<compile_context>
chip_gen: v6e
topology: v6e:2x2x1
jax: 0.10.0
libtpu: 0.0.40
codegen_flags: <defaults>
</compile_context>

<pallas_src>
import functools

import jax
import jax.numpy as jnp
from jax.experimental import pallas as pl
from jax.experimental.pallas import tpu as pltpu

# Gaudi's fp8_143 saturates at 240 (OCP float8_e4m3fn saturates at 448).
HPU_E4M3_MAX = 240.0


def _pick_tile(dim, target):
    """Use `target` if it divides `dim` evenly, otherwise fall back to the
    full dimension (kept whole-dim so the (8,128) block rule is satisfied).
    # TODO(synk): no ragged-tile padding path; non-divisible huge dims fall
    # back to an untiled dimension."""
    if dim <= target or dim % target != 0:
        return dim
    return target


# ---------------------------------------------------------------------------
# 1) quantize-to-fp8(e4m3, HPU clamp) + unscaled amax, row-tiled
# ---------------------------------------------------------------------------

def _quantize_kernel(scale_ref, x_ref, xq_ref, amax_ref):
    i = pl.program_id(0)
    x = x_ref[...].astype(jnp.float32)                       # (tr, C)

    # amax of the *unscaled* tensor (matches cast_to_fp8_hybrid's amax output),
    # max-accumulated across row tiles into the resident (1,1) output block.
    tile_amax = jnp.max(jnp.abs(x), axis=(0, 1), keepdims=True)

    @pl.when(i == 0)
    def _():
        amax_ref[...] = jnp.zeros_like(amax_ref)

    amax_ref[...] = jnp.maximum(amax_ref[...], tile_amax)

    s = scale_ref[0]
    # TODO(synk): HPU fp8_143 rounding/format differs slightly from OCP
    # float8_e4m3fn; we clamp at 240 and use e4m3fn round-to-nearest-even.
    xq = jnp.clip(x * s, -HPU_E4M3_MAX, HPU_E4M3_MAX)
    xq_ref[...] = xq.astype(jnp.float8_e4m3fn).astype(xq_ref.dtype)


def _quantize_e4m3(x2d, scale, *, row_tile=256):
    rows, cols = x2d.shape
    tr = _pick_tile(rows, row_tile)
    xq, amax = pl.pallas_call(
        _quantize_kernel,
        grid=(rows // tr,),
        in_specs=[
            pl.BlockSpec(memory_space=pltpu.MemorySpace.SMEM),   # scale (1,)
            pl.BlockSpec((tr, cols), lambda i: (i, 0)),          # rows of x
        ],
        out_specs=(
            pl.BlockSpec((tr, cols), lambda i: (i, 0)),          # quantized rows
            pl.BlockSpec((1, 1), lambda i: (0, 0)),              # amax accumulator
        ),
        out_shape=(
            jax.ShapeDtypeStruct((rows, cols), jnp.bfloat16),
            jax.ShapeDtypeStruct((1, 1), jnp.float32),
        ),
        compiler_params=pltpu.CompilerParams(
            dimension_semantics=("arbitrary",)),   # amax accumulates over rows
    )(scale.reshape(1).astype(jnp.float32), x2d)
    return xq, amax


# ---------------------------------------------------------------------------
# 2) tiled matmul on the quantized (bf16) operands with f32 accumulator
# ---------------------------------------------------------------------------

def _fp8_matmul_kernel(inv_scale_ref, xq_ref, wq_ref, out_ref, acc_ref):
    @pl.when(pl.program_id(2) == 0)
    def _():
        acc_ref[...] = jnp.zeros_like(acc_ref)

    acc_ref[...] += jnp.dot(xq_ref[...], wq_ref[...],
                            preferred_element_type=jnp.float32)

    @pl.when(pl.program_id(2) == pl.num_programs(2) - 1)
    def _():
        # fp8_gemm_v2(..., 1/s_in, 1/s_w): combined inverse scale on the f32 acc.
        out_ref[...] = (acc_ref[...] * inv_scale_ref[0]).astype(out_ref.dtype)


def _fp8_matmul(xq, wq_t, inv_scale, out_dtype, *, tm=256, tn=256, tk=512):
    M, K = xq.shape
    K2, N = wq_t.shape
    assert K == K2
    tm = _pick_tile(M, tm)
    tn = _pick_tile(N, tn)
    tk = _pick_tile(K, tk)
    return pl.pallas_call(
        _fp8_matmul_kernel,
        grid=(M // tm, N // tn, K // tk),
        in_specs=[
            pl.BlockSpec(memory_space=pltpu.MemorySpace.SMEM),   # inv scale (1,)
            pl.BlockSpec((tm, tk), lambda i, j, k: (i, k)),      # x tiles
            pl.BlockSpec((tk, tn), lambda i, j, k: (k, j)),      # w.T tiles
        ],
        out_specs=pl.BlockSpec((tm, tn), lambda i, j, k: (i, j)),
        out_shape=jax.ShapeDtypeStruct((M, N), out_dtype),
        scratch_shapes=[pltpu.VMEM((tm, tn), jnp.float32)],
        compiler_params=pltpu.CompilerParams(
            dimension_semantics=("parallel", "parallel", "arbitrary")),
    )(inv_scale.reshape(1).astype(jnp.float32), xq, wq_t)


# ---------------------------------------------------------------------------
# Functional FP8Linear.forward
# ---------------------------------------------------------------------------

def fp8_linear_forward(x, weight, input_amax_history, weight_amax_history,
                       input_scale_e4m3, weight_scale_e4m3,
                       *, row_tile=256, tm=256, tn=256, tk=512):
    """Returns (out[A,B,N], new_input_amax_history, new_weight_amax_history).

    (grad_* / e5m2 state is only used in backward, which is not implemented.)
    """
    A, B, C = x.shape
    N = weight.shape[0]
    M = A * B
    x2d = x.reshape(M, C)

    # Quantize once outside the hot matmul loop (weight quant / amax is not
    # redone per output tile); quantized values kept in the scaled fp8 domain,
    # stored as bf16 (exact container for e4m3, fast MXU input).
    xq, in_amax = _quantize_e4m3(x2d, input_scale_e4m3, row_tile=row_tile)
    wq, w_amax = _quantize_e4m3(weight, weight_scale_e4m3, row_tile=row_tile)

    # One-time transpose so the matmul contracts (M,K)x(K,N): output N is the
    # lane dimension and no per-tile XLU transpose is needed in the kernel.
    # TODO(synk): could be fused into the weight-quantize kernel (transposed
    # out_spec + in-kernel XLU transpose) to save one bf16 HBM round-trip.
    wq_t = wq.T                                              # (C, N) bf16

    inv_scale = ((1.0 / input_scale_e4m3.astype(jnp.float32)) *
                 (1.0 / weight_scale_e4m3.astype(jnp.float32)))

    out2d = _fp8_matmul(xq, wq_t, inv_scale, x.dtype, tm=tm, tn=tn, tk=tk)

    # update_amax_history: hist[1:] = hist[:-1]; hist[0] = amax
    new_in_hist = jnp.concatenate([in_amax.reshape(1), input_amax_history[:-1]])
    new_w_hist = jnp.concatenate([w_amax.reshape(1), weight_amax_history[:-1]])

    return out2d.reshape(A, B, N), new_in_hist, new_w_hist


if __name__ == "__main__":
    key = jax.random.PRNGKey(0)
    kx, kw = jax.random.split(key)

    # Small shapes consistent with the module: input (A, B, C), weight (N, C).
    # Chosen so every grid axis has > 1 step with the test tile sizes below.
    A, B, C, N = 2, 128, 512, 256            # M = A*B = 256
    x = jax.random.normal(kx, (A, B, C), dtype=jnp.float32)
    weight = jax.random.normal(kw, (N, C), dtype=jnp.float32) * 0.05

    # Deterministic module state (FP8Linear.__init__): zero histories, unit scales.
    amax_history_len = 1024                  # 1024 / data_parallel_world_size(=1)
    input_amax_history = jnp.zeros((amax_history_len,), jnp.float32)
    weight_amax_history = jnp.zeros((amax_history_len,), jnp.float32)
    input_scale_e4m3 = jnp.array(1.0, jnp.float32)
    weight_scale_e4m3 = jnp.array(1.0, jnp.float32)

    fwd = jax.jit(functools.partial(fp8_linear_forward,
                                    row_tile=128, tm=128, tn=128, tk=256))
    out, new_in_hist, new_w_hist = fwd(
        x, weight, input_amax_history, weight_amax_history,
        input_scale_e4m3, weight_scale_e4m3)
    jax.block_until_ready((out, new_in_hist, new_w_hist))

    # Lightweight reference check (same fp8 emulation in plain JAX; scales = 1).
    xq = jnp.clip(x.reshape(A * B, C), -HPU_E4M3_MAX, HPU_E4M3_MAX)
    wq = jnp.clip(weight, -HPU_E4M3_MAX, HPU_E4M3_MAX)
    xq = xq.astype(jnp.float8_e4m3fn).astype(jnp.float32)
    wq = wq.astype(jnp.float8_e4m3fn).astype(jnp.float32)
    ref = (xq @ wq.T).reshape(A, B, N)

    assert out.shape == (A, B, N)
    assert out.dtype == x.dtype
    assert jnp.allclose(out, ref, rtol=1e-2, atol=1e-2)
    assert jnp.allclose(new_in_hist[0], jnp.max(jnp.abs(x)), rtol=1e-6)
    assert jnp.allclose(new_w_hist[0], jnp.max(jnp.abs(weight)), rtol=1e-6)
    assert float(new_in_hist[1]) == 0.0      # shifted history
    assert new_in_hist.shape == (amax_history_len,)

    print("KERNEL_OK")
</pallas_src>

<mosaic_0001>
module attributes {stable_mosaic.version = 11 : i64} {
  func.func @_quantize_kernel(%arg0: i32, %arg1: memref<1xf32, #tpu.memory_space<smem>>, %arg2: memref<128x512xf32, #tpu.memory_space<vmem>>, %arg3: memref<128x512xbf16, #tpu.memory_space<vmem>>, %arg4: memref<1x1xf32, #tpu.memory_space<vmem>>) attributes {dimension_semantics = [#tpu.dimension_semantics<arbitrary>], iteration_bounds = array<i64: 2>, scalar_prefetch = 0 : i64, scratch_operands = 0 : i64, tpu.core_type = #tpu.core_type<tc>, window_params = [{transform_indices = @transform_0, window_bounds = array<i64: 1>}, {transform_indices = @transform_1, window_bounds = array<i64: 128, 512>}, {transform_indices = @transform_2, window_bounds = array<i64: 128, 512>}, {pipeline_mode = #tpu.pipeline_mode<synchronous>, transform_indices = @transform_3, window_bounds = array<i64: 1, 1>}]} {
    %c0 = arith.constant 0 : index
    %c0_0 = arith.constant 0 : index
    %0 = vector.load %arg2[%c0, %c0_0] : memref<128x512xf32, #tpu.memory_space<vmem>>, vector<128x512xf32>
    %1 = math.absf %0 : vector<128x512xf32>
    %2 = vector.shape_cast %1 : vector<128x512xf32> to vector<1x128x512xf32>
    %cst = arith.constant dense<0xFF800000> : vector<1xf32>
    %3 = vector.multi_reduction <maximumf>, %2, %cst [1, 2] : vector<1x128x512xf32> to vector<1xf32>
    %4 = vector.shape_cast %3 : vector<1xf32> to vector<1x1x1xf32>
    %5 = vector.extract %4[0, 0, 0] : f32 from vector<1x1x1xf32>
    %6 = vector.broadcast %5 : f32 to vector<1x1xf32>
    %c0_i32 = arith.constant 0 : i32
    %7 = arith.cmpi eq, %arg0, %c0_i32 : i32
    %8 = arith.extui %7 : i1 to i32
    %c0_i32_1 = arith.constant 0 : i32
    %9 = arith.cmpi ne, %8, %c0_i32_1 : i32
    scf.if %9 {
      %cst_11 = arith.constant 0.000000e+00 : f32
      %23 = vector.broadcast %cst_11 : f32 to vector<1x1xf32>
      %c0_12 = arith.constant 0 : index
      %c0_13 = arith.constant 0 : index
      %24 = vector.load %arg4[%c0_12, %c0_13] : memref<1x1xf32, #tpu.memory_space<vmem>>, vector<1x1xf32>
      tpu.vector_store %arg4[%c0_12, %c0_13], %23 {strides = array<i32>} : memref<1x1xf32, #tpu.memory_space<vmem>>, vector<1x1xf32>,
    } else {
    }
    %c0_2 = arith.constant 0 : index
    %c0_3 = arith.constant 0 : index
    %10 = vector.load %arg4[%c0_2, %c0_3] : memref<1x1xf32, #tpu.memory_space<vmem>>, vector<1x1xf32>
    %11 = arith.maximumf %10, %6 : vector<1x1xf32>
    %c0_4 = arith.constant 0 : index
    %c0_5 = arith.constant 0 : index
    %12 = vector.load %arg4[%c0_4, %c0_5] : memref<1x1xf32, #tpu.memory_space<vmem>>, vector<1x1xf32>
    tpu.vector_store %arg4[%c0_4, %c0_5], %11 {strides = array<i32>} : memref<1x1xf32, #tpu.memory_space<vmem>>, vector<1x1xf32>,
    %c0_6 = arith.constant 0 : index
    %13 = memref.load %arg1[%c0_6] : memref<1xf32, #tpu.memory_space<smem>>
    %14 = vector.broadcast %13 : f32 to vector<128x512xf32>
    %15 = arith.mulf %0, %14 : vector<128x512xf32>
    %cst_7 = arith.constant -2.400000e+02 : f32
    %cst_8 = arith.constant 2.400000e+02 : f32
    %16 = vector.broadcast %cst_7 : f32 to vector<128x512xf32>
    %17 = arith.maximumf %16, %15 : vector<128x512xf32>
    %18 = vector.broadcast %cst_8 : f32 to vector<128x512xf32>
    %19 = arith.minimumf %18, %17 : vector<128x512xf32>
    %20 = arith.truncf %19 : vector<128x512xf32> to vector<128x512xf8E4M3FN>
    %21 = arith.extf %20 : vector<128x512xf8E4M3FN> to vector<128x512xbf16>
    %c0_9 = arith.constant 0 : index
    %c0_10 = arith.constant 0 : index
    %22 = vector.load %arg3[%c0_9, %c0_10] : memref<128x512xbf16, #tpu.memory_space<vmem>>, vector<128x512xbf16>
    tpu.vector_store %arg3[%c0_9, %c0_10], %21 {strides = array<i32>} : memref<128x512xbf16, #tpu.memory_space<vmem>>, vector<128x512xbf16>,
    return
  }
  func.func @transform_0(%arg0: i32) -> i32 {
    %c0_i32 = arith.constant 0 : i32
    %c0_i32_0 = arith.constant 0 : i32
    return %c0_i32 : i32
  }
  func.func @transform_1(%arg0: i32) -> (i32, i32) {
    %c0_i32 = arith.constant 0 : i32
    %c0_i32_0 = arith.constant 0 : i32
    return %arg0, %c0_i32 : i32, i32
  }
  func.func @transform_2(%arg0: i32) -> (i32, i32) {
    %c0_i32 = arith.constant 0 : i32
    %c0_i32_0 = arith.constant 0 : i32
    return %arg0, %c0_i32 : i32, i32
  }
  func.func @transform_3(%arg0: i32) -> (i32, i32) {
    %c0_i32 = arith.constant 0 : i32
    %c0_i32_0 = arith.constant 0 : i32
    %c0_i32_1 = arith.constant 0 : i32
    return %c0_i32, %c0_i32_0 : i32, i32
  }
}

module attributes {stable_mosaic.version = 11 : i64} {
  func.func @_fp8_matmul_kernel(%arg0: i32, %arg1: i32, %arg2: i32, %arg3: memref<1xf32, #tpu.memory_space<smem>>, %arg4: memref<128x256xbf16, #tpu.memory_space<vmem>>, %arg5: memref<256x128xbf16, #tpu.memory_space<vmem>>, %arg6: memref<128x128xf32, #tpu.memory_space<vmem>>, %arg7: memref<128x128xf32, #tpu.memory_space<vmem>>) attributes {dimension_semantics = [#tpu.dimension_semantics<parallel>, #tpu.dimension_semantics<parallel>, #tpu.dimension_semantics<arbitrary>], iteration_bounds = array<i64: 2, 2, 2>, scalar_prefetch = 0 : i64, scratch_operands = 1 : i64, tpu.core_type = #tpu.core_type<tc>, window_params = [{transform_indices = @transform_0, window_bounds = array<i64: 1>}, {transform_indices = @transform_1, window_bounds = array<i64: 128, 256>}, {transform_indices = @transform_2, window_bounds = array<i64: 256, 128>}, {transform_indices = @transform_3, window_bounds = array<i64: 128, 128>}]} {
    %c0_i32 = arith.constant 0 : i32
    %0 = arith.cmpi eq, %arg2, %c0_i32 : i32
    %1 = arith.extui %0 : i1 to i32
    %c0_i32_0 = arith.constant 0 : i32
    %2 = arith.cmpi ne, %1, %c0_i32_0 : i32
    scf.if %2 {
      %cst_9 = arith.constant 0.000000e+00 : f32
      %12 = vector.broadcast %cst_9 : f32 to vector<128x128xf32>
      %c0_10 = arith.constant 0 : index
      %c0_11 = arith.constant 0 : index
      %13 = vector.load %arg7[%c0_10, %c0_11] : memref<128x128xf32, #tpu.memory_space<vmem>>, vector<128x128xf32>
      tpu.vector_store %arg7[%c0_10, %c0_11], %12 {strides = array<i32>} : memref<128x128xf32, #tpu.memory_space<vmem>>, vector<128x128xf32>,
    } else {
    }
    %c0 = arith.constant 0 : index
    %c0_1 = arith.constant 0 : index
    %3 = vector.load %arg7[%c0, %c0_1] : memref<128x128xf32, #tpu.memory_space<vmem>>, vector<128x128xf32>
    %c0_2 = arith.constant 0 : index
    %c0_3 = arith.constant 0 : index
    %4 = vector.load %arg4[%c0_2, %c0_3] : memref<128x256xbf16, #tpu.memory_space<vmem>>, vector<128x256xbf16>
    %c0_4 = arith.constant 0 : index
    %c0_5 = arith.constant 0 : index
    %5 = vector.load %arg5[%c0_4, %c0_5] : memref<256x128xbf16, #tpu.memory_space<vmem>>, vector<256x128xbf16>
    %cst = arith.constant dense<0.000000e+00> : vector<128x128xf32>
    %6 = tpu.matmul %4, %5, %cst {dimension_numbers = #tpu.dot_dimension_numbers<[1], [0], [0], [1], [0, 0, 1, 1], [], []>} : vector<128x256xbf16>, vector<256x128xbf16>, vector<128x128xf32> -> vector<128x128xf32>
    %7 = arith.addf %3, %6 : vector<128x128xf32>
    %c0_6 = arith.constant 0 : index
    %c0_7 = arith.constant 0 : index
    %8 = vector.load %arg7[%c0_6, %c0_7] : memref<128x128xf32, #tpu.memory_space<vmem>>, vector<128x128xf32>
    tpu.vector_store %arg7[%c0_6, %c0_7], %7 {strides = array<i32>} : memref<128x128xf32, #tpu.memory_space<vmem>>, vector<128x128xf32>,
    %c1_i32 = arith.constant 1 : i32
    %9 = arith.cmpi eq, %arg2, %c1_i32 : i32
    %10 = arith.extui %9 : i1 to i32
    %c0_i32_8 = arith.constant 0 : i32
    %11 = arith.cmpi ne, %10, %c0_i32_8 : i32
    scf.if %11 {
      %c0_9 = arith.constant 0 : index
      %c0_10 = arith.constant 0 : index
      %12 = vector.load %arg7[%c0_9, %c0_10] : memref<128x128xf32, #tpu.memory_space<vmem>>, vector<128x128xf32>
      %c0_11 = arith.constant 0 : index
      %13 = memref.load %arg3[%c0_11] : memref<1xf32, #tpu.memory_space<smem>>
      %14 = vector.broadcast %13 : f32 to vector<128x128xf32>
      %15 = arith.mulf %12, %14 : vector<128x128xf32>
      %c0_12 = arith.constant 0 : index
      %c0_13 = arith.constant 0 : index
      %16 = vector.load %arg6[%c0_12, %c0_13] : memref<128x128xf32, #tpu.memory_space<vmem>>, vector<128x128xf32>
      tpu.vector_store %arg6[%c0_12, %c0_13], %15 {strides = array<i32>} : memref<128x128xf32, #tpu.memory_space<vmem>>, vector<128x128xf32>,
    } else {
    }
    return
  }
  func.func @transform_0(%arg0: i32, %arg1: i32, %arg2: i32) -> i32 {
    %c0_i32 = arith.constant 0 : i32
    %c0_i32_0 = arith.constant 0 : i32
    return %c0_i32 : i32
  }
  func.func @transform_1(%arg0: i32, %arg1: i32, %arg2: i32) -> (i32, i32) {
    %c0_i32 = arith.constant 0 : i32
    return %arg0, %arg2 : i32, i32
  }
  func.func @transform_2(%arg0: i32, %arg1: i32, %arg2: i32) -> (i32, i32) {
    %c0_i32 = arith.constant 0 : i32
    return %arg2, %arg1 : i32, i32
  }
  func.func @transform_3(%arg0: i32, %arg1: i32, %arg2: i32) -> (i32, i32) {
    %c0_i32 = arith.constant 0 : i32
    return %arg0, %arg1 : i32, i32
  }
}

module attributes {stable_mosaic.version = 11 : i64} {
  func.func @_quantize_kernel(%arg0: i32, %arg1: memref<1xf32, #tpu.memory_space<smem>>, %arg2: memref<128x512xf32, #tpu.memory_space<vmem>>, %arg3: memref<128x512xbf16, #tpu.memory_space<vmem>>, %arg4: memref<1x1xf32, #tpu.memory_space<vmem>>) attributes {dimension_semantics = [#tpu.dimension_semantics<arbitrary>], iteration_bounds = array<i64: 2>, scalar_prefetch = 0 : i64, scratch_operands = 0 : i64, tpu.core_type = #tpu.core_type<tc>, window_params = [{transform_indices = @transform_0, window_bounds = array<i64: 1>}, {transform_indices = @transform_1, window_bounds = array<i64: 128, 512>}, {transform_indices = @transform_2, window_bounds = array<i64: 128, 512>}, {pipeline_mode = #tpu.pipeline_mode<synchronous>, transform_indices = @transform_3, window_bounds = array<i64: 1, 1>}]} {
    %c0 = arith.constant 0 : index
    %c0_0 = arith.constant 0 : index
    %0 = vector.load %arg2[%c0, %c0_0] : memref<128x512xf32, #tpu.memory_space<vmem>>, vector<128x512xf32>
    %1 = math.absf %0 : vector<128x512xf32>
    %2 = vector.shape_cast %1 : vector<128x512xf32> to vector<1x128x512xf32>
    %cst = arith.constant dense<0xFF800000> : vector<1xf32>
    %3 = vector.multi_reduction <maximumf>, %2, %cst [1, 2] : vector<1x128x512xf32> to vector<1xf32>
    %4 = vector.shape_cast %3 : vector<1xf32> to vector<1x1x1xf32>
    %5 = vector.extract %4[0, 0, 0] : f32 from vector<1x1x1xf32>
    %6 = vector.broadcast %5 : f32 to vector<1x1xf32>
    %c0_i32 = arith.constant 0 : i32
    %7 = arith.cmpi eq, %arg0, %c0_i32 : i32
    %8 = arith.extui %7 : i1 to i32
    %c0_i32_1 = arith.constant 0 : i32
    %9 = arith.cmpi ne, %8, %c0_i32_1 : i32
    scf.if %9 {
      %cst_11 = arith.constant 0.000000e+00 : f32
      %23 = vector.broadcast %cst_11 : f32 to vector<1x1xf32>
      %c0_12 = arith.constant 0 : index
      %c0_13 = arith.constant 0 : index
      %24 = vector.load %arg4[%c0_12, %c0_13] : memref<1x1xf32, #tpu.memory_space<vmem>>, vector<1x1xf32>
      tpu.vector_store %arg4[%c0_12, %c0_13], %23 {strides = array<i32>} : memref<1x1xf32, #tpu.memory_space<vmem>>, vector<1x1xf32>,
    } else {
    }
    %c0_2 = arith.constant 0 : index
    %c0_3 = arith.constant 0 : index
    %10 = vector.load %arg4[%c0_2, %c0_3] : memref<1x1xf32, #tpu.memory_space<vmem>>, vector<1x1xf32>
    %11 = arith.maximumf %10, %6 : vector<1x1xf32>
    %c0_4 = arith.constant 0 : index
    %c0_5 = arith.constant 0 : index
    %12 = vector.load %arg4[%c0_4, %c0_5] : memref<1x1xf32, #tpu.memory_space<vmem>>, vector<1x1xf32>
    tpu.vector_store %arg4[%c0_4, %c0_5], %11 {strides = array<i32>} : memref<1x1xf32, #tpu.memory_space<vmem>>, vector<1x1xf32>,
    %c0_6 = arith.constant 0 : index
    %13 = memref.load %arg1[%c0_6] : memref<1xf32, #tpu.memory_space<smem>>
    %14 = vector.broadcast %13 : f32 to vector<128x512xf32>
    %15 = arith.mulf %0, %14 : vector<128x512xf32>
    %cst_7 = arith.constant -2.400000e+02 : f32
    %cst_8 = arith.constant 2.400000e+02 : f32
    %16 = vector.broadcast %cst_7 : f32 to vector<128x512xf32>
    %17 = arith.maximumf %16, %15 : vector<128x512xf32>
    %18 = vector.broadcast %cst_8 : f32 to vector<128x512xf32>
    %19 = arith.minimumf %18, %17 : vector<128x512xf32>
    %20 = arith.truncf %19 : vector<128x512xf32> to vector<128x512xf8E4M3FN>
    %21 = arith.extf %20 : vector<128x512xf8E4M3FN> to vector<128x512xbf16>
    %c0_9 = arith.constant 0 : index
    %c0_10 = arith.constant 0 : index
    %22 = vector.load %arg3[%c0_9, %c0_10] : memref<128x512xbf16, #tpu.memory_space<vmem>>, vector<128x512xbf16>
    tpu.vector_store %arg3[%c0_9, %c0_10], %21 {strides = array<i32>} : memref<128x512xbf16, #tpu.memory_space<vmem>>, vector<128x512xbf16>,
    return
  }
  func.func @transform_0(%arg0: i32) -> i32 {
    %c0_i32 = arith.constant 0 : i32
    %c0_i32_0 = arith.constant 0 : i32
    return %c0_i32 : i32
  }
  func.func @transform_1(%arg0: i32) -> (i32, i32) {
    %c0_i32 = arith.constant 0 : i32
    %c0_i32_0 = arith.constant 0 : i32
    return %arg0, %c0_i32 : i32, i32
  }
  func.func @transform_2(%arg0: i32) -> (i32, i32) {
    %c0_i32 = arith.constant 0 : i32
    %c0_i32_0 = arith.constant 0 : i32
    return %arg0, %c0_i32 : i32, i32
  }
  func.func @transform_3(%arg0: i32) -> (i32, i32) {
    %c0_i32 = arith.constant 0 : i32
    %c0_i32_0 = arith.constant 0 : i32
    %c0_i32_1 = arith.constant 0 : i32
    return %c0_i32, %c0_i32_0 : i32, i32
  }
}

</mosaic_0001>

<bundles_post_ra>
// kernel: fp8_linear_forward.5
= control target key start
LH: loop header
LB: loop body
LE: loop exit
PB: predicated region body
PF: predicated region fallthrough
CT: control target
= control target key end

     0   :  { %s1914_s0 = inlined_call_operand.<no memory space> [shape: f32[1], index: 0, kind: input, shape index: {}]   ;;  %s1915_s1 = inlined_call_operand.vmem [shape: bf16[256,512], index: 1, kind: input, shape index: {}]   ;;  %s1916_s2 = inlined_call_operand.vmem [shape: bf16[512,256], index: 2, kind: input, shape index: {}]   ;;  %s1917_s3 = inlined_call_operand.hbm [shape: f32[256,256], index: 3, kind: output, shape index: {}]  }
   0x1   :  { %1921 = sst [smem:[#allocation13_spill]] %s1917_s3 }
   0x2   :  { %8 = sst [smem:[#allocation3]] %s1914_s0 }
   0x3   :  { %9 = vsyncpa [#allocation7], 0 }
   0x4   :  { %11 = vsyncpa [#allocation7 + $0x1], 0  ;;  %s1531_s14 = smov 0   ;;  %s1533_s15 = smov 0  }
   0x5   :  { %s1535_s16 = smov 0   ;;  %s1537_s17 = smov 0  }
   0x6   :  { %s1539_s18 = smov 0   ;;  %s1541_s19 = smov 0  }
   0x7   :  { %s1543_s20 = smov 0   ;;  %s1545_s21 = smov 0  }
   0x8   :  { %s1547_s22 = smov 0   ;;  %s1549_s0 = smov 0  }
   0x9   :  { %s1551_s23 = smov 0   ;;  %s1553_s24 = smov 0  }
   0xa   :  { %s1555_s25 = smov 0   ;;  %s1557_s26 = smov 0  }
   0xb LB: > { %1922 = sst [smem:[#allocation9_spill]] %s1481_s22  ;;  %s29_s29 = sadd.s32 1, %s1489_s23  ;;  %s1501_s26 = sphi %s1557_s26, %s17_s26   ;;  %s1497_s25 = sphi %s1555_s25, %s1950_s25   ;;  %s1493_s24 = sphi %s1553_s24, %s1949_s24   ;;  %s1489_s23 = sphi %s1551_s23, %s1948_s23   ;;  %s1485_s0 = sphi %s1549_s0, %s1947_s0   ;;  %s1481_s22 = sphi %s1547_s22, %s1946_s22   ;;  %s1477_s21 = sphi %s1545_s21, %s1945_s21   ;;  %s1473_s20 = sphi %s1543_s20, %s1944_s20   ;;  %s1469_s19 = sphi %s1541_s19, %s1943_s19   ;;  %s1465_s18 = sphi %s1539_s18, %s1942_s18   ;;  %s1461_s17 = sphi %s1537_s17, %s1941_s17   ;;  %s1457_s16 = sphi %s1535_s16, %s1940_s16   ;;  %s1453_s15 = sphi %s1533_s15, %s1939_s15   ;;  %s1449_s14 = sphi %s1531_s14, %s1938_s14  }
   0xc   : > { %1923 = sst [smem:[#allocation10_spill]] %s1485_s0  ;;  %s32_s30 = sadd.s32 1, %s1493_s24 }
   0xd   : > { %p30_p0 = scmp.ge.s32.totalorder %s29_s29, 2  ;;  %s36_s4 = sadd.s32 1, %s1497_s25 }
   0xe   : > { %s66_s5 = sadd.s32 1, %s1473_s20  ;;  %p73_p1 = scmp.ne.s32.totalorder %s1473_s20, %s1469_s19 }
   0xf   : > { %s1952_s29 = smov (%p30_p0, %s29_s29), 0  ;;  %s1954_s30 = smov (!%p30_p0, %s32_s30), %s1493_s24 }
  0x10   : > { %1924 = sst [smem:[#allocation11_spill]] %s1952_s29  ;;  %s62_s6 = ssub.s32 %s1489_s23, %s1952_s29 }
  0x11   : > { %p74_p2 = scmp.eq.s32.totalorder %s1501_s26, 0  ;;  %p34_p3 = scmp.ge.s32.totalorder %s1954_s30, 2 }
  0x12   : > { %s94_s7 = sadd.s32 1, %s1465_s18  ;;  %p101_p5 = scmp.ne.s32.totalorder %s1465_s18, %s1461_s17 }
  0x13   : > { %p1616_p4 = por %p74_p2, %p73_p1  ;;  %s1956_s30 = smov (%p34_p3, %s1954_s30), 0 }
  0x14   : > { %1926 = sst [smem:[#allocation12_spill]] %s1956_s30  ;;  %s1958_s4 = smov (!%p34_p3, %s36_s4), %s1497_s25 }
  0x15   : > { %s90_s9 = ssub.s32 %s1493_s24, %s1956_s30  ;;  %p1627_p6 = por %p101_p5, %p74_p2 }
  0x16   : > { %p38_p7 = scmp.ge.s32.totalorder %s1958_s4, 2  ;;  %s91_s11 = sor.u32 %s90_s9, %s62_s6 }
  0x17   : > { %p92_p8 = scmp.eq.s32.totalorder %s91_s11, 0  ;;  %s122_s12 = sadd.s32 1, %s1457_s16 }
  0x18   : > { %s1960_s4 = smov (%p38_p7, %s1958_s4), 0  ;;  %p132_p9 = scmp.ne.s32.totalorder %s1457_s16, %s1453_s15 }
  0x19   : > { %s1635_s13 = scalar_select %p92_p8, %s1465_s18, %s94_s7  }
  0x1a   : > { %s61_s28 = ssub.s32 %s1497_s25, %s1960_s4  ;;  %s1928_s29 = sadd.s32 4294967295, %s1501_s26  }
  0x1b   : > { %s63_s27 = sor.u32 %s62_s6, %s61_s28  ;;  %s119_s30 = sor.u32 %s90_s9, %s61_s28 }
  0x1c   : > { %p64_p10 = scmp.eq.s32.totalorder %s63_s27, 0  ;;  %p120_p11 = scmp.eq.s32.totalorder %s119_s30, 0 }
  0x1d   : > { %p133_p12 = scmp.eq.s32.totalorder %s1928_s29, 7  ;;  %p138_p13 = scmp.ne.s32.totalorder %s1453_s15, %s1449_s14 }
  0x1e   : > { %s1646_s3 = scalar_select %p64_p10, %s1473_s20, %s66_s5  }
  0x1f   : > { %s1649_s22 = scalar_select %p120_p11, %s1457_s16, %s122_s12  }
  0x20   : > { %p1651_p0 = por %p133_p12, %p132_p9  ;;  %s1930_s0 = sadd.s32 4294967294, %s1501_s26  }
  0x21   : > { %p139_p1 = scmp.eq.s32.totalorder %s1930_s0, 7  ;;  %p1061_p3 = scmp.ge.s32.totalorder %s1501_s26, 8 }
  0x23   : > { %p1657_p2 = por %p139_p1, %p138_p13  ;;  %158 = sbr.rel (%p1061_p3) target bundleno = 82 (0x52), region = 20 }
  0x28   : > { %161 = sbr.rel (!%p1616_p4) target bundleno = 55 (0x37), region = 24  ;;  %s163_s27 = sand.u32 (%p1616_p4), 1, %s1473_s20  }
  0x29   : > { %s1064_s28 = sshll.u32 (%p1616_p4), %s1489_s23, 1  ;;  %s1062_s29 = sshll.u32 (%p1616_p4), %s163_s27, 7 }
  0x2a   : > { %s1115_s30 = sshll.u32 (%p1616_p4), %s1497_s25, 6  ;;  %s165_s8 = scalar_lea.vmem (%p1616_p4), [#allocation4], %s1062_s29 }
  0x2b   : > { %s169_s5 = sadd.s32 (%p1616_p4), %s1115_s30, %s1064_s28 }
  0x2c   : > { %s1066_s6 = sshll.u32 (%p1616_p4), %s169_s5, 2 }
  0x2d   : > { %s1670_s12 = scalar_lea.vmem %s1915_s1, %s1066_s6 }
  0x2e   : > { %v230_v0 = vld [vmem:[%s1670_s12] sm:$0xff]  ;;  %v232_v1 = vld [vmem:[%s1670_s12 + $0x10] sm:$0xff] }
  0x2f   : > { %v234_v2 = vld [vmem:[%s1670_s12 + $0x20] sm:$0xff]  ;;  %231 = vst [vmem:[%s165_s8] sm:$0xff] %v230_v0  ;;  %233 = vst [vmem:[%s165_s8 + $0x8] sm:$0xff] %v232_v1  ;;  %v236_v3 = vld [vmem:[%s1670_s12 + $0x30] sm:$0xff] }
  0x30   : > { %235 = vst [vmem:[%s165_s8 + $0x10] sm:$0xff] %v234_v2  ;;  %v238_v4 = vld [vmem:[%s1670_s12 + $0x40] sm:$0xff]  ;;  %v240_v5 = vld [vmem:[%s1670_s12 + $0x50] sm:$0xff]  ;;  %237 = vst [vmem:[%s165_s8 + $0x18] sm:$0xff] %v236_v3 }
  0x31   : > { %239 = vst [vmem:[%s165_s8 + $0x20] sm:$0xff] %v238_v4  ;;  %241 = vst [vmem:[%s165_s8 + $0x28] sm:$0xff] %v240_v5  ;;  %v242_v6 = vld [vmem:[%s1670_s12 + $0x60] sm:$0xff]  ;;  %v244_v7 = vld [vmem:[%s1670_s12 + $0x70] sm:$0xff] }
  0x32   : > { %v246_v8 = vld [vmem:[%s1670_s12 + $0x80] sm:$0xff]  ;;  %243 = vst [vmem:[%s165_s8 + $0x30] sm:$0xff] %v242_v6  ;;  %245 = vst [vmem:[%s165_s8 + $0x38] sm:$0xff] %v244_v7  ;;  %v248_v9 = vld [vmem:[%s1670_s12 + $0x90] sm:$0xff] }
  0x33   : > { %247 = vst [vmem:[%s165_s8 + $0x40] sm:$0xff] %v246_v8  ;;  %v250_v10 = vld [vmem:[%s1670_s12 + $0xa0] sm:$0xff]  ;;  %v252_v11 = vld [vmem:[%s1670_s12 + $0xb0] sm:$0xff]  ;;  %249 = vst [vmem:[%s165_s8 + $0x48] sm:$0xff] %v248_v9 }
  0x34   : > { %251 = vst [vmem:[%s165_s8 + $0x50] sm:$0xff] %v250_v10  ;;  %253 = vst [vmem:[%s165_s8 + $0x58] sm:$0xff] %v252_v11  ;;  %v254_v12 = vld [vmem:[%s1670_s12 + $0xc0] sm:$0xff]  ;;  %v256_v13 = vld [vmem:[%s1670_s12 + $0xd0] sm:$0xff] }
  0x35   : > { %v258_v14 = vld [vmem:[%s1670_s12 + $0xe0] sm:$0xff]  ;;  %255 = vst [vmem:[%s165_s8 + $0x60] sm:$0xff] %v254_v12  ;;  %257 = vst [vmem:[%s165_s8 + $0x68] sm:$0xff] %v256_v13  ;;  %v260_v15 = vld [vmem:[%s1670_s12 + $0xf0] sm:$0xff] }
  0x36   : > { %259 = vst [vmem:[%s165_s8 + $0x70] sm:$0xff] %v258_v14  ;;  %261 = vst [vmem:[%s165_s8 + $0x78] sm:$0xff] %v260_v15 }
  0x37 PF: > { %267 = sbr.rel (!%p1627_p6) target bundleno = 82 (0x52), region = 62  ;;  %s269_s27 = sand.u32 (%p1627_p6), 1, %s1465_s18  }
  0x38   : > { %s1116_s28 = sshll.u32 (%p1627_p6), %s1489_s23, 6  ;;  %s1067_s29 = sshll.u32 (%p1627_p6), %s269_s27, 7 }
  0x39   : > { %s274_s30 = sadd.s32 (%p1627_p6), %s1493_s24, %s1116_s28  ;;  %s1701_s10 = scalar_lea.vmem (%p1627_p6), [#allocation5], %s1067_s29 }
  0x3a   : > { %s1070_s5 = sshll.u32 (%p1627_p6), %s274_s30, 2 }
  0x3b   : > { %s1696_s9 = scalar_lea.vmem (%p1627_p6), %s1916_s2, %s1070_s5 }
  0x3c   : > { %v293_v16 = vld [vmem:[%s1696_s9] sm:$0xf]  ;;  %v295_v17 = vld [vmem:[%s1696_s9 + $0x8] sm:$0xf]  ;;  %v297_v18 = vld [vmem:[%s1696_s9 + $0x10] sm:$0xf] }
  0x3d   : > { %294 = vst [vmem:[%s1701_s10] sm:$0xf] %v293_v16  ;;  %296 = vst [vmem:[%s1701_s10 + $0x4] sm:$0xf] %v295_v17  ;;  %v299_v19 = vld [vmem:[%s1696_s9 + $0x18] sm:$0xf] }
  0x3e   : > { %298 = vst [vmem:[%s1701_s10 + $0x8] sm:$0xf] %v297_v18  ;;  %v301_v20 = vld [vmem:[%s1696_s9 + $0x20] sm:$0xf]  ;;  %v303_v21 = vld [vmem:[%s1696_s9 + $0x28] sm:$0xf] }
  0x3f   : > { %300 = vst [vmem:[%s1701_s10 + $0xc] sm:$0xf] %v299_v19  ;;  %302 = vst [vmem:[%s1701_s10 + $0x10] sm:$0xf] %v301_v20  ;;  %v305_v22 = vld [vmem:[%s1696_s9 + $0x30] sm:$0xf] }
  0x40   : > { %304 = vst [vmem:[%s1701_s10 + $0x14] sm:$0xf] %v303_v21  ;;  %v307_v23 = vld [vmem:[%s1696_s9 + $0x38] sm:$0xf]  ;;  %v309_v24 = vld [vmem:[%s1696_s9 + $0x40] sm:$0xf] }
  0x41   : > { %306 = vst [vmem:[%s1701_s10 + $0x18] sm:$0xf] %v305_v22  ;;  %308 = vst [vmem:[%s1701_s10 + $0x1c] sm:$0xf] %v307_v23  ;;  %v311_v25 = vld [vmem:[%s1696_s9 + $0x48] sm:$0xf] }
  0x42   : > { %310 = vst [vmem:[%s1701_s10 + $0x20] sm:$0xf] %v309_v24  ;;  %v313_v26 = vld [vmem:[%s1696_s9 + $0x50] sm:$0xf]  ;;  %v315_v27 = vld [vmem:[%s1696_s9 + $0x58] sm:$0xf] }
  0x43   : > { %312 = vst [vmem:[%s1701_s10 + $0x24] sm:$0xf] %v311_v25  ;;  %314 = vst [vmem:[%s1701_s10 + $0x28] sm:$0xf] %v313_v26  ;;  %v317_v28 = vld [vmem:[%s1696_s9 + $0x60] sm:$0xf] }
  0x44   : > { %316 = vst [vmem:[%s1701_s10 + $0x2c] sm:$0xf] %v315_v27  ;;  %v319_v29 = vld [vmem:[%s1696_s9 + $0x68] sm:$0xf]  ;;  %v321_v30 = vld [vmem:[%s1696_s9 + $0x70] sm:$0xf] }
  0x45   : > { %318 = vst [vmem:[%s1701_s10 + $0x30] sm:$0xf] %v317_v28  ;;  %320 = vst [vmem:[%s1701_s10 + $0x34] sm:$0xf] %v319_v29  ;;  %v323_v31 = vld [vmem:[%s1696_s9 + $0x78] sm:$0xf] }
  0x46   : > { %322 = vst [vmem:[%s1701_s10 + $0x38] sm:$0xf] %v321_v30  ;;  %v325_v32 = vld [vmem:[%s1696_s9 + $0x80] sm:$0xf]  ;;  %v327_v33 = vld [vmem:[%s1696_s9 + $0x88] sm:$0xf] }
  0x47   : > { %324 = vst [vmem:[%s1701_s10 + $0x3c] sm:$0xf] %v323_v31  ;;  %326 = vst [vmem:[%s1701_s10 + $0x40] sm:$0xf] %v325_v32  ;;  %v329_v34 = vld [vmem:[%s1696_s9 + $0x90] sm:$0xf] }
  0x48   : > { %328 = vst [vmem:[%s1701_s10 + $0x44] sm:$0xf] %v327_v33  ;;  %v331_v35 = vld [vmem:[%s1696_s9 + $0x98] sm:$0xf]  ;;  %v333_v36 = vld [vmem:[%s1696_s9 + $0xa0] sm:$0xf] }
  0x49   : > { %330 = vst [vmem:[%s1701_s10 + $0x48] sm:$0xf] %v329_v34  ;;  %332 = vst [vmem:[%s1701_s10 + $0x4c] sm:$0xf] %v331_v35  ;;  %v335_v37 = vld [vmem:[%s1696_s9 + $0xa8] sm:$0xf] }
  0x4a   : > { %334 = vst [vmem:[%s1701_s10 + $0x50] sm:$0xf] %v333_v36  ;;  %v337_v38 = vld [vmem:[%s1696_s9 + $0xb0] sm:$0xf]  ;;  %v339_v39 = vld [vmem:[%s1696_s9 + $0xb8] sm:$0xf] }
  0x4b   : > { %336 = vst [vmem:[%s1701_s10 + $0x54] sm:$0xf] %v335_v37  ;;  %338 = vst [vmem:[%s1701_s10 + $0x58] sm:$0xf] %v337_v38  ;;  %v341_v40 = vld [vmem:[%s1696_s9 + $0xc0] sm:$0xf] }
  0x4c   : > { %340 = vst [vmem:[%s1701_s10 + $0x5c] sm:$0xf] %v339_v39  ;;  %v343_v41 = vld [vmem:[%s1696_s9 + $0xc8] sm:$0xf]  ;;  %v345_v42 = vld [vmem:[%s1696_s9 + $0xd0] sm:$0xf] }
  0x4d   : > { %342 = vst [vmem:[%s1701_s10 + $0x60] sm:$0xf] %v341_v40  ;;  %344 = vst [vmem:[%s1701_s10 + $0x64] sm:$0xf] %v343_v41  ;;  %v347_v43 = vld [vmem:[%s1696_s9 + $0xd8] sm:$0xf] }
  0x4e   : > { %346 = vst [vmem:[%s1701_s10 + $0x68] sm:$0xf] %v345_v42  ;;  %v349_v44 = vld [vmem:[%s1696_s9 + $0xe0] sm:$0xf]  ;;  %v351_v45 = vld [vmem:[%s1696_s9 + $0xe8] sm:$0xf] }
  0x4f   : > { %348 = vst [vmem:[%s1701_s10 + $0x6c] sm:$0xf] %v347_v43  ;;  %350 = vst [vmem:[%s1701_s10 + $0x70] sm:$0xf] %v349_v44  ;;  %v353_v46 = vld [vmem:[%s1696_s9 + $0xf0] sm:$0xf] }
  0x50   : > { %352 = vst [vmem:[%s1701_s10 + $0x74] sm:$0xf] %v351_v45  ;;  %v355_v47 = vld [vmem:[%s1696_s9 + $0xf8] sm:$0xf]  ;;  %354 = vst [vmem:[%s1701_s10 + $0x78] sm:$0xf] %v353_v46 }
  0x51   : > { %356 = vst [vmem:[%s1701_s10 + $0x7c] sm:$0xf] %v355_v47 }
  0x52 PF: > { %p1071_p4 = scmp.ge.s32.totalorder %s1501_s26, 1  ;;  %p443_p5 = scmp.lt.s32.totalorder %s1501_s26, 9 }
  0x54   : > { %p444_p6 = pnand %p1071_p4, %p443_p5 }
  0x55   : > { %s450_s12 = sand.u32 (!%p444_p6), 1, %s1469_s19   ;;  %s457_s8 = sand.u32 (!%p444_p6), 1, %s1461_s17  }
  0x56   : > { %447 = sbr.rel (%p444_p6) target bundleno = 409 (0x199), region = 103  ;;  %s1072_s27 = sshll.u32 (!%p444_p6), %s450_s12, 7 }
  0x57   : > { %s1073_s28 = sshll.u32 (!%p444_p6), %s457_s8, 7  ;;  %s481_s29 = sand.u32 (!%p444_p6), 1, %s1453_s15  }
  0x58   : > { %s1074_s30 = sshll.u32 (!%p444_p6), %s481_s29, 7  ;;  %s1771_s5 = scalar_lea.vmem (!%p444_p6), [#allocation4], %s1072_s27 }
  0x59   : > { %s1773_s6 = scalar_lea.vmem (!%p444_p6), [#allocation5], %s1073_s28  ;;  %s1775_s0 = scalar_lea.vmem (!%p444_p6), [#allocation6], %s1074_s30 }
  0x5a   : > { %p1075_p7 = scmp.ne.s32.totalorder (!%p444_p6), %s1477_s21, 0 }
  0x5c   : > { %492 = sbr.rel (%p1075_p7) target bundleno = 106 (0x6a), region = 115 }
  0x61   : > { %v1503_v48 = vmov 0.0  }
  0x62   : > { %493 = vst [vmem:[#allocation2 + $0x30] sm:$0xff] %v1503_v48  ;;  %494 = vst [vmem:[#allocation2] sm:$0xff] %v1503_v48 }
  0x63   : > { %495 = vst [vmem:[#allocation2 + $0x58] sm:$0xff] %v1503_v48  ;;  %496 = vst [vmem:[#allocation2 + $0x18] sm:$0xff] %v1503_v48 }
  0x64   : > { %497 = vst [vmem:[#allocation2 + $0x50] sm:$0xff] %v1503_v48  ;;  %498 = vst [vmem:[#allocation2 + $0x68] sm:$0xff] %v1503_v48 }
  0x65   : > { %499 = vst [vmem:[#allocation2 + $0x8] sm:$0xff] %v1503_v48  ;;  %500 = vst [vmem:[#allocation2 + $0x48] sm:$0xff] %v1503_v48 }
  0x66   : > { %501 = vst [vmem:[#allocation2 + $0x40] sm:$0xff] %v1503_v48  ;;  %502 = vst [vmem:[#allocation2 + $0x20] sm:$0xff] %v1503_v48 }
  0x67   : > { %503 = vst [vmem:[#allocation2 + $0x10] sm:$0xff] %v1503_v48  ;;  %504 = vst [vmem:[#allocation2 + $0x38] sm:$0xff] %v1503_v48 }
  0x68   : > { %505 = vst [vmem:[#allocation2 + $0x60] sm:$0xff] %v1503_v48  ;;  %506 = vst [vmem:[#allocation2 + $0x70] sm:$0xff] %v1503_v48 }
  0x69   : > { %507 = vst [vmem:[#allocation2 + $0x78] sm:$0xff] %v1503_v48  ;;  %508 = vst [vmem:[#allocation2 + $0x28] sm:$0xff] %v1503_v48 }
  0x6a PF: > { %v1321_v49 = vld [vmem:[%s1773_s6 + $0x78] sm:$0xff]   ;;  %v1323_v51 = vld [vmem:[%s1773_s6 + $0x70] sm:$0xff]   ;;  %v1325_v53 = vld [vmem:[%s1773_s6 + $0x68] sm:$0xff]   ;;  %p1108_p8 = scmp.ne.s32.totalorder %s1477_s21, 1 }
  0x6b   : > { %v1322_v50 = vld [vmem:[%s1773_s6 + $0x38] sm:$0xff]   ;;  %1118 = vmatprep.subr.bf16.mxu0 %v1321_v49  ;;  %1182 = vmatprep.subr.bf16.mxu1 %v1321_v49  ;;  %v1324_v52 = vld [vmem:[%s1773_s6 + $0x30] sm:$0xff]   ;;  %v1326_v54 = vld [vmem:[%s1773_s6 + $0x28] sm:$0xff]   ;;  %s898_s17 = sld [smem:[#allocation3]] (!%p1108_p8) }
  0x6c   : > { %1119 = vmatpush3.bf16.msra.mxu0 %v1322_v50  ;;  %1190 = vmatpush3.bf16.msra.mxu1 %v1322_v50  ;;  %v1327_v55 = vld [vmem:[%s1773_s6 + $0x60] sm:$0xff]   ;;  %v1329_v57 = vld [vmem:[%s1773_s6 + $0x58] sm:$0xff]   ;;  %v1331_v59 = vld [vmem:[%s1773_s6 + $0x50] sm:$0xff]  }
  0x6d   : > { %1120 = vmatprep.subr.bf16.mxu0 %v1323_v51  ;;  %1183 = vmatprep.subr.bf16.mxu1 %v1323_v51  ;;  %v1328_v56 = vld [vmem:[%s1773_s6 + $0x20] sm:$0xff]   ;;  %v1330_v58 = vld [vmem:[%s1773_s6 + $0x18] sm:$0xff]   ;;  %v1332_v62 = vld [vmem:[%s1773_s6 + $0x10] sm:$0xff]  }
  0x6e   : > { %v1339_v60 = vld [vmem:[%s1771_s5 + $0x4] ss:$8 sps:$4 sm:$0xff]   ;;  %v1337_v3 = vld [vmem:[%s1771_s5] ss:$8 sps:$4 sm:$0xff]   ;;  %v1343_v5 = vld [vmem:[%s1771_s5 + $0x14] ss:$8 sps:$4 sm:$0xff]  }
  0x6f   : > { %v1342_v61 = vld [vmem:[%s1771_s5 + $0x44] ss:$8 sps:$4 sm:$0xff]   ;;  %781 = vmatprep.mubr.bf16.mxu0 %v1339_v60  ;;  %v1340_v4 = vld [vmem:[%s1771_s5 + $0x40] ss:$8 sps:$4 sm:$0xff]   ;;  %v1345_v6 = vld [vmem:[%s1771_s5 + $0x54] ss:$8 sps:$4 sm:$0xff]  }
  0x70   : > { %1121 = vmatpush3.bf16.msra.mxu0 %v1324_v52  ;;  %1191 = vmatpush3.bf16.msra.mxu1 %v1324_v52  ;;  %v1333_v63 = vld [vmem:[%s1773_s6 + $0x48] sm:$0xff]   ;;  %v1335_v1 = vld [vmem:[%s1773_s6 + $0x40] sm:$0xff]   ;;  %v1347_v7 = vld [vmem:[%s1771_s5 + $0x10] ss:$8 sps:$4 sm:$0xff]  }
  0x71   : > { %1122 = vmatprep.subr.bf16.mxu0 %v1325_v53  ;;  %1184 = vmatprep.subr.bf16.mxu1 %v1325_v53  ;;  %v1334_v0 = vld [vmem:[%s1773_s6 + $0x8] sm:$0xff]   ;;  %v1336_v2 = vld [vmem:[%s1773_s6] sm:$0xff]   ;;  %v1348_v8 = vld [vmem:[%s1771_s5 + $0x50] ss:$8 sps:$4 sm:$0xff]  }
  0x72   : > { %813 = vmatprep.mubr.bf16.mxu1 %v1342_v61  ;;  %v1349_v9 = vld [vmem:[%s1771_s5 + $0x24] ss:$8 sps:$4 sm:$0xff]   ;;  %v1353_v11 = vld [vmem:[%s1771_s5 + $0x20] ss:$8 sps:$4 sm:$0xff]   ;;  %v1355_v13 = vld [vmem:[%s1771_s5 + $0x34] ss:$8 sps:$4 sm:$0xff]  }
  0x73   : > { %v1351_v10 = vld [vmem:[%s1771_s5 + $0x64] ss:$8 sps:$4 sm:$0xff]   ;;  %v1354_v12 = vld [vmem:[%s1771_s5 + $0x60] ss:$8 sps:$4 sm:$0xff]   ;;  %v1357_v14 = vld [vmem:[%s1771_s5 + $0x74] ss:$8 sps:$4 sm:$0xff]  }
  0x74   : > { %1123 = vmatpush3.bf16.msra.mxu0 %v1326_v54  ;;  %1192 = vmatpush3.bf16.msra.mxu1 %v1326_v54  ;;  %v1359_v15 = vld [vmem:[%s1771_s5 + $0x30] ss:$8 sps:$4 sm:$0xff]   ;;  %v517_v21 = vld [vmem:[#allocation2 + $0x40] sm:$0xff] }
  0x75   : > { %1124 = vmatprep.subr.bf16.mxu0 %v1327_v55  ;;  %1185 = vmatprep.subr.bf16.mxu1 %v1327_v55  ;;  %v1360_v16 = vld [vmem:[%s1771_s5 + $0x70] ss:$8 sps:$4 sm:$0xff]   ;;  %v510_v29 = vld [vmem:[#allocation2] sm:$0xff] }
  0x76   : > { %v509_v19 = vld [vmem:[#allocation2 + $0x30] sm:$0xff]  ;;  %v518_v31 = vld [vmem:[#allocation2 + $0x20] sm:$0xff]  ;;  %v511_v39 = vld [vmem:[#allocation2 + $0x58] sm:$0xff] }
  0x77   : > { %v519_v41 = vld [vmem:[#allocation2 + $0x10] sm:$0xff]  ;;  %v512_v49 = vld [vmem:[#allocation2 + $0x18] sm:$0xff]  ;;  %v521_v61 = vld [vmem:[#allocation2 + $0x60] sm:$0xff] }
  0x78   : > { %1125 = vmatpush3.bf16.msra.mxu0 %v1328_v56  ;;  %1193 = vmatpush3.bf16.msra.mxu1 %v1328_v56  ;;  %v520_v51 = vld [vmem:[#allocation2 + $0x38] sm:$0xff] }
  0x79   : > { %1126 = vmatprep.subr.bf16.mxu0 %v1329_v57  ;;  %1186 = vmatprep.subr.bf16.mxu1 %v1329_v57 }
  0x7c   : > { %1127 = vmatpush3.bf16.msra.mxu0 %v1330_v58  ;;  %1194 = vmatpush3.bf16.msra.mxu1 %v1330_v58 }
  0x7d   : > { %1128 = vmatprep.subr.bf16.mxu0 %v1331_v59  ;;  %1187 = vmatprep.subr.bf16.mxu1 %v1331_v59  ;;  %v513_v59 = vld [vmem:[#allocation2 + $0x50] sm:$0xff] }
  0x80   : > { %1129 = vmatpush3.bf16.msra.mxu0 %v1332_v62  ;;  %1195 = vmatpush3.bf16.msra.mxu1 %v1332_v62 }
  0x81   : > { %1130 = vmatprep.subr.bf16.mxu0 %v1333_v63  ;;  %1188 = vmatprep.subr.bf16.mxu1 %v1333_v63 }
  0x84   : > { %1131 = vmatpush3.bf16.msra.mxu0 %v1334_v0  ;;  %1196 = vmatpush3.bf16.msra.mxu1 %v1334_v0 }
  0x85   : > { %1132 = vmatprep.subr.bf16.mxu0 %v1335_v1  ;;  %1189 = vmatprep.subr.bf16.mxu1 %v1335_v1 }
  0x88   : > { %1133 = vmatpush3.bf16.msra.mxu0 %v1336_v2  ;;  %1197 = vmatpush3.bf16.msra.mxu1 %v1336_v2 }
  0x8b   : > { %782 = vmatmul.mubr.bf16.vlgmr.msra.gmra.mxu0 %v1337_v3  ;;  %814 = vmatmul.mubr.bf16.vlgmr.msra.gmra.mxu1 %v1340_v4 }
  0x8c   : > { %789 = vmatprep.mubr.bf16.mxu0 %v1343_v5  ;;  %821 = vmatprep.mubr.bf16.mxu1 %v1345_v6  ;;  %v514_v5 = vld [vmem:[#allocation2 + $0x68] sm:$0xff] }
  0x93   : > { %790 = vmatmul.mubr.bf16.gmra.mxu0 %v1347_v7  ;;  %822 = vmatmul.mubr.bf16.gmra.mxu1 %v1348_v8  ;;  %v522_v7 = vld [vmem:[#allocation2 + $0x70] sm:$0xff] }
  0x94   : > { %797 = vmatprep.mubr.bf16.mxu0 %v1349_v9  ;;  %829 = vmatprep.mubr.bf16.mxu1 %v1351_v10 }
  0x9b   : > { %798 = vmatmul.mubr.bf16.gmra.mxu0 %v1353_v11  ;;  %830 = vmatmul.mubr.bf16.gmra.mxu1 %v1354_v12 }
  0x9c   : > { %805 = vmatprep.mubr.bf16.mxu0 %v1355_v13  ;;  %837 = vmatprep.mubr.bf16.mxu1 %v1357_v14 }
  0xa3   : > { %806 = vmatmul.mubr.bf16.gmra.mxu0 %v1359_v15  ;;  %838 = vmatmul.mubr.bf16.gmra.mxu1 %v1360_v16  ;;  %v515_v15 = vld [vmem:[#allocation2 + $0x8] sm:$0xff] }
 0x14b   : > { %v1134_v17 = vpop.f32.mrf.mxu0  ;;  %v1158_v18 = vpop.f32.mrf.mxu1 }
 0x14d   : > { %v1135_v20 = vpop.f32.mrf.mxu0  ;;  %v1159_v22 = vpop.f32.mrf.mxu1 }
 0x14e   : > { %v1136_v23 = vadd.f32 %v1135_v20, %v1134_v17  ;;  %v1160_v24 = vadd.f32 %v1159_v22, %v1158_v18  ;;  %v523_v17 = vld [vmem:[#allocation2 + $0x78] sm:$0xff] }
 0x14f   : > { %v1137_v25 = vpop.f32.mrf.mxu0  ;;  %v1161_v26 = vpop.f32.mrf.mxu1 }
 0x150   : > { %v846_v27 = vadd.f32 %v1136_v23, %v509_v19  ;;  %v854_v28 = vadd.f32 %v1160_v24, %v517_v21 }
 0x151   : > { %v1138_v30 = vpop.f32.mrf.mxu0  ;;  %v1162_v32 = vpop.f32.mrf.mxu1 }
 0x152   : > { %862 = vst [vmem:[#allocation2 + $0x30] sm:$0xff] %v846_v27  ;;  %870 = vst [vmem:[#allocation2 + $0x40] sm:$0xff] %v854_v28  ;;  %v1139_v33 = vadd.f32 %v1138_v30, %v1137_v25  ;;  %v1163_v34 = vadd.f32 %v1162_v32, %v1161_v26  ;;  %v516_v25 = vld [vmem:[#allocation2 + $0x48] sm:$0xff] }
 0x153   : > { %v1140_v35 = vpop.f32.mrf.mxu0  ;;  %v1164_v36 = vpop.f32.mrf.mxu1  ;;  %v524_v27 = vld [vmem:[#allocation2 + $0x28] sm:$0xff] }
 0x154   : > { %v847_v37 = vadd.f32 %v1139_v33, %v510_v29  ;;  %v855_v38 = vadd.f32 %v1163_v34, %v518_v31 }
 0x155   : > { %v1141_v40 = vpop.f32.mrf.mxu0  ;;  %v1165_v42 = vpop.f32.mrf.mxu1 }
 0x156   : > { %863 = vst [vmem:[#allocation2] sm:$0xff] %v847_v37  ;;  %871 = vst [vmem:[#allocation2 + $0x20] sm:$0xff] %v855_v38  ;;  %v1142_v43 = vadd.f32 %v1141_v40, %v1140_v35  ;;  %v1166_v44 = vadd.f32 %v1165_v42, %v1164_v36 }
 0x157   : > { %v1143_v45 = vpop.f32.mrf.mxu0  ;;  %v1167_v46 = vpop.f32.mrf.mxu1 }
 0x158   : > { %v848_v47 = vadd.f32 %v1142_v43, %v511_v39  ;;  %v856_v48 = vadd.f32 %v1166_v44, %v519_v41 }
 0x159   : > { %v1144_v50 = vpop.f32.mrf.mxu0  ;;  %v1168_v52 = vpop.f32.mrf.mxu1 }
 0x15a   : > { %864 = vst [vmem:[#allocation2 + $0x58] sm:$0xff] %v848_v47  ;;  %872 = vst [vmem:[#allocation2 + $0x10] sm:$0xff] %v856_v48  ;;  %v1145_v53 = vadd.f32 %v1144_v50, %v1143_v45  ;;  %v1169_v54 = vadd.f32 %v1168_v52, %v1167_v46 }
 0x15b   : > { %v1146_v55 = vpop.f32.mrf.mxu0  ;;  %v1170_v56 = vpop.f32.mrf.mxu1 }
 0x15c   : > { %v849_v57 = vadd.f32 %v1145_v53, %v512_v49  ;;  %v857_v58 = vadd.f32 %v1169_v54, %v520_v51 }
 0x15d   : > { %v1147_v60 = vpop.f32.mrf.mxu0  ;;  %v1171_v62 = vpop.f32.mrf.mxu1 }
 0x15e   : > { %865 = vst [vmem:[#allocation2 + $0x18] sm:$0xff] %v849_v57  ;;  %873 = vst [vmem:[#allocation2 + $0x38] sm:$0xff] %v857_v58  ;;  %v1148_v63 = vadd.f32 %v1147_v60, %v1146_v55  ;;  %v1172_v0 = vadd.f32 %v1171_v62, %v1170_v56 }
 0x15f   : > { %v1149_v1 = vpop.f32.mrf.mxu0  ;;  %v1173_v2 = vpop.f32.mrf.mxu1 }
 0x160   : > { %v850_v3 = vadd.f32 %v1148_v63, %v513_v59  ;;  %v858_v4 = vadd.f32 %v1172_v0, %v521_v61 }
 0x161   : > { %v1150_v6 = vpop.f32.mrf.mxu0  ;;  %v1174_v8 = vpop.f32.mrf.mxu1 }
 0x162   : > { %866 = vst [vmem:[#allocation2 + $0x50] sm:$0xff] %v850_v3  ;;  %874 = vst [vmem:[#allocation2 + $0x60] sm:$0xff] %v858_v4  ;;  %v1151_v9 = vadd.f32 %v1150_v6, %v1149_v1  ;;  %v1175_v10 = vadd.f32 %v1174_v8, %v1173_v2 }
 0x163   : > { %v1152_v11 = vpop.f32.mrf.mxu0  ;;  %v1176_v12 = vpop.f32.mrf.mxu1 }
 0x164   : > { %v851_v13 = vadd.f32 %v1151_v9, %v514_v5  ;;  %v859_v14 = vadd.f32 %v1175_v10, %v522_v7 }
 0x165   : > { %v1153_v16 = vpop.f32.mrf.mxu0  ;;  %v1177_v18 = vpop.f32.mrf.mxu1 }
 0x166   : > { %867 = vst [vmem:[#allocation2 + $0x68] sm:$0xff] %v851_v13  ;;  %875 = vst [vmem:[#allocation2 + $0x70] sm:$0xff] %v859_v14  ;;  %v1154_v19 = vadd.f32 %v1153_v16, %v1152_v11  ;;  %v1178_v20 = vadd.f32 %v1177_v18, %v1176_v12 }
 0x167   : > { %v1155_v21 = vpop.f32.mrf.mxu0  ;;  %v1179_v22 = vpop.f32.mrf.mxu1 }
 0x168   : > { %v852_v23 = vadd.f32 %v1154_v19, %v515_v15  ;;  %v860_v24 = vadd.f32 %v1178_v20, %v523_v17 }
 0x169   : > { %v1156_v26 = vpop.f32.mrf.mxu0  ;;  %v1180_v28 = vpop.f32.mrf.mxu1 }
 0x16a   : > { %868 = vst [vmem:[#allocation2 + $0x8] sm:$0xff] %v852_v23  ;;  %876 = vst [vmem:[#allocation2 + $0x78] sm:$0xff] %v860_v24  ;;  %v1157_v29 = vadd.f32 %v1156_v26, %v1155_v21  ;;  %v1181_v30 = vadd.f32 %v1180_v28, %v1179_v22  ;;  %881 = sbr.rel (%p1108_p8) target bundleno = 379 (0x17b), region = 119 }
 0x16c   : > { %v853_v31 = vadd.f32 %v1157_v29, %v516_v25  ;;  %v861_v32 = vadd.f32 %v1181_v30, %v524_v27 }
 0x16e   : > { %869 = vst [vmem:[#allocation2 + $0x48] sm:$0xff] %v853_v31  ;;  %877 = vst [vmem:[#allocation2 + $0x28] sm:$0xff] %v861_v32 }
 0x16f   : > { %v882_v33 = vld [vmem:[#allocation2 + $0x30] sm:$0xff]  ;;  %v883_v34 = vld [vmem:[#allocation2] sm:$0xff]  ;;  %v884_v35 = vld [vmem:[#allocation2 + $0x58] sm:$0xff]  ;;  %v899_v43 = vstv %s898_s17 }
 0x170   : > { %v885_v36 = vld [vmem:[#allocation2 + $0x18] sm:$0xff]  ;;  %v886_v37 = vld [vmem:[#allocation2 + $0x50] sm:$0xff]  ;;  %v887_v38 = vld [vmem:[#allocation2 + $0x68] sm:$0xff]  ;;  %v900_v47 = vmul.f32 %v899_v43, %v882_v33  ;;  %v901_v48 = vmul.f32 %v899_v43, %v883_v34  ;;  %v902_v49 = vmul.f32 %v899_v43, %v884_v35 }
 0x171   : > { %v888_v39 = vld [vmem:[#allocation2 + $0x8] sm:$0xff]  ;;  %v890_v41 = vld [vmem:[#allocation2 + $0x40] sm:$0xff]  ;;  %v892_v44 = vld [vmem:[#allocation2 + $0x10] sm:$0xff]  ;;  %v903_v50 = vmul.f32 %v899_v43, %v885_v36  ;;  %v904_v54 = vmul.f32 %v899_v43, %v886_v37  ;;  %v905_v55 = vmul.f32 %v899_v43, %v887_v38 }
 0x172   : > { %v891_v42 = vld [vmem:[#allocation2 + $0x20] sm:$0xff]  ;;  %v893_v45 = vld [vmem:[#allocation2 + $0x38] sm:$0xff]  ;;  %v895_v51 = vld [vmem:[#allocation2 + $0x70] sm:$0xff]  ;;  %v906_v56 = vmul.f32 %v899_v43, %v888_v39  ;;  %916 = vst [vmem:[%s1775_s0] sm:$0xff] %v900_v47  ;;  %v908_v58 = vmul.f32 %v899_v43, %v890_v41  ;;  %v910_v60 = vmul.f32 %v899_v43, %v892_v44 }
 0x173   : > { %v894_v46 = vld [vmem:[#allocation2 + $0x60] sm:$0xff]  ;;  %v896_v52 = vld [vmem:[#allocation2 + $0x78] sm:$0xff]  ;;  %917 = vst [vmem:[%s1775_s0 + $0x8] sm:$0xff] %v901_v48  ;;  %918 = vst [vmem:[%s1775_s0 + $0x10] sm:$0xff] %v902_v49  ;;  %v909_v59 = vmul.f32 %v899_v43, %v891_v42  ;;  %v911_v61 = vmul.f32 %v899_v43, %v893_v45  ;;  %v913_v63 = vmul.f32 %v899_v43, %v895_v51 }
 0x174   : > { %919 = vst [vmem:[%s1775_s0 + $0x18] sm:$0xff] %v903_v50  ;;  %920 = vst [vmem:[%s1775_s0 + $0x20] sm:$0xff] %v904_v54  ;;  %v912_v62 = vmul.f32 %v899_v43, %v894_v46  ;;  %v914_v0 = vmul.f32 %v899_v43, %v896_v52 }
 0x175   : > { %v889_v40 = vld [vmem:[#allocation2 + $0x48] sm:$0xff]  ;;  %921 = vst [vmem:[%s1775_s0 + $0x28] sm:$0xff] %v905_v55  ;;  %922 = vst [vmem:[%s1775_s0 + $0x30] sm:$0xff] %v906_v56 }
 0x176   : > { %v897_v53 = vld [vmem:[#allocation2 + $0x28] sm:$0xff]  ;;  %v907_v57 = vmul.f32 %v899_v43, %v889_v40  ;;  %924 = vst [vmem:[%s1775_s0 + $0x40] sm:$0xff] %v908_v58  ;;  %925 = vst [vmem:[%s1775_s0 + $0x48] sm:$0xff] %v909_v59 }
 0x177   : > { %v915_v1 = vmul.f32 %v899_v43, %v897_v53  ;;  %926 = vst [vmem:[%s1775_s0 + $0x50] sm:$0xff] %v910_v60  ;;  %927 = vst [vmem:[%s1775_s0 + $0x58] sm:$0xff] %v911_v61 }
 0x178   : > { %923 = vst [vmem:[%s1775_s0 + $0x38] sm:$0xff] %v907_v57  ;;  %928 = vst [vmem:[%s1775_s0 + $0x60] sm:$0xff] %v912_v62 }
 0x179   : > { %929 = vst [vmem:[%s1775_s0 + $0x68] sm:$0xff] %v913_v63  ;;  %930 = vst [vmem:[%s1775_s0 + $0x70] sm:$0xff] %v914_v0 }
 0x17a   : > { %931 = vst [vmem:[%s1775_s0 + $0x78] sm:$0xff] %v915_v1 }
 0x17b PF: > { %s1932_s19 = sld [smem:[#allocation10_spill]]  ;;  %s948_s12 = sshll.u32 %s1775_s0, 4  ;;  %s1830_s12 = int_to_ptr.vmem [resolvable:$true] %s948_s12 }
 0x17c   : > { %s1933_s21 = sld [smem:[#allocation9_spill]]  ;;  %s1839_s6 = scalar_lea.sflag [#allocation7], %s481_s29 }
 0x17d   : > { %s1934_s30 = sld [smem:[#allocation13_spill]]  ;;  %s1361_s17 = scalar_lea.vmem %s1830_s12, 2048 }
 0x17e   : > { %p1362_p9 = scmp.ne.s32.totalorder %s1830_s12, %s1361_s17  ;;  %s1504_s0 = smov [#allocation6]  }
 0x180   : > { %p1363_p10 = pnand %p1362_p9, %p1651_p0 }
 0x181   : > { %s1117_s9 = sshll.u32 %s1932_s19, 5  ;;  %s1365_s19 = sshll.u32 %s1504_s0, 4  ;;  %s1366_s19 = int_to_ptr.vmem [resolvable:$false] %s1365_s19 }
 0x182   : > { %s945_s10 = sadd.s32 %s1933_s21, %s1117_s9  ;;  %p1364_p11 = pneg %p1363_p10 }
 0x183   : > { %s1112_s8 = sshll.u32 %s945_s10, 7  ;;  %s1367_s21 = scalar_lea.vmem %s1366_s19, 4096 }
 0x184   : > { %s1835_s5 = scalar_lea.hbm %s1934_s30, %s1112_s8  ;;  %p1368_p12 = scmp.lt.s32.totalorder %s1830_s12, %s1366_s19 }
 0x185   : > { %p1369_p13 = scmp.lt.s32.totalorder %s1367_s21, %s1361_s17 }
 0x187   : > { %p1370_p1 = por %p1369_p13, %p1368_p12 }
 0x189   : > { %p1371_p3 = pnand %p1370_p1, %p1364_p11 }
 0x18b   : > { %1374 = shalt.err (!%p1371_p3)
}
 0x18c   : > { %s1375_s29 = scalar_lea.hbm %s1835_s5, 2048  ;;  %s1379_s8 = scalar_lea.hbm %s1934_s30, 8192 }
 0x18d   : > { %p1376_p4 = scmp.ne.s32.totalorder %s1835_s5, %s1375_s29  ;;  %p1380_p7 = scmp.lt.s32.totalorder %s1835_s5, %s1934_s30 }
 0x18e   : > { %p1381_p8 = scmp.lt.s32.totalorder %s1379_s8, %s1375_s29 }
 0x18f   : > { %p1377_p5 = pnand %p1376_p4, %p1651_p0 }
 0x190   : > { %p1382_p9 = por %p1381_p8, %p1380_p7 }
 0x191   : > { %p1378_p6 = pneg %p1377_p5 }
 0x193   : > { %p1383_p10 = pnand %p1382_p9, %p1378_p6 }
 0x195   : > { %1386 = shalt.err (!%p1383_p10)
}
 0x196   : > { %s1505_s17 = smov 128   ;;  %s1506_s0 = smov 256  }
 0x197   : > { %s1507_s19 = smov 8  }
 0x198   : > { %1198 = dma.vmem_to_hbm [thread:$0]  (%p1651_p0), %s1830_s12, 2048, %s1835_s5, %s1839_s6, %s1505_s17, %s1506_s0, %s1507_s19  }
 0x199 PF: > { %p1204_p11 = scmp.ge.s32.totalorder %s1501_s26, 2  ;;  %s963_s21 = sand.u32 1, %s1449_s14  }
 0x19a   : > { %s964_s29 = scalar_lea.sflag [#allocation7], %s963_s21 }
 0x19b   : > { %p1201_p12 = pnand %p1204_p11, %p1657_p2 }
 0x19d   : > { %p1202_p13 = pneg %p1201_p12 }
 0x19f   : > { %1444 = dma.done.wait (%p1202_p13), %s964_s29, 2048  }
 0x1a0   : > { %1446 = vsyncadd (%p1202_p13), %s964_s29, 4294965248  ;;  %s17_s26 = sadd.s32 1, %s1501_s26   ;;  %s1936_s11 = sld [smem:[#allocation11_spill]] }
 0x1a1   : > { %p1867_p1 = scmp.ge.s32.totalorder %s17_s26, 10   ;;  %s1937_s7 = sld [smem:[#allocation12_spill]] }
 0x1a2   : > { %s1938_s14 = smov %s1453_s15  ;;  %s1939_s15 = smov %s1457_s16 }
 0x1a3   : > { %s1940_s16 = smov %s1649_s22  ;;  %s1941_s17 = smov %s1465_s18 }
 0x1a4   : > { %s1942_s18 = smov %s1635_s13  ;;  %s1943_s19 = smov %s1473_s20 }
 0x1a5   : > { %s1944_s20 = smov %s1646_s3  ;;  %s1945_s21 = smov %s1489_s23 }
 0x1a6   : > { %s1946_s22 = smov %s1493_s24  ;;  %s1947_s0 = smov %s1497_s25 }
 0x1a7   : > { %s1948_s23 = smov %s1936_s11  ;;  %s1949_s24 = smov %s1937_s7 }
 0x1a8   : > { %s1950_s25 = smov %s1960_s4  ;;  %16 = sbr.rel (!%p1867_p1) target bundleno = 11 (0xb), region = 167 }
 0x1ad   :  { %969 = vsyncpa [#allocation7], 1 }
 0x1ae   :  { %971 = vsyncpa [#allocation7 + $0x1], 1 }

// kernel: fp8_linear_forward.3
= control target key start
LH: loop header
LB: loop body
LE: loop exit
PB: predicated region body
PF: predicated region fallthrough
CT: control target
= control target key end

     0   :  { %s7005_s0 = inlined_call_operand.<no memory space> [shape: f32[1], index: 0, kind: input, shape index: {}]   ;;  %s7006_s1 = inlined_call_operand.hbm [shape: f32[256,512], index: 1, kind: input, shape index: {}]   ;;  %s7007_s2 = inlined_call_operand.vmem [shape: bf16[256,512], index: 2, kind: output, shape index: {0}]   ;;  %s7008_s3 = inlined_call_operand.hbm [shape: f32[1,1], index: 3, kind: output, shape index: {1}]  }
   0x1   :  { %9 = sst [smem:[#allocation2]] %s7005_s0 }
   0x2   :  { %10 = vsyncpa [#allocation4], 0 }
   0x3   :  { %12 = vsyncpa [#allocation4 + $0x1], 0 }
   0x4   :  { %13 = vsyncpa [#allocation5], 0  ;;  %s4678_s14 = smov 0   ;;  %s4680_s15 = smov 0  }
   0x5   :  { %s4682_s16 = smov 0   ;;  %s4684_s17 = smov 0  }
   0x6 LB: > { %s4697_s0 = sadd.s32 4294967295, %s4648_s17   ;;  %s4700_s18 = sadd.s32 1, %s4648_s17   ;;  %s4648_s17 = sphi %s4684_s17, %s7698_s17   ;;  %s4644_s16 = sphi %s4682_s16, %s7697_s16   ;;  %s4640_s15 = sphi %s4680_s15, %s7696_s15   ;;  %s4636_s14 = sphi %s4678_s14, %s7695_s14  }
   0x7   : > { %s44_s19 = ssub.s32 %s4648_s17, %s4700_s18  ;;  %s47_s20 = sadd.s32 1, %s4644_s16 }
   0x8   : > { %p45_p0 = scmp.eq.s32.totalorder %s44_s19, 0  ;;  %p54_p1 = scmp.ne.s32.totalorder %s4644_s16, %s4640_s15 }
   0x9   : > { %p55_p2 = scmp.eq.s32.totalorder %s4648_s17, 0  ;;  %p60_p3 = scmp.ne.s32.totalorder %s4640_s15, %s4636_s14 }
   0xa   : > { %s4710_s21 = scalar_select %p45_p0, %s4644_s16, %s47_s20  }
   0xb   : > { %p56_p4 = por %p55_p2, %p54_p1  ;;  %p61_p5 = scmp.eq.s32.totalorder %s4697_s0, 0 }
   0xc   : > { %p4519_p6 = scmp.lt.s32.totalorder %s4648_s17, 2  ;;  %s134_s23 = sand.u32 1, %s4644_s16  }
   0xd   : > { %p4714_p7 = por %p61_p5, %p60_p3  ;;  %s4298_s24 = sshll.u32 %s134_s23, 9 }
   0xe   : > { %s4473_s25 = sshll.u32 %s4648_s17, 13  ;;  %s138_s29 = scalar_lea.vmem [#allocation3], %s4298_s24 }
   0xf   : > { %s7183_s22 = scalar_select %p4714_p7, 1, 0 }
  0x10   : > { %s4723_s28 = scalar_lea.hbm %s7006_s1, %s4473_s25  ;;  %s146_s30 = sshll.u32 %s138_s29, 4  ;;  %s4725_s30 = int_to_ptr.vmem [resolvable:$true] %s146_s30 }
  0x11   : > { %p4727_p8 = pnand %p4519_p6, %p56_p4  ;;  %s4732_s5 = scalar_lea.sflag [#allocation4], %s134_s23 }
  0x12   : > { %s4558_s6 = scalar_lea.hbm %s4723_s28, 8192  ;;  %s4563_s9 = scalar_lea.hbm %s7006_s1, 16384 }
  0x13   : > { %p4559_p10 = scmp.ne.s32.totalorder %s4723_s28, %s4558_s6  ;;  %p4560_p11 = pneg %p4727_p8 }
  0x14   : > { %p4564_p0 = scmp.lt.s32.totalorder %s4723_s28, %s7006_s1  ;;  %p4565_p1 = scmp.lt.s32.totalorder %s4563_s9, %s4558_s6 }
  0x15   : > { %p4561_p12 = pnand %p4560_p11, %p4559_p10 }
  0x16   : > { %p4566_p2 = por %p4565_p1, %p4564_p0 }
  0x17   : > { %p4562_p13 = pneg %p4561_p12 }
  0x19   : > { %p4567_p3 = pnand %p4566_p2, %p4562_p13 }
  0x1b   : > { %4570 = shalt.err (!%p4567_p3)
}
  0x1c   : > { %s4571_s12 = scalar_lea.vmem %s4725_s30, 8192  ;;  %s4650_s13 = smov [#allocation3]  }
  0x1d   : > { %p4572_p4 = scmp.ne.s32.totalorder %s4725_s30, %s4571_s12  ;;  %s4576_s14 = sshll.u32 %s4650_s13, 4  ;;  %s4577_s14 = int_to_ptr.vmem [resolvable:$false] %s4576_s14 }
  0x1e   : > { %s4578_s19 = scalar_lea.vmem %s4577_s14, 16384  ;;  %p4579_p10 = scmp.lt.s32.totalorder %s4725_s30, %s4577_s14 }
  0x1f   : > { %p4574_p5 = pnand %p4572_p4, %p4560_p11  ;;  %p4580_p12 = scmp.lt.s32.totalorder %s4578_s19, %s4571_s12 }
  0x21   : > { %p4575_p6 = pneg %p4574_p5  ;;  %p4581_p9 = por %p4580_p12, %p4579_p10 }
  0x23   : > { %p4582_p7 = pnand %p4581_p9, %p4575_p6 }
  0x25   : > { %4585 = shalt.err (!%p4582_p7)
}
  0x26   : > { %s4651_s20 = smov 512   ;;  %s4652_s23 = smov 32  }
  0x27   : > { %4518 = dma.hbm_to_vmem [thread:$0]  (!%p4727_p8), %s4723_s28, 8192, %s4725_s30, %s4732_s5, %s4651_s20, %s4651_s20, %s4652_s23  }
  0x28   : > { %p154_p11 = scmp.lt.s32.totalorder %s4648_s17, 3  ;;  %p7185_p13 = scmp.ge.s32.totalorder %s4648_s17, 1 }
  0x2a   : > { %p155_p0 = pnand %p7185_p13, %p154_p11 }
  0x2c   : > { %158 = sbr.rel (%p155_p0) target bundleno = 1600 (0x640), region = 28 }
  0x31   : > { %s160_s24 = sand.u32 1, %s4640_s15   ;;  %p7186_p7 = scmp.ne.s32.totalorder %s7183_s22, 0 }
  0x32   : > { %s4303_s25 = sshll.u32 %s160_s24, 9  ;;  %s161_s26 = scalar_lea.sflag [#allocation4], %s160_s24 }
  0x33   : > { %s4757_s27 = scalar_lea.vmem [#allocation3], %s4303_s25 }
  0x34   : > { %4627 = dma.done.wait (%p7186_p7), %s161_s26, 8192  }
  0x35   : > { %4629 = vsyncadd (%p7186_p7), %s161_s26, 4294959104  ;;  %s4304_s17 = sshll.u32 %s4697_s0, 4  ;;  %v4770_v0 = vld [vmem:[%s4757_s27] sm:$0xff]  ;;  %v4773_v1 = vld [vmem:[%s4757_s27 + $0x8] sm:$0xff]  ;;  %p4307_p9 = scmp.ne.s32.totalorder %s4697_s0, 0 }
  0x36   : > { %p190_p8 = scmp.lt.s32.totalorder %s4304_s17, 31  ;;  %v4776_v2 = vld [vmem:[%s4757_s27 + $0x10] sm:$0xff]  ;;  %v4779_v3 = vld [vmem:[%s4757_s27 + $0x20] sm:$0xff]  ;;  %v4782_v4 = vld [vmem:[%s4757_s27 + $0x18] sm:$0xff]  ;;  %v260_v6 = vand.u32 2147483647, %v4770_v0 }
  0x37   : > { %v4785_v5 = vld [vmem:[%s4757_s27 + $0x28] sm:$0xff]  ;;  %v4789_v7 = vld [vmem:[%s4757_s27 + $0x30] sm:$0xff]  ;;  %v261_v8 = vand.u32 2147483647, %v4773_v1  ;;  %v4793_v9 = vld [vmem:[%s4757_s27 + $0x38] sm:$0xff] }
  0x38   : > { %s7700_s17 = smov (!%p190_p8, %s4304_s17), 31  ;;  %v262_v10 = vand.u32 2147483647, %v4776_v2  ;;  %v264_v11 = vand.u32 2147483647, %v4779_v3  ;;  %v4798_v12 = vld [vmem:[%s4757_s27 + $0x40] sm:$0xff] }
  0x39   : > { %s4474_s28 = sshll.u32 %s7700_s17, 4  ;;  %v263_v13 = vand.u32 2147483647, %v4782_v4  ;;  %v265_v14 = vand.u32 2147483647, %v4785_v5  ;;  %v4803_v15 = vld [vmem:[%s4757_s27 + $0x48] sm:$0xff] }
  0x3a   : > { %s4767_s4 = scalar_lea.vmem %s7007_s2, %s4474_s28  ;;  %v266_v16 = vand.u32 2147483647, %v4789_v7  ;;  %v324_v17 = vmax.f32.f32 %v260_v6, %v264_v11  ;;  %v4807_v18 = vld [vmem:[%s4757_s27 + $0x50] sm:$0xff]  ;;  %v267_v19 = vand.u32 2147483647, %v4793_v9  ;;  %v4811_v21 = vld [vmem:[%s4757_s27 + $0x58] sm:$0xff] }
  0x3b   : > { %v325_v20 = vmax.f32.f32 %v261_v8, %v265_v14  ;;  %v268_v22 = vand.u32 2147483647, %v4798_v12  ;;  %v4815_v24 = vld [vmem:[%s4757_s27 + $0x60] sm:$0xff]  ;;  %v269_v25 = vand.u32 2147483647, %v4803_v15  ;;  %v4819_v27 = vld [vmem:[%s4757_s27 + $0x68] sm:$0xff] }
  0x3c   : > { %v326_v23 = vmax.f32.f32 %v262_v10, %v266_v16  ;;  %v327_v26 = vmax.f32.f32 %v263_v13, %v267_v19  ;;  %v270_v28 = vand.u32 2147483647, %v4807_v18  ;;  %v4823_v30 = vld [vmem:[%s4757_s27 + $0x70] sm:$0xff]  ;;  %v271_v31 = vand.u32 2147483647, %v4811_v21  ;;  %v4827_v33 = vld [vmem:[%s4757_s27 + $0x78] sm:$0xff] }
  0x3d   : > { %v328_v29 = vmax.f32.f32 %v324_v17, %v268_v22  ;;  %v329_v32 = vmax.f32.f32 %v325_v20, %v269_v25  ;;  %v272_v34 = vand.u32 2147483647, %v4815_v24  ;;  %v4831_v36 = vld [vmem:[%s4757_s27 + $0x80] sm:$0xff]  ;;  %v273_v37 = vand.u32 2147483647, %v4819_v27  ;;  %v4835_v39 = vld [vmem:[%s4757_s27 + $0x88] sm:$0xff] }
  0x3e   : > { %v330_v35 = vmax.f32.f32 %v326_v23, %v270_v28  ;;  %v331_v38 = vmax.f32.f32 %v327_v26, %v271_v31  ;;  %v274_v40 = vand.u32 2147483647, %v4823_v30  ;;  %v4839_v42 = vld [vmem:[%s4757_s27 + $0x90] sm:$0xff]  ;;  %v275_v43 = vand.u32 2147483647, %v4827_v33  ;;  %v4843_v45 = vld [vmem:[%s4757_s27 + $0x98] sm:$0xff] }
  0x3f   : > { %v332_v41 = vmax.f32.f32 %v328_v29, %v272_v34  ;;  %v333_v44 = vmax.f32.f32 %v329_v32, %v273_v37  ;;  %v276_v46 = vand.u32 2147483647, %v4831_v36  ;;  %v4847_v48 = vld [vmem:[%s4757_s27 + $0xa0] sm:$0xff]  ;;  %v4850_v49 = vld [vmem:[%s4757_s27 + $0xa8] sm:$0xff]  ;;  %v277_v50 = vand.u32 2147483647, %v4835_v39 }
  0x40   : > { %v334_v47 = vmax.f32.f32 %v330_v35, %v274_v40  ;;  %v335_v51 = vmax.f32.f32 %v331_v38, %v275_v43  ;;  %v4854_v52 = vld [vmem:[%s4757_s27 + $0xb0] sm:$0xff]  ;;  %v4857_v53 = vld [vmem:[%s4757_s27 + $0xb8] sm:$0xff]  ;;  %v278_v54 = vand.u32 2147483647, %v4839_v42  ;;  %v4861_v56 = vld [vmem:[%s4757_s27 + $0xc0] sm:$0xff] }
  0x41   : > { %v336_v55 = vmax.f32.f32 %v332_v41, %v276_v46  ;;  %v279_v57 = vand.u32 2147483647, %v4843_v45  ;;  %v337_v58 = vmax.f32.f32 %v333_v44, %v277_v50  ;;  %v4865_v59 = vld [vmem:[%s4757_s27 + $0xc8] sm:$0xff]  ;;  %v280_v60 = vand.u32 2147483647, %v4847_v48  ;;  %v4870_v63 = vld [vmem:[%s4757_s27 + $0xd0] sm:$0xff] }
  0x42   : > { %v281_v61 = vand.u32 2147483647, %v4850_v49  ;;  %v338_v62 = vmax.f32.f32 %v334_v47, %v278_v54  ;;  %v282_v6 = vand.u32 2147483647, %v4854_v52  ;;  %v283_v8 = vand.u32 2147483647, %v4857_v53 }
  0x43   : > { %v339_v10 = vmax.f32.f32 %v335_v51, %v279_v57  ;;  %v4875_v11 = vld [vmem:[%s4757_s27 + $0xd8] sm:$0xff]  ;;  %v284_v13 = vand.u32 2147483647, %v4861_v56  ;;  %v340_v14 = vmax.f32.f32 %v336_v55, %v280_v60  ;;  %v4879_v16 = vld [vmem:[%s4757_s27 + $0xe0] sm:$0xff]  ;;  %v285_v17 = vand.u32 2147483647, %v4865_v59 }
  0x44   : > { %7187 = vst [vmem:[#allocation73_spill] sm:$0xff] %v4875_v11  ;;  %7188 = vst [vmem:[#allocation74_spill] sm:$0xff] %v4879_v16  ;;  %v341_v19 = vmax.f32.f32 %v337_v58, %v281_v61  ;;  %v4883_v20 = vld [vmem:[%s4757_s27 + $0xe8] sm:$0xff]  ;;  %v286_v22 = vand.u32 2147483647, %v4870_v63  ;;  %v342_v23 = vmax.f32.f32 %v338_v62, %v282_v6  ;;  %v4887_v25 = vld [vmem:[%s4757_s27 + $0xf0] sm:$0xff] }
  0x45   : > { %7189 = vst [vmem:[#allocation75_spill] sm:$0xff] %v4883_v20  ;;  %7190 = vst [vmem:[#allocation76_spill] sm:$0xff] %v4887_v25  ;;  %v287_v26 = vand.u32 2147483647, %v4875_v11  ;;  %v343_v28 = vmax.f32.f32 %v339_v10, %v283_v8  ;;  %v4891_v29 = vld [vmem:[%s4757_s27 + $0xf8] sm:$0xff]  ;;  %v344_v32 = vmax.f32.f32 %v340_v14, %v284_v13  ;;  %v4895_v34 = vld [vmem:[%s4757_s27 + $0x100] sm:$0xff] }
  0x46   : > { %7191 = vst [vmem:[#allocation77_spill] sm:$0xff] %v4891_v29  ;;  %v288_v31 = vand.u32 2147483647, %v4879_v16  ;;  %7192 = vst [vmem:[#allocation78_spill] sm:$0xff] %v4895_v34  ;;  %v4898_v35 = vld [vmem:[%s4757_s27 + $0x108] sm:$0xff]  ;;  %v4901_v37 = vld [vmem:[%s4757_s27 + $0x110] sm:$0xff]  ;;  %v345_v40 = vmax.f32.f32 %v341_v19, %v285_v17  ;;  %v346_v47 = vmax.f32.f32 %v342_v23, %v286_v22 }
  0x47   : > { %7193 = vst [vmem:[#allocation79_spill] sm:$0xff] %v4898_v35  ;;  %7194 = vst [vmem:[#allocation80_spill] sm:$0xff] %v4901_v37  ;;  %v289_v38 = vand.u32 2147483647, %v4883_v20  ;;  %v4905_v41 = vld [vmem:[%s4757_s27 + $0x118] sm:$0xff]  ;;  %v4908_v43 = vld [vmem:[%s4757_s27 + $0x120] sm:$0xff]  ;;  %v347_v57 = vmax.f32.f32 %v343_v28, %v287_v26 }
  0x48   : > { %7195 = vst [vmem:[#allocation81_spill] sm:$0xff] %v4905_v41  ;;  %7196 = vst [vmem:[#allocation82_spill] sm:$0xff] %v4908_v43  ;;  %v4911_v44 = vld [vmem:[%s4757_s27 + $0x128] sm:$0xff]  ;;  %v290_v46 = vand.u32 2147483647, %v4887_v25  ;;  %v4915_v50 = vld [vmem:[%s4757_s27 + $0x130] sm:$0xff]  ;;  %v348_v6 = vmax.f32.f32 %v344_v32, %v288_v31 }
  0x49   : > { %7197 = vst [vmem:[#allocation83_spill] sm:$0xff] %v4911_v44  ;;  %7198 = vst [vmem:[#allocation84_spill] sm:$0xff] %v4915_v50  ;;  %v4918_v51 = vld [vmem:[%s4757_s27 + $0x138] sm:$0xff]  ;;  %v4921_v54 = vld [vmem:[%s4757_s27 + $0x140] sm:$0xff]  ;;  %v291_v55 = vand.u32 2147483647, %v4891_v29  ;;  %v349_v17 = vmax.f32.f32 %v345_v40, %v289_v38 }
  0x4a   : > { %7199 = vst [vmem:[#allocation85_spill] sm:$0xff] %v4918_v51  ;;  %7200 = vst [vmem:[#allocation86_spill] sm:$0xff] %v4921_v54  ;;  %v4925_v58 = vld [vmem:[%s4757_s27 + $0x148] sm:$0xff]  ;;  %v4928_v60 = vld [vmem:[%s4757_s27 + $0x150] sm:$0xff]  ;;  %v292_v62 = vand.u32 2147483647, %v4895_v34  ;;  %v350_v28 = vmax.f32.f32 %v346_v47, %v290_v46 }
  0x4b   : > { %7201 = vst [vmem:[#allocation87_spill] sm:$0xff] %v4925_v58  ;;  %7202 = vst [vmem:[#allocation88_spill] sm:$0xff] %v4928_v60  ;;  %v4931_v61 = vld [vmem:[%s4757_s27 + $0x158] sm:$0xff]  ;;  %v4935_v8 = vld [vmem:[%s4757_s27 + $0x160] sm:$0xff]  ;;  %v293_v10 = vand.u32 2147483647, %v4898_v35  ;;  %v351_v35 = vmax.f32.f32 %v347_v57, %v291_v55 }
  0x4c   : > { %7203 = vst [vmem:[#allocation89_spill] sm:$0xff] %v4931_v61  ;;  %7204 = vst [vmem:[#allocation90_spill] sm:$0xff] %v4935_v8  ;;  %v294_v13 = vand.u32 2147483647, %v4901_v37  ;;  %v295_v14 = vand.u32 2147483647, %v4905_v41  ;;  %v352_v29 = vmax.f32.f32 %v348_v6, %v292_v62 }
  0x4d   : > { %v4941_v19 = vld [vmem:[%s4757_s27 + $0x168] sm:$0xff]  ;;  %v4944_v22 = vld [vmem:[%s4757_s27 + $0x170] sm:$0xff]  ;;  %v4947_v23 = vld [vmem:[%s4757_s27 + $0x178] sm:$0xff]  ;;  %v296_v26 = vand.u32 2147483647, %v4908_v43  ;;  %v353_v57 = vmax.f32.f32 %v349_v17, %v293_v10 }
  0x4e   : > { %7205 = vst [vmem:[#allocation91_spill] sm:$0xff] %v4941_v19  ;;  %7206 = vst [vmem:[#allocation92_spill] sm:$0xff] %v4944_v22  ;;  %v4951_v31 = vld [vmem:[%s4757_s27 + $0x180] sm:$0xff]  ;;  %v4954_v32 = vld [vmem:[%s4757_s27 + $0x188] sm:$0xff]  ;;  %v297_v38 = vand.u32 2147483647, %v4911_v44  ;;  %v355_v20 = vmax.f32.f32 %v351_v35, %v295_v14 }
  0x4f   : > { %7207 = vst [vmem:[#allocation93_spill] sm:$0xff] %v4947_v23  ;;  %7208 = vst [vmem:[#allocation94_spill] sm:$0xff] %v4951_v31  ;;  %v4957_v37 = vld [vmem:[%s4757_s27 + $0x190] sm:$0xff]  ;;  %v298_v40 = vand.u32 2147483647, %v4915_v50  ;;  %v4963_v34 = vld [vmem:[%s4757_s27 + $0x198] sm:$0xff]  ;;  %v356_v6 = vmax.f32.f32 %v352_v29, %v296_v26 }
  0x50   : > { %7209 = vst [vmem:[#allocation95_spill] sm:$0xff] %v4954_v32  ;;  %7210 = vst [vmem:[#allocation96_spill] sm:$0xff] %v4957_v37  ;;  %v299_v41 = vand.u32 2147483647, %v4918_v51  ;;  %v300_v43 = vand.u32 2147483647, %v4921_v54  ;;  %v354_v51 = vmax.f32.f32 %v350_v28, %v294_v13  ;;  %v357_v13 = vmax.f32.f32 %v353_v57, %v297_v38 }
  0x51   : > { %7211 = vst [vmem:[#allocation97_spill] sm:$0xff] %v4963_v34  ;;  %v301_v46 = vand.u32 2147483647, %v4925_v58  ;;  %v302_v47 = vand.u32 2147483647, %v4928_v60  ;;  %v4969_v25 = vld [vmem:[%s4757_s27 + $0x1a0] sm:$0xff] }
  0x52   : > { %7212 = vst [vmem:[#allocation98_spill] sm:$0xff] %v4969_v25  ;;  %v4972_v44 = vld [vmem:[%s4757_s27 + $0x1a8] sm:$0xff]  ;;  %v4975_v50 = vld [vmem:[%s4757_s27 + $0x1b0] sm:$0xff]  ;;  %v303_v55 = vand.u32 2147483647, %v4931_v61  ;;  %v4982_v60 = vld [vmem:[%s4757_s27 + $0x1b8] sm:$0xff]  ;;  %v358_v35 = vmax.f32.f32 %v354_v51, %v298_v40  ;;  %v359_v14 = vmax.f32.f32 %v355_v20, %v299_v41  ;;  %v360_v26 = vmax.f32.f32 %v356_v6, %v300_v43 }
  0x53   : > { %7213 = vst [vmem:[#allocation99_spill] sm:$0xff] %v4972_v44  ;;  %7214 = vst [vmem:[#allocation100_spill] sm:$0xff] %v4975_v50  ;;  %v304_v54 = vand.u32 2147483647, %v4935_v8  ;;  %v305_v58 = vand.u32 2147483647, %v4941_v19  ;;  %v361_v51 = vmax.f32.f32 %v357_v13, %v301_v46 }
  0x54   : > { %v306_v62 = vand.u32 2147483647, %v4944_v22  ;;  %v4985_v16 = vld [vmem:[%s4757_s27 + $0x1c0] sm:$0xff]  ;;  %v4988_v11 = vld [vmem:[%s4757_s27 + $0x1c8] sm:$0xff]  ;;  %v307_v10 = vand.u32 2147483647, %v4947_v23  ;;  %v362_v20 = vmax.f32.f32 %v358_v35, %v302_v47  ;;  %v363_v41 = vmax.f32.f32 %v359_v14, %v303_v55 }
  0x55   : > { %7215 = vst [vmem:[#allocation101_spill] sm:$0xff] %v4988_v11  ;;  %v308_v17 = vand.u32 2147483647, %v4951_v31  ;;  %v309_v28 = vand.u32 2147483647, %v4954_v32  ;;  %v4995_v22 = vld [vmem:[%s4757_s27 + $0x1d0] sm:$0xff]  ;;  %v364_v31 = vmax.f32.f32 %v360_v26, %v304_v54  ;;  %v365_v61 = vmax.f32.f32 %v361_v51, %v305_v58 }
  0x56   : > { %v310_v29 = vand.u32 2147483647, %v4957_v37  ;;  %7216 = vst [vmem:[#allocation102_spill] sm:$0xff] %v4995_v22  ;;  %v4998_v19 = vld [vmem:[%s4757_s27 + $0x1d8] sm:$0xff]  ;;  %v5001_v8 = vld [vmem:[%s4757_s27 + $0x1e0] sm:$0xff]  ;;  %v5008_v37 = vld [vmem:[%s4757_s27 + $0x1e8] sm:$0xff]  ;;  %v367_v46 = vmax.f32.f32 %v363_v41, %v307_v10 }
  0x57   : > { %7217 = vst [vmem:[#allocation103_spill] sm:$0xff] %v4998_v19  ;;  %v311_v38 = vand.u32 2147483647, %v4963_v34  ;;  %v312_v40 = vand.u32 2147483647, %v4969_v25  ;;  %7218 = vst [vmem:[#allocation104_spill] sm:$0xff] %v5008_v37  ;;  %v366_v34 = vmax.f32.f32 %v362_v20, %v306_v62  ;;  %v368_v35 = vmax.f32.f32 %v364_v31, %v308_v17 }
  0x58   : > { %v313_v57 = vand.u32 2147483647, %v4972_v44  ;;  %v314_v32 = vand.u32 2147483647, %v4975_v50  ;;  %v5011_v43 = vld [vmem:[%s4757_s27 + $0x1f0] sm:$0xff]  ;;  %v5014_v6 = vld [vmem:[%s4757_s27 + $0x1f8] sm:$0xff]  ;;  %v369_v14 = vmax.f32.f32 %v365_v61, %v309_v28 }
  0x59   : > { %7219 = vst [vmem:[#allocation105_spill] sm:$0xff] %v5011_v43  ;;  %7220 = vst [vmem:[#allocation106_spill] sm:$0xff] %v5014_v6  ;;  %v315_v23 = vand.u32 2147483647, %v4982_v60  ;;  %v316_v47 = vand.u32 2147483647, %v4985_v16  ;;  %v370_v26 = vmax.f32.f32 %v366_v34, %v310_v29  ;;  %v371_v50 = vmax.f32.f32 %v367_v46, %v311_v38 }
  0x5a   : > { %v317_v55 = vand.u32 2147483647, %v4988_v11  ;;  %v318_v13 = vand.u32 2147483647, %v4995_v22  ;;  %v319_v54 = vand.u32 2147483647, %v4998_v19  ;;  %v372_v62 = vmax.f32.f32 %v368_v35, %v312_v40 }
  0x5b   : > { %v320_v44 = vand.u32 2147483647, %v5001_v8  ;;  %v321_v25 = vand.u32 2147483647, %v5008_v37  ;;  %v322_v58 = vand.u32 2147483647, %v5011_v43  ;;  %v373_v51 = vmax.f32.f32 %v369_v14, %v313_v57 }
  0x5c   : > { %v323_v10 = vand.u32 2147483647, %v5014_v6  ;;  %v374_v20 = vmax.f32.f32 %v370_v26, %v314_v32  ;;  %v375_v41 = vmax.f32.f32 %v371_v50, %v315_v23  ;;  %v376_v11 = vmax.f32.f32 %v372_v62, %v316_v47 }
  0x5d   : > { %v377_v22 = vmax.f32.f32 %v373_v51, %v317_v55 }
  0x5e   : > { %v378_v31 = vmax.f32.f32 %v374_v20, %v318_v13  ;;  %v379_v17 = vmax.f32.f32 %v375_v41, %v319_v54  ;;  %v380_v19 = vmax.f32.f32 %v376_v11, %v320_v44 }
  0x5f   : > { %v381_v61 = vmax.f32.f32 %v377_v22, %v321_v25 }
  0x60   : > { %v382_v34 = vmax.f32.f32 %v378_v31, %v322_v58  ;;  %v383_v28 = vmax.f32.f32 %v379_v17, %v323_v10 }
  0x61   : > { %v384_v29 = vmax.f32.f32 %v380_v19, %v381_v61 }
  0x62   : > { %v385_v38 = vmax.f32.f32 %v382_v34, %v383_v28 }
  0x64   : > { %v386_v46 = vmax.f32.f32 %v384_v29, %v385_v38 }
  0x66   : > { %387 = vmax.xlane.f32.xlu0 %v386_v46 }
  0xef   : > { %v388_v37 = vpop.xlane.xlu0 %387 }
  0xf0   : > { %v389_v43 = vrot.slane %v388_v37, 4 }
  0xf2   : > { %v390_v40 = vmax.f32 %v388_v37, %v389_v43 }
  0xf4   : > { %v391_v35 = vrot.slane %v390_v40, 2 }
  0xf6   : > { %v392_v6 = vmax.f32 %v390_v40, %v391_v35 }
  0xf8   : > { %v393_v57 = vrot.slane %v392_v6, 1 }
  0xfa   : > { %v394_v32 = vmax.f32 %v392_v6, %v393_v57 }
  0xfc   : > { %4507 = vpush %v394_v32 }
 0x12a   : > { %400 = sbr.rel (%p4307_p9) target bundleno = 305 (0x131), region = 36 }
 0x12d   : > { %s4508_s22 = spop %4507 }
 0x12e   : > { %v396_v50 = vstv %s4508_s22 }
 0x12f   : > { %vm401_vm0 = vcmask 0   ;;  %v4653_v11 = vmov 0.0  }
 0x130   : > { %402 = vst.msk [vmem:[#allocation6] sm:$0x1] %vm401_vm0, %v4653_v11 }
 0x131 PF: > { %vm405_vm1 = vcmask 0   ;;  %s407_s5 = sld [smem:[#allocation2]]  ;;  %v7221_v47 = vld [vmem:[#allocation73_spill] sm:$0xff]  ;;  %v7222_v55 = vld [vmem:[#allocation74_spill] sm:$0xff]  ;;  %v7223_v13 = vld [vmem:[#allocation75_spill] sm:$0xff] }
 0x132   : > { %v7224_v54 = vld [vmem:[#allocation76_spill] sm:$0xff]  ;;  %v7225_v14 = vld [vmem:[#allocation77_spill] sm:$0xff]  ;;  %v7226_v26 = vld [vmem:[#allocation78_spill] sm:$0xff] }
 0x133   : > { %v7227_v62 = vld [vmem:[#allocation79_spill] sm:$0xff]  ;;  %v7228_v51 = vld [vmem:[#allocation80_spill] sm:$0xff]  ;;  %v7229_v41 = vld [vmem:[#allocation81_spill] sm:$0xff] }
 0x134   : > { %v7230_v17 = vld [vmem:[#allocation82_spill] sm:$0xff]  ;;  %v7231_v34 = vld [vmem:[#allocation83_spill] sm:$0xff]  ;;  %v7232_v29 = vld [vmem:[#allocation84_spill] sm:$0xff] }
 0x135   : > { %v7233_v46 = vld [vmem:[#allocation85_spill] sm:$0xff]  ;;  %v7234_v35 = vld [vmem:[#allocation86_spill] sm:$0xff]  ;;  %v7235_v32 = vld [vmem:[#allocation87_spill] sm:$0xff] }
 0x136   : > { %v7236_v11 = vld [vmem:[#allocation88_spill] sm:$0xff] }
 0x137   : > { %v403_v25 = vld [vmem:[#allocation6] sm:$0x1]  ;;  %v5026_v37 = vstv %s407_s5 }
 0x138   : > { %v404_v44 = vmax.f32 %v403_v25, %v396_v50  ;;  %v5030_v19 = vmul.f32 %v5026_v37, %v4770_v0  ;;  %v5034_v22 = vmul.f32 %v5026_v37, %v4773_v1  ;;  %v5038_v23 = vmul.f32 %v5026_v37, %v4776_v2 }
 0x139   : > { %v5042_v43 = vmul.f32 %v5026_v37, %v4782_v4  ;;  %v5046_v6 = vmul.f32 %v5026_v37, %v4779_v3  ;;  %v5050_v0 = vmul.f32 %v5026_v37, %v4785_v5  ;;  %v5054_v1 = vmul.f32 %v5026_v37, %v4789_v7 }
 0x13a   : > { %406 = vst.msk [vmem:[#allocation6] sm:$0x1] %vm405_vm1, %v404_v44  ;;  %v5058_v2 = vmul.f32 %v5026_v37, %v4793_v9  ;;  %v5062_v4 = vmul.f32 %v5026_v37, %v4798_v12  ;;  %v5066_v3 = vmul.f32 %v5026_v37, %v4803_v15  ;;  %v5070_v5 = vmul.f32 %v5026_v37, %v4807_v18  ;;  %v7237_v44 = vld [vmem:[#allocation89_spill] sm:$0xff] }
 0x13b   : > { %v5074_v7 = vmul.f32 %v5026_v37, %v4811_v21  ;;  %v5078_v9 = vmul.f32 %v5026_v37, %v4815_v24  ;;  %v5082_v12 = vmul.f32 %v5026_v37, %v4819_v27  ;;  %v5086_v15 = vmul.f32 %v5026_v37, %v4823_v30 }
 0x13c   : > { %v5090_v18 = vmul.f32 %v5026_v37, %v4827_v33  ;;  %v5094_v21 = vmul.f32 %v5026_v37, %v4831_v36  ;;  %v5098_v24 = vmul.f32 %v5026_v37, %v4835_v39  ;;  %v5102_v27 = vmul.f32 %v5026_v37, %v4839_v42 }
 0x13d   : > { %v5106_v30 = vmul.f32 %v5026_v37, %v4843_v45  ;;  %v5110_v33 = vmul.f32 %v5026_v37, %v4847_v48  ;;  %v5114_v36 = vmul.f32 %v5026_v37, %v4850_v49  ;;  %v5118_v39 = vmul.f32 %v5026_v37, %v4854_v52 }
 0x13e   : > { %v5122_v42 = vmul.f32 %v5026_v37, %v4857_v53  ;;  %v5126_v45 = vmul.f32 %v5026_v37, %v4861_v56  ;;  %v5130_v48 = vmul.f32 %v5026_v37, %v4865_v59  ;;  %v5134_v49 = vmul.f32 %v5026_v37, %v4870_v63 }
 0x13f   : > { %v5138_v52 = vmul.f32 %v5026_v37, %v7221_v47  ;;  %v5142_v53 = vmul.f32 %v5026_v37, %v7222_v55  ;;  %v5146_v56 = vmul.f32 %v5026_v37, %v7223_v13  ;;  %v5150_v59 = vmul.f32 %v5026_v37, %v7224_v54  ;;  %v7238_v55 = vld [vmem:[#allocation90_spill] sm:$0xff]  ;;  %v7239_v54 = vld [vmem:[#allocation91_spill] sm:$0xff] }
 0x140   : > { %v5154_v63 = vmul.f32 %v5026_v37, %v7225_v14  ;;  %v5158_v58 = vmul.f32 %v5026_v37, %v7226_v26  ;;  %v5162_v10 = vmul.f32 %v5026_v37, %v7227_v62  ;;  %v5166_v20 = vmul.f32 %v5026_v37, %v7228_v51  ;;  %v7240_v26 = vld [vmem:[#allocation92_spill] sm:$0xff]  ;;  %v7242_v51 = vld [vmem:[#allocation93_spill] sm:$0xff] }
 0x141   : > { %v5170_v31 = vmul.f32 %v5026_v37, %v7229_v41  ;;  %v5174_v61 = vmul.f32 %v5026_v37, %v7230_v17  ;;  %v5178_v28 = vmul.f32 %v5026_v37, %v7231_v34  ;;  %v5182_v38 = vmul.f32 %v5026_v37, %v7232_v29  ;;  %v7244_v17 = vld [vmem:[#allocation94_spill] sm:$0xff]  ;;  %v7246_v29 = vld [vmem:[#allocation95_spill] sm:$0xff] }
 0x142   : > { %v5186_v40 = vmul.f32 %v5026_v37, %v7233_v46  ;;  %v5190_v57 = vmul.f32 %v5026_v37, %v7234_v35  ;;  %v5194_v50 = vmul.f32 %v5026_v37, %v7235_v32  ;;  %v5198_v25 = vmul.f32 %v5026_v37, %v7236_v11  ;;  %v7248_v35 = vld [vmem:[#allocation96_spill] sm:$0xff]  ;;  %v7250_v11 = vld [vmem:[#allocation97_spill] sm:$0xff] }
 0x143   : > { %v5202_v47 = vmul.f32 %v5026_v37, %v7237_v44  ;;  %v5206_v13 = vmul.f32 %v5026_v37, %v7238_v55  ;;  %v5210_v14 = vmul.f32 %v5026_v37, %v7239_v54  ;;  %v5214_v62 = vmul.f32 %v5026_v37, %v7240_v26  ;;  %v7252_v55 = vld [vmem:[#allocation98_spill] sm:$0xff]  ;;  %v7253_v26 = vld [vmem:[#allocation99_spill] sm:$0xff] }
 0x144   : > { %v5218_v41 = vmul.f32 %v5026_v37, %v7242_v51  ;;  %v5222_v34 = vmul.f32 %v5026_v37, %v7244_v17  ;;  %v5226_v46 = vmul.f32 %v5026_v37, %v7246_v29  ;;  %v5230_v32 = vmul.f32 %v5026_v37, %v7248_v35  ;;  %v7254_v17 = vld [vmem:[#allocation100_spill] sm:$0xff] }
 0x145   : > { %7241 = vst [vmem:[#allocation73_spill] sm:$0xff] %v5214_v62  ;;  %v5234_v44 = vmul.f32 %v5026_v37, %v7250_v11  ;;  %v461_v54 = vmul.f32 %v5026_v37, %v7252_v55  ;;  %v462_v51 = vmul.f32 %v5026_v37, %v7253_v26  ;;  %v5244_v29 = vmul.f32 %v5026_v37, %v4982_v60  ;;  %v7258_v55 = vld [vmem:[#allocation103_spill] sm:$0xff]  ;;  %v7264_v62 = vld [vmem:[#allocation106_spill] sm:$0xff] }
 0x146   : > { %7243 = vst [vmem:[#allocation74_spill] sm:$0xff] %v5218_v41  ;;  %7245 = vst [vmem:[#allocation75_spill] sm:$0xff] %v5222_v34  ;;  %v463_v34 = vmul.f32 %v5026_v37, %v7254_v17  ;;  %v465_v35 = vmul.f32 %v5026_v37, %v4985_v16  ;;  %v5254_v41 = vmul.f32 %v5026_v37, %v7258_v55  ;;  %v7260_v17 = vld [vmem:[#allocation104_spill] sm:$0xff]  ;;  %v5274_v55 = vclamps-f32 %v5034_v22, 240.0 }
 0x147   : > { %7247 = vst [vmem:[#allocation76_spill] sm:$0xff] %v5226_v46  ;;  %7249 = vst [vmem:[#allocation77_spill] sm:$0xff] %v5230_v32  ;;  %v7256_v32 = vld [vmem:[#allocation101_spill] sm:$0xff]  ;;  %v469_v26 = vmul.f32 %v5026_v37, %v5001_v8  ;;  %v5260_v60 = vmul.f32 %v5026_v37, %v7260_v17  ;;  %v5277_v8 = vclamps-f32 %v5038_v23, 240.0  ;;  %v5280_v17 = vclamps-f32 %v5042_v43, 240.0 }
 0x148   : > { %7251 = vst [vmem:[#allocation78_spill] sm:$0xff] %v5234_v44  ;;  %7255 = vst [vmem:[#allocation79_spill] sm:$0xff] %v5244_v29  ;;  %v466_v11 = vmul.f32 %v5026_v37, %v7256_v32  ;;  %v7257_v44 = vld [vmem:[#allocation102_spill] sm:$0xff]  ;;  %v7262_v29 = vld [vmem:[#allocation105_spill] sm:$0xff]  ;;  %v5268_v32 = vmul.f32 %v5026_v37, %v7264_v62  ;;  %v5295_v22 = vclamps-f32 %v5062_v4, 240.0  ;;  %v5298_v23 = vclamps-f32 %v5066_v3, 240.0 }
 0x149   : > { %v467_v46 = vmul.f32 %v5026_v37, %v7257_v44  ;;  %7259 = vst [vmem:[#allocation80_spill] sm:$0xff] %v5254_v41  ;;  %7261 = vst [vmem:[#allocation81_spill] sm:$0xff] %v5260_v60  ;;  %v5264_v16 = vmul.f32 %v5026_v37, %v7262_v29  ;;  %v5271_v44 = vclamps-f32 %v5030_v19, 240.0  ;;  %v5283_v41 = vclamps-f32 %v5046_v6, 240.0 }
 0x14a   : > { %7265 = vst [vmem:[#allocation83_spill] sm:$0xff] %v5268_v32  ;;  %v5286_v29 = vclamps-f32 %v5050_v0, 240.0  ;;  %v5289_v37 = vclamps-f32 %v5054_v1, 240.0  ;;  %v5292_v19 = vclamps-f32 %v5058_v2, 240.0  ;;  %v5301_v43 = vclamps-f32 %v5070_v5, 240.0 }
 0x14b   : > { %7263 = vst [vmem:[#allocation82_spill] sm:$0xff] %v5264_v16  ;;  %v5304_v6 = vclamps-f32 %v5074_v7, 240.0  ;;  %v5307_v0 = vclamps-f32 %v5078_v9, 240.0  ;;  %v5310_v1 = vclamps-f32 %v5082_v12, 240.0  ;;  %v5313_v2 = vclamps-f32 %v5086_v15, 240.0 }
 0x14c   : > { %v5316_v4 = vclamps-f32 %v5090_v18, 240.0  ;;  %v5319_v3 = vclamps-f32 %v5094_v21, 240.0  ;;  %v5322_v5 = vclamps-f32 %v5098_v24, 240.0  ;;  %v5325_v7 = vclamps-f32 %v5102_v27, 240.0 }
 0x14d   : > { %v5328_v9 = vclamps-f32 %v5106_v30, 240.0  ;;  %v5331_v12 = vclamps-f32 %v5110_v33, 240.0  ;;  %v5334_v15 = vclamps-f32 %v5114_v36, 240.0  ;;  %v5337_v18 = vclamps-f32 %v5118_v39, 240.0 }
 0x14e   : > { %v5340_v21 = vclamps-f32 %v5122_v42, 240.0  ;;  %v5343_v24 = vclamps-f32 %v5126_v45, 240.0  ;;  %v5346_v27 = vclamps-f32 %v5130_v48, 240.0  ;;  %v5349_v30 = vclamps-f32 %v5134_v49, 240.0 }
 0x14f   : > { %v5352_v33 = vclamps-f32 %v5138_v52, 240.0  ;;  %v5355_v36 = vclamps-f32 %v5142_v53, 240.0  ;;  %v5358_v39 = vclamps-f32 %v5146_v56, 240.0  ;;  %v5361_v42 = vclamps-f32 %v5150_v59, 240.0 }
 0x150   : > { %v5364_v45 = vclamps-f32 %v5154_v63, 240.0  ;;  %v5367_v48 = vclamps-f32 %v5158_v58, 240.0  ;;  %v5370_v49 = vclamps-f32 %v5162_v10, 240.0  ;;  %v5373_v52 = vclamps-f32 %v5166_v20, 240.0 }
 0x151   : > { %v5376_v53 = vclamps-f32 %v5170_v31, 240.0  ;;  %v5379_v56 = vclamps-f32 %v5174_v61, 240.0  ;;  %v5382_v59 = vclamps-f32 %v5178_v28, 240.0  ;;  %v5385_v63 = vclamps-f32 %v5182_v38, 240.0 }
 0x152   : > { %v5388_v58 = vclamps-f32 %v5186_v40, 240.0  ;;  %v5391_v10 = vclamps-f32 %v5190_v57, 240.0  ;;  %v5394_v20 = vclamps-f32 %v5194_v50, 240.0  ;;  %v5397_v31 = vclamps-f32 %v5198_v25, 240.0  ;;  %v7271_v40 = vld [vmem:[#allocation73_spill] sm:$0xff]  ;;  %v7273_v57 = vld [vmem:[#allocation74_spill] sm:$0xff] }
 0x153   : > { %7266 = vst [vmem:[#allocation84_spill] sm:$0xff] %v5376_v53  ;;  %7267 = vst [vmem:[#allocation85_spill] sm:$0xff] %v5385_v63  ;;  %v5400_v61 = vclamps-f32 %v5202_v47, 240.0  ;;  %v5403_v28 = vclamps-f32 %v5206_v13, 240.0  ;;  %v5406_v38 = vclamps-f32 %v5210_v14, 240.0  ;;  %v5409_v62 = vclamps-f32 %v7271_v40, 240.0 }
 0x154   : > { %7268 = vst [vmem:[#allocation86_spill] sm:$0xff] %v5388_v58  ;;  %7269 = vst [vmem:[#allocation87_spill] sm:$0xff] %v5397_v31  ;;  %v5412_v32 = vclamps-f32 %v7273_v57, 240.0  ;;  %v7275_v50 = vld [vmem:[#allocation75_spill] sm:$0xff]  ;;  %v7277_v25 = vld [vmem:[#allocation76_spill] sm:$0xff]  ;;  %v5423_v13 = vclamps-f32 %v461_v54, 240.0  ;;  %vm616_vm2 = vcmp.ne.f32.partialorder %v5271_v44, %v5271_v44  ;;  %vm637_vm3 = vcmp.ne.f32.partialorder %v5283_v41, %v5283_v41 }
 0x155   : > { %7270 = vst [vmem:[#allocation88_spill] sm:$0xff] %v5400_v61  ;;  %7272 = vst [vmem:[#allocation89_spill] sm:$0xff] %v5409_v62  ;;  %v5415_v16 = vclamps-f32 %v7275_v50, 240.0  ;;  %v5418_v60 = vclamps-f32 %v7277_v25, 240.0  ;;  %v7279_v47 = vld [vmem:[#allocation77_spill] sm:$0xff]  ;;  %v5425_v58 = vclamps-f32 %v462_v51, 240.0  ;;  %vm658_vm10 = vcmp.ne.f32.partialorder %v5295_v22, %v5295_v22 }
 0x156   : > { %7274 = vst [vmem:[#allocation90_spill] sm:$0xff] %v5412_v32  ;;  %v5421_v61 = vclamps-f32 %v7279_v47, 240.0  ;;  %7281 = vst [vmem:[#allocation94_spill] sm:$0xff] %v5423_v13  ;;  %v5427_v14 = vclamps-f32 %v463_v34, 240.0  ;;  %v5429_v40 = vclamps-f32 %v465_v35, 240.0  ;;  %v5431_v53 = vclamps-f32 %v466_v11, 240.0 }
 0x157   : > { %7276 = vst [vmem:[#allocation91_spill] sm:$0xff] %v5415_v16  ;;  %7278 = vst [vmem:[#allocation92_spill] sm:$0xff] %v5418_v60  ;;  %v5433_v57 = vclamps-f32 %v467_v46, 240.0  ;;  %v601_v50 = vand.u32 2147483647, %v5271_v44  ;;  %v607_v25 = vshrl.u32 %v5271_v44, 20  ;;  %vm679_vm13 = vcmp.ne.f32.partialorder %v5307_v0, %v5307_v0 }
 0x158   : > { %7280 = vst [vmem:[#allocation93_spill] sm:$0xff] %v5421_v61  ;;  %7282 = vst [vmem:[#allocation95_spill] sm:$0xff] %v5425_v58  ;;  %v5437_v60 = vclamps-f32 %v469_v26, 240.0  ;;  %v602_v47 = vand.u32 2147483648, %v5271_v44  ;;  %v622_v54 = vand.u32 2147483647, %v5283_v41  ;;  %vm704_vm14 = vcmp.ne.f32.partialorder %v5274_v55, %v5274_v55 }
 0x159   : > { %7283 = vst [vmem:[#allocation96_spill] sm:$0xff] %v5427_v14  ;;  %7284 = vst [vmem:[#allocation97_spill] sm:$0xff] %v5429_v40  ;;  %v628_v51 = vshrl.u32 %v5283_v41, 20  ;;  %v604_v34 = vadd.f32 1182793728, %v601_v50  ;;  %v608_v14 = vand.u32 1, %v607_v25  ;;  %v623_v46 = vand.u32 2147483648, %v5283_v41 }
 0x15a   : > { %7285 = vst [vmem:[#allocation98_spill] sm:$0xff] %v5431_v53  ;;  %7286 = vst [vmem:[#allocation99_spill] sm:$0xff] %v5433_v57  ;;  %v609_v35 = vadd.s32 3288858623, %v601_v50  ;;  %v625_v11 = vadd.f32 1182793728, %v622_v54  ;;  %vm612_vm4 = vcmp.lt.s32.totalorder %v601_v50, 1015021568  ;;  %vm725_vm1 = vcmp.ne.f32.partialorder %v5286_v29, %v5286_v29 }
 0x15b   : > { %7287 = vst [vmem:[#allocation100_spill] sm:$0xff] %v5437_v60  ;;  %v629_v57 = vand.u32 1, %v628_v51  ;;  %v4372_v26 = vadd.s32 3112173568, %v604_v34  ;;  %v630_v53 = vadd.s32 3288858623, %v622_v54  ;;  %v618_v58 = vshrl.u32 %v602_v47, 24 }
 0x15c   : > { %v610_v61 = vadd.s32 %v609_v35, %v608_v14  ;;  %vm614_vm5 = vcmp.ge.s32.totalorder %v601_v50, 1139277825  ;;  %vm633_vm6 = vcmp.lt.s32.totalorder %v622_v54, 1015021568  ;;  %v643_v25 = vand.u32 2147483647, %v5295_v22 }
 0x15d   : > { %v4373_v40 = vadd.s32 3112173568, %v625_v11  ;;  %v631_v13 = vadd.s32 %v630_v53, %v629_v57  ;;  %v649_v16 = vshrl.u32 %v5295_v22, 20  ;;  %vm635_vm7 = vcmp.ge.s32.totalorder %v622_v54, 1139277825 }
 0x15e   : > { %v611_v60 = vshrl.u32 %v610_v61, 20  ;;  %v639_v32 = vshrl.u32 %v623_v46, 24  ;;  %v646_v51 = vadd.f32 1182793728, %v643_v25  ;;  %v651_v62 = vadd.s32 3288858623, %v643_v25 }
 0x15f   : > { %v632_v63 = vshrl.u32 %v631_v13, 20  ;;  %v644_v14 = vand.u32 2147483648, %v5295_v22  ;;  %v650_v34 = vand.u32 1, %v649_v16  ;;  %vm654_vm8 = vcmp.lt.s32.totalorder %v643_v25, 1015021568 }
 0x160   : > { %v613_v31 = vsel %vm612_vm4, %v4372_v26, %v611_v60  ;;  %vm656_vm9 = vcmp.ge.s32.totalorder %v643_v25, 1139277825  ;;  %v664_v47 = vand.u32 2147483647, %v5307_v0  ;;  %v4374_v57 = vadd.s32 3112173568, %v646_v51 }
 0x161   : > { %v615_v35 = vsel %vm614_vm5, 127, %v613_v31  ;;  %v634_v61 = vsel %vm633_vm6, %v4373_v40, %v632_v63  ;;  %v652_v46 = vadd.s32 %v651_v62, %v650_v34  ;;  %v670_v16 = vshrl.u32 %v5307_v0, 20 }
 0x162   : > { %v617_v53 = vsel %vm616_vm2, 127, %v615_v35  ;;  %v636_v60 = vsel %vm635_vm7, 127, %v634_v61  ;;  %v667_v13 = vadd.f32 1182793728, %v664_v47  ;;  %v672_v44 = vadd.s32 3288858623, %v664_v47 }
 0x163   : > { %v619_v11 = vor.u32 %v618_v58, %v617_v53  ;;  %v638_v31 = vsel %vm637_vm3, 127, %v636_v60  ;;  %v653_v50 = vshrl.u32 %v652_v46, 20  ;;  %v660_v35 = vshrl.u32 %v644_v14, 24 }
 0x164   : > { %v640_v26 = vor.u32 %v639_v32, %v638_v31  ;;  %v665_v63 = vand.u32 2147483648, %v5307_v0  ;;  %v671_v62 = vand.u32 1, %v670_v16  ;;  %v4375_v54 = vadd.s32 3112173568, %v667_v13 }
 0x165   : > { %v620_v58 = vor.u32 4294967040, %v619_v11  ;;  %v655_v40 = vsel %vm654_vm8, %v4374_v57, %v653_v50  ;;  %vm675_vm11 = vcmp.lt.s32.totalorder %v664_v47, 1015021568  ;;  %v689_v53 = vand.u32 2147483647, %v5274_v55 }
 0x166   : > { %v641_v51 = vor.u32 4294967040, %v640_v26  ;;  %v657_v34 = vsel %vm656_vm9, 127, %v655_v40  ;;  %v673_v41 = vadd.s32 %v672_v44, %v671_v62  ;;  %vm677_vm12 = vcmp.ge.s32.totalorder %v664_v47, 1139277825 }
 0x167   : > { %v659_v61 = vsel %vm658_vm10, 127, %v657_v34  ;;  %v695_v32 = vshrl.u32 %v5274_v55, 20  ;;  %v681_v46 = vshrl.u32 %v665_v63, 24  ;;  %v692_v11 = vadd.f32 1182793728, %v689_v53 }
 0x168   : > { %v661_v22 = vor.u32 %v660_v35, %v659_v61  ;;  %v674_v14 = vshrl.u32 %v673_v41, 20  ;;  %v690_v57 = vand.u32 2147483648, %v5274_v55  ;;  %v697_v13 = vadd.s32 3288858623, %v689_v53 }
 0x169   : > { %v696_v60 = vand.u32 1, %v695_v32  ;;  %v685_v16 = vpack.c.b16 %v641_v51, %v620_v58  ;;  %vm700_vm15 = vcmp.lt.s32.totalorder %v689_v53, 1015021568  ;;  %vm702_vm0 = vcmp.ge.s32.totalorder %v689_v53, 1139277825 }
 0x16a   : > { %v676_v25 = vsel %vm675_vm11, %v4375_v54, %v674_v14  ;;  %v4376_v50 = vadd.s32 3112173568, %v692_v11  ;;  %v710_v26 = vand.u32 2147483647, %v5286_v29  ;;  %v662_v35 = vor.u32 4294967040, %v661_v22 }
 0x16b   : > { %v678_v31 = vsel %vm677_vm12, 127, %v676_v25  ;;  %v698_v44 = vadd.s32 %v697_v13, %v696_v60  ;;  %v716_v62 = vshrl.u32 %v5286_v29, 20  ;;  %v731_v40 = vand.u32 2147483647, %v5298_v23 }
 0x16c   : > { %v680_v63 = vsel %vm679_vm13, 127, %v678_v31  ;;  %v713_v54 = vadd.f32 1182793728, %v710_v26  ;;  %v718_v58 = vadd.s32 3288858623, %v710_v26  ;;  %v706_v51 = vshrl.u32 %v690_v57, 24 }
 0x16d   : > { %v682_v34 = vor.u32 %v681_v46, %v680_v63  ;;  %v699_v47 = vshrl.u32 %v698_v44, 20  ;;  %v711_v41 = vand.u32 2147483648, %v5286_v29  ;;  %v717_v61 = vand.u32 1, %v716_v62 }
 0x16e   : > { %v4377_v0 = vadd.s32 3112173568, %v713_v54  ;;  %vm721_vm2 = vcmp.lt.s32.totalorder %v710_v26, 1015021568  ;;  %v734_v60 = vadd.f32 1182793728, %v731_v40  ;;  %v737_v46 = vshrl.u32 %v5298_v23, 20 }
 0x16f   : > { %v683_v32 = vor.u32 4294967040, %v682_v34  ;;  %v701_v22 = vsel %vm700_vm15, %v4376_v50, %v699_v47  ;;  %v719_v11 = vadd.s32 %v718_v58, %v717_v61  ;;  %v732_v25 = vand.u32 2147483648, %v5298_v23 }
 0x170   : > { %v703_v14 = vsel %vm702_vm0, 127, %v701_v22  ;;  %v739_v31 = vadd.s32 3288858623, %v731_v40  ;;  %vm723_vm3 = vcmp.ge.s32.totalorder %v710_v26, 1139277825  ;;  %v727_v63 = vshrl.u32 %v711_v41, 24 }
 0x171   : > { %v686_v13 = vpack.c.b16 %v683_v32, %v662_v35  ;;  %v705_v57 = vsel %vm704_vm14, 127, %v703_v14  ;;  %v720_v44 = vshrl.u32 %v719_v11, 20  ;;  %v738_v50 = vand.u32 1, %v737_v46 }
 0x172   : > { %v707_v53 = vor.u32 %v706_v51, %v705_v57  ;;  %v4378_v34 = vadd.s32 3112173568, %v734_v60  ;;  %vm742_vm4 = vcmp.lt.s32.totalorder %v731_v40, 1015021568  ;;  %vm744_vm5 = vcmp.ge.s32.totalorder %v731_v40, 1139277825 }
 0x173   : > { %v5490_v62 = vpack.c.b8 %v686_v13, %v685_v16  ;;  %v722_v47 = vsel %vm721_vm2, %v4377_v0, %v720_v44  ;;  %v740_v54 = vadd.s32 %v739_v31, %v738_v50  ;;  %v752_v35 = vand.u32 2147483647, %v5310_v1 }
 0x174   : > { %v724_v55 = vsel %vm723_vm3, 127, %v722_v47  ;;  %vm746_vm6 = vcmp.ne.f32.partialorder %v5298_v23, %v5298_v23  ;;  %v748_v58 = vshrl.u32 %v732_v25, 24  ;;  %v758_v61 = vshrl.u32 %v5310_v1, 20 }
 0x175   : > { %v726_v16 = vsel %vm725_vm1, 127, %v724_v55  ;;  %v741_v51 = vshrl.u32 %v740_v54, 20  ;;  %v755_v41 = vadd.f32 1182793728, %v752_v35  ;;  %v760_v32 = vadd.s32 3288858623, %v752_v35 }
 0x176   : > { %v708_v26 = vor.u32 4294967040, %v707_v53  ;;  %v728_v22 = vor.u32 %v727_v63, %v726_v16  ;;  %v753_v0 = vand.u32 2147483648, %v5310_v1  ;;  %v759_v14 = vand.u32 1, %v758_v61 }
 0x177   : > { %v743_v11 = vsel %vm742_vm4, %v4378_v34, %v741_v51  ;;  %vm763_vm7 = vcmp.lt.s32.totalorder %v752_v35, 1015021568  ;;  %vm767_vm8 = vcmp.ne.f32.partialorder %v5310_v1, %v5310_v1  ;;  %v777_v60 = vand.u32 2147483647, %v5277_v8 }
 0x178   : > { %v729_v46 = vor.u32 4294967040, %v728_v22  ;;  %v745_v29 = vsel %vm744_vm5, 127, %v743_v11  ;;  %v4379_v13 = vadd.s32 3112173568, %v755_v41  ;;  %v761_v57 = vadd.s32 %v760_v32, %v759_v14 }
 0x179   : > { %v747_v25 = vsel %vm746_vm6, 127, %v745_v29  ;;  %v780_v31 = vadd.f32 1182793728, %v777_v60  ;;  %v783_v44 = vshrl.u32 %v5277_v8, 20  ;;  %v785_v63 = vadd.s32 3288858623, %v777_v60 }
 0x17a   : > { %v749_v50 = vor.u32 %v748_v58, %v747_v25  ;;  %v762_v53 = vshrl.u32 %v761_v57, 20  ;;  %vm765_vm9 = vcmp.ge.s32.totalorder %v752_v35, 1139277825  ;;  %v769_v34 = vshrl.u32 %v753_v0, 24 }
 0x17b   : > { %v773_v47 = vpack.c.b16 %v729_v46, %v708_v26  ;;  %v778_v54 = vand.u32 2147483648, %v5277_v8  ;;  %v784_v55 = vand.u32 1, %v783_v44  ;;  %vm788_vm10 = vcmp.lt.s32.totalorder %v777_v60, 1015021568 }
 0x17c   : > { %v764_v40 = vsel %vm763_vm7, %v4379_v13, %v762_v53  ;;  %v4380_v61 = vadd.s32 3112173568, %v780_v31  ;;  %vm790_vm11 = vcmp.ge.s32.totalorder %v777_v60, 1139277825  ;;  %v798_v23 = vand.u32 2147483647, %v5289_v37 }
 0x17d   : > { %v766_v16 = vsel %vm765_vm9, 127, %v764_v40  ;;  %v786_v51 = vadd.s32 %v785_v63, %v784_v55  ;;  %vm792_vm12 = vcmp.ne.f32.partialorder %v5277_v8, %v5277_v8  ;;  %v804_v58 = vshrl.u32 %v5289_v37, 20 }
 0x17e   : > { %v750_v41 = vor.u32 4294967040, %v749_v50  ;;  %v768_v32 = vsel %vm767_vm8, 127, %v766_v16  ;;  %v801_v26 = vadd.f32 1182793728, %v798_v23  ;;  %v806_v22 = vadd.s32 3288858623, %v798_v23 }
 0x17f   : > { %v770_v35 = vor.u32 %v769_v34, %v768_v32  ;;  %v787_v0 = vshrl.u32 %v786_v51, 20  ;;  %v794_v14 = vshrl.u32 %v778_v54, 24  ;;  %v805_v11 = vand.u32 1, %v804_v58 }
 0x180   : > { %v799_v46 = vand.u32 2147483648, %v5289_v37  ;;  %vm809_vm13 = vcmp.lt.s32.totalorder %v798_v23, 1015021568  ;;  %vm811_vm14 = vcmp.ge.s32.totalorder %v798_v23, 1139277825  ;;  %v819_v29 = vand.u32 2147483647, %v5301_v43 }
 0x181   : > { %v771_v13 = vor.u32 4294967040, %v770_v35  ;;  %v789_v57 = vsel %vm788_vm10, %v4380_v61, %v787_v0  ;;  %v4381_v25 = vadd.s32 3112173568, %v801_v26  ;;  %v807_v31 = vadd.s32 %v806_v22, %v805_v11 }
 0x182   : > { %v791_v1 = vsel %vm790_vm11, 127, %v789_v57  ;;  %v822_v44 = vadd.f32 1182793728, %v819_v29  ;;  %v825_v63 = vshrl.u32 %v5301_v43, 20  ;;  %v827_v50 = vadd.s32 3288858623, %v819_v29 }
 0x183   : > { %v774_v53 = vpack.c.b16 %v771_v13, %v750_v41  ;;  %v793_v34 = vsel %vm792_vm12, 127, %v791_v1  ;;  %v808_v54 = vshrl.u32 %v807_v31, 20  ;;  %v820_v55 = vand.u32 2147483648, %v5301_v43 }
 0x184   : > { %vm813_vm15 = vcmp.ne.f32.partialorder %v5289_v37, %v5289_v37  ;;  %v815_v40 = vshrl.u32 %v799_v46, 24  ;;  %v826_v61 = vand.u32 1, %v825_v63  ;;  %vm830_vm0 = vcmp.lt.s32.totalorder %v819_v29, 1015021568 }
 0x185   : > { %v5530_v60 = vpack.c.b8 %v774_v53, %v773_v47  ;;  %v795_v16 = vor.u32 %v794_v14, %v793_v34  ;;  %v810_v51 = vsel %vm809_vm13, %v4381_v25, %v808_v54  ;;  %v4382_v58 = vadd.s32 3112173568, %v822_v44 }
 0x186   : > { %v812_v41 = vsel %vm811_vm14, 127, %v810_v51  ;;  %v828_v32 = vadd.s32 %v827_v50, %v826_v61  ;;  %vm832_vm1 = vcmp.ge.s32.totalorder %v819_v29, 1139277825  ;;  %v840_v8 = vand.u32 2147483647, %v5313_v2 }
 0x187   : > { %v814_v26 = vsel %vm813_vm15, 127, %v812_v41  ;;  %vm834_vm2 = vcmp.ne.f32.partialorder %v5301_v43, %v5301_v43  ;;  %v836_v37 = vshrl.u32 %v820_v55, 24  ;;  %v846_v22 = vshrl.u32 %v5313_v2, 20 }
 0x188   : > { %v816_v35 = vor.u32 %v815_v40, %v814_v26  ;;  %v829_v47 = vshrl.u32 %v828_v32, 20  ;;  %v843_v0 = vadd.f32 1182793728, %v840_v8  ;;  %v848_v14 = vadd.s32 3288858623, %v840_v8 }
 0x189   : > { %v796_v11 = vor.u32 4294967040, %v795_v16  ;;  %v841_v46 = vand.u32 2147483648, %v5313_v2  ;;  %v847_v23 = vand.u32 1, %v846_v22  ;;  %vm855_vm3 = vcmp.ne.f32.partialorder %v5313_v2, %v5313_v2 }
 0x18a   : > { %v817_v13 = vor.u32 4294967040, %v816_v35  ;;  %v831_v57 = vsel %vm830_vm0, %v4382_v58, %v829_v47  ;;  %vm851_vm4 = vcmp.lt.s32.totalorder %v840_v8, 1015021568  ;;  %v865_v25 = vand.u32 2147483647, %v5280_v17 }
 0x18b   : > { %v833_v31 = vsel %vm832_vm1, 127, %v831_v57  ;;  %v4383_v1 = vadd.s32 3112173568, %v843_v0  ;;  %v849_v44 = vadd.s32 %v848_v14, %v847_v23  ;;  %v871_v63 = vshrl.u32 %v5280_v17, 20 }
 0x18c   : > { %v835_v50 = vsel %vm834_vm2, 127, %v833_v31  ;;  %v866_v53 = vand.u32 2147483648, %v5280_v17  ;;  %v868_v34 = vadd.f32 1182793728, %v865_v25  ;;  %v873_v54 = vadd.s32 3288858623, %v865_v25 }
 0x18d   : > { %v850_v55 = vshrl.u32 %v849_v44, 20  ;;  %vm853_vm5 = vcmp.ge.s32.totalorder %v840_v8, 1139277825  ;;  %v857_v40 = vshrl.u32 %v841_v46, 24  ;;  %v872_v61 = vand.u32 1, %v871_v63 }
 0x18e   : > { %v837_v16 = vor.u32 %v836_v37, %v835_v50  ;;  %v861_v51 = vpack.c.b16 %v817_v13, %v796_v11  ;;  %v4384_v29 = vadd.s32 3112173568, %v868_v34  ;;  %vm876_vm6 = vcmp.lt.s32.totalorder %v865_v25, 1015021568 }
 0x18f   : > { %v852_v58 = vsel %vm851_vm4, %v4383_v1, %v850_v55  ;;  %v874_v41 = vadd.s32 %v873_v54, %v872_v61  ;;  %vm878_vm7 = vcmp.ge.s32.totalorder %v865_v25, 1139277825  ;;  %v886_v32 = vand.u32 2147483647, %v5292_v19 }
 0x190   : > { %v854_v43 = vsel %vm853_vm5, 127, %v852_v58  ;;  %vm880_vm8 = vcmp.ne.f32.partialorder %v5280_v17, %v5280_v17  ;;  %v882_v26 = vshrl.u32 %v866_v53, 24  ;;  %v892_v22 = vshrl.u32 %v5292_v19, 20 }
 0x191   : > { %v856_v37 = vsel %vm855_vm3, 127, %v854_v43  ;;  %v875_v35 = vshrl.u32 %v874_v41, 20  ;;  %v889_v47 = vadd.f32 1182793728, %v886_v32  ;;  %v894_v0 = vadd.s32 3288858623, %v886_v32 }
 0x192   : > { %v838_v8 = vor.u32 4294967040, %v837_v16  ;;  %v858_v14 = vor.u32 %v857_v40, %v856_v37  ;;  %v887_v11 = vand.u32 2147483648, %v5292_v19  ;;  %v893_v46 = vand.u32 1, %v892_v22 }
 0x193   : > { %v877_v23 = vsel %vm876_vm6, %v4384_v29, %v875_v35  ;;  %vm897_vm9 = vcmp.lt.s32.totalorder %v886_v32, 1015021568  ;;  %vm901_vm10 = vcmp.ne.f32.partialorder %v5292_v19, %v5292_v19  ;;  %v907_v13 = vand.u32 2147483647, %v5304_v6 }
 0x194   : > { %v859_v57 = vor.u32 4294967040, %v858_v14  ;;  %v879_v2 = vsel %vm878_vm7, 127, %v877_v23  ;;  %v4385_v31 = vadd.s32 3112173568, %v889_v47  ;;  %v895_v1 = vadd.s32 %v894_v0, %v893_v46 }
 0x195   : > { %v881_v44 = vsel %vm880_vm8, 127, %v879_v2  ;;  %v910_v63 = vadd.f32 1182793728, %v907_v13  ;;  %v913_v50 = vshrl.u32 %v5304_v6, 20  ;;  %v915_v53 = vadd.s32 3288858623, %v907_v13 }
 0x196   : > { %v862_v34 = vpack.c.b16 %v859_v57, %v838_v8  ;;  %v896_v54 = vshrl.u32 %v895_v1, 20  ;;  %vm899_vm11 = vcmp.ge.s32.totalorder %v886_v32, 1139277825  ;;  %v903_v55 = vshrl.u32 %v887_v11, 24 }
 0x197   : > { %v883_v40 = vor.u32 %v882_v26, %v881_v44  ;;  %v908_v61 = vand.u32 2147483648, %v5304_v6  ;;  %v914_v16 = vand.u32 1, %v913_v50  ;;  %vm918_vm12 = vcmp.lt.s32.totalorder %v907_v13, 1015021568 }
 0x198   : > { %v5568_v25 = vpack.c.b8 %v862_v34, %v861_v51  ;;  %v898_v29 = vsel %vm897_vm9, %v4385_v31, %v896_v54  ;;  %v4386_v58 = vadd.s32 3112173568, %v910_v63  ;;  %vm920_vm13 = vcmp.ge.s32.totalorder %v907_v13, 1139277825 }
 0x199   : > { %v900_v17 = vsel %vm899_vm11, 127, %v898_v29  ;;  %v916_v41 = vadd.s32 %v915_v53, %v914_v16  ;;  %vm922_vm14 = vcmp.ne.f32.partialorder %v5304_v6, %v5304_v6  ;;  %v928_v43 = vand.u32 2147483647, %v5316_v4 }
 0x19a   : > { %v902_v26 = vsel %vm901_vm10, 127, %v900_v17  ;;  %v929_v22 = vand.u32 2147483648, %v5316_v4  ;;  %v934_v51 = vshrl.u32 %v5316_v4, 20  ;;  %v953_v32 = vand.u32 2147483647, %v5319_v3 }
 0x19b   : > { %v904_v37 = vor.u32 %v903_v55, %v902_v26  ;;  %v917_v35 = vshrl.u32 %v916_v41, 20  ;;  %v931_v47 = vadd.f32 1182793728, %v928_v43  ;;  %v936_v0 = vadd.s32 3288858623, %v928_v43 }
 0x19c   : > { %v884_v8 = vor.u32 4294967040, %v883_v40  ;;  %v924_v14 = vshrl.u32 %v908_v61, 24  ;;  %v935_v11 = vand.u32 1, %v934_v51  ;;  %vm943_vm15 = vcmp.ne.f32.partialorder %v5316_v4, %v5316_v4 }
 0x19d   : > { %v905_v46 = vor.u32 4294967040, %v904_v37  ;;  %v919_v19 = vsel %vm918_vm12, %v4386_v58, %v917_v35  ;;  %v4387_v23 = vadd.s32 3112173568, %v931_v47  ;;  %vm939_vm0 = vcmp.lt.s32.totalorder %v928_v43, 1015021568 }
 0x19e   : > { %v921_v57 = vsel %vm920_vm13, 127, %v919_v19  ;;  %v937_v2 = vadd.s32 %v936_v0, %v935_v11  ;;  %v956_v31 = vadd.f32 1182793728, %v953_v32  ;;  %v959_v1 = vshrl.u32 %v5319_v3, 20 }
 0x19f   : > { %v923_v44 = vsel %vm922_vm14, 127, %v921_v57  ;;  %vm941_vm1 = vcmp.ge.s32.totalorder %v928_v43, 1139277825  ;;  %v945_v63 = vshrl.u32 %v929_v22, 24  ;;  %v961_v50 = vadd.s32 3288858623, %v953_v32 }
 0x1a0   : > { %v925_v53 = vor.u32 %v924_v14, %v923_v44  ;;  %v938_v34 = vshrl.u32 %v937_v2, 20  ;;  %v954_v54 = vand.u32 2147483648, %v5319_v3  ;;  %v960_v55 = vand.u32 1, %v959_v1 }
 0x1a1   : > { %v949_v40 = vpack.c.b16 %v905_v46, %v884_v8  ;;  %v4388_v61 = vadd.s32 3112173568, %v956_v31  ;;  %vm964_vm2 = vcmp.lt.s32.totalorder %v953_v32, 1015021568  ;;  %v974_v13 = vand.u32 2147483647, %v5331_v12 }
 0x1a2   : > { %v940_v16 = vsel %vm939_vm0, %v4387_v23, %v938_v34  ;;  %v962_v29 = vadd.s32 %v961_v50, %v960_v55  ;;  %vm966_vm3 = vcmp.ge.s32.totalorder %v953_v32, 1139277825  ;;  %vm968_vm4 = vcmp.ne.f32.partialorder %v5319_v3, %v5319_v3 }
 0x1a3   : > { %v942_v6 = vsel %vm941_vm1, 127, %v940_v16  ;;  %v977_v58 = vadd.f32 1182793728, %v974_v13  ;;  %v980_v17 = vshrl.u32 %v5331_v12, 20  ;;  %v982_v41 = vadd.s32 3288858623, %v974_v13 }
 0x1a4   : > { %v926_v26 = vor.u32 4294967040, %v925_v53  ;;  %v944_v22 = vsel %vm943_vm15, 127, %v942_v6  ;;  %v963_v51 = vshrl.u32 %v962_v29, 20  ;;  %v970_v37 = vshrl.u32 %v954_v54, 24 }
 0x1a5   : > { %v946_v35 = vor.u32 %v945_v63, %v944_v22  ;;  %v975_v43 = vand.u32 2147483648, %v5331_v12  ;;  %v981_v47 = vand.u32 1, %v980_v17  ;;  %vm985_vm5 = vcmp.lt.s32.totalorder %v974_v13, 1015021568 }
 0x1a6   : > { %v965_v0 = vsel %vm964_vm2, %v4388_v61, %v963_v51  ;;  %v4389_v8 = vadd.s32 3112173568, %v977_v58  ;;  %vm987_vm6 = vcmp.ge.s32.totalorder %v974_v13, 1139277825  ;;  %v995_v14 = vand.u32 2147483647, %v5343_v24 }
 0x1a7   : > { %v947_v11 = vor.u32 4294967040, %v946_v35  ;;  %v967_v46 = vsel %vm966_vm3, 127, %v965_v0  ;;  %v983_v19 = vadd.s32 %v982_v41, %v981_v47  ;;  %v1001_v4 = vshrl.u32 %v5343_v24, 20 }
 0x1a8   : > { %v969_v23 = vsel %vm968_vm4, 127, %v967_v46  ;;  %vm989_vm7 = vcmp.ne.f32.partialorder %v5331_v12, %v5331_v12  ;;  %v998_v57 = vadd.f32 1182793728, %v995_v14  ;;  %v1003_v2 = vadd.s32 3288858623, %v995_v14 }
 0x1a9   : > { %v950_v31 = vpack.c.b16 %v947_v11, %v926_v26  ;;  %v984_v1 = vshrl.u32 %v983_v19, 20  ;;  %v996_v44 = vand.u32 2147483648, %v5343_v24  ;;  %v1002_v63 = vand.u32 1, %v1001_v4 }
 0x1aa   : > { %v971_v50 = vor.u32 %v970_v37, %v969_v23  ;;  %v991_v32 = vshrl.u32 %v975_v43, 24  ;;  %v4390_v53 = vadd.s32 3112173568, %v998_v57  ;;  %vm1006_vm8 = vcmp.lt.s32.totalorder %v995_v14, 1015021568 }
 0x1ab   : > { %v5608_v34 = vpack.c.b8 %v950_v31, %v949_v40  ;;  %v986_v54 = vsel %vm985_vm5, %v4389_v8, %v984_v1  ;;  %v1004_v3 = vadd.s32 %v1003_v2, %v1002_v63  ;;  %vm1008_vm9 = vcmp.ge.s32.totalorder %v995_v14, 1139277825 }
 0x1ac   : > { %v988_v55 = vsel %vm987_vm6, 127, %v986_v54  ;;  %vm1010_vm10 = vcmp.ne.f32.partialorder %v5343_v24, %v5343_v24  ;;  %v1016_v61 = vand.u32 2147483647, %v5355_v36  ;;  %v1022_v16 = vshrl.u32 %v5355_v36, 20 }
 0x1ad   : > { %v990_v29 = vsel %vm989_vm7, 127, %v988_v55  ;;  %v1005_v6 = vshrl.u32 %v1004_v3, 20  ;;  %v1012_v40 = vshrl.u32 %v996_v44, 24  ;;  %v1041_v58 = vand.u32 2147483647, %v5322_v5 }
 0x1ae   : > { %v992_v17 = vor.u32 %v991_v32, %v990_v29  ;;  %v1019_v41 = vadd.f32 1182793728, %v1016_v61  ;;  %v1023_v26 = vand.u32 1, %v1022_v16  ;;  %v1024_v13 = vadd.s32 3288858623, %v1016_v61 }
 0x1af   : > { %v972_v22 = vor.u32 4294967040, %v971_v50  ;;  %v1007_v51 = vsel %vm1006_vm8, %v4390_v53, %v1005_v6  ;;  %v1017_v37 = vand.u32 2147483648, %v5355_v36  ;;  %vm1031_vm11 = vcmp.ne.f32.partialorder %v5355_v36, %v5355_v36 }
 0x1b0   : > { %v993_v35 = vor.u32 4294967040, %v992_v17  ;;  %v1009_v12 = vsel %vm1008_vm9, 127, %v1007_v51  ;;  %v4391_v43 = vadd.s32 3112173568, %v1019_v41  ;;  %v1025_v47 = vadd.s32 %v1024_v13, %v1023_v26 }
 0x1b1   : > { %v1011_v0 = vsel %vm1010_vm10, 127, %v1009_v12  ;;  %vm1027_vm12 = vcmp.lt.s32.totalorder %v1016_v61, 1015021568  ;;  %v1044_v8 = vadd.f32 1182793728, %v1041_v58  ;;  %v1047_v11 = vshrl.u32 %v5322_v5, 20 }
 0x1b2   : > { %v1013_v46 = vor.u32 %v1012_v40, %v1011_v0  ;;  %v1026_v19 = vshrl.u32 %v1025_v47, 20  ;;  %vm1029_vm13 = vcmp.ge.s32.totalorder %v1016_v61, 1139277825  ;;  %v1049_v4 = vadd.s32 3288858623, %v1041_v58 }
 0x1b3   : > { %v1033_v23 = vshrl.u32 %v1017_v37, 24  ;;  %v1037_v57 = vpack.c.b16 %v993_v35, %v972_v22  ;;  %v1042_v2 = vand.u32 2147483648, %v5322_v5  ;;  %v1048_v14 = vand.u32 1, %v1047_v11 }
 0x1b4   : > { %v1028_v31 = vsel %vm1027_vm12, %v4391_v43, %v1026_v19  ;;  %v4392_v1 = vadd.s32 3112173568, %v1044_v8  ;;  %vm1052_vm14 = vcmp.lt.s32.totalorder %v1041_v58, 1015021568  ;;  %vm1054_vm15 = vcmp.ge.s32.totalorder %v1041_v58, 1139277825 }
 0x1b5   : > { %v1014_v44 = vor.u32 4294967040, %v1013_v46  ;;  %v1030_v24 = vsel %vm1029_vm13, 127, %v1028_v31  ;;  %v1050_v63 = vadd.s32 %v1049_v4, %v1048_v14  ;;  %v1062_v50 = vand.u32 2147483647, %v5334_v15 }
 0x1b6   : > { %v1032_v32 = vsel %vm1031_vm11, 127, %v1030_v24  ;;  %vm1056_vm0 = vcmp.ne.f32.partialorder %v5322_v5, %v5322_v5  ;;  %v1068_v53 = vshrl.u32 %v5334_v15, 20  ;;  %v1083_v54 = vand.u32 2147483647, %v5346_v27 }
 0x1b7   : > { %v1034_v3 = vor.u32 %v1033_v23, %v1032_v32  ;;  %v1051_v55 = vshrl.u32 %v1050_v63, 20  ;;  %v1065_v61 = vadd.f32 1182793728, %v1062_v50  ;;  %v1070_v16 = vadd.s32 3288858623, %v1062_v50 }
 0x1b8   : > { %v1058_v29 = vshrl.u32 %v1042_v2, 24  ;;  %v1063_v6 = vand.u32 2147483648, %v5334_v15  ;;  %v1069_v40 = vand.u32 1, %v1068_v53  ;;  %vm1077_vm1 = vcmp.ne.f32.partialorder %v5334_v15, %v5334_v15 }
 0x1b9   : > { %v1035_v36 = vor.u32 4294967040, %v1034_v3  ;;  %v1053_v17 = vsel %vm1052_vm14, %v4392_v1, %v1051_v55  ;;  %v4393_v41 = vadd.s32 3112173568, %v1065_v61  ;;  %vm1073_vm2 = vcmp.lt.s32.totalorder %v1062_v50, 1015021568 }
 0x1ba   : > { %v1055_v26 = vsel %vm1054_vm15, 127, %v1053_v17  ;;  %v1071_v13 = vadd.s32 %v1070_v16, %v1069_v40  ;;  %v1086_v22 = vadd.f32 1182793728, %v1083_v54  ;;  %v1089_v51 = vshrl.u32 %v5346_v27, 20 }
 0x1bb   : > { %v1038_v37 = vpack.c.b16 %v1035_v36, %v1014_v44  ;;  %v1057_v35 = vsel %vm1056_vm0, 127, %v1055_v26  ;;  %v1084_v12 = vand.u32 2147483648, %v5346_v27  ;;  %v1091_v43 = vadd.s32 3288858623, %v1083_v54 }
 0x1bc   : > { %v1072_v47 = vshrl.u32 %v1071_v13, 20  ;;  %vm1075_vm3 = vcmp.ge.s32.totalorder %v1062_v50, 1139277825  ;;  %v1079_v0 = vshrl.u32 %v1063_v6, 24  ;;  %v1090_v8 = vand.u32 1, %v1089_v51 }
 0x1bd   : > { %v5648_v11 = vpack.c.b8 %v1038_v37, %v1037_v57  ;;  %v1059_v58 = vor.u32 %v1058_v29, %v1057_v35  ;;  %v4394_v46 = vadd.s32 3112173568, %v1086_v22  ;;  %vm1094_vm4 = vcmp.lt.s32.totalorder %v1083_v54, 1015021568 }
 0x1be   : > { %v1074_v19 = vsel %vm1073_vm2, %v4393_v41, %v1072_v47  ;;  %v1092_v4 = vadd.s32 %v1091_v43, %v1090_v8  ;;  %vm1096_vm5 = vcmp.ge.s32.totalorder %v1083_v54, 1139277825  ;;  %v1104_v23 = vand.u32 2147483647, %v5358_v39 }
 0x1bf   : > { %v1076_v5 = vsel %vm1075_vm3, 127, %v1074_v19  ;;  %vm1098_vm6 = vcmp.ne.f32.partialorder %v5346_v27, %v5346_v27  ;;  %v1100_v2 = vshrl.u32 %v1084_v12, 24  ;;  %v1110_v14 = vshrl.u32 %v5358_v39, 20 }
 0x1c0   : > { %v1078_v57 = vsel %vm1077_vm1, 127, %v1076_v5  ;;  %v1093_v31 = vshrl.u32 %v1092_v4, 20  ;;  %v1107_v1 = vadd.f32 1182793728, %v1104_v23  ;;  %v1112_v44 = vadd.s32 3288858623, %v1104_v23 }
 0x1c1   : > { %v1060_v24 = vor.u32 4294967040, %v1059_v58  ;;  %v1080_v63 = vor.u32 %v1079_v0, %v1078_v57  ;;  %v1105_v50 = vand.u32 2147483648, %v5358_v39  ;;  %v1111_v32 = vand.u32 1, %v1110_v14 }
 0x1c2   : > { %v1095_v53 = vsel %vm1094_vm4, %v4394_v46, %v1093_v31  ;;  %vm1115_vm7 = vcmp.lt.s32.totalorder %v1104_v23, 1015021568  ;;  %vm1119_vm8 = vcmp.ne.f32.partialorder %v5358_v39, %v5358_v39  ;;  %v1129_v3 = vand.u32 2147483647, %v5325_v7 }
 0x1c3   : > { %v1081_v55 = vor.u32 4294967040, %v1080_v63  ;;  %v1097_v15 = vsel %vm1096_vm5, 127, %v1095_v53  ;;  %v4395_v61 = vadd.s32 3112173568, %v1107_v1  ;;  %v1113_v16 = vadd.s32 %v1112_v44, %v1111_v32 }
 0x1c4   : > { %v1099_v29 = vsel %vm1098_vm6, 127, %v1097_v15  ;;  %v1132_v6 = vadd.f32 1182793728, %v1129_v3  ;;  %v1135_v40 = vshrl.u32 %v5325_v7, 20  ;;  %v1137_v36 = vadd.s32 3288858623, %v1129_v3 }
 0x1c5   : > { %v1101_v17 = vor.u32 %v1100_v2, %v1099_v29  ;;  %v1114_v41 = vshrl.u32 %v1113_v16, 20  ;;  %vm1117_vm9 = vcmp.ge.s32.totalorder %v1104_v23, 1139277825  ;;  %v1121_v26 = vshrl.u32 %v1105_v50, 24 }
 0x1c6   : > { %v1125_v13 = vpack.c.b16 %v1081_v55, %v1060_v24  ;;  %v1130_v22 = vand.u32 2147483648, %v5325_v7  ;;  %v1136_v51 = vand.u32 1, %v1135_v40  ;;  %vm1140_vm10 = vcmp.lt.s32.totalorder %v1129_v3, 1015021568 }
 0x1c7   : > { %v1116_v54 = vsel %vm1115_vm7, %v4395_v61, %v1114_v41  ;;  %v4396_v37 = vadd.s32 3112173568, %v1132_v6  ;;  %vm1142_vm11 = vcmp.ge.s32.totalorder %v1129_v3, 1139277825  ;;  %v1150_v27 = vand.u32 2147483647, %v5337_v18 }
 0x1c8   : > { %v1118_v35 = vsel %vm1117_vm9, 127, %v1116_v54  ;;  %v1138_v12 = vadd.s32 %v1137_v36, %v1136_v51  ;;  %vm1144_vm12 = vcmp.ne.f32.partialorder %v5325_v7, %v5325_v7  ;;  %v1156_v43 = vshrl.u32 %v5337_v18, 20 }
 0x1c9   : > { %v1102_v47 = vor.u32 4294967040, %v1101_v17  ;;  %v1120_v0 = vsel %vm1119_vm8, 127, %v1118_v35  ;;  %v1153_v8 = vadd.f32 1182793728, %v1150_v27  ;;  %v1158_v58 = vadd.s32 3288858623, %v1150_v27 }
 0x1ca   : > { %v1122_v46 = vor.u32 %v1121_v26, %v1120_v0  ;;  %v1139_v19 = vshrl.u32 %v1138_v12, 20  ;;  %v1146_v4 = vshrl.u32 %v1130_v22, 24  ;;  %v1157_v23 = vand.u32 1, %v1156_v43 }
 0x1cb   : > { %v1151_v5 = vand.u32 2147483648, %v5337_v18  ;;  %vm1161_vm13 = vcmp.lt.s32.totalorder %v1150_v27, 1015021568  ;;  %vm1163_vm14 = vcmp.ge.s32.totalorder %v1150_v27, 1139277825  ;;  %v1171_v2 = vand.u32 2147483647, %v5349_v30 }
 0x1cc   : > { %v1123_v14 = vor.u32 4294967040, %v1122_v46  ;;  %v1141_v57 = vsel %vm1140_vm10, %v4396_v37, %v1139_v19  ;;  %v4397_v31 = vadd.s32 3112173568, %v1153_v8  ;;  %v1159_v1 = vadd.s32 %v1158_v58, %v1157_v23 }
 0x1cd   : > { %v1143_v39 = vsel %vm1142_vm11, 127, %v1141_v57  ;;  %v1174_v44 = vadd.f32 1182793728, %v1171_v2  ;;  %v1177_v24 = vshrl.u32 %v5349_v30, 20  ;;  %v1179_v63 = vadd.s32 3288858623, %v1171_v2 }
 0x1ce   : > { %v1126_v50 = vpack.c.b16 %v1123_v14, %v1102_v47  ;;  %v1145_v32 = vsel %vm1144_vm12, 127, %v1143_v39  ;;  %v1160_v53 = vshrl.u32 %v1159_v1, 20  ;;  %v1172_v55 = vand.u32 2147483648, %v5349_v30 }
 0x1cf   : > { %vm1165_vm15 = vcmp.ne.f32.partialorder %v5337_v18, %v5337_v18  ;;  %v1167_v15 = vshrl.u32 %v1151_v5, 24  ;;  %v1178_v61 = vand.u32 1, %v1177_v24  ;;  %vm1182_vm0 = vcmp.lt.s32.totalorder %v1171_v2, 1015021568 }
 0x1d0   : > { %v5688_v3 = vpack.c.b8 %v1126_v50, %v1125_v13  ;;  %v1147_v16 = vor.u32 %v1146_v4, %v1145_v32  ;;  %v1162_v29 = vsel %vm1161_vm13, %v4397_v31, %v1160_v53  ;;  %v4398_v6 = vadd.s32 3112173568, %v1174_v44 }
 0x1d1   : > { %v1164_v40 = vsel %vm1163_vm14, 127, %v1162_v29  ;;  %v1180_v36 = vadd.s32 %v1179_v63, %v1178_v61  ;;  %vm1184_vm1 = vcmp.ge.s32.totalorder %v1171_v2, 1139277825  ;;  %v1192_v7 = vand.u32 2147483647, %v5361_v42 }
 0x1d2   : > { %v1166_v17 = vsel %vm1165_vm15, 127, %v1164_v40  ;;  %vm1186_vm2 = vcmp.ne.f32.partialorder %v5349_v30, %v5349_v30  ;;  %v1188_v18 = vshrl.u32 %v1172_v55, 24  ;;  %v1198_v41 = vshrl.u32 %v5361_v42, 20 }
 0x1d3   : > { %v1168_v26 = vor.u32 %v1167_v15, %v1166_v17  ;;  %v1181_v13 = vshrl.u32 %v1180_v36, 20  ;;  %v1195_v22 = vadd.f32 1182793728, %v1192_v7  ;;  %v1200_v51 = vadd.s32 3288858623, %v1192_v7 }
 0x1d4   : > { %v1148_v54 = vor.u32 4294967040, %v1147_v16  ;;  %v1193_v37 = vand.u32 2147483648, %v5361_v42  ;;  %v1199_v27 = vand.u32 1, %v1198_v41  ;;  %vm1207_vm3 = vcmp.ne.f32.partialorder %v5361_v42, %v5361_v42 }
 0x1d5   : > { %v1169_v35 = vor.u32 4294967040, %v1168_v26  ;;  %v1183_v12 = vsel %vm1182_vm0, %v4398_v6, %v1181_v13  ;;  %vm1203_vm4 = vcmp.lt.s32.totalorder %v1192_v7, 1015021568  ;;  %v1217_v43 = vand.u32 2147483647, %v5328_v9 }
 0x1d6   : > { %v1185_v47 = vsel %vm1184_vm1, 127, %v1183_v12  ;;  %v4399_v0 = vadd.s32 3112173568, %v1195_v22  ;;  %v1201_v8 = vadd.s32 %v1200_v51, %v1199_v27  ;;  %v1223_v58 = vshrl.u32 %v5328_v9, 20 }
 0x1d7   : > { %v1187_v46 = vsel %vm1186_vm2, 127, %v1185_v47  ;;  %v1218_v19 = vand.u32 2147483648, %v5328_v9  ;;  %v1220_v4 = vadd.f32 1182793728, %v1217_v43  ;;  %v1225_v23 = vadd.s32 3288858623, %v1217_v43 }
 0x1d8   : > { %v1202_v5 = vshrl.u32 %v1201_v8, 20  ;;  %vm1205_vm5 = vcmp.ge.s32.totalorder %v1192_v7, 1139277825  ;;  %v1209_v14 = vshrl.u32 %v1193_v37, 24  ;;  %v1224_v57 = vand.u32 1, %v1223_v58 }
 0x1d9   : > { %v1189_v31 = vor.u32 %v1188_v18, %v1187_v46  ;;  %v1213_v1 = vpack.c.b16 %v1169_v35, %v1148_v54  ;;  %v4400_v2 = vadd.s32 3112173568, %v1220_v4  ;;  %vm1228_vm6 = vcmp.lt.s32.totalorder %v1217_v43, 1015021568 }
 0x1da   : > { %v1204_v39 = vsel %vm1203_vm4, %v4399_v0, %v1202_v5  ;;  %v1226_v44 = vadd.s32 %v1225_v23, %v1224_v57  ;;  %vm1230_vm7 = vcmp.ge.s32.totalorder %v1217_v43, 1139277825  ;;  %v1238_v24 = vand.u32 2147483647, %v5340_v21 }
 0x1db   : > { %v1206_v30 = vsel %vm1205_vm5, 127, %v1204_v39  ;;  %vm1232_vm8 = vcmp.ne.f32.partialorder %v5328_v9, %v5328_v9  ;;  %v1234_v63 = vshrl.u32 %v1218_v19, 24  ;;  %v1244_v50 = vshrl.u32 %v5340_v21, 20 }
 0x1dc   : > { %v1208_v32 = vsel %vm1207_vm3, 127, %v1206_v30  ;;  %v1227_v53 = vshrl.u32 %v1226_v44, 20  ;;  %v1241_v55 = vadd.f32 1182793728, %v1238_v24  ;;  %v1246_v15 = vadd.s32 3288858623, %v1238_v24 }
 0x1dd   : > { %v1190_v61 = vor.u32 4294967040, %v1189_v31  ;;  %v1210_v16 = vor.u32 %v1209_v14, %v1208_v32  ;;  %v1239_v29 = vand.u32 2147483648, %v5340_v21  ;;  %v1245_v6 = vand.u32 1, %v1244_v50 }
 0x1de   : > { %v1229_v40 = vsel %vm1228_vm6, %v4400_v2, %v1227_v53  ;;  %vm1249_vm9 = vcmp.lt.s32.totalorder %v1238_v24, 1015021568  ;;  %vm1253_vm10 = vcmp.ne.f32.partialorder %v5340_v21, %v5340_v21  ;;  %v1259_v36 = vand.u32 2147483647, %v5352_v33 }
 0x1df   : > { %v1211_v7 = vor.u32 4294967040, %v1210_v16  ;;  %v1231_v42 = vsel %vm1230_vm7, 127, %v1229_v40  ;;  %v4401_v17 = vadd.s32 3112173568, %v1241_v55  ;;  %v1247_v18 = vadd.s32 %v1246_v15, %v1245_v6 }
 0x1e0   : > { %v1233_v41 = vsel %vm1232_vm8, 127, %v1231_v42  ;;  %v1262_v26 = vadd.f32 1182793728, %v1259_v36  ;;  %v1265_v13 = vshrl.u32 %v5352_v33, 20  ;;  %v1267_v22 = vadd.s32 3288858623, %v1259_v36 }
 0x1e1   : > { %v1214_v51 = vpack.c.b16 %v1211_v7, %v1190_v61  ;;  %v1248_v54 = vshrl.u32 %v1247_v18, 20  ;;  %vm1251_vm11 = vcmp.ge.s32.totalorder %v1238_v24, 1139277825  ;;  %v1255_v37 = vshrl.u32 %v1239_v29, 24 }
 0x1e2   : > { %v1235_v27 = vor.u32 %v1234_v63, %v1233_v41  ;;  %v1260_v35 = vand.u32 2147483648, %v5352_v33  ;;  %v1266_v12 = vand.u32 1, %v1265_v13  ;;  %vm1270_vm12 = vcmp.lt.s32.totalorder %v1259_v36, 1015021568 }
 0x1e3   : > { %v5726_v43 = vpack.c.b8 %v1214_v51, %v1213_v1  ;;  %v1250_v47 = vsel %vm1249_vm9, %v4401_v17, %v1248_v54  ;;  %v4402_v0 = vadd.s32 3112173568, %v1262_v26  ;;  %vm1272_vm13 = vcmp.ge.s32.totalorder %v1259_v36, 1139277825 }
 0x1e4   : > { %v1252_v9 = vsel %vm1251_vm11, 127, %v1250_v47  ;;  %v1268_v8 = vadd.s32 %v1267_v22, %v1266_v12  ;;  %vm1274_vm14 = vcmp.ne.f32.partialorder %v5352_v33, %v5352_v33  ;;  %v1280_v58 = vand.u32 2147483647, %v5364_v45 }
 0x1e5   : > { %v1254_v46 = vsel %vm1253_vm10, 127, %v1252_v9  ;;  %v1281_v19 = vand.u32 2147483648, %v5364_v45  ;;  %v1286_v4 = vshrl.u32 %v5364_v45, 20  ;;  %v1305_v23 = vand.u32 2147483647, %v5367_v48 }
 0x1e6   : > { %v1256_v5 = vor.u32 %v1255_v37, %v1254_v46  ;;  %v1269_v14 = vshrl.u32 %v1268_v8, 20  ;;  %v1283_v57 = vadd.f32 1182793728, %v1280_v58  ;;  %v1288_v31 = vadd.s32 3288858623, %v1280_v58 }
 0x1e7   : > { %v1236_v1 = vor.u32 4294967040, %v1235_v27  ;;  %v1276_v2 = vshrl.u32 %v1260_v35, 24  ;;  %v1287_v39 = vand.u32 1, %v1286_v4  ;;  %vm1295_vm15 = vcmp.ne.f32.partialorder %v5364_v45, %v5364_v45 }
 0x1e8   : > { %v1257_v44 = vor.u32 4294967040, %v1256_v5  ;;  %v1271_v21 = vsel %vm1270_vm12, %v4402_v0, %v1269_v14  ;;  %v4403_v24 = vadd.s32 3112173568, %v1283_v57  ;;  %vm1291_vm0 = vcmp.lt.s32.totalorder %v1280_v58, 1015021568 }
 0x1e9   : > { %v1273_v30 = vsel %vm1272_vm13, 127, %v1271_v21  ;;  %v1289_v63 = vadd.s32 %v1288_v31, %v1287_v39  ;;  %v1308_v50 = vadd.f32 1182793728, %v1305_v23  ;;  %v1311_v32 = vshrl.u32 %v5367_v48, 20 }
 0x1ea   : > { %v1275_v53 = vsel %vm1274_vm14, 127, %v1273_v30  ;;  %vm1293_vm1 = vcmp.ge.s32.totalorder %v1280_v58, 1139277825  ;;  %v1297_v55 = vshrl.u32 %v1281_v19, 24  ;;  %v1313_v15 = vadd.s32 3288858623, %v1305_v23 }
 0x1eb   : > { %v1277_v61 = vor.u32 %v1276_v2, %v1275_v53  ;;  %v1290_v16 = vshrl.u32 %v1289_v63, 20  ;;  %v1306_v29 = vand.u32 2147483648, %v5367_v48  ;;  %v1312_v6 = vand.u32 1, %v1311_v32 }
 0x1ec   : > { %v1301_v40 = vpack.c.b16 %v1257_v44, %v1236_v1  ;;  %v4404_v7 = vadd.s32 3112173568, %v1308_v50  ;;  %vm1316_vm2 = vcmp.lt.s32.totalorder %v1305_v23, 1015021568  ;;  %v1326_v36 = vand.u32 2147483647, %v5379_v56 }
 0x1ed   : > { %v1292_v42 = vsel %vm1291_vm0, %v4403_v24, %v1290_v16  ;;  %v1314_v17 = vadd.s32 %v1313_v15, %v1312_v6  ;;  %vm1318_vm3 = vcmp.ge.s32.totalorder %v1305_v23, 1139277825  ;;  %vm1320_vm4 = vcmp.ne.f32.partialorder %v5367_v48, %v5367_v48 }
 0x1ee   : > { %v1294_v33 = vsel %vm1293_vm1, 127, %v1292_v42  ;;  %v1329_v18 = vadd.f32 1182793728, %v1326_v36  ;;  %v1332_v41 = vshrl.u32 %v5379_v56, 20  ;;  %v1334_v26 = vadd.s32 3288858623, %v1326_v36 }
 0x1ef   : > { %v1278_v13 = vor.u32 4294967040, %v1277_v61  ;;  %v1296_v22 = vsel %vm1295_vm15, 127, %v1294_v33  ;;  %v1315_v51 = vshrl.u32 %v1314_v17, 20  ;;  %v1322_v54 = vshrl.u32 %v1306_v29, 24 }
 0x1f0   : > { %v1298_v37 = vor.u32 %v1297_v55, %v1296_v22  ;;  %v1327_v27 = vand.u32 2147483648, %v5379_v56  ;;  %v1333_v35 = vand.u32 1, %v1332_v41  ;;  %vm1337_vm5 = vcmp.lt.s32.totalorder %v1326_v36, 1015021568 }
 0x1f1   : > { %v1317_v12 = vsel %vm1316_vm2, %v4404_v7, %v1315_v51  ;;  %v4405_v47 = vadd.s32 3112173568, %v1329_v18  ;;  %vm1339_vm6 = vcmp.ge.s32.totalorder %v1326_v36, 1139277825  ;;  %v1347_v0 = vand.u32 2147483647, %v5391_v10 }
 0x1f2   : > { %v1299_v9 = vor.u32 4294967040, %v1298_v37  ;;  %v1319_v8 = vsel %vm1318_vm3, 127, %v1317_v12  ;;  %v1335_v58 = vadd.s32 %v1334_v26, %v1333_v35  ;;  %v1353_v45 = vshrl.u32 %v5391_v10, 20 }
 0x1f3   : > { %v1321_v46 = vsel %vm1320_vm4, 127, %v1319_v8  ;;  %vm1341_vm7 = vcmp.ne.f32.partialorder %v5379_v56, %v5379_v56  ;;  %v1350_v19 = vadd.f32 1182793728, %v1347_v0  ;;  %v1355_v4 = vadd.s32 3288858623, %v1347_v0 }
 0x1f4   : > { %v1302_v5 = vpack.c.b16 %v1299_v9, %v1278_v13  ;;  %v1336_v14 = vshrl.u32 %v1335_v58, 20  ;;  %v1348_v57 = vand.u32 2147483648, %v5391_v10  ;;  %v1354_v31 = vand.u32 1, %v1353_v45 }
 0x1f5   : > { %v1323_v1 = vor.u32 %v1322_v54, %v1321_v46  ;;  %v1343_v23 = vshrl.u32 %v1327_v27, 24  ;;  %v4406_v2 = vadd.s32 3112173568, %v1350_v19  ;;  %vm1358_vm8 = vcmp.lt.s32.totalorder %v1347_v0, 1015021568 }
 0x1f6   : > { %v5766_v39 = vpack.c.b8 %v1302_v5, %v1301_v40  ;;  %v1338_v44 = vsel %vm1337_vm5, %v4405_v47, %v1336_v14  ;;  %v1356_v48 = vadd.s32 %v1355_v4, %v1354_v31  ;;  %vm1360_vm9 = vcmp.ge.s32.totalorder %v1347_v0, 1139277825 }
 0x1f7   : > { %v1340_v21 = vsel %vm1339_vm6, 127, %v1338_v44  ;;  %vm1362_vm10 = vcmp.ne.f32.partialorder %v5391_v10, %v5391_v10  ;;  %v1368_v24 = vand.u32 2147483647, %v5403_v28  ;;  %v1374_v30 = vshrl.u32 %v5403_v28, 20 }
 0x1f8   : > { %v1342_v63 = vsel %vm1341_vm7, 127, %v1340_v21  ;;  %v1357_v50 = vshrl.u32 %v1356_v48, 20  ;;  %v1364_v32 = vshrl.u32 %v1348_v57, 24  ;;  %v1393_v53 = vand.u32 2147483647, %v5370_v49 }
 0x1f9   : > { %v1344_v55 = vor.u32 %v1343_v23, %v1342_v63  ;;  %v1371_v15 = vadd.f32 1182793728, %v1368_v24  ;;  %v1375_v61 = vand.u32 1, %v1374_v30  ;;  %v1376_v16 = vadd.s32 3288858623, %v1368_v24 }
 0x1fa   : > { %v1324_v29 = vor.u32 4294967040, %v1323_v1  ;;  %v1359_v6 = vsel %vm1358_vm8, %v4406_v2, %v1357_v50  ;;  %v1369_v40 = vand.u32 2147483648, %v5403_v28  ;;  %vm1383_vm11 = vcmp.ne.f32.partialorder %v5403_v28, %v5403_v28 }
 0x1fb   : > { %v1345_v7 = vor.u32 4294967040, %v1344_v55  ;;  %v1361_v56 = vsel %vm1360_vm9, 127, %v1359_v6  ;;  %v4407_v36 = vadd.s32 3112173568, %v1371_v15  ;;  %v1377_v42 = vadd.s32 %v1376_v16, %v1375_v61 }
 0x1fc   : > { %v1363_v17 = vsel %vm1362_vm10, 127, %v1361_v56  ;;  %vm1379_vm12 = vcmp.lt.s32.totalorder %v1368_v24, 1015021568  ;;  %v1396_v33 = vadd.f32 1182793728, %v1393_v53  ;;  %v1399_v18 = vshrl.u32 %v5370_v49, 20 }
 0x1fd   : > { %v1365_v41 = vor.u32 %v1364_v32, %v1363_v17  ;;  %v1378_v26 = vshrl.u32 %v1377_v42, 20  ;;  %vm1381_vm13 = vcmp.ge.s32.totalorder %v1368_v24, 1139277825  ;;  %v1401_v13 = vadd.s32 3288858623, %v1393_v53 }
 0x1fe   : > { %v1385_v22 = vshrl.u32 %v1369_v40, 24  ;;  %v1389_v51 = vpack.c.b16 %v1345_v7, %v1324_v29  ;;  %v1394_v54 = vand.u32 2147483648, %v5370_v49  ;;  %v1400_v37 = vand.u32 1, %v1399_v18 }
 0x1ff   : > { %v1380_v27 = vsel %vm1379_vm12, %v4407_v36, %v1378_v26  ;;  %v4408_v35 = vadd.s32 3112173568, %v1396_v33  ;;  %vm1404_vm14 = vcmp.lt.s32.totalorder %v1393_v53, 1015021568  ;;  %vm1406_vm15 = vcmp.ge.s32.totalorder %v1393_v53, 1139277825 }
 0x200   : > { %v1366_v12 = vor.u32 4294967040, %v1365_v41  ;;  %v1382_v10 = vsel %vm1381_vm13, 127, %v1380_v27  ;;  %v1402_v47 = vadd.s32 %v1401_v13, %v1400_v37  ;;  %v1414_v0 = vand.u32 2147483647, %v5382_v59 }
 0x201   : > { %v1384_v9 = vsel %vm1383_vm11, 127, %v1382_v10  ;;  %vm1408_vm0 = vcmp.ne.f32.partialorder %v5370_v49, %v5370_v49  ;;  %v1420_v8 = vshrl.u32 %v5382_v59, 20  ;;  %v1435_v58 = vand.u32 2147483647, %v5394_v20 }
 0x202   : > { %v1386_v45 = vor.u32 %v1385_v22, %v1384_v9  ;;  %v1403_v46 = vshrl.u32 %v1402_v47, 20  ;;  %v1417_v19 = vadd.f32 1182793728, %v1414_v0  ;;  %v1422_v4 = vadd.s32 3288858623, %v1414_v0 }
 0x203   : > { %v1410_v5 = vshrl.u32 %v1394_v54, 24  ;;  %v1415_v14 = vand.u32 2147483648, %v5382_v59  ;;  %v1421_v57 = vand.u32 1, %v1420_v8  ;;  %vm1429_vm1 = vcmp.ne.f32.partialorder %v5382_v59, %v5382_v59 }
 0x204   : > { %v1387_v28 = vor.u32 4294967040, %v1386_v45  ;;  %v1405_v31 = vsel %vm1404_vm14, %v4408_v35, %v1403_v46  ;;  %v4409_v1 = vadd.s32 3112173568, %v1417_v19  ;;  %vm1425_vm2 = vcmp.lt.s32.totalorder %v1414_v0, 1015021568 }
 0x205   : > { %v1407_v23 = vsel %vm1406_vm15, 127, %v1405_v31  ;;  %v1423_v2 = vadd.s32 %v1422_v4, %v1421_v57  ;;  %v1438_v44 = vadd.f32 1182793728, %v1435_v58  ;;  %v1441_v48 = vshrl.u32 %v5394_v20, 20  ;;  %v7288_v4 = vld [vmem:[#allocation85_spill] sm:$0xff] }
 0x206   : > { %v1390_v21 = vpack.c.b16 %v1387_v28, %v1366_v12  ;;  %v1409_v24 = vsel %vm1408_vm0, 127, %v1407_v23  ;;  %v1436_v30 = vand.u32 2147483648, %v5394_v20  ;;  %v1443_v63 = vadd.s32 3288858623, %v1435_v58 }
 0x207   : > { %v1424_v50 = vshrl.u32 %v1423_v2, 20  ;;  %vm1427_vm3 = vcmp.ge.s32.totalorder %v1414_v0, 1139277825  ;;  %v1431_v32 = vshrl.u32 %v1415_v14, 24  ;;  %v1442_v55 = vand.u32 1, %v1441_v48 }
 0x208   : > { %v5806_v15 = vpack.c.b8 %v1390_v21, %v1389_v51  ;;  %v1411_v53 = vor.u32 %v1410_v5, %v1409_v24  ;;  %v4410_v61 = vadd.s32 3112173568, %v1438_v44  ;;  %vm1446_vm4 = vcmp.lt.s32.totalorder %v1435_v58, 1015021568 }
 0x209   : > { %v1426_v16 = vsel %vm1425_vm2, %v4409_v1, %v1424_v50  ;;  %v1444_v29 = vadd.s32 %v1443_v63, %v1442_v55  ;;  %vm1448_vm5 = vcmp.ge.s32.totalorder %v1435_v58, 1139277825  ;;  %v1456_v6 = vand.u32 2147483647, %v5406_v38 }
 0x20a   : > { %v1428_v49 = vsel %vm1427_vm3, 127, %v1426_v16  ;;  %vm1450_vm6 = vcmp.ne.f32.partialorder %v5394_v20, %v5394_v20  ;;  %v1452_v40 = vshrl.u32 %v1436_v30, 24  ;;  %v1462_v7 = vshrl.u32 %v5406_v38, 20  ;;  %v7289_v30 = vld [vmem:[#allocation87_spill] sm:$0xff] }
 0x20b   : > { %v1430_v56 = vsel %vm1429_vm1, 127, %v1428_v49  ;;  %v1445_v36 = vshrl.u32 %v1444_v29, 20  ;;  %v1459_v42 = vadd.f32 1182793728, %v1456_v6  ;;  %v1464_v17 = vadd.s32 3288858623, %v1456_v6 }
 0x20c   : > { %v1412_v33 = vor.u32 4294967040, %v1411_v53  ;;  %v1432_v18 = vor.u32 %v1431_v32, %v1430_v56  ;;  %v1457_v41 = vand.u32 2147483648, %v5406_v38  ;;  %v1463_v26 = vand.u32 1, %v1462_v7 }
 0x20d   : > { %v1447_v13 = vsel %vm1446_vm4, %v4410_v61, %v1445_v36  ;;  %vm1467_vm7 = vcmp.lt.s32.totalorder %v1456_v6, 1015021568  ;;  %vm1471_vm8 = vcmp.ne.f32.partialorder %v5406_v38, %v5406_v38  ;;  %v1481_v22 = vand.u32 2147483647, %v5373_v52 }
 0x20e   : > { %v1433_v51 = vor.u32 4294967040, %v1432_v18  ;;  %v1449_v59 = vsel %vm1448_vm5, 127, %v1447_v13  ;;  %v4411_v54 = vadd.s32 3112173568, %v1459_v42  ;;  %v1465_v37 = vadd.s32 %v1464_v17, %v1463_v26 }
 0x20f   : > { %v1451_v27 = vsel %vm1450_vm6, 127, %v1449_v59  ;;  %v1484_v35 = vadd.f32 1182793728, %v1481_v22  ;;  %v1487_v12 = vshrl.u32 %v5373_v52, 20  ;;  %v1489_v10 = vadd.s32 3288858623, %v1481_v22 }
 0x210   : > { %v1453_v47 = vor.u32 %v1452_v40, %v1451_v27  ;;  %v1466_v0 = vshrl.u32 %v1465_v37, 20  ;;  %vm1469_vm9 = vcmp.ge.s32.totalorder %v1456_v6, 1139277825  ;;  %v1473_v9 = vshrl.u32 %v1457_v41, 24 }
 0x211   : > { %v1477_v8 = vpack.c.b16 %v1433_v51, %v1412_v33  ;;  %v1482_v45 = vand.u32 2147483648, %v5373_v52  ;;  %v1488_v46 = vand.u32 1, %v1487_v12  ;;  %vm1492_vm10 = vcmp.lt.s32.totalorder %v1481_v22, 1015021568 }
 0x212   : > { %v1468_v58 = vsel %vm1467_vm7, %v4411_v54, %v1466_v0  ;;  %v4412_v19 = vadd.s32 3112173568, %v1484_v35  ;;  %vm1494_vm11 = vcmp.ge.s32.totalorder %v1481_v22, 1139277825  ;;  %v1502_v20 = vand.u32 2147483647, %v7288_v4 }
 0x213   : > { %v1470_v5 = vsel %vm1469_vm9, 127, %v1468_v58  ;;  %v1490_v14 = vadd.s32 %v1489_v10, %v1488_v46  ;;  %vm1496_vm12 = vcmp.ne.f32.partialorder %v5373_v52, %v5373_v52  ;;  %v1508_v57 = vshrl.u32 %v7288_v4, 20  ;;  %v7290_v52 = vld [vmem:[#allocation89_spill] sm:$0xff] }
 0x214   : > { %v1454_v28 = vor.u32 4294967040, %v1453_v47  ;;  %v1472_v31 = vsel %vm1471_vm8, 127, %v1470_v5  ;;  %v1505_v1 = vadd.f32 1182793728, %v1502_v20  ;;  %v1510_v23 = vadd.s32 3288858623, %v1502_v20 }
 0x215   : > { %v1474_v2 = vor.u32 %v1473_v9, %v1472_v31  ;;  %v1491_v44 = vshrl.u32 %v1490_v14, 20  ;;  %v1498_v48 = vshrl.u32 %v1482_v45, 24  ;;  %v1509_v21 = vand.u32 1, %v1508_v57 }
 0x216   : > { %v1503_v24 = vand.u32 2147483648, %v7288_v4  ;;  %vm1513_vm13 = vcmp.lt.s32.totalorder %v1502_v20, 1015021568  ;;  %vm1515_vm14 = vcmp.ge.s32.totalorder %v1502_v20, 1139277825  ;;  %v1523_v63 = vand.u32 2147483647, %v7289_v30 }
 0x217   : > { %v1475_v50 = vor.u32 4294967040, %v1474_v2  ;;  %v1493_v32 = vsel %vm1492_vm10, %v4412_v19, %v1491_v44  ;;  %v4413_v55 = vadd.s32 3112173568, %v1505_v1  ;;  %v1511_v53 = vadd.s32 %v1510_v23, %v1509_v21 }
 0x218   : > { %v1495_v38 = vsel %vm1494_vm11, 127, %v1493_v32  ;;  %v1526_v61 = vadd.f32 1182793728, %v1523_v63  ;;  %v1529_v16 = vshrl.u32 %v7289_v30, 20  ;;  %v1531_v29 = vadd.s32 3288858623, %v1523_v63 }
 0x219   : > { %v1478_v6 = vpack.c.b16 %v1475_v50, %v1454_v28  ;;  %v1497_v49 = vsel %vm1496_vm12, 127, %v1495_v38  ;;  %v1512_v40 = vshrl.u32 %v1511_v53, 20  ;;  %v1524_v7 = vand.u32 2147483648, %v7289_v30 }
 0x21a   : > { %vm1517_vm15 = vcmp.ne.f32.partialorder %v7288_v4, %v7288_v4  ;;  %v1519_v56 = vshrl.u32 %v1503_v24, 24  ;;  %v1530_v36 = vand.u32 1, %v1529_v16  ;;  %vm1534_vm0 = vcmp.lt.s32.totalorder %v1523_v63, 1015021568  ;;  %v7292_v24 = vld [vmem:[#allocation86_spill] sm:$0xff] }
 0x21b   : > { %v5846_v42 = vpack.c.b8 %v1478_v6, %v1477_v8  ;;  %v1499_v17 = vor.u32 %v1498_v48, %v1497_v49  ;;  %v1514_v33 = vsel %vm1513_vm13, %v4413_v55, %v1512_v40  ;;  %v4414_v18 = vadd.s32 3112173568, %v1526_v61  ;;  %v7291_v8 = vld [vmem:[#allocation84_spill] sm:$0xff] }
 0x21c   : > { %v1516_v41 = vsel %vm1515_vm14, 127, %v1514_v33  ;;  %v1532_v26 = vadd.s32 %v1531_v29, %v1530_v36  ;;  %vm1536_vm1 = vcmp.ge.s32.totalorder %v1523_v63, 1139277825  ;;  %v1544_v13 = vand.u32 2147483647, %v7290_v52 }
 0x21d   : > { %v1518_v22 = vsel %vm1517_vm15, 127, %v1516_v41  ;;  %vm1538_vm2 = vcmp.ne.f32.partialorder %v7289_v30, %v7289_v30  ;;  %v1540_v51 = vshrl.u32 %v1524_v7, 24  ;;  %v1550_v59 = vshrl.u32 %v7290_v52, 20  ;;  %v7293_v7 = vld [vmem:[#allocation88_spill] sm:$0xff] }
 0x21e   : > { %v1520_v54 = vor.u32 %v1519_v56, %v1518_v22  ;;  %v1533_v37 = vshrl.u32 %v1532_v26, 20  ;;  %v1547_v27 = vadd.f32 1182793728, %v1544_v13  ;;  %v1552_v35 = vadd.s32 3288858623, %v1544_v13 }
 0x21f   : > { %v1500_v12 = vor.u32 4294967040, %v1499_v17  ;;  %v1545_v10 = vand.u32 2147483648, %v7290_v52  ;;  %v1551_v47 = vand.u32 1, %v1550_v59  ;;  %vm1559_vm3 = vcmp.ne.f32.partialorder %v7290_v52, %v7290_v52 }
 0x220   : > { %v1521_v0 = vor.u32 4294967040, %v1520_v54  ;;  %v1535_v9 = vsel %vm1534_vm0, %v4414_v18, %v1533_v37  ;;  %vm1555_vm4 = vcmp.lt.s32.totalorder %v1544_v13, 1015021568  ;;  %v1569_v45 = vand.u32 2147483647, %v7291_v8 }
 0x221   : > { %v1537_v46 = vsel %vm1536_vm1, 127, %v1535_v9  ;;  %v4415_v58 = vadd.s32 3112173568, %v1547_v27  ;;  %v1553_v19 = vadd.s32 %v1552_v35, %v1551_v47  ;;  %v1575_v4 = vshrl.u32 %v7291_v8, 20  ;;  %v7294_v9 = vld [vmem:[#allocation90_spill] sm:$0xff] }
 0x222   : > { %v1539_v20 = vsel %vm1538_vm2, 127, %v1537_v46  ;;  %v1570_v5 = vand.u32 2147483648, %v7291_v8  ;;  %v1572_v14 = vadd.f32 1182793728, %v1569_v45  ;;  %v1577_v57 = vadd.s32 3288858623, %v1569_v45 }
 0x223   : > { %v1554_v28 = vshrl.u32 %v1553_v19, 20  ;;  %vm1557_vm5 = vcmp.ge.s32.totalorder %v1544_v13, 1139277825  ;;  %v1561_v31 = vshrl.u32 %v1545_v10, 24  ;;  %v1576_v1 = vand.u32 1, %v1575_v4  ;;  %v7295_v19 = vld [vmem:[#allocation91_spill] sm:$0xff] }
 0x224   : > { %v1541_v23 = vor.u32 %v1540_v51, %v1539_v20  ;;  %v1565_v2 = vpack.c.b16 %v1521_v0, %v1500_v12  ;;  %v4416_v44 = vadd.s32 3112173568, %v1572_v14  ;;  %vm1580_vm6 = vcmp.lt.s32.totalorder %v1569_v45, 1015021568 }
 0x225   : > { %v1556_v48 = vsel %vm1555_vm4, %v4415_v58, %v1554_v28  ;;  %v1578_v21 = vadd.s32 %v1577_v57, %v1576_v1  ;;  %vm1582_vm7 = vcmp.ge.s32.totalorder %v1569_v45, 1139277825  ;;  %v1590_v63 = vand.u32 2147483647, %v7292_v24 }
 0x226   : > { %v1558_v30 = vsel %vm1557_vm5, 127, %v1556_v48  ;;  %vm1584_vm8 = vcmp.ne.f32.partialorder %v7291_v8, %v7291_v8  ;;  %v1586_v50 = vshrl.u32 %v1570_v5, 24  ;;  %v1596_v32 = vshrl.u32 %v7292_v24, 20 }
 0x227   : > { %v1560_v55 = vsel %vm1559_vm3, 127, %v1558_v30  ;;  %v1579_v53 = vshrl.u32 %v1578_v21, 20  ;;  %v1593_v38 = vadd.f32 1182793728, %v1590_v63  ;;  %v1598_v61 = vadd.s32 3288858623, %v1590_v63 }
 0x228   : > { %v1542_v16 = vor.u32 4294967040, %v1541_v23  ;;  %v1562_v29 = vor.u32 %v1561_v31, %v1560_v55  ;;  %v1591_v6 = vand.u32 2147483648, %v7292_v24  ;;  %v1597_v49 = vand.u32 1, %v1596_v32 }
 0x229   : > { %v1581_v40 = vsel %vm1580_vm6, %v4416_v44, %v1579_v53  ;;  %vm1601_vm9 = vcmp.lt.s32.totalorder %v1590_v63, 1015021568  ;;  %vm1605_vm10 = vcmp.ne.f32.partialorder %v7292_v24, %v7292_v24  ;;  %v1611_v56 = vand.u32 2147483647, %v7293_v7 }
 0x22a   : > { %v1563_v36 = vor.u32 4294967040, %v1562_v29  ;;  %v1583_v17 = vsel %vm1582_vm7, 127, %v1581_v40  ;;  %v4417_v33 = vadd.s32 3112173568, %v1593_v38  ;;  %v1599_v18 = vadd.s32 %v1598_v61, %v1597_v49 }
 0x22b   : > { %v1585_v41 = vsel %vm1584_vm8, 127, %v1583_v17  ;;  %v1614_v26 = vadd.f32 1182793728, %v1611_v56  ;;  %v1617_v52 = vshrl.u32 %v7293_v7, 20  ;;  %v1619_v13 = vadd.s32 3288858623, %v1611_v56 }
 0x22c   : > { %v1566_v22 = vpack.c.b16 %v1563_v36, %v1542_v16  ;;  %v1600_v51 = vshrl.u32 %v1599_v18, 20  ;;  %vm1603_vm11 = vcmp.ge.s32.totalorder %v1590_v63, 1139277825  ;;  %v1607_v59 = vshrl.u32 %v1591_v6, 24  ;;  %v7296_v6 = vld [vmem:[#allocation94_spill] sm:$0xff] }
 0x22d   : > { %v1587_v54 = vor.u32 %v1586_v50, %v1585_v41  ;;  %v1612_v37 = vand.u32 2147483648, %v7293_v7  ;;  %v1618_v27 = vand.u32 1, %v1617_v52  ;;  %vm1622_vm12 = vcmp.lt.s32.totalorder %v1611_v56, 1015021568 }
 0x22e   : > { %v5884_v35 = vpack.c.b8 %v1566_v22, %v1565_v2  ;;  %v1602_v12 = vsel %vm1601_vm9, %v4417_v33, %v1600_v51  ;;  %v4418_v10 = vadd.s32 3112173568, %v1614_v26  ;;  %vm1624_vm13 = vcmp.ge.s32.totalorder %v1611_v56, 1139277825 }
 0x22f   : > { %v1604_v47 = vsel %vm1603_vm11, 127, %v1602_v12  ;;  %v1620_v0 = vadd.s32 %v1619_v13, %v1618_v27  ;;  %vm1626_vm14 = vcmp.ne.f32.partialorder %v7293_v7, %v7293_v7  ;;  %v1632_v8 = vand.u32 2147483647, %v7294_v9 }
 0x230   : > { %v1606_v45 = vsel %vm1605_vm10, 127, %v1604_v47  ;;  %v1633_v46 = vand.u32 2147483648, %v7294_v9  ;;  %v1638_v58 = vshrl.u32 %v7294_v9, 20  ;;  %v1657_v4 = vand.u32 2147483647, %v7295_v19 }
 0x231   : > { %v1608_v20 = vor.u32 %v1607_v59, %v1606_v45  ;;  %v1621_v5 = vshrl.u32 %v1620_v0, 20  ;;  %v1635_v14 = vadd.f32 1182793728, %v1632_v8  ;;  %v1640_v57 = vadd.s32 3288858623, %v1632_v8 }
 0x232   : > { %v1588_v28 = vor.u32 4294967040, %v1587_v54  ;;  %v1628_v31 = vshrl.u32 %v1612_v37, 24  ;;  %v1639_v1 = vand.u32 1, %v1638_v58  ;;  %vm1647_vm15 = vcmp.ne.f32.partialorder %v7294_v9, %v7294_v9  ;;  %v7297_v37 = vld [vmem:[#allocation97_spill] sm:$0xff] }
 0x233   : > { %v1609_v23 = vor.u32 4294967040, %v1608_v20  ;;  %v1623_v2 = vsel %vm1622_vm12, %v4418_v10, %v1621_v5  ;;  %v4419_v44 = vadd.s32 3112173568, %v1635_v14  ;;  %vm1643_vm0 = vcmp.lt.s32.totalorder %v1632_v8, 1015021568 }
 0x234   : > { %v1625_v48 = vsel %vm1624_vm13, 127, %v1623_v2  ;;  %v1641_v21 = vadd.s32 %v1640_v57, %v1639_v1  ;;  %v1660_v24 = vadd.f32 1182793728, %v1657_v4  ;;  %v1663_v63 = vshrl.u32 %v7295_v19, 20 }
 0x235   : > { %v1627_v30 = vsel %vm1626_vm14, 127, %v1625_v48  ;;  %vm1645_vm1 = vcmp.ge.s32.totalorder %v1632_v8, 1139277825  ;;  %v1649_v50 = vshrl.u32 %v1633_v46, 24  ;;  %v1665_v32 = vadd.s32 3288858623, %v1657_v4 }
 0x236   : > { %v1629_v55 = vor.u32 %v1628_v31, %v1627_v30  ;;  %v1642_v53 = vshrl.u32 %v1641_v21, 20  ;;  %v1658_v38 = vand.u32 2147483648, %v7295_v19  ;;  %v1664_v61 = vand.u32 1, %v1663_v63  ;;  %v7299_v63 = vld [vmem:[#allocation92_spill] sm:$0xff] }
 0x237   : > { %v1653_v16 = vpack.c.b16 %v1609_v23, %v1588_v28  ;;  %v4420_v29 = vadd.s32 3112173568, %v1660_v24  ;;  %vm1668_vm2 = vcmp.lt.s32.totalorder %v1657_v4, 1015021568  ;;  %v1678_v49 = vand.u32 2147483647, %v7296_v6  ;;  %v7298_v23 = vld [vmem:[#allocation100_spill] sm:$0xff] }
 0x238   : > { %v1644_v40 = vsel %vm1643_vm0, %v4419_v44, %v1642_v53  ;;  %v1666_v56 = vadd.s32 %v1665_v32, %v1664_v61  ;;  %vm1670_vm3 = vcmp.ge.s32.totalorder %v1657_v4, 1139277825  ;;  %vm1672_vm4 = vcmp.ne.f32.partialorder %v7295_v19, %v7295_v19 }
 0x239   : > { %v1646_v7 = vsel %vm1645_vm1, 127, %v1644_v40  ;;  %v1681_v36 = vadd.f32 1182793728, %v1678_v49  ;;  %v1684_v17 = vshrl.u32 %v7296_v6, 20  ;;  %v1686_v33 = vadd.s32 3288858623, %v1678_v49 }
 0x23a   : > { %v1630_v18 = vor.u32 4294967040, %v1629_v55  ;;  %v1648_v41 = vsel %vm1647_vm15, 127, %v1646_v7  ;;  %v1667_v26 = vshrl.u32 %v1666_v56, 20  ;;  %v1674_v52 = vshrl.u32 %v1658_v38, 24  ;;  %v7300_v38 = vld [vmem:[#allocation81_spill] sm:$0xff] }
 0x23b   : > { %v1650_v13 = vor.u32 %v1649_v50, %v1648_v41  ;;  %v1679_v22 = vand.u32 2147483648, %v7296_v6  ;;  %v1685_v51 = vand.u32 1, %v1684_v17  ;;  %vm1689_vm5 = vcmp.lt.s32.totalorder %v1678_v49, 1015021568 }
 0x23c   : > { %v1669_v59 = vsel %vm1668_vm2, %v4420_v29, %v1667_v26  ;;  %v4421_v54 = vadd.s32 3112173568, %v1681_v36  ;;  %vm1691_vm6 = vcmp.ge.s32.totalorder %v1678_v49, 1139277825  ;;  %v1699_v27 = vand.u32 2147483647, %v7297_v37 }
 0x23d   : > { %v1651_v12 = vor.u32 4294967040, %v1650_v13  ;;  %v1671_v10 = vsel %vm1670_vm3, 127, %v1669_v59  ;;  %v1687_v47 = vadd.s32 %v1686_v33, %v1685_v51  ;;  %v1705_v0 = vshrl.u32 %v7297_v37, 20 }
 0x23e   : > { %v1673_v9 = vsel %vm1672_vm4, 127, %v1671_v10  ;;  %vm1693_vm7 = vcmp.ne.f32.partialorder %v7296_v6, %v7296_v6  ;;  %v1702_v8 = vadd.f32 1182793728, %v1699_v27  ;;  %v1707_v45 = vadd.s32 3288858623, %v1699_v27 }
 0x23f   : > { %v1654_v46 = vpack.c.b16 %v1651_v12, %v1630_v18  ;;  %v1688_v58 = vshrl.u32 %v1687_v47, 20  ;;  %v1700_v20 = vand.u32 2147483648, %v7297_v37  ;;  %v1706_v5 = vand.u32 1, %v1705_v0  ;;  %v7301_v12 = vld [vmem:[#allocation95_spill] sm:$0xff] }
 0x240   : > { %v1675_v14 = vor.u32 %v1674_v52, %v1673_v9  ;;  %v1695_v4 = vshrl.u32 %v1679_v22, 24  ;;  %v4422_v57 = vadd.s32 3112173568, %v1702_v8  ;;  %vm1710_vm8 = vcmp.lt.s32.totalorder %v1699_v27, 1015021568  ;;  %v7302_v8 = vld [vmem:[#allocation98_spill] sm:$0xff] }
 0x241   : > { %v5924_v28 = vpack.c.b8 %v1654_v46, %v1653_v16  ;;  %v1690_v31 = vsel %vm1689_vm5, %v4421_v54, %v1688_v58  ;;  %v1708_v19 = vadd.s32 %v1707_v45, %v1706_v5  ;;  %vm1712_vm9 = vcmp.ge.s32.totalorder %v1699_v27, 1139277825 }
 0x242   : > { %v1692_v1 = vsel %vm1691_vm6, 127, %v1690_v31  ;;  %vm1714_vm10 = vcmp.ne.f32.partialorder %v7297_v37, %v7297_v37  ;;  %v1720_v2 = vand.u32 2147483647, %v7298_v23  ;;  %v1726_v44 = vshrl.u32 %v7298_v23, 20 }
 0x243   : > { %v1694_v48 = vsel %vm1693_vm7, 127, %v1692_v1  ;;  %v1709_v21 = vshrl.u32 %v1708_v19, 20  ;;  %v1716_v24 = vshrl.u32 %v1700_v20, 24  ;;  %v1745_v30 = vand.u32 2147483647, %v7299_v63 }
 0x244   : > { %v1696_v50 = vor.u32 %v1695_v4, %v1694_v48  ;;  %v1723_v32 = vadd.f32 1182793728, %v1720_v2  ;;  %v1727_v55 = vand.u32 1, %v1726_v44  ;;  %v1728_v53 = vadd.s32 3288858623, %v1720_v2 }
 0x245   : > { %v5937_v61 = vclamps-f32 %v7300_v38, 240.0  ;;  %v1676_v16 = vor.u32 4294967040, %v1675_v14  ;;  %v1711_v29 = vsel %vm1710_vm8, %v4422_v57, %v1709_v21  ;;  %v1721_v49 = vand.u32 2147483648, %v7298_v23 }
 0x246   : > { %v1697_v40 = vor.u32 4294967040, %v1696_v50  ;;  %v1713_v6 = vsel %vm1712_vm9, 127, %v1711_v29  ;;  %v4423_v56 = vadd.s32 3112173568, %v1723_v32  ;;  %v1729_v7 = vadd.s32 %v1728_v53, %v1727_v55 }
 0x247   : > { %v1715_v36 = vsel %vm1714_vm10, 127, %v1713_v6  ;;  %vm1731_vm11 = vcmp.lt.s32.totalorder %v1720_v2, 1015021568  ;;  %v1748_v17 = vadd.f32 1182793728, %v1745_v30  ;;  %v1751_v33 = vshrl.u32 %v7299_v63, 20 }
 0x248   : > { %v1717_v18 = vor.u32 %v1716_v24, %v1715_v36  ;;  %v1730_v41 = vshrl.u32 %v1729_v7, 20  ;;  %vm1733_vm12 = vcmp.ge.s32.totalorder %v1720_v2, 1139277825  ;;  %v1753_v26 = vadd.s32 3288858623, %v1745_v30 }
 0x249   : > { %vm1735_vm13 = vcmp.ne.f32.partialorder %v7298_v23, %v7298_v23  ;;  %v1737_v52 = vshrl.u32 %v1721_v49, 24  ;;  %v1746_v13 = vand.u32 2147483648, %v7299_v63  ;;  %v1752_v22 = vand.u32 1, %v1751_v33 }
 0x24a   : > { %v1732_v51 = vsel %vm1731_vm11, %v4423_v56, %v1730_v41  ;;  %v1741_v59 = vpack.c.b16 %v1697_v40, %v1676_v16  ;;  %v4424_v54 = vadd.s32 3112173568, %v1748_v17  ;;  %vm1756_vm14 = vcmp.lt.s32.totalorder %v1745_v30, 1015021568 }
 0x24b   : > { %v1734_v37 = vsel %vm1733_vm12, 127, %v1732_v51  ;;  %v1754_v27 = vadd.s32 %v1753_v26, %v1752_v22  ;;  %vm1758_vm15 = vcmp.ge.s32.totalorder %v1745_v30, 1139277825  ;;  %v1766_v10 = vand.u32 2147483647, %v7301_v12  ;;  %v7303_v51 = vld [vmem:[#allocation93_spill] sm:$0xff] }
 0x24c   : > { %v1718_v47 = vor.u32 4294967040, %v1717_v18  ;;  %v1736_v0 = vsel %vm1735_vm13, 127, %v1734_v37  ;;  %v1772_v9 = vshrl.u32 %v7301_v12, 20  ;;  %v1787_v45 = vand.u32 2147483647, %v7302_v8 }
 0x24d   : > { %v1738_v46 = vor.u32 %v1737_v52, %v1736_v0  ;;  %v1755_v58 = vshrl.u32 %v1754_v27, 20  ;;  %v1769_v20 = vadd.f32 1182793728, %v1766_v10  ;;  %v1774_v5 = vadd.s32 3288858623, %v1766_v10 }
 0x24e   : > { %vm1760_vm0 = vcmp.ne.f32.partialorder %v7299_v63, %v7299_v63  ;;  %v1762_v14 = vshrl.u32 %v1746_v13, 24  ;;  %v1767_v4 = vand.u32 2147483648, %v7301_v12  ;;  %v1773_v57 = vand.u32 1, %v1772_v9 }
 0x24f   : > { %v1739_v31 = vor.u32 4294967040, %v1738_v46  ;;  %v1757_v19 = vsel %vm1756_vm14, %v4424_v54, %v1755_v58  ;;  %v4425_v1 = vadd.s32 3112173568, %v1769_v20  ;;  %vm1781_vm1 = vcmp.ne.f32.partialorder %v7301_v12, %v7301_v12  ;;  %v7304_v46 = vld [vmem:[#allocation82_spill] sm:$0xff] }
 0x250   : > { %v1759_v23 = vsel %vm1758_vm15, 127, %v1757_v19  ;;  %v1775_v2 = vadd.s32 %v1774_v5, %v1773_v57  ;;  %v1790_v44 = vadd.f32 1182793728, %v1787_v45  ;;  %v1793_v48 = vshrl.u32 %v7302_v8, 20 }
 0x251   : > { %v1742_v21 = vpack.c.b16 %v1739_v31, %v1718_v47  ;;  %v1761_v24 = vsel %vm1760_vm0, 127, %v1759_v23  ;;  %vm1777_vm2 = vcmp.lt.s32.totalorder %v1766_v10, 1015021568  ;;  %v1795_v63 = vadd.s32 3288858623, %v1787_v45  ;;  %v7305_v31 = vld [vmem:[#allocation96_spill] sm:$0xff] }
 0x252   : > { %v1776_v50 = vshrl.u32 %v1775_v2, 20  ;;  %vm1779_vm3 = vcmp.ge.s32.totalorder %v1766_v10, 1139277825  ;;  %v1783_v32 = vshrl.u32 %v1767_v4, 24  ;;  %v1794_v55 = vand.u32 1, %v1793_v48 }
 0x253   : > { %v5960_v53 = vpack.c.b8 %v1742_v21, %v1741_v59  ;;  %v1763_v38 = vor.u32 %v1762_v14, %v1761_v24  ;;  %v1788_v16 = vand.u32 2147483648, %v7302_v8  ;;  %vm1798_vm4 = vcmp.lt.s32.totalorder %v1787_v45, 1015021568 }
 0x254   : > { %v1778_v30 = vsel %vm1777_vm2, %v4425_v1, %v1776_v50  ;;  %v4426_v29 = vadd.s32 3112173568, %v1790_v44  ;;  %v1796_v49 = vadd.s32 %v1795_v63, %v1794_v55  ;;  %v1808_v40 = vand.u32 2147483647, %v5937_v61 }
 0x255   : > { %v1780_v6 = vsel %vm1779_vm3, 127, %v1778_v30  ;;  %vm1800_vm5 = vcmp.ge.s32.totalorder %v1787_v45, 1139277825  ;;  %vm1802_vm6 = vcmp.ne.f32.partialorder %v7302_v8, %v7302_v8  ;;  %v1814_v56 = vshrl.u32 %v5937_v61, 20 }
 0x256   : > { %v1782_v7 = vsel %vm1781_vm1, 127, %v1780_v6  ;;  %v1797_v36 = vshrl.u32 %v1796_v49, 20  ;;  %v1811_v17 = vadd.f32 1182793728, %v1808_v40  ;;  %v1816_v33 = vadd.s32 3288858623, %v1808_v40 }
 0x257   : > { %v1764_v18 = vor.u32 4294967040, %v1763_v38  ;;  %v1784_v41 = vor.u32 %v1783_v32, %v1782_v7  ;;  %v1804_v26 = vshrl.u32 %v1788_v16, 24  ;;  %v1815_v52 = vand.u32 1, %v1814_v56  ;;  %v7306_v38 = vld [vmem:[#allocation99_spill] sm:$0xff] }
 0x258   : > { %v1799_v13 = vsel %vm1798_vm4, %v4426_v29, %v1797_v36  ;;  %v1809_v22 = vand.u32 2147483648, %v5937_v61  ;;  %vm1819_vm7 = vcmp.lt.s32.totalorder %v1808_v40, 1015021568  ;;  %v1833_v59 = vand.u32 2147483647, %v7303_v51 }
 0x259   : > { %v1785_v54 = vor.u32 4294967040, %v1784_v41  ;;  %v1801_v37 = vsel %vm1800_vm5, 127, %v1799_v13  ;;  %v4427_v27 = vadd.s32 3112173568, %v1811_v17  ;;  %v1817_v12 = vadd.s32 %v1816_v33, %v1815_v52  ;;  %v7307_v17 = vld [vmem:[#allocation78_spill] sm:$0xff] }
 0x25a   : > { %v1803_v10 = vsel %vm1802_vm6, 127, %v1801_v37  ;;  %v1836_v47 = vadd.f32 1182793728, %v1833_v59  ;;  %v1839_v0 = vshrl.u32 %v7303_v51, 20  ;;  %v1841_v9 = vadd.s32 3288858623, %v1833_v59 }
 0x25b   : > { %v5979_v58 = vclamps-f32 %v7304_v46, 240.0  ;;  %v1818_v20 = vshrl.u32 %v1817_v12, 20  ;;  %vm1821_vm8 = vcmp.ge.s32.totalorder %v1808_v40, 1139277825  ;;  %vm1823_vm9 = vcmp.ne.f32.partialorder %v5937_v61, %v5937_v61 }
 0x25c   : > { %v1805_v45 = vor.u32 %v1804_v26, %v1803_v10  ;;  %v1825_v5 = vshrl.u32 %v1809_v22, 24  ;;  %v1834_v14 = vand.u32 2147483648, %v7303_v51  ;;  %v1840_v4 = vand.u32 1, %v1839_v0  ;;  %v7308_v0 = vld [vmem:[#allocation79_spill] sm:$0xff] }
 0x25d   : > { %v1820_v8 = vsel %vm1819_vm7, %v4427_v27, %v1818_v20  ;;  %v1829_v57 = vpack.c.b16 %v1785_v54, %v1764_v18  ;;  %vm1844_vm10 = vcmp.lt.s32.totalorder %v1833_v59, 1015021568  ;;  %v1854_v19 = vand.u32 2147483647, %v7305_v31 }
 0x25e   : > { %v1822_v1 = vsel %vm1821_vm8, 127, %v1820_v8  ;;  %v4428_v23 = vadd.s32 3112173568, %v1836_v47  ;;  %v1842_v2 = vadd.s32 %v1841_v9, %v1840_v4  ;;  %v1860_v44 = vshrl.u32 %v7305_v31, 20 }
 0x25f   : > { %v1824_v48 = vsel %vm1823_vm9, 127, %v1822_v1  ;;  %vm1846_vm11 = vcmp.ge.s32.totalorder %v1833_v59, 1139277825  ;;  %v1857_v21 = vadd.f32 1182793728, %v1854_v19  ;;  %v1862_v61 = vadd.s32 3288858623, %v1854_v19 }
 0x260   : > { %v1806_v24 = vor.u32 4294967040, %v1805_v45  ;;  %v1826_v63 = vor.u32 %v1825_v5, %v1824_v48  ;;  %v1843_v50 = vshrl.u32 %v1842_v2, 20  ;;  %v1861_v32 = vand.u32 1, %v1860_v44 }
 0x261   : > { %vm1848_vm12 = vcmp.ne.f32.partialorder %v7303_v51, %v7303_v51  ;;  %v1855_v55 = vand.u32 2147483648, %v7305_v31  ;;  %vm1865_vm13 = vcmp.lt.s32.totalorder %v1854_v19, 1015021568  ;;  %v1875_v16 = vand.u32 2147483647, %v7306_v38 }
 0x262   : > { %v1827_v30 = vor.u32 4294967040, %v1826_v63  ;;  %v1845_v29 = vsel %vm1844_vm10, %v4428_v23, %v1843_v50  ;;  %v4429_v49 = vadd.s32 3112173568, %v1857_v21  ;;  %v1863_v40 = vadd.s32 %v1862_v61, %v1861_v32  ;;  %v7309_v63 = vld [vmem:[#allocation80_spill] sm:$0xff] }
 0x263   : > { %v1847_v6 = vsel %vm1846_vm11, 127, %v1845_v29  ;;  %v1878_v56 = vadd.f32 1182793728, %v1875_v16  ;;  %v1881_v7 = vshrl.u32 %v7306_v38, 20  ;;  %v1883_v36 = vadd.s32 3288858623, %v1875_v16 }
 0x264   : > { %v5994_v33 = vclamps-f32 %v7307_v17, 240.0  ;;  %v1830_v18 = vpack.c.b16 %v1827_v30, %v1806_v24  ;;  %v1864_v41 = vshrl.u32 %v1863_v40, 20  ;;  %vm1867_vm14 = vcmp.ge.s32.totalorder %v1854_v19, 1139277825 }
 0x265   : > { %v1850_v26 = vshrl.u32 %v1834_v14, 24  ;;  %vm1869_vm15 = vcmp.ne.f32.partialorder %v7305_v31, %v7305_v31  ;;  %v1871_v52 = vshrl.u32 %v1855_v55, 24  ;;  %v1882_v13 = vand.u32 1, %v1881_v7 }
 0x266   : > { %v5998_v22 = vpack.c.b8 %v1830_v18, %v1829_v57  ;;  %v1849_v59 = vsel %vm1848_vm12, 127, %v1847_v6  ;;  %v1866_v54 = vsel %vm1865_vm13, %v4429_v49, %v1864_v41  ;;  %v1876_v37 = vand.u32 2147483648, %v7306_v38 }
 0x267   : > { %v1868_v27 = vsel %vm1867_vm14, 127, %v1866_v54  ;;  %v4430_v12 = vadd.s32 3112173568, %v1878_v56  ;;  %v1884_v10 = vadd.s32 %v1883_v36, %v1882_v13  ;;  %v1896_v47 = vand.u32 2147483647, %v5979_v58  ;;  %v7310_v56 = vld [vmem:[#allocation83_spill] sm:$0xff] }
 0x268   : > { %v6007_v9 = vclamps-f32 %v7308_v0, 240.0  ;;  %v1870_v46 = vsel %vm1869_vm15, 127, %v1868_v27  ;;  %vm1886_vm0 = vcmp.lt.s32.totalorder %v1875_v16, 1015021568  ;;  %v1902_v20 = vshrl.u32 %v5979_v58, 20 }
 0x269   : > { %v1885_v45 = vshrl.u32 %v1884_v10, 20  ;;  %vm1888_vm1 = vcmp.ge.s32.totalorder %v1875_v16, 1139277825  ;;  %v1899_v51 = vadd.f32 1182793728, %v1896_v47  ;;  %v1904_v5 = vadd.s32 3288858623, %v1896_v47 }
 0x26a   : > { %v1851_v14 = vor.u32 %v1850_v26, %v1849_v59  ;;  %vm1890_vm2 = vcmp.ne.f32.partialorder %v7306_v38, %v7306_v38  ;;  %v1892_v4 = vshrl.u32 %v1876_v37, 24  ;;  %v1903_v8 = vand.u32 1, %v1902_v20 }
 0x26b   : > { %v1872_v57 = vor.u32 %v1871_v52, %v1870_v46  ;;  %v1887_v31 = vsel %vm1886_vm0, %v4430_v12, %v1885_v45  ;;  %v1897_v19 = vand.u32 2147483648, %v5979_v58  ;;  %v1921_v1 = vand.u32 2147483647, %v5994_v33 }
 0x26c   : > { %v1889_v23 = vsel %vm1888_vm1, 127, %v1887_v31  ;;  %v4431_v2 = vadd.s32 3112173568, %v1899_v51  ;;  %v1905_v44 = vadd.s32 %v1904_v5, %v1903_v8  ;;  %v1927_v48 = vshrl.u32 %v5994_v33, 20 }
 0x26d   : > { %v1891_v21 = vsel %vm1890_vm2, 127, %v1889_v23  ;;  %vm1907_vm3 = vcmp.lt.s32.totalorder %v1896_v47, 1015021568  ;;  %v1924_v61 = vadd.f32 1182793728, %v1921_v1  ;;  %v1929_v24 = vadd.s32 3288858623, %v1921_v1 }
 0x26e   : > { %v6016_v50 = vclamps-f32 %v7309_v63, 240.0  ;;  %v1906_v32 = vshrl.u32 %v1905_v44, 20  ;;  %vm1909_vm4 = vcmp.ge.s32.totalorder %v1896_v47, 1139277825  ;;  %v1928_v55 = vand.u32 1, %v1927_v48 }
 0x26f   : > { %v1852_v38 = vor.u32 4294967040, %v1851_v14  ;;  %v1893_v16 = vor.u32 %v1892_v4, %v1891_v21  ;;  %vm1911_vm5 = vcmp.ne.f32.partialorder %v5979_v58, %v5979_v58  ;;  %v1913_v30 = vshrl.u32 %v1897_v19, 24 }
 0x270   : > { %v1873_v29 = vor.u32 4294967040, %v1872_v57  ;;  %v1908_v49 = vsel %vm1907_vm3, %v4431_v2, %v1906_v32  ;;  %v1930_v40 = vadd.s32 %v1929_v24, %v1928_v55  ;;  %v1942_v6 = vand.u32 2147483647, %v6007_v9 }
 0x271   : > { %v6022_v7 = vclamps-f32 %v7310_v56, 240.0  ;;  %v1910_v36 = vsel %vm1909_vm4, 127, %v1908_v49  ;;  %v4432_v17 = vadd.s32 3112173568, %v1924_v61  ;;  %v1948_v18 = vshrl.u32 %v6007_v9, 20 }
 0x272   : > { %v1912_v41 = vsel %vm1911_vm5, 127, %v1910_v36  ;;  %v1931_v26 = vshrl.u32 %v1930_v40, 20  ;;  %v1945_v52 = vadd.f32 1182793728, %v1942_v6  ;;  %v1950_v13 = vadd.s32 3288858623, %v1942_v6 }
 0x273   : > { %v1894_v59 = vor.u32 4294967040, %v1893_v16  ;;  %v1914_v54 = vor.u32 %v1913_v30, %v1912_v41  ;;  %vm1932_vm6 = vcmp.lt.s32.totalorder %v1921_v1, 1015021568  ;;  %v1949_v58 = vand.u32 1, %v1948_v18 }
 0x274   : > { %v1917_v37 = vpack.c.b16 %v1873_v29, %v1852_v38  ;;  %v1922_v27 = vand.u32 2147483648, %v5994_v33  ;;  %vm1934_vm7 = vcmp.ge.s32.totalorder %v1921_v1, 1139277825  ;;  %v1963_v12 = vand.u32 2147483647, %v6016_v50 }
 0x275   : > { %v1915_v10 = vor.u32 4294967040, %v1914_v54  ;;  %v4433_v47 = vadd.s32 3112173568, %v1945_v52  ;;  %v1951_v0 = vadd.s32 %v1950_v13, %v1949_v58  ;;  %vm1953_vm8 = vcmp.lt.s32.totalorder %v1942_v6, 1015021568 }
 0x276   : > { %v1933_v46 = vsel %vm1932_vm6, %v4432_v17, %v1931_v26  ;;  %v1966_v20 = vadd.f32 1182793728, %v1963_v12  ;;  %v1969_v45 = vshrl.u32 %v6016_v50, 20  ;;  %v1971_v51 = vadd.s32 3288858623, %v1963_v12 }
 0x277   : > { %v1918_v5 = vpack.c.b16 %v1915_v10, %v1894_v59  ;;  %v1943_v14 = vand.u32 2147483648, %v6007_v9  ;;  %v1952_v4 = vshrl.u32 %v1951_v0, 20  ;;  %vm1955_vm9 = vcmp.ge.s32.totalorder %v1942_v6, 1139277825 }
 0x278   : > { %vm1936_vm10 = vcmp.ne.f32.partialorder %v5994_v33, %v5994_v33  ;;  %vm1957_vm11 = vcmp.ne.f32.partialorder %v6007_v9, %v6007_v9  ;;  %v1970_v8 = vand.u32 1, %v1969_v45  ;;  %v1935_v31 = vsel %vm1934_vm7, 127, %v1933_v46 }
 0x279   : > { %v6033_v57 = vpack.c.b8 %v1918_v5, %v1917_v37  ;;  %v1954_v19 = vsel %vm1953_vm8, %v4433_v47, %v1952_v4  ;;  %v1964_v23 = vand.u32 2147483648, %v6016_v50  ;;  %v4434_v44 = vadd.s32 3112173568, %v1966_v20 }
 0x27a   : > { %v1956_v2 = vsel %vm1955_vm9, 127, %v1954_v19  ;;  %v1972_v48 = vadd.s32 %v1971_v51, %v1970_v8  ;;  %v1984_v21 = vand.u32 2147483647, %v6022_v7  ;;  %v1938_v61 = vshrl.u32 %v1922_v27, 24 }
 0x27b   : > { %v1959_v24 = vshrl.u32 %v1943_v14, 24  ;;  %vm1974_vm12 = vcmp.lt.s32.totalorder %v1963_v12, 1015021568  ;;  %v1990_v63 = vshrl.u32 %v6022_v7, 20  ;;  %vm1976_vm13 = vcmp.ge.s32.totalorder %v1963_v12, 1139277825 }
 0x27c   : > { %v1973_v32 = vshrl.u32 %v1972_v48, 20  ;;  %v1987_v55 = vadd.f32 1182793728, %v1984_v21  ;;  %v1992_v38 = vadd.s32 3288858623, %v1984_v21  ;;  %v1937_v1 = vsel %vm1936_vm10, 127, %v1935_v31 }
 0x27d   : > { %v1958_v16 = vsel %vm1957_vm11, 127, %v1956_v2  ;;  %vm1978_vm14 = vcmp.ne.f32.partialorder %v6016_v50, %v6016_v50  ;;  %v1991_v30 = vand.u32 1, %v1990_v63  ;;  %v1980_v49 = vshrl.u32 %v1964_v23, 24 }
 0x27e   : > { %v1975_v29 = vsel %vm1974_vm12, %v4434_v44, %v1973_v32  ;;  %v1985_v40 = vand.u32 2147483648, %v6022_v7  ;;  %v4435_v56 = vadd.s32 3112173568, %v1987_v55  ;;  %v1939_v17 = vor.u32 %v1938_v61, %v1937_v1 }
 0x27f   : > { %v1977_v6 = vsel %vm1976_vm13, 127, %v1975_v29  ;;  %v1993_v36 = vadd.s32 %v1992_v38, %v1991_v30  ;;  %v1960_v18 = vor.u32 %v1959_v24, %v1958_v16  ;;  %vm1995_vm15 = vcmp.lt.s32.totalorder %v1984_v21, 1015021568 }
 0x280   : > { %v1979_v41 = vsel %vm1978_vm14, 127, %v1977_v6  ;;  %vm1997_vm0 = vcmp.ge.s32.totalorder %v1984_v21, 1139277825  ;;  %vm1999_vm1 = vcmp.ne.f32.partialorder %v6022_v7, %v6022_v7  ;;  %v2001_v9 = vshrl.u32 %v1985_v40, 24 }
 0x281   : > { %v1994_v33 = vshrl.u32 %v1993_v36, 20  ;;  %v1981_v26 = vor.u32 %v1980_v49, %v1979_v41  ;;  %v1940_v52 = vor.u32 4294967040, %v1939_v17  ;;  %v1961_v13 = vor.u32 4294967040, %v1960_v18 }
 0x283   : > { %v1996_v50 = vsel %vm1995_vm15, %v4435_v56, %v1994_v33  ;;  %v1982_v58 = vor.u32 4294967040, %v1981_v26  ;;  %v2005_v12 = vpack.c.b16 %v1961_v13, %v1940_v52 }
 0x284   : > { %v1998_v59 = vsel %vm1997_vm0, 127, %v1996_v50 }
 0x285   : > { %v2000_v54 = vsel %vm1999_vm1, 127, %v1998_v59 }
 0x286   : > { %v2002_v37 = vor.u32 %v2001_v9, %v2000_v54 }
 0x288   : > { %v2003_v27 = vor.u32 4294967040, %v2002_v37 }
 0x28a   : > { %v2006_v10 = vpack.c.b16 %v2003_v27, %v1982_v58 }
 0x28c   : > { %v6050_v47 = vpack.c.b8 %v2006_v10, %v2005_v12 }
 0x28d   : > { %2009 = vst [vmem:[#allocation7] sm:$0xff] %v5490_v62 }
 0x294   : > { %v2010_v0 = vld [vmem:[#allocation7] sm:$0x3] }
 0x295   : > { %v2011_v46 = vunpack.c.0.f8e4m3b11 %v2010_v0 }
 0x297   : > { %v2015_v20 = vand.u32 2147483647, %v2011_v46  ;;  %vm2017_vm2 = vcmp.ne.f32.partialorder %v2011_v46, %v2011_v46  ;;  %v2018_v7 = vmul.f32 16.0, %v2011_v46 }
 0x299   : > { %vm6053_vm3 = vcmp.gt.f32.partialorder %v2015_v20, 29.0  ;;  %v6057_v51 = vsel %vm2017_vm2, -0.0, %v2018_v7 }
 0x29a   : > { %2039 = vst [vmem:[#allocation8] sm:$0xff] %v5530_v60 }
 0x2a1   : > { %v2040_v14 = vld [vmem:[#allocation8] sm:$0x3] }
 0x2a2   : > { %v2041_v4 = vunpack.c.0.f8e4m3b11 %v2040_v14 }
 0x2a4   : > { %v2045_v8 = vand.u32 2147483647, %v2041_v4  ;;  %vm2047_vm4 = vcmp.ne.f32.partialorder %v2041_v4, %v2041_v4  ;;  %v2048_v31 = vmul.f32 16.0, %v2041_v4 }
 0x2a6   : > { %vm6063_vm5 = vcmp.gt.f32.partialorder %v2045_v8, 29.0  ;;  %v6067_v23 = vsel %vm2047_vm4, -0.0, %v2048_v31 }
 0x2a7   : > { %2069 = vst [vmem:[#allocation9] sm:$0xff] %v5568_v25 }
 0x2ae   : > { %v2070_v44 = vld [vmem:[#allocation9] sm:$0x3] }
 0x2af   : > { %v2071_v48 = vunpack.c.0.f8e4m3b11 %v2070_v44 }
 0x2b1   : > { %v2075_v21 = vand.u32 2147483647, %v2071_v48  ;;  %vm2077_vm6 = vcmp.ne.f32.partialorder %v2071_v48, %v2071_v48  ;;  %v2078_v61 = vmul.f32 16.0, %v2071_v48 }
 0x2b3   : > { %vm6073_vm7 = vcmp.gt.f32.partialorder %v2075_v21, 29.0  ;;  %v6077_v63 = vsel %vm2077_vm6, -0.0, %v2078_v61 }
 0x2b4   : > { %2099 = vst [vmem:[#allocation10] sm:$0xff] %v5608_v34 }
 0x2bb   : > { %v2100_v55 = vld [vmem:[#allocation10] sm:$0x3] }
 0x2bc   : > { %v2101_v38 = vunpack.c.0.f8e4m3b11 %v2100_v55 }
 0x2be   : > { %v2105_v1 = vand.u32 2147483647, %v2101_v38  ;;  %vm2107_vm8 = vcmp.ne.f32.partialorder %v2101_v38, %v2101_v38  ;;  %v2108_v16 = vmul.f32 16.0, %v2101_v38 }
 0x2c0   : > { %vm6083_vm9 = vcmp.gt.f32.partialorder %v2105_v1, 29.0  ;;  %v6087_v29 = vsel %vm2107_vm8, -0.0, %v2108_v16 }
 0x2c1   : > { %2129 = vst [vmem:[#allocation11] sm:$0xff] %v5490_v62 }
 0x2c8   : > { %v2131_v40 = vld [vmem:[#allocation11 + $0x2] sm:$0x3] }
 0x2c9   : > { %v2132_v6 = vunpack.c.0.f8e4m3b11 %v2131_v40 }
 0x2cb   : > { %v2136_v56 = vand.u32 2147483647, %v2132_v6  ;;  %vm2138_vm10 = vcmp.ne.f32.partialorder %v2132_v6, %v2132_v6  ;;  %v2139_v36 = vmul.f32 16.0, %v2132_v6 }
 0x2cd   : > { %vm6093_vm11 = vcmp.gt.f32.partialorder %v2136_v56, 29.0  ;;  %v6097_v18 = vsel %vm2138_vm10, -0.0, %v2139_v36 }
 0x2ce   : > { %2160 = vst [vmem:[#allocation12] sm:$0xff] %v5530_v60 }
 0x2d5   : > { %v2162_v33 = vld [vmem:[#allocation12 + $0x2] sm:$0x3] }
 0x2d6   : > { %v2163_v26 = vunpack.c.0.f8e4m3b11 %v2162_v33 }
 0x2d8   : > { %v2167_v9 = vand.u32 2147483647, %v2163_v26  ;;  %vm2169_vm12 = vcmp.ne.f32.partialorder %v2163_v26, %v2163_v26  ;;  %v2170_v50 = vmul.f32 16.0, %v2163_v26 }
 0x2da   : > { %vm6103_vm13 = vcmp.gt.f32.partialorder %v2167_v9, 29.0  ;;  %v6107_v13 = vsel %vm2169_vm12, -0.0, %v2170_v50 }
 0x2db   : > { %2191 = vst [vmem:[#allocation13] sm:$0xff] %v5568_v25 }
 0x2e2   : > { %v2193_v54 = vld [vmem:[#allocation13 + $0x2] sm:$0x3] }
 0x2e3   : > { %v2194_v58 = vunpack.c.0.f8e4m3b11 %v2193_v54 }
 0x2e5   : > { %v2198_v37 = vand.u32 2147483647, %v2194_v58  ;;  %vm2200_vm14 = vcmp.ne.f32.partialorder %v2194_v58, %v2194_v58  ;;  %v2201_v27 = vmul.f32 16.0, %v2194_v58 }
 0x2e7   : > { %vm6113_vm15 = vcmp.gt.f32.partialorder %v2198_v37, 29.0  ;;  %v6117_v10 = vsel %vm2200_vm14, -0.0, %v2201_v27 }
 0x2e8   : > { %2222 = vst [vmem:[#allocation14] sm:$0xff] %v5608_v34 }
 0x2ef   : > { %v2224_v46 = vld [vmem:[#allocation14 + $0x2] sm:$0x3] }
 0x2f0   : > { %v2225_v20 = vunpack.c.0.f8e4m3b11 %v2224_v46 }
 0x2f2   : > { %v2229_v7 = vand.u32 2147483647, %v2225_v20  ;;  %vm2231_vm0 = vcmp.ne.f32.partialorder %v2225_v20, %v2225_v20  ;;  %v2232_v14 = vmul.f32 16.0, %v2225_v20 }
 0x2f4   : > { %vm6123_vm1 = vcmp.gt.f32.partialorder %v2229_v7, 29.0  ;;  %v6127_v8 = vsel %vm2231_vm0, -0.0, %v2232_v14 }
 0x2f5   : > { %2253 = vst [vmem:[#allocation15] sm:$0xff] %v5490_v62 }
 0x2fc   : > { %v2255_v44 = vld [vmem:[#allocation15 + $0x4] sm:$0x3] }
 0x2fd   : > { %v2256_v48 = vunpack.c.0.f8e4m3b11 %v2255_v44 }
 0x2ff   : > { %v2260_v21 = vand.u32 2147483647, %v2256_v48  ;;  %vm2262_vm2 = vcmp.ne.f32.partialorder %v2256_v48, %v2256_v48  ;;  %v2263_v61 = vmul.f32 16.0, %v2256_v48 }
 0x301   : > { %vm6133_vm4 = vcmp.gt.f32.partialorder %v2260_v21, 29.0  ;;  %v6137_v38 = vsel %vm2262_vm2, -0.0, %v2263_v61 }
 0x302   : > { %2284 = vst [vmem:[#allocation16] sm:$0xff] %v5530_v60 }
 0x309   : > { %v2286_v16 = vld [vmem:[#allocation16 + $0x4] sm:$0x3] }
 0x30a   : > { %v2287_v40 = vunpack.c.0.f8e4m3b11 %v2286_v16 }
 0x30c   : > { %v2291_v6 = vand.u32 2147483647, %v2287_v40  ;;  %vm2293_vm6 = vcmp.ne.f32.partialorder %v2287_v40, %v2287_v40  ;;  %v2294_v56 = vmul.f32 16.0, %v2287_v40 }
 0x30e   : > { %vm6143_vm8 = vcmp.gt.f32.partialorder %v2291_v6, 29.0  ;;  %v6147_v33 = vsel %vm2293_vm6, -0.0, %v2294_v56 }
 0x30f   : > { %2315 = vst [vmem:[#allocation17] sm:$0xff] %v5568_v25 }
 0x316   : > { %v2317_v9 = vld [vmem:[#allocation17 + $0x4] sm:$0x3] }
 0x317   : > { %v2318_v50 = vunpack.c.0.f8e4m3b11 %v2317_v9 }
 0x319   : > { %v2322_v54 = vand.u32 2147483647, %v2318_v50  ;;  %vm2324_vm10 = vcmp.ne.f32.partialorder %v2318_v50, %v2318_v50  ;;  %v2325_v58 = vmul.f32 16.0, %v2318_v50 }
 0x31b   : > { %vm6153_vm12 = vcmp.gt.f32.partialorder %v2322_v54, 29.0  ;;  %v6157_v27 = vsel %vm2324_vm10, -0.0, %v2325_v58 }
 0x31c   : > { %2346 = vst [vmem:[#allocation18] sm:$0xff] %v5608_v34 }
 0x323   : > { %v2348_v20 = vld [vmem:[#allocation18 + $0x4] sm:$0x3] }
 0x324   : > { %v2349_v7 = vunpack.c.0.f8e4m3b11 %v2348_v20 }
 0x326   : > { %v2353_v14 = vand.u32 2147483647, %v2349_v7  ;;  %vm2355_vm14 = vcmp.ne.f32.partialorder %v2349_v7, %v2349_v7  ;;  %v2356_v44 = vmul.f32 16.0, %v2349_v7 }
 0x328   : > { %vm6163_vm0 = vcmp.gt.f32.partialorder %v2353_v14, 29.0  ;;  %v6167_v21 = vsel %vm2355_vm14, -0.0, %v2356_v44 }
 0x329   : > { %2377 = vst [vmem:[#allocation19] sm:$0xff] %v5490_v62  ;;  %v7335_v9 = vmov 0 }
 0x330   : > { %v2379_v16 = vld [vmem:[#allocation19 + $0x6] sm:$0x3] }
 0x331   : > { %v2380_v40 = vunpack.c.0.f8e4m3b11 %v2379_v16 }
 0x333   : > { %v2384_v6 = vand.u32 2147483647, %v2380_v40  ;;  %vm2386_vm2 = vcmp.ne.f32.partialorder %v2380_v40, %v2380_v40  ;;  %v2387_v56 = vmul.f32 16.0, %v2380_v40 }
 0x335   : > { %vm6173_vm6 = vcmp.gt.f32.partialorder %v2384_v6, 29.0  ;;  %v6177_v50 = vsel %vm2386_vm2, -0.0, %v2387_v56 }
 0x336   : > { %v7336_v9 = vsel %vm6173_vm6, 4294967295, %v7335_v9 }
 0x337   : > { %2408 = vst [vmem:[#allocation20] sm:$0xff] %v5530_v60  ;;  %v7337_v14 = vmov 0 }
 0x33e   : > { %v2410_v58 = vld [vmem:[#allocation20 + $0x6] sm:$0x3] }
 0x33f   : > { %v2411_v20 = vunpack.c.0.f8e4m3b11 %v2410_v58 }
 0x341   : > { %v2415_v62 = vand.u32 2147483647, %v2411_v20  ;;  %vm2417_vm10 = vcmp.ne.f32.partialorder %v2411_v20, %v2411_v20  ;;  %v2418_v7 = vmul.f32 16.0, %v2411_v20 }
 0x343   : > { %vm6183_vm14 = vcmp.gt.f32.partialorder %v2415_v62, 29.0  ;;  %v6187_v44 = vsel %vm2417_vm10, -0.0, %v2418_v7 }
 0x344   : > { %v7338_v14 = vsel %vm6183_vm14, 4294967295, %v7337_v14 }
 0x345   : > { %2439 = vst [vmem:[#allocation21] sm:$0xff] %v5568_v25  ;;  %v7339_v58 = vmov 0 }
 0x34c   : > { %v2441_v40 = vld [vmem:[#allocation21 + $0x6] sm:$0x3] }
 0x34d   : > { %v2442_v6 = vunpack.c.0.f8e4m3b11 %v2441_v40 }
 0x34f   : > { %v2446_v60 = vand.u32 2147483647, %v2442_v6  ;;  %vm2448_vm2 = vcmp.ne.f32.partialorder %v2442_v6, %v2442_v6  ;;  %v2449_v56 = vmul.f32 16.0, %v2442_v6 }
 0x351   : > { %vm6193_vm6 = vcmp.gt.f32.partialorder %v2446_v60, 29.0  ;;  %v6197_v20 = vsel %vm2448_vm2, -0.0, %v2449_v56 }
 0x352   : > { %v7340_v58 = vsel %vm6193_vm6, 4294967295, %v7339_v58 }
 0x353   : > { %2470 = vst [vmem:[#allocation22] sm:$0xff] %v5608_v34  ;;  %v7341_v54 = vmov 0 }
 0x35a   : > { %v2472_v7 = vld [vmem:[#allocation22 + $0x6] sm:$0x3] }
 0x35b   : > { %v2473_v16 = vunpack.c.0.f8e4m3b11 %v2472_v7 }
 0x35d   : > { %v2477_v25 = vand.u32 2147483647, %v2473_v16  ;;  %vm2479_vm10 = vcmp.ne.f32.partialorder %v2473_v16, %v2473_v16  ;;  %v2480_v40 = vmul.f32 16.0, %v2473_v16 }
 0x35f   : > { %vm6203_vm14 = vcmp.gt.f32.partialorder %v2477_v25, 29.0  ;;  %v6207_v6 = vsel %vm2479_vm10, -0.0, %v2480_v40 }
 0x360   : > { %v7342_v54 = vsel %vm6203_vm14, 4294967295, %v7341_v54 }
 0x361   : > { %2501 = vst [vmem:[#allocation23] sm:$0xff] %v5648_v11  ;;  %v7343_v61 = vmov 0 }
 0x368   : > { %v2502_v56 = vld [vmem:[#allocation23] sm:$0x3] }
 0x369   : > { %v2503_v62 = vunpack.c.0.f8e4m3b11 %v2502_v56 }
 0x36b   : > { %v2507_v34 = vand.u32 2147483647, %v2503_v62  ;;  %vm2509_vm2 = vcmp.ne.f32.partialorder %v2503_v62, %v2503_v62  ;;  %v2510_v7 = vmul.f32 16.0, %v2503_v62 }
 0x36d   : > { %vm6213_vm6 = vcmp.gt.f32.partialorder %v2507_v34, 29.0  ;;  %v6217_v16 = vsel %vm2509_vm2, -0.0, %v2510_v7 }
 0x36e   : > { %v7344_v61 = vsel %vm6213_vm6, 4294967295, %v7343_v61 }
 0x36f   : > { %2531 = vst [vmem:[#allocation24] sm:$0xff] %v5688_v3  ;;  %v7345_v26 = vmov 0 }
 0x376   : > { %v2532_v40 = vld [vmem:[#allocation24] sm:$0x3] }
 0x377   : > { %v2533_v60 = vunpack.c.0.f8e4m3b11 %v2532_v40 }
 0x379   : > { %v2537_v46 = vand.u32 2147483647, %v2533_v60  ;;  %vm2539_vm10 = vcmp.ne.f32.partialorder %v2533_v60, %v2533_v60  ;;  %v2540_v56 = vmul.f32 16.0, %v2533_v60 }
 0x37b   : > { %vm6223_vm14 = vcmp.gt.f32.partialorder %v2537_v46, 29.0  ;;  %v6227_v62 = vsel %vm2539_vm10, -0.0, %v2540_v56 }
 0x37c   : > { %v7346_v26 = vsel %vm6223_vm14, 4294967295, %v7345_v26 }
 0x37d   : > { %2561 = vst [vmem:[#allocation25] sm:$0xff] %v5726_v43  ;;  %v7347_v31 = vmov 0 }
 0x384   : > { %v2562_v7 = vld [vmem:[#allocation25] sm:$0x3] }
 0x385   : > { %v2563_v25 = vunpack.c.0.f8e4m3b11 %v2562_v7 }
 0x387   : > { %v2567_v1 = vand.u32 2147483647, %v2563_v25  ;;  %vm2569_vm2 = vcmp.ne.f32.partialorder %v2563_v25, %v2563_v25  ;;  %v2570_v40 = vmul.f32 16.0, %v2563_v25 }
 0x389   : > { %vm6233_vm6 = vcmp.gt.f32.partialorder %v2567_v1, 29.0  ;;  %v6237_v46 = vsel %vm2569_vm2, -0.0, %v2570_v40 }
 0x38a   : > { %v7348_v31 = vsel %vm6233_vm6, 4294967295, %v7347_v31 }
 0x38b   : > { %2591 = vst [vmem:[#allocation26] sm:$0xff] %v5766_v39  ;;  %v7349_v59 = vmov 0 }
 0x392   : > { %v2592_v56 = vld [vmem:[#allocation26] sm:$0x3] }
 0x393   : > { %v2593_v34 = vunpack.c.0.f8e4m3b11 %v2592_v56 }
 0x395   : > { %v2597_v0 = vand.u32 2147483647, %v2593_v34  ;;  %vm2599_vm10 = vcmp.ne.f32.partialorder %v2593_v34, %v2593_v34  ;;  %v2600_v7 = vmul.f32 16.0, %v2593_v34 }
 0x397   : > { %vm6243_vm14 = vcmp.gt.f32.partialorder %v2597_v0, 29.0  ;;  %v6247_v1 = vsel %vm2599_vm10, -0.0, %v2600_v7 }
 0x398   : > { %v7350_v59 = vsel %vm6243_vm14, 4294967295, %v7349_v59 }
 0x399   : > { %2621 = vst [vmem:[#allocation27] sm:$0xff] %v5648_v11  ;;  %v7351_v49 = vmov 0 }
 0x3a0   : > { %v2623_v40 = vld [vmem:[#allocation27 + $0x2] sm:$0x3] }
 0x3a1   : > { %v2624_v60 = vunpack.c.0.f8e4m3b11 %v2623_v40 }
 0x3a3   : > { %v2628_v41 = vand.u32 2147483647, %v2624_v60  ;;  %vm2630_vm2 = vcmp.ne.f32.partialorder %v2624_v60, %v2624_v60  ;;  %v2631_v56 = vmul.f32 16.0, %v2624_v60 }
 0x3a5   : > { %vm6253_vm6 = vcmp.gt.f32.partialorder %v2628_v41, 29.0  ;;  %v6257_v0 = vsel %vm2630_vm2, -0.0, %v2631_v56 }
 0x3a6   : > { %v7352_v49 = vsel %vm6253_vm6, 4294967295, %v7351_v49  ;;  %7353 = vst [vmem:[#allocation101_spill] sm:$0xff] %v6257_v0 }
 0x3a7   : > { %2652 = vst [vmem:[#allocation28] sm:$0xff] %v5688_v3  ;;  %v7354_v2 = vmov 0 }
 0x3ae   : > { %v2654_v7 = vld [vmem:[#allocation28 + $0x2] sm:$0x3] }
 0x3af   : > { %v2655_v25 = vunpack.c.0.f8e4m3b11 %v2654_v7 }
 0x3b1   : > { %v2659_v32 = vand.u32 2147483647, %v2655_v25  ;;  %vm2661_vm10 = vcmp.ne.f32.partialorder %v2655_v25, %v2655_v25  ;;  %v2662_v40 = vmul.f32 16.0, %v2655_v25 }
 0x3b3   : > { %vm6263_vm14 = vcmp.gt.f32.partialorder %v2659_v32, 29.0  ;;  %v6267_v41 = vsel %vm2661_vm10, -0.0, %v2662_v40 }
 0x3b4   : > { %v7355_v2 = vsel %vm6263_vm14, 4294967295, %v7354_v2  ;;  %7357 = vst [vmem:[#allocation103_spill] sm:$0xff] %v6267_v41 }
 0x3b5   : > { %7356 = vst [vmem:[#allocation102_spill] sm:$0xff] %v7355_v2 }
 0x3b6   : > { %2683 = vst [vmem:[#allocation29] sm:$0xff] %v5726_v43  ;;  %v7358_v0 = vmov 0 }
 0x3bd   : > { %v2685_v56 = vld [vmem:[#allocation29 + $0x2] sm:$0x3] }
 0x3be   : > { %v2686_v34 = vunpack.c.0.f8e4m3b11 %v2685_v56 }
 0x3c0   : > { %v2690_v5 = vand.u32 2147483647, %v2686_v34  ;;  %vm2692_vm2 = vcmp.ne.f32.partialorder %v2686_v34, %v2686_v34  ;;  %v2693_v7 = vmul.f32 16.0, %v2686_v34 }
 0x3c2   : > { %vm6273_vm6 = vcmp.gt.f32.partialorder %v2690_v5, 29.0  ;;  %v6277_v32 = vsel %vm2692_vm2, -0.0, %v2693_v7 }
 0x3c3   : > { %v7359_v0 = vsel %vm6273_vm6, 4294967295, %v7358_v0  ;;  %7361 = vst [vmem:[#allocation105_spill] sm:$0xff] %v6277_v32 }
 0x3c4   : > { %7360 = vst [vmem:[#allocation104_spill] sm:$0xff] %v7359_v0 }
 0x3c5   : > { %2714 = vst [vmem:[#allocation30] sm:$0xff] %v5766_v39  ;;  %v7362_v2 = vmov 0 }
 0x3cc   : > { %v2716_v40 = vld [vmem:[#allocation30 + $0x2] sm:$0x3] }
 0x3cd   : > { %v2717_v60 = vunpack.c.0.f8e4m3b11 %v2716_v40 }
 0x3cf   : > { %v2721_v41 = vand.u32 2147483647, %v2717_v60  ;;  %vm2723_vm10 = vcmp.ne.f32.partialorder %v2717_v60, %v2717_v60  ;;  %v2724_v56 = vmul.f32 16.0, %v2717_v60 }
 0x3d1   : > { %vm6283_vm14 = vcmp.gt.f32.partialorder %v2721_v41, 29.0  ;;  %v6287_v5 = vsel %vm2723_vm10, -0.0, %v2724_v56 }
 0x3d2   : > { %v7363_v2 = vsel %vm6283_vm14, 4294967295, %v7362_v2  ;;  %7365 = vst [vmem:[#allocation73_spill] sm:$0xff] %v6287_v5 }
 0x3d3   : > { %7364 = vst [vmem:[#allocation106_spill] sm:$0xff] %v7363_v2 }
 0x3d4   : > { %2745 = vst [vmem:[#allocation31] sm:$0xff] %v5648_v11  ;;  %v7366_v0 = vmov 0 }
 0x3db   : > { %v2747_v7 = vld [vmem:[#allocation31 + $0x4] sm:$0x3] }
 0x3dc   : > { %v2748_v25 = vunpack.c.0.f8e4m3b11 %v2747_v7 }
 0x3de   : > { %v2752_v32 = vand.u32 2147483647, %v2748_v25  ;;  %vm2754_vm2 = vcmp.ne.f32.partialorder %v2748_v25, %v2748_v25  ;;  %v2755_v40 = vmul.f32 16.0, %v2748_v25 }
 0x3e0   : > { %vm6293_vm6 = vcmp.gt.f32.partialorder %v2752_v32, 29.0  ;;  %v6297_v41 = vsel %vm2754_vm2, -0.0, %v2755_v40 }
 0x3e1   : > { %v7367_v0 = vsel %vm6293_vm6, 4294967295, %v7366_v0  ;;  %7369 = vst [vmem:[#allocation75_spill] sm:$0xff] %v6297_v41 }
 0x3e2   : > { %7368 = vst [vmem:[#allocation74_spill] sm:$0xff] %v7367_v0 }
 0x3e3   : > { %2776 = vst [vmem:[#allocation32] sm:$0xff] %v5688_v3  ;;  %v7370_v2 = vmov 0 }
 0x3ea   : > { %v2778_v56 = vld [vmem:[#allocation32 + $0x4] sm:$0x3] }
 0x3eb   : > { %v2779_v34 = vunpack.c.0.f8e4m3b11 %v2778_v56 }
 0x3ed   : > { %v2783_v5 = vand.u32 2147483647, %v2779_v34  ;;  %vm2785_vm10 = vcmp.ne.f32.partialorder %v2779_v34, %v2779_v34  ;;  %v2786_v7 = vmul.f32 16.0, %v2779_v34 }
 0x3ef   : > { %vm6303_vm14 = vcmp.gt.f32.partialorder %v2783_v5, 29.0  ;;  %v6307_v32 = vsel %vm2785_vm10, -0.0, %v2786_v7 }
 0x3f0   : > { %v7371_v2 = vsel %vm6303_vm14, 4294967295, %v7370_v2  ;;  %7373 = vst [vmem:[#allocation77_spill] sm:$0xff] %v6307_v32 }
 0x3f1   : > { %7372 = vst [vmem:[#allocation76_spill] sm:$0xff] %v7371_v2 }
 0x3f2   : > { %2807 = vst [vmem:[#allocation33] sm:$0xff] %v5726_v43  ;;  %v7374_v0 = vmov 0 }
 0x3f9   : > { %v2809_v40 = vld [vmem:[#allocation33 + $0x4] sm:$0x3] }
 0x3fa   : > { %v2810_v60 = vunpack.c.0.f8e4m3b11 %v2809_v40 }
 0x3fc   : > { %v2814_v41 = vand.u32 2147483647, %v2810_v60  ;;  %vm2816_vm2 = vcmp.ne.f32.partialorder %v2810_v60, %v2810_v60  ;;  %v2817_v56 = vmul.f32 16.0, %v2810_v60 }
 0x3fe   : > { %vm6313_vm6 = vcmp.gt.f32.partialorder %v2814_v41, 29.0  ;;  %v6317_v5 = vsel %vm2816_vm2, -0.0, %v2817_v56 }
 0x3ff   : > { %v7375_v0 = vsel %vm6313_vm6, 4294967295, %v7374_v0  ;;  %7377 = vst [vmem:[#allocation87_spill] sm:$0xff] %v6317_v5 }
 0x400   : > { %7376 = vst [vmem:[#allocation85_spill] sm:$0xff] %v7375_v0 }
 0x401   : > { %2838 = vst [vmem:[#allocation34] sm:$0xff] %v5766_v39  ;;  %v7378_v2 = vmov 0 }
 0x408   : > { %v2840_v7 = vld [vmem:[#allocation34 + $0x4] sm:$0x3] }
 0x409   : > { %v2841_v25 = vunpack.c.0.f8e4m3b11 %v2840_v7 }
 0x40b   : > { %v2845_v32 = vand.u32 2147483647, %v2841_v25  ;;  %vm2847_vm10 = vcmp.ne.f32.partialorder %v2841_v25, %v2841_v25  ;;  %v2848_v40 = vmul.f32 16.0, %v2841_v25 }
 0x40d   : > { %vm6323_vm14 = vcmp.gt.f32.partialorder %v2845_v32, 29.0  ;;  %v6327_v41 = vsel %vm2847_vm10, -0.0, %v2848_v40 }
 0x40e   : > { %v7379_v2 = vsel %vm6323_vm14, 4294967295, %v7378_v2  ;;  %7380 = vst [vmem:[#allocation89_spill] sm:$0xff] %v6327_v41 }
 0x40f   : > { %2869 = vst [vmem:[#allocation35] sm:$0xff] %v5648_v11  ;;  %v7381_v0 = vmov 0 }
 0x416   : > { %v2871_v56 = vld [vmem:[#allocation35 + $0x6] sm:$0x3] }
 0x417   : > { %v2872_v34 = vunpack.c.0.f8e4m3b11 %v2871_v56 }
 0x419   : > { %v2876_v5 = vand.u32 2147483647, %v2872_v34  ;;  %vm2878_vm2 = vcmp.ne.f32.partialorder %v2872_v34, %v2872_v34  ;;  %v2879_v7 = vmul.f32 16.0, %v2872_v34 }
 0x41b   : > { %vm6333_vm6 = vcmp.gt.f32.partialorder %v2876_v5, 29.0  ;;  %v6337_v32 = vsel %vm2878_vm2, -0.0, %v2879_v7 }
 0x41c   : > { %v7382_v0 = vsel %vm6333_vm6, 4294967295, %v7381_v0  ;;  %7383 = vst [vmem:[#allocation84_spill] sm:$0xff] %v6337_v32 }
 0x41d   : > { %2900 = vst [vmem:[#allocation36] sm:$0xff] %v5688_v3  ;;  %v7384_v41 = vmov 0 }
 0x424   : > { %v2902_v40 = vld [vmem:[#allocation36 + $0x6] sm:$0x3] }
 0x425   : > { %v2903_v60 = vunpack.c.0.f8e4m3b11 %v2902_v40 }
 0x427   : > { %v2907_v11 = vand.u32 2147483647, %v2903_v60  ;;  %vm2909_vm10 = vcmp.ne.f32.partialorder %v2903_v60, %v2903_v60  ;;  %v2910_v56 = vmul.f32 16.0, %v2903_v60 }
 0x429   : > { %vm6343_vm14 = vcmp.gt.f32.partialorder %v2907_v11, 29.0  ;;  %v6347_v5 = vsel %vm2909_vm10, -0.0, %v2910_v56 }
 0x42a   : > { %v7385_v41 = vsel %vm6343_vm14, 4294967295, %v7384_v41  ;;  %7386 = vst [vmem:[#allocation86_spill] sm:$0xff] %v6347_v5 }
 0x42b   : > { %2931 = vst [vmem:[#allocation37] sm:$0xff] %v5726_v43  ;;  %v7387_v32 = vmov 0 }
 0x432   : > { %v2933_v7 = vld [vmem:[#allocation37 + $0x6] sm:$0x3] }
 0x433   : > { %v2934_v25 = vunpack.c.0.f8e4m3b11 %v2933_v7 }
 0x435   : > { %v2938_v3 = vand.u32 2147483647, %v2934_v25  ;;  %vm2940_vm2 = vcmp.ne.f32.partialorder %v2934_v25, %v2934_v25  ;;  %v2941_v40 = vmul.f32 16.0, %v2934_v25 }
 0x437   : > { %vm6353_vm6 = vcmp.gt.f32.partialorder %v2938_v3, 29.0  ;;  %v6357_v60 = vsel %vm2940_vm2, -0.0, %v2941_v40 }
 0x438   : > { %v7388_v32 = vsel %vm6353_vm6, 4294967295, %v7387_v32  ;;  %7389 = vst [vmem:[#allocation88_spill] sm:$0xff] %v6357_v60 }
 0x439   : > { %2962 = vst [vmem:[#allocation38] sm:$0xff] %v5766_v39  ;;  %v7390_v5 = vmov 0 }
 0x440   : > { %v2964_v56 = vld [vmem:[#allocation38 + $0x6] sm:$0x3] }
 0x441   : > { %v2965_v34 = vunpack.c.0.f8e4m3b11 %v2964_v56 }
 0x443   : > { %v2969_v43 = vand.u32 2147483647, %v2965_v34  ;;  %vm2971_vm10 = vcmp.ne.f32.partialorder %v2965_v34, %v2965_v34  ;;  %v2972_v7 = vmul.f32 16.0, %v2965_v34 }
 0x445   : > { %vm6363_vm14 = vcmp.gt.f32.partialorder %v2969_v43, 29.0  ;;  %v6367_v25 = vsel %vm2971_vm10, -0.0, %v2972_v7 }
 0x446   : > { %v7391_v5 = vsel %vm6363_vm14, 4294967295, %v7390_v5  ;;  %7393 = vst [vmem:[#allocation91_spill] sm:$0xff] %v6367_v25 }
 0x447   : > { %7392 = vst [vmem:[#allocation90_spill] sm:$0xff] %v7391_v5 }
 0x448   : > { %2993 = vst [vmem:[#allocation39] sm:$0xff] %v5806_v15  ;;  %v7394_v60 = vmov 0 }
 0x44f   : > { %v2994_v40 = vld [vmem:[#allocation39] sm:$0x3] }
 0x450   : > { %v2995_v11 = vunpack.c.0.f8e4m3b11 %v2994_v40 }
 0x452   : > { %v2999_v39 = vand.u32 2147483647, %v2995_v11  ;;  %vm3001_vm2 = vcmp.ne.f32.partialorder %v2995_v11, %v2995_v11  ;;  %v3002_v56 = vmul.f32 16.0, %v2995_v11 }
 0x454   : > { %vm6373_vm6 = vcmp.gt.f32.partialorder %v2999_v39, 29.0  ;;  %v6377_v34 = vsel %vm3001_vm2, -0.0, %v3002_v56 }
 0x455   : > { %v7395_v60 = vsel %vm6373_vm6, 4294967295, %v7394_v60  ;;  %7397 = vst [vmem:[#allocation97_spill] sm:$0xff] %v6377_v34 }
 0x456   : > { %7396 = vst [vmem:[#allocation94_spill] sm:$0xff] %v7395_v60 }
 0x457   : > { %3023 = vst [vmem:[#allocation40] sm:$0xff] %v5846_v42  ;;  %v7398_v5 = vmov 0 }
 0x45e   : > { %v3024_v7 = vld [vmem:[#allocation40] sm:$0x3] }
 0x45f   : > { %v3025_v3 = vunpack.c.0.f8e4m3b11 %v3024_v7 }
 0x461   : > { %v3029_v25 = vand.u32 2147483647, %v3025_v3  ;;  %vm3031_vm10 = vcmp.ne.f32.partialorder %v3025_v3, %v3025_v3  ;;  %v3032_v40 = vmul.f32 16.0, %v3025_v3 }
 0x463   : > { %vm6383_vm14 = vcmp.gt.f32.partialorder %v3029_v25, 29.0  ;;  %v6387_v11 = vsel %vm3031_vm10, -0.0, %v3032_v40 }
 0x464   : > { %v7399_v5 = vsel %vm6383_vm14, 4294967295, %v7398_v5  ;;  %7401 = vst [vmem:[#allocation92_spill] sm:$0xff] %v6387_v11 }
 0x465   : > { %7400 = vst [vmem:[#allocation100_spill] sm:$0xff] %v7399_v5 }
 0x466   : > { %3053 = vst [vmem:[#allocation41] sm:$0xff] %v5884_v35  ;;  %v7402_v60 = vmov 0 }
 0x46d   : > { %v3054_v56 = vld [vmem:[#allocation41] sm:$0x3] }
 0x46e   : > { %v3055_v43 = vunpack.c.0.f8e4m3b11 %v3054_v56 }
 0x470   : > { %v3059_v34 = vand.u32 2147483647, %v3055_v43  ;;  %vm3061_vm2 = vcmp.ne.f32.partialorder %v3055_v43, %v3055_v43  ;;  %v3062_v7 = vmul.f32 16.0, %v3055_v43 }
 0x472   : > { %vm6393_vm6 = vcmp.gt.f32.partialorder %v3059_v34, 29.0  ;;  %v6397_v25 = vsel %vm3061_vm2, -0.0, %v3062_v7 }
 0x473   : > { %v7403_v60 = vsel %vm6393_vm6, 4294967295, %v7402_v60  ;;  %7405 = vst [vmem:[#allocation95_spill] sm:$0xff] %v6397_v25 }
 0x474   : > { %7404 = vst [vmem:[#allocation81_spill] sm:$0xff] %v7403_v60 }
 0x475   : > { %3083 = vst [vmem:[#allocation42] sm:$0xff] %v5924_v28  ;;  %v7406_v5 = vmov 0 }
 0x47c   : > { %v3084_v40 = vld [vmem:[#allocation42] sm:$0x3] }
 0x47d   : > { %v3085_v39 = vunpack.c.0.f8e4m3b11 %v3084_v40 }
 0x47f   : > { %v3089_v11 = vand.u32 2147483647, %v3085_v39  ;;  %vm3091_vm10 = vcmp.ne.f32.partialorder %v3085_v39, %v3085_v39  ;;  %v3092_v56 = vmul.f32 16.0, %v3085_v39 }
 0x481   : > { %vm6403_vm14 = vcmp.gt.f32.partialorder %v3089_v11, 29.0  ;;  %v6407_v34 = vsel %vm3091_vm10, -0.0, %v3092_v56 }
 0x482   : > { %v7407_v5 = vsel %vm6403_vm14, 4294967295, %v7406_v5  ;;  %7409 = vst [vmem:[#allocation93_spill] sm:$0xff] %v6407_v34 }
 0x483   : > { %7408 = vst [vmem:[#allocation98_spill] sm:$0xff] %v7407_v5 }
 0x484   : > { %3113 = vst [vmem:[#allocation43] sm:$0xff] %v5806_v15  ;;  %v7410_v60 = vmov 0 }
 0x48b   : > { %v3115_v7 = vld [vmem:[#allocation43 + $0x2] sm:$0x3] }
 0x48c   : > { %v3116_v3 = vunpack.c.0.f8e4m3b11 %v3115_v7 }
 0x48e   : > { %v3120_v25 = vand.u32 2147483647, %v3116_v3  ;;  %vm3122_vm2 = vcmp.ne.f32.partialorder %v3116_v3, %v3116_v3  ;;  %v3123_v40 = vmul.f32 16.0, %v3116_v3 }
 0x490   : > { %vm6413_vm6 = vcmp.gt.f32.partialorder %v3120_v25, 29.0  ;;  %v6417_v11 = vsel %vm3122_vm2, -0.0, %v3123_v40 }
 0x491   : > { %v7411_v60 = vsel %vm6413_vm6, 4294967295, %v7410_v60  ;;  %7413 = vst [vmem:[#allocation96_spill] sm:$0xff] %v6417_v11 }
 0x492   : > { %7412 = vst [vmem:[#allocation82_spill] sm:$0xff] %v7411_v60 }
 0x493   : > { %3144 = vst [vmem:[#allocation44] sm:$0xff] %v5846_v42  ;;  %v7414_v5 = vmov 0 }
 0x49a   : > { %v3146_v56 = vld [vmem:[#allocation44 + $0x2] sm:$0x3] }
 0x49b   : > { %v3147_v43 = vunpack.c.0.f8e4m3b11 %v3146_v56 }
 0x49d   : > { %v3151_v34 = vand.u32 2147483647, %v3147_v43  ;;  %vm3153_vm10 = vcmp.ne.f32.partialorder %v3147_v43, %v3147_v43  ;;  %v3154_v7 = vmul.f32 16.0, %v3147_v43 }
 0x49f   : > { %vm6423_vm14 = vcmp.gt.f32.partialorder %v3151_v34, 29.0  ;;  %v6427_v25 = vsel %vm3153_vm10, -0.0, %v3154_v7 }
 0x4a0   : > { %v7415_v5 = vsel %vm6423_vm14, 4294967295, %v7414_v5  ;;  %7417 = vst [vmem:[#allocation78_spill] sm:$0xff] %v6427_v25 }
 0x4a1   : > { %7416 = vst [vmem:[#allocation99_spill] sm:$0xff] %v7415_v5 }
 0x4a2   : > { %3175 = vst [vmem:[#allocation45] sm:$0xff] %v5884_v35  ;;  %v7418_v60 = vmov 0 }
 0x4a9   : > { %v3177_v40 = vld [vmem:[#allocation45 + $0x2] sm:$0x3] }
 0x4aa   : > { %v3178_v39 = vunpack.c.0.f8e4m3b11 %v3177_v40 }
 0x4ac   : > { %v3182_v11 = vand.u32 2147483647, %v3178_v39  ;;  %vm3184_vm2 = vcmp.ne.f32.partialorder %v3178_v39, %v3178_v39  ;;  %v3185_v56 = vmul.f32 16.0, %v3178_v39 }
 0x4ae   : > { %vm6433_vm6 = vcmp.gt.f32.partialorder %v3182_v11, 29.0  ;;  %v6437_v34 = vsel %vm3184_vm2, -0.0, %v3185_v56 }
 0x4af   : > { %v7419_v60 = vsel %vm6433_vm6, 4294967295, %v7418_v60  ;;  %7421 = vst [vmem:[#allocation80_spill] sm:$0xff] %v6437_v34 }
 0x4b0   : > { %7420 = vst [vmem:[#allocation79_spill] sm:$0xff] %v7419_v60 }
 0x4b1   : > { %3206 = vst [vmem:[#allocation46] sm:$0xff] %v5924_v28  ;;  %v7422_v5 = vmov 0 }
 0x4b8   : > { %v3208_v7 = vld [vmem:[#allocation46 + $0x2] sm:$0x3] }
 0x4b9   : > { %v3209_v3 = vunpack.c.0.f8e4m3b11 %v3208_v7 }
 0x4bb   : > { %v3213_v25 = vand.u32 2147483647, %v3209_v3  ;;  %vm3215_vm10 = vcmp.ne.f32.partialorder %v3209_v3, %v3209_v3  ;;  %v3216_v40 = vmul.f32 16.0, %v3209_v3 }
 0x4bd   : > { %vm6443_vm14 = vcmp.gt.f32.partialorder %v3213_v25, 29.0  ;;  %v6447_v11 = vsel %vm3215_vm10, -0.0, %v3216_v40 }
 0x4be   : > { %v7423_v5 = vsel %vm6443_vm14, 4294967295, %v7422_v5  ;;  %7425 = vst [vmem:[#allocation107_spill] sm:$0xff] %v6447_v11 }
 0x4bf   : > { %7424 = vst [vmem:[#allocation83_spill] sm:$0xff] %v7423_v5 }
 0x4c0   : > { %3237 = vst [vmem:[#allocation47] sm:$0xff] %v5806_v15  ;;  %v7426_v60 = vmov 0 }
 0x4c7   : > { %v3239_v56 = vld [vmem:[#allocation47 + $0x4] sm:$0x3] }
 0x4c8   : > { %v3240_v43 = vunpack.c.0.f8e4m3b11 %v3239_v56 }
 0x4ca   : > { %v3244_v34 = vand.u32 2147483647, %v3240_v43  ;;  %vm3246_vm2 = vcmp.ne.f32.partialorder %v3240_v43, %v3240_v43  ;;  %v3247_v7 = vmul.f32 16.0, %v3240_v43 }
 0x4cc   : > { %vm6453_vm6 = vcmp.gt.f32.partialorder %v3244_v34, 29.0  ;;  %v6457_v25 = vsel %vm3246_vm2, -0.0, %v3247_v7 }
 0x4cd   : > { %v7427_v60 = vsel %vm6453_vm6, 4294967295, %v7426_v60  ;;  %7429 = vst [vmem:[#allocation109_spill] sm:$0xff] %v6457_v25 }
 0x4ce   : > { %7428 = vst [vmem:[#allocation108_spill] sm:$0xff] %v7427_v60 }
 0x4cf   : > { %3268 = vst [vmem:[#allocation48] sm:$0xff] %v5846_v42  ;;  %v7430_v5 = vmov 0 }
 0x4d6   : > { %v3270_v40 = vld [vmem:[#allocation48 + $0x4] sm:$0x3] }
 0x4d7   : > { %v3271_v39 = vunpack.c.0.f8e4m3b11 %v3270_v40 }
 0x4d9   : > { %v3275_v11 = vand.u32 2147483647, %v3271_v39  ;;  %vm3277_vm10 = vcmp.ne.f32.partialorder %v3271_v39, %v3271_v39  ;;  %v3278_v56 = vmul.f32 16.0, %v3271_v39 }
 0x4db   : > { %vm6463_vm14 = vcmp.gt.f32.partialorder %v3275_v11, 29.0  ;;  %v6467_v34 = vsel %vm3277_vm10, -0.0, %v3278_v56 }
 0x4dc   : > { %v7431_v5 = vsel %vm6463_vm14, 4294967295, %v7430_v5  ;;  %7433 = vst [vmem:[#allocation111_spill] sm:$0xff] %v6467_v34 }
 0x4dd   : > { %7432 = vst [vmem:[#allocation110_spill] sm:$0xff] %v7431_v5 }
 0x4de   : > { %3299 = vst [vmem:[#allocation49] sm:$0xff] %v5884_v35  ;;  %v7434_v60 = vmov 0 }
 0x4e5   : > { %v3301_v7 = vld [vmem:[#allocation49 + $0x4] sm:$0x3] }
 0x4e6   : > { %v3302_v3 = vunpack.c.0.f8e4m3b11 %v3301_v7 }
 0x4e8   : > { %v3306_v25 = vand.u32 2147483647, %v3302_v3  ;;  %vm3308_vm2 = vcmp.ne.f32.partialorder %v3302_v3, %v3302_v3  ;;  %v3309_v40 = vmul.f32 16.0, %v3302_v3 }
 0x4ea   : > { %vm6473_vm6 = vcmp.gt.f32.partialorder %v3306_v25, 29.0  ;;  %v6477_v11 = vsel %vm3308_vm2, -0.0, %v3309_v40 }
 0x4eb   : > { %v7435_v60 = vsel %vm6473_vm6, 4294967295, %v7434_v60  ;;  %7437 = vst [vmem:[#allocation113_spill] sm:$0xff] %v6477_v11 }
 0x4ec   : > { %7436 = vst [vmem:[#allocation112_spill] sm:$0xff] %v7435_v60 }
 0x4ed   : > { %3330 = vst [vmem:[#allocation50] sm:$0xff] %v5924_v28  ;;  %v7438_v5 = vmov 0 }
 0x4f4   : > { %v3332_v56 = vld [vmem:[#allocation50 + $0x4] sm:$0x3] }
 0x4f5   : > { %v3333_v43 = vunpack.c.0.f8e4m3b11 %v3332_v56 }
 0x4f7   : > { %v3337_v34 = vand.u32 2147483647, %v3333_v43  ;;  %vm3339_vm10 = vcmp.ne.f32.partialorder %v3333_v43, %v3333_v43  ;;  %v3340_v7 = vmul.f32 16.0, %v3333_v43 }
 0x4f9   : > { %vm6483_vm14 = vcmp.gt.f32.partialorder %v3337_v34, 29.0  ;;  %v6487_v25 = vsel %vm3339_vm10, -0.0, %v3340_v7 }
 0x4fa   : > { %v7439_v5 = vsel %vm6483_vm14, 4294967295, %v7438_v5  ;;  %7440 = vst [vmem:[#allocation114_spill] sm:$0xff] %v6487_v25 }
 0x4fb   : > { %3361 = vst [vmem:[#allocation51] sm:$0xff] %v5806_v15  ;;  %v7441_v60 = vmov 0 }
 0x502   : > { %v3363_v40 = vld [vmem:[#allocation51 + $0x6] sm:$0x3] }
 0x503   : > { %v3364_v39 = vunpack.c.0.f8e4m3b11 %v3363_v40 }
 0x505   : > { %v3368_v11 = vand.u32 2147483647, %v3364_v39  ;;  %vm3370_vm2 = vcmp.ne.f32.partialorder %v3364_v39, %v3364_v39  ;;  %v3371_v56 = vmul.f32 16.0, %v3364_v39 }
 0x507   : > { %vm6493_vm6 = vcmp.gt.f32.partialorder %v3368_v11, 29.0  ;;  %v6497_v34 = vsel %vm3370_vm2, -0.0, %v3371_v56 }
 0x508   : > { %v7442_v60 = vsel %vm6493_vm6, 4294967295, %v7441_v60  ;;  %7443 = vst [vmem:[#allocation115_spill] sm:$0xff] %v6497_v34 }
 0x509   : > { %3392 = vst [vmem:[#allocation52] sm:$0xff] %v5846_v42  ;;  %v7444_v25 = vmov 0 }
 0x510   : > { %v3394_v7 = vld [vmem:[#allocation52 + $0x6] sm:$0x3] }
 0x511   : > { %v3395_v3 = vunpack.c.0.f8e4m3b11 %v3394_v7 }
 0x513   : > { %v3399_v15 = vand.u32 2147483647, %v3395_v3  ;;  %vm3401_vm10 = vcmp.ne.f32.partialorder %v3395_v3, %v3395_v3  ;;  %v3402_v40 = vmul.f32 16.0, %v3395_v3 }
 0x515   : > { %vm6503_vm14 = vcmp.gt.f32.partialorder %v3399_v15, 29.0  ;;  %v6507_v11 = vsel %vm3401_vm10, -0.0, %v3402_v40 }
 0x516   : > { %v7445_v25 = vsel %vm6503_vm14, 4294967295, %v7444_v25  ;;  %7446 = vst [vmem:[#allocation116_spill] sm:$0xff] %v6507_v11 }
 0x517   : > { %3423 = vst [vmem:[#allocation53] sm:$0xff] %v5884_v35  ;;  %v7447_v34 = vmov 0 }
 0x51e   : > { %v3425_v56 = vld [vmem:[#allocation53 + $0x6] sm:$0x3] }
 0x51f   : > { %v3426_v43 = vunpack.c.0.f8e4m3b11 %v3425_v56 }
 0x521   : > { %v3430_v42 = vand.u32 2147483647, %v3426_v43  ;;  %vm3432_vm2 = vcmp.ne.f32.partialorder %v3426_v43, %v3426_v43  ;;  %v3433_v7 = vmul.f32 16.0, %v3426_v43 }
 0x523   : > { %vm6513_vm6 = vcmp.gt.f32.partialorder %v3430_v42, 29.0  ;;  %v6517_v3 = vsel %vm3432_vm2, -0.0, %v3433_v7 }
 0x524   : > { %v7448_v34 = vsel %vm6513_vm6, 4294967295, %v7447_v34  ;;  %7449 = vst [vmem:[#allocation117_spill] sm:$0xff] %v6517_v3 }
 0x525   : > { %3454 = vst [vmem:[#allocation54] sm:$0xff] %v5924_v28  ;;  %v7450_v11 = vmov 0 }
 0x52c   : > { %v3456_v40 = vld [vmem:[#allocation54 + $0x6] sm:$0x3] }
 0x52d   : > { %v3457_v39 = vunpack.c.0.f8e4m3b11 %v3456_v40 }
 0x52f   : > { %v3461_v35 = vand.u32 2147483647, %v3457_v39  ;;  %vm3463_vm10 = vcmp.ne.f32.partialorder %v3457_v39, %v3457_v39  ;;  %v3464_v56 = vmul.f32 16.0, %v3457_v39 }
 0x531   : > { %vm6523_vm14 = vcmp.gt.f32.partialorder %v3461_v35, 29.0  ;;  %v6527_v43 = vsel %vm3463_vm10, -0.0, %v3464_v56 }
 0x532   : > { %v7451_v11 = vsel %vm6523_vm14, 4294967295, %v7450_v11  ;;  %7453 = vst [vmem:[#allocation119_spill] sm:$0xff] %v6527_v43 }
 0x533   : > { %7452 = vst [vmem:[#allocation118_spill] sm:$0xff] %v7451_v11 }
 0x534   : > { %3485 = vst [vmem:[#allocation55] sm:$0xff] %v5960_v53  ;;  %v7454_v3 = vmov 0 }
 0x53b   : > { %v3486_v7 = vld [vmem:[#allocation55] sm:$0x3] }
 0x53c   : > { %v3487_v15 = vunpack.c.0.f8e4m3b11 %v3486_v7 }
 0x53e   : > { %v3491_v28 = vand.u32 2147483647, %v3487_v15  ;;  %vm3493_vm2 = vcmp.ne.f32.partialorder %v3487_v15, %v3487_v15  ;;  %v3494_v40 = vmul.f32 16.0, %v3487_v15 }
 0x540   : > { %vm6533_vm6 = vcmp.gt.f32.partialorder %v3491_v28, 29.0  ;;  %v6537_v39 = vsel %vm3493_vm2, -0.0, %v3494_v40 }
 0x541   : > { %v7455_v3 = vsel %vm6533_vm6, 4294967295, %v7454_v3  ;;  %7457 = vst [vmem:[#allocation121_spill] sm:$0xff] %v6537_v39 }
 0x542   : > { %7456 = vst [vmem:[#allocation120_spill] sm:$0xff] %v7455_v3 }
 0x543   : > { %3515 = vst [vmem:[#allocation56] sm:$0xff] %v5998_v22  ;;  %v7458_v11 = vmov 0 }
 0x54a   : > { %v3516_v56 = vld [vmem:[#allocation56] sm:$0x3] }
 0x54b   : > { %v3517_v42 = vunpack.c.0.f8e4m3b11 %v3516_v56 }
 0x54d   : > { %v3521_v43 = vand.u32 2147483647, %v3517_v42  ;;  %vm3523_vm10 = vcmp.ne.f32.partialorder %v3517_v42, %v3517_v42  ;;  %v3524_v7 = vmul.f32 16.0, %v3517_v42 }
 0x54f   : > { %vm6543_vm14 = vcmp.gt.f32.partialorder %v3521_v43, 29.0  ;;  %v6547_v15 = vsel %vm3523_vm10, -0.0, %v3524_v7 }
 0x550   : > { %v7459_v11 = vsel %vm6543_vm14, 4294967295, %v7458_v11  ;;  %7461 = vst [vmem:[#allocation123_spill] sm:$0xff] %v6547_v15 }
 0x551   : > { %7460 = vst [vmem:[#allocation122_spill] sm:$0xff] %v7459_v11 }
 0x552   : > { %3545 = vst [vmem:[#allocation57] sm:$0xff] %v6033_v57  ;;  %v7462_v3 = vmov 0 }
 0x559   : > { %v3546_v40 = vld [vmem:[#allocation57] sm:$0x3] }
 0x55a   : > { %v3547_v35 = vunpack.c.0.f8e4m3b11 %v3546_v40 }
 0x55c   : > { %v3551_v39 = vand.u32 2147483647, %v3547_v35  ;;  %vm3553_vm2 = vcmp.ne.f32.partialorder %v3547_v35, %v3547_v35  ;;  %v3554_v56 = vmul.f32 16.0, %v3547_v35 }
 0x55e   : > { %vm6553_vm6 = vcmp.gt.f32.partialorder %v3551_v39, 29.0  ;;  %v6557_v43 = vsel %vm3553_vm2, -0.0, %v3554_v56 }
 0x55f   : > { %v7463_v3 = vsel %vm6553_vm6, 4294967295, %v7462_v3  ;;  %7465 = vst [vmem:[#allocation125_spill] sm:$0xff] %v6557_v43 }
 0x560   : > { %7464 = vst [vmem:[#allocation124_spill] sm:$0xff] %v7463_v3 }
 0x561   : > { %3575 = vst [vmem:[#allocation58] sm:$0xff] %v6050_v47  ;;  %v7466_v11 = vmov 0 }
 0x568   : > { %v3576_v7 = vld [vmem:[#allocation58] sm:$0x3] }
 0x569   : > { %v3577_v28 = vunpack.c.0.f8e4m3b11 %v3576_v7 }
 0x56b   : > { %v3581_v15 = vand.u32 2147483647, %v3577_v28  ;;  %vm3583_vm10 = vcmp.ne.f32.partialorder %v3577_v28, %v3577_v28  ;;  %v3584_v40 = vmul.f32 16.0, %v3577_v28 }
 0x56d   : > { %vm6563_vm14 = vcmp.gt.f32.partialorder %v3581_v15, 29.0  ;;  %v6567_v39 = vsel %vm3583_vm10, -0.0, %v3584_v40 }
 0x56e   : > { %v7467_v11 = vsel %vm6563_vm14, 4294967295, %v7466_v11  ;;  %7469 = vst [vmem:[#allocation127_spill] sm:$0xff] %v6567_v39 }
 0x56f   : > { %7468 = vst [vmem:[#allocation126_spill] sm:$0xff] %v7467_v11 }
 0x570   : > { %3605 = vst [vmem:[#allocation59] sm:$0xff] %v5960_v53  ;;  %v7470_v3 = vmov 0 }
 0x577   : > { %v3607_v56 = vld [vmem:[#allocation59 + $0x2] sm:$0x3] }
 0x578   : > { %v3608_v42 = vunpack.c.0.f8e4m3b11 %v3607_v56 }
 0x57a   : > { %v3612_v43 = vand.u32 2147483647, %v3608_v42  ;;  %vm3614_vm2 = vcmp.ne.f32.partialorder %v3608_v42, %v3608_v42  ;;  %v3615_v7 = vmul.f32 16.0, %v3608_v42 }
 0x57c   : > { %vm6573_vm6 = vcmp.gt.f32.partialorder %v3612_v43, 29.0  ;;  %v6577_v15 = vsel %vm3614_vm2, -0.0, %v3615_v7 }
 0x57d   : > { %v7471_v3 = vsel %vm6573_vm6, 4294967295, %v7470_v3  ;;  %7473 = vst [vmem:[#allocation129_spill] sm:$0xff] %v6577_v15 }
 0x57e   : > { %7472 = vst [vmem:[#allocation128_spill] sm:$0xff] %v7471_v3 }
 0x57f   : > { %3636 = vst [vmem:[#allocation60] sm:$0xff] %v5998_v22  ;;  %v7474_v11 = vmov 0 }
 0x586   : > { %v3638_v40 = vld [vmem:[#allocation60 + $0x2] sm:$0x3] }
 0x587   : > { %v3639_v35 = vunpack.c.0.f8e4m3b11 %v3638_v40 }
 0x589   : > { %v3643_v39 = vand.u32 2147483647, %v3639_v35  ;;  %vm3645_vm10 = vcmp.ne.f32.partialorder %v3639_v35, %v3639_v35  ;;  %v3646_v56 = vmul.f32 16.0, %v3639_v35 }
 0x58b   : > { %vm6583_vm14 = vcmp.gt.f32.partialorder %v3643_v39, 29.0  ;;  %v6587_v43 = vsel %vm3645_vm10, -0.0, %v3646_v56 }
 0x58c   : > { %v7475_v11 = vsel %vm6583_vm14, 4294967295, %v7474_v11  ;;  %7477 = vst [vmem:[#allocation131_spill] sm:$0xff] %v6587_v43 }
 0x58d   : > { %7476 = vst [vmem:[#allocation130_spill] sm:$0xff] %v7475_v11 }
 0x58e   : > { %3667 = vst [vmem:[#allocation61] sm:$0xff] %v6033_v57  ;;  %v7478_v3 = vmov 0 }
 0x595   : > { %v3669_v7 = vld [vmem:[#allocation61 + $0x2] sm:$0x3] }
 0x596   : > { %v3670_v28 = vunpack.c.0.f8e4m3b11 %v3669_v7 }
 0x598   : > { %v3674_v15 = vand.u32 2147483647, %v3670_v28  ;;  %vm3676_vm2 = vcmp.ne.f32.partialorder %v3670_v28, %v3670_v28  ;;  %v3677_v40 = vmul.f32 16.0, %v3670_v28 }
 0x59a   : > { %vm6593_vm6 = vcmp.gt.f32.partialorder %v3674_v15, 29.0  ;;  %v6597_v39 = vsel %vm3676_vm2, -0.0, %v3677_v40 }
 0x59b   : > { %v7479_v3 = vsel %vm6593_vm6, 4294967295, %v7478_v3  ;;  %7481 = vst [vmem:[#allocation133_spill] sm:$0xff] %v6597_v39 }
 0x59c   : > { %7480 = vst [vmem:[#allocation132_spill] sm:$0xff] %v7479_v3 }
 0x59d   : > { %3698 = vst [vmem:[#allocation62] sm:$0xff] %v6050_v47  ;;  %v7482_v11 = vmov 0 }
 0x5a4   : > { %v3700_v56 = vld [vmem:[#allocation62 + $0x2] sm:$0x3] }
 0x5a5   : > { %v3701_v42 = vunpack.c.0.f8e4m3b11 %v3700_v56 }
 0x5a7   : > { %v3705_v43 = vand.u32 2147483647, %v3701_v42  ;;  %vm3707_vm10 = vcmp.ne.f32.partialorder %v3701_v42, %v3701_v42  ;;  %v3708_v7 = vmul.f32 16.0, %v3701_v42 }
 0x5a9   : > { %vm6603_vm14 = vcmp.gt.f32.partialorder %v3705_v43, 29.0  ;;  %v6607_v15 = vsel %vm3707_vm10, -0.0, %v3708_v7 }
 0x5aa   : > { %v7483_v11 = vsel %vm6603_vm14, 4294967295, %v7482_v11  ;;  %7485 = vst [vmem:[#allocation135_spill] sm:$0xff] %v6607_v15 }
 0x5ab   : > { %7484 = vst [vmem:[#allocation134_spill] sm:$0xff] %v7483_v11 }
 0x5ac   : > { %3729 = vst [vmem:[#allocation63] sm:$0xff] %v5960_v53  ;;  %v7486_v3 = vmov 0 }
 0x5b3   : > { %v3731_v40 = vld [vmem:[#allocation63 + $0x4] sm:$0x3] }
 0x5b4   : > { %v3732_v35 = vunpack.c.0.f8e4m3b11 %v3731_v40 }
 0x5b6   : > { %v3736_v39 = vand.u32 2147483647, %v3732_v35  ;;  %vm3738_vm2 = vcmp.ne.f32.partialorder %v3732_v35, %v3732_v35  ;;  %v3739_v56 = vmul.f32 16.0, %v3732_v35 }
 0x5b8   : > { %vm6613_vm6 = vcmp.gt.f32.partialorder %v3736_v39, 29.0  ;;  %v6617_v43 = vsel %vm3738_vm2, -0.0, %v3739_v56 }
 0x5b9   : > { %v7487_v3 = vsel %vm6613_vm6, 4294967295, %v7486_v3  ;;  %7489 = vst [vmem:[#allocation137_spill] sm:$0xff] %v6617_v43 }
 0x5ba   : > { %7488 = vst [vmem:[#allocation136_spill] sm:$0xff] %v7487_v3 }
 0x5bb   : > { %3760 = vst [vmem:[#allocation64] sm:$0xff] %v5998_v22  ;;  %v7490_v11 = vmov 0 }
 0x5c2   : > { %v3762_v7 = vld [vmem:[#allocation64 + $0x4] sm:$0x3] }
 0x5c3   : > { %v3763_v28 = vunpack.c.0.f8e4m3b11 %v3762_v7 }
 0x5c5   : > { %v3767_v15 = vand.u32 2147483647, %v3763_v28  ;;  %vm3769_vm10 = vcmp.ne.f32.partialorder %v3763_v28, %v3763_v28  ;;  %v3770_v40 = vmul.f32 16.0, %v3763_v28 }
 0x5c7   : > { %vm6623_vm14 = vcmp.gt.f32.partialorder %v3767_v15, 29.0  ;;  %v6627_v39 = vsel %vm3769_vm10, -0.0, %v3770_v40 }
 0x5c8   : > { %v7491_v11 = vsel %vm6623_vm14, 4294967295, %v7490_v11  ;;  %7493 = vst [vmem:[#allocation139_spill] sm:$0xff] %v6627_v39 }
 0x5c9   : > { %7492 = vst [vmem:[#allocation138_spill] sm:$0xff] %v7491_v11 }
 0x5ca   : > { %3791 = vst [vmem:[#allocation65] sm:$0xff] %v6033_v57  ;;  %v7494_v3 = vmov 0 }
 0x5d1   : > { %v3793_v56 = vld [vmem:[#allocation65 + $0x4] sm:$0x3] }
 0x5d2   : > { %v3794_v42 = vunpack.c.0.f8e4m3b11 %v3793_v56 }
 0x5d4   : > { %v3798_v43 = vand.u32 2147483647, %v3794_v42  ;;  %vm3800_vm2 = vcmp.ne.f32.partialorder %v3794_v42, %v3794_v42  ;;  %v3801_v7 = vmul.f32 16.0, %v3794_v42 }
 0x5d6   : > { %vm6633_vm6 = vcmp.gt.f32.partialorder %v3798_v43, 29.0  ;;  %v6637_v15 = vsel %vm3800_vm2, -0.0, %v3801_v7 }
 0x5d7   : > { %v7495_v3 = vsel %vm6633_vm6, 4294967295, %v7494_v3  ;;  %7497 = vst [vmem:[#allocation141_spill] sm:$0xff] %v6637_v15 }
 0x5d8   : > { %7496 = vst [vmem:[#allocation140_spill] sm:$0xff] %v7495_v3 }
 0x5d9   : > { %3822 = vst [vmem:[#allocation66] sm:$0xff] %v6050_v47  ;;  %v7498_v11 = vmov 0 }
 0x5e0   : > { %v3824_v40 = vld [vmem:[#allocation66 + $0x4] sm:$0x3] }
 0x5e1   : > { %v3825_v35 = vunpack.c.0.f8e4m3b11 %v3824_v40 }
 0x5e3   : > { %v3829_v39 = vand.u32 2147483647, %v3825_v35  ;;  %vm3831_vm10 = vcmp.ne.f32.partialorder %v3825_v35, %v3825_v35  ;;  %v3832_v56 = vmul.f32 16.0, %v3825_v35 }
 0x5e5   : > { %vm6643_vm14 = vcmp.gt.f32.partialorder %v3829_v39, 29.0  ;;  %v6647_v43 = vsel %vm3831_vm10, -0.0, %v3832_v56 }
 0x5e6   : > { %v7499_v11 = vsel %vm6643_vm14, 4294967295, %v7498_v11  ;;  %7500 = vst [vmem:[#allocation142_spill] sm:$0xff] %v6647_v43 }
 0x5e7   : > { %3853 = vst [vmem:[#allocation67] sm:$0xff] %v5960_v53  ;;  %v7501_v3 = vmov 0 }
 0x5ee   : > { %v3855_v7 = vld [vmem:[#allocation67 + $0x6] sm:$0x3] }
 0x5ef   : > { %v3856_v28 = vunpack.c.0.f8e4m3b11 %v3855_v7 }
 0x5f1   : > { %v3860_v15 = vand.u32 2147483647, %v3856_v28  ;;  %vm3862_vm2 = vcmp.ne.f32.partialorder %v3856_v28, %v3856_v28  ;;  %v3863_v40 = vmul.f32 16.0, %v3856_v28 }
 0x5f3   : > { %vm6653_vm6 = vcmp.gt.f32.partialorder %v3860_v15, 29.0  ;;  %v6657_v39 = vsel %vm3862_vm2, -0.0, %v3863_v40 }
 0x5f4   : > { %v7502_v3 = vsel %vm6653_vm6, 4294967295, %v7501_v3  ;;  %7503 = vst [vmem:[#allocation143_spill] sm:$0xff] %v6657_v39 }
 0x5f5   : > { %3884 = vst [vmem:[#allocation68] sm:$0xff] %v5998_v22  ;;  %v7504_v43 = vmov 0 }
 0x5fc   : > { %v3886_v56 = vld [vmem:[#allocation68 + $0x6] sm:$0x3] }
 0x5fd   : > { %v3887_v42 = vunpack.c.0.f8e4m3b11 %v3886_v56 }
 0x5ff   : > { %v3891_v53 = vand.u32 2147483647, %v3887_v42  ;;  %vm3893_vm10 = vcmp.ne.f32.partialorder %v3887_v42, %v3887_v42  ;;  %v3894_v7 = vmul.f32 16.0, %v3887_v42 }
 0x601   : > { %vm6663_vm14 = vcmp.gt.f32.partialorder %v3891_v53, 29.0  ;;  %v6667_v15 = vsel %vm3893_vm10, -0.0, %v3894_v7 }
 0x602   : > { %v7505_v43 = vsel %vm6663_vm14, 4294967295, %v7504_v43  ;;  %7506 = vst [vmem:[#allocation144_spill] sm:$0xff] %v6667_v15 }
 0x603   : > { %3915 = vst [vmem:[#allocation69] sm:$0xff] %v6033_v57 }
 0x60a   : > { %v3917_v40 = vld [vmem:[#allocation69 + $0x6] sm:$0x3] }
 0x60b   : > { %v3918_v35 = vunpack.c.0.f8e4m3b11 %v3917_v40 }
 0x60d   : > { %v3922_v22 = vand.u32 2147483647, %v3918_v35  ;;  %vm3924_vm2 = vcmp.ne.f32.partialorder %v3918_v35, %v3918_v35  ;;  %v3925_v56 = vmul.f32 16.0, %v3918_v35 }
 0x60f   : > { %vm6673_vm6 = vcmp.gt.f32.partialorder %v3922_v22, 29.0  ;;  %v6677_v42 = vsel %vm3924_vm2, -0.0, %v3925_v56 }
 0x610   : > { %v3927_v53 = vsel %vm6673_vm6, nan, %v6677_v42 }
 0x611   : > { %3946 = vst [vmem:[#allocation70] sm:$0xff] %v6050_v47  ;;  %v7511_v56 = vsel %vm6053_vm3, nan, %v6057_v51  ;;  %v7512_v47 = vsel %vm6063_vm5, nan, %v6067_v23  ;;  %v7514_v45 = vsel %vm6083_vm9, nan, %v6087_v29  ;;  %v7515_v51 = vsel %vm6093_vm11, nan, %v6097_v18  ;;  %p4520_p1 = scmp.eq.s32.totalorder %s4697_s0, 1 }
 0x612   : > { %v7516_v19 = vsel %vm6103_vm13, nan, %v6107_v13  ;;  %v7517_v24 = vsel %vm6113_vm15, nan, %v6117_v10  ;;  %v7519_v29 = vsel %vm6133_vm4, nan, %v6137_v38  ;;  %v7520_v17 = vsel %vm6143_vm8, nan, %v6147_v33  ;;  %s4654_s6 = smov [#allocation6]  }
 0x613   : > { %v4477_v23 = vpack.c.bf16 %v7516_v19, %v7515_v51  ;;  %v4479_v18 = vpack.c.bf16 %v7520_v17, %v7519_v29  ;;  %v7521_v52 = vsel %vm6153_vm12, nan, %v6157_v27  ;;  %v7522_v13 = vsel %vm6163_vm0, nan, %v6167_v21  ;;  %s4218_s7 = sshll.u32 %s4654_s6, 4  ;;  %v7567_v51 = vld [vmem:[#allocation89_spill] sm:$0xff]  ;;  %s4219_s7 = int_to_ptr.vmem [resolvable:$true] %s4218_s7 }
 0x614   : > { %v4480_v12 = vpack.c.bf16 %v7522_v13, %v7521_v52  ;;  %vm7523_vm3 = vnez %v7336_v9  ;;  %vm7525_vm5 = vnez %v7338_v14  ;;  %vm7529_vm9 = vnez %v7342_v54  ;;  %v7542_v54 = vld [vmem:[#allocation102_spill] sm:$0xff]  ;;  %s4586_s8 = scalar_lea.vmem %s4219_s7, 16  ;;  %s4592_s9 = scalar_lea.vmem %s4219_s7, 32 }
 0x615   : > { %v7524_v10 = vsel %vm7523_vm3, nan, %v6177_v50  ;;  %v7526_v4 = vsel %vm7525_vm5, nan, %v6187_v44  ;;  %v7530_v38 = vsel %vm7529_vm9, nan, %v6207_v6  ;;  %4171 = vst [vmem:[%s4767_s4 + $0x10] sm:$0xff] %v4477_v23  ;;  %vm7531_vm11 = vnez %v7344_v61  ;;  %v7540_v61 = vld [vmem:[#allocation101_spill] sm:$0xff]  ;;  %v7550_v6 = vld [vmem:[#allocation106_spill] sm:$0xff]  ;;  %p4587_p2 = scmp.ne.s32.totalorder %s4219_s7, %s4586_s8  ;;  %p4593_p5 = scmp.lt.s32.totalorder %s4219_s7, %s4219_s7 }
 0x616   : > { %v7532_v33 = vsel %vm7531_vm11, nan, %v6217_v16  ;;  %vm7533_vm13 = vnez %v7346_v26  ;;  %vm7535_vm15 = vnez %v7348_v31  ;;  %vm7539_vm4 = vnez %v7352_v49  ;;  %v7544_v26 = vld [vmem:[#allocation103_spill] sm:$0xff]  ;;  %v7548_v31 = vld [vmem:[#allocation105_spill] sm:$0xff]  ;;  %4173 = vst [vmem:[%s4767_s4 + $0x20] sm:$0xff] %v4479_v18  ;;  %4174 = vst [vmem:[%s4767_s4 + $0x28] sm:$0xff] %v4480_v12  ;;  %p4594_p6 = scmp.lt.s32.totalorder %s4592_s9, %s4586_s8 }
 0x617   : > { %v7534_v37 = vsel %vm7533_vm13, nan, %v6227_v62  ;;  %v7536_v48 = vsel %vm7535_vm15, nan, %v6237_v46  ;;  %v7541_v50 = vsel %vm7539_vm4, nan, %v7540_v61  ;;  %vm7543_vm8 = vnez %v7542_v54  ;;  %v7554_v49 = vld [vmem:[#allocation74_spill] sm:$0xff]  ;;  %v7556_v46 = vld [vmem:[#allocation75_spill] sm:$0xff]  ;;  %v7576_v18 = vld [vmem:[#allocation88_spill] sm:$0xff]  ;;  %p4588_p3 = pnand %p4587_p2, %p4520_p1 }
 0x618   : > { %v3948_v7 = vld [vmem:[#allocation70 + $0x6] sm:$0x3]  ;;  %v4483_v27 = vpack.c.bf16 %v7534_v37, %v7532_v33  ;;  %v7545_v14 = vsel %vm7543_vm8, nan, %v7544_v26  ;;  %vm7551_vm0 = vnez %v7550_v6  ;;  %vm7555_vm2 = vnez %v7554_v49  ;;  %v7578_v13 = vld [vmem:[#allocation90_spill] sm:$0xff]  ;;  %v7580_v12 = vld [vmem:[#allocation91_spill] sm:$0xff]  ;;  %p4595_p10 = por %p4594_p6, %p4593_p5 }
 0x619   : > { %v3949_v28 = vunpack.c.0.f8e4m3b11 %v3948_v7  ;;  %v7513_v7 = vsel %vm6073_vm7, nan, %v6077_v63  ;;  %v7518_v63 = vsel %vm6123_vm1, nan, %v6127_v8  ;;  %v4481_v8 = vpack.c.bf16 %v7526_v4, %v7524_v10  ;;  %v7592_v33 = vld [vmem:[#allocation95_spill] sm:$0xff]  ;;  %v7598_v61 = vld [vmem:[#allocation82_spill] sm:$0xff]  ;;  %p4589_p4 = pneg %p4588_p3 }
 0x61a   : > { %v4478_v30 = vpack.c.bf16 %v7518_v63, %v7517_v24  ;;  %vm7527_vm7 = vnez %v7340_v58  ;;  %vm7537_vm1 = vnez %v7350_v59  ;;  %v4485_v44 = vpack.c.bf16 %v7545_v14, %v7541_v50  ;;  %v7546_v58 = vld [vmem:[#allocation104_spill] sm:$0xff]  ;;  %v7552_v59 = vld [vmem:[#allocation73_spill] sm:$0xff]  ;;  %4177 = vst [vmem:[%s4767_s4 + $0x40] sm:$0xff] %v4483_v27  ;;  %v7602_v26 = vld [vmem:[#allocation99_spill] sm:$0xff] }
 0x61b   : > { %v3953_v57 = vand.u32 2147483647, %v3949_v28  ;;  %vm3955_vm10 = vcmp.ne.f32.partialorder %v3949_v28, %v3949_v28  ;;  %v3956_v40 = vmul.f32 16.0, %v3949_v28  ;;  %v4475_v28 = vpack.c.bf16 %v7512_v47, %v7511_v56  ;;  %4175 = vst [vmem:[%s4767_s4 + $0x30] sm:$0xff] %v4481_v8  ;;  %v7560_v56 = vld [vmem:[#allocation77_spill] sm:$0xff]  ;;  %v7570_v24 = vld [vmem:[#allocation84_spill] sm:$0xff]  ;;  %p4596_p12 = pnand %p4595_p10, %p4589_p4 }
 0x61c   : > { %v7528_v55 = vsel %vm7527_vm7, nan, %v6197_v20  ;;  %4172 = vst [vmem:[%s4767_s4 + $0x18] sm:$0xff] %v4478_v30  ;;  %v7538_v21 = vsel %vm7537_vm1, nan, %v6247_v1  ;;  %vm7547_vm12 = vnez %v7546_v58  ;;  %v7553_v16 = vsel %vm7551_vm0, nan, %v7552_v59  ;;  %v7573_v30 = vld [vmem:[#allocation86_spill] sm:$0xff]  ;;  %4179 = vst [vmem:[%s4767_s4 + $0x50] sm:$0xff] %v4485_v44 }
 0x61d   : > { %vm6683_vm14 = vcmp.gt.f32.partialorder %v3953_v57, 29.0  ;;  %v6687_v35 = vsel %vm3955_vm10, -0.0, %v3956_v40  ;;  %v4476_v57 = vpack.c.bf16 %v7514_v45, %v7513_v7  ;;  %v4482_v36 = vpack.c.bf16 %v7530_v38, %v7528_v55  ;;  %4169 = vst [vmem:[%s4767_s4] sm:$0xff] %v4475_v28  ;;  %v7558_v40 = vld [vmem:[#allocation76_spill] sm:$0xff]  ;;  %v7562_v7 = vld [vmem:[#allocation85_spill] sm:$0xff]  ;;  %v7564_v45 = vld [vmem:[#allocation87_spill] sm:$0xff] }
 0x61e   : > { %v3958_v22 = vsel %vm6683_vm14, nan, %v6687_v35  ;;  %v4484_v9 = vpack.c.bf16 %v7538_v21, %v7536_v48  ;;  %v7549_v20 = vsel %vm7547_vm12, nan, %v7548_v31  ;;  %v7557_v1 = vsel %vm7555_vm2, nan, %v7556_v46  ;;  %v7586_v8 = vld [vmem:[#allocation100_spill] sm:$0xff]  ;;  %v7594_v48 = vld [vmem:[#allocation98_spill] sm:$0xff]  ;;  %v7596_v21 = vld [vmem:[#allocation93_spill] sm:$0xff] }
 0x61f   : > { %4170 = vst [vmem:[%s4767_s4 + $0x8] sm:$0xff] %v4476_v57  ;;  %v4486_v62 = vpack.c.bf16 %v7553_v16, %v7549_v20  ;;  %4176 = vst [vmem:[%s4767_s4 + $0x38] sm:$0xff] %v4482_v36  ;;  %vm7559_vm10 = vnez %v7558_v40  ;;  %vm7563_vm3 = vnez %v7562_v7  ;;  %vm7566_vm5 = vnez %v7379_v2  ;;  %v7588_v55 = vld [vmem:[#allocation92_spill] sm:$0xff]  ;;  %v7590_v36 = vld [vmem:[#allocation81_spill] sm:$0xff] }
 0x620   : > { %v7561_v47 = vsel %vm7559_vm10, nan, %v7560_v56  ;;  %v7565_v57 = vsel %vm7563_vm3, nan, %v7564_v45  ;;  %v7568_v19 = vsel %vm7566_vm5, nan, %v7567_v51  ;;  %vm7569_vm7 = vnez %v7382_v0  ;;  %4178 = vst [vmem:[%s4767_s4 + $0x48] sm:$0xff] %v4484_v9  ;;  %v7582_v0 = vld [vmem:[#allocation94_spill] sm:$0xff]  ;;  %v7600_v50 = vld [vmem:[#allocation96_spill] sm:$0xff] }
 0x621   : > { %v4487_v28 = vpack.c.bf16 %v7561_v47, %v7557_v1  ;;  %v4488_v23 = vpack.c.bf16 %v7568_v19, %v7565_v57  ;;  %v7571_v63 = vsel %vm7569_vm7, nan, %v7570_v24  ;;  %vm7572_vm9 = vnez %v7385_v41  ;;  %4180 = vst [vmem:[%s4767_s4 + $0x58] sm:$0xff] %v4486_v62  ;;  %v7584_v41 = vld [vmem:[#allocation97_spill] sm:$0xff]  ;;  %v7604_v14 = vld [vmem:[#allocation78_spill] sm:$0xff]  ;;  %v7606_v31 = vld [vmem:[#allocation79_spill] sm:$0xff] }
 0x622   : > { %v7574_v29 = vsel %vm7572_vm9, nan, %v7573_v30  ;;  %vm7575_vm11 = vnez %v7388_v32  ;;  %vm7579_vm13 = vnez %v7578_v13  ;;  %vm7583_vm15 = vnez %v7582_v0  ;;  %v7608_v20 = vld [vmem:[#allocation80_spill] sm:$0xff]  ;;  %v7610_v59 = vld [vmem:[#allocation83_spill] sm:$0xff] }
 0x623   : > { %v4489_v17 = vpack.c.bf16 %v7574_v29, %v7571_v63  ;;  %v7577_v52 = vsel %vm7575_vm11, nan, %v7576_v18  ;;  %v7581_v2 = vsel %vm7579_vm13, nan, %v7580_v12  ;;  %v7585_v4 = vsel %vm7583_vm15, nan, %v7584_v41  ;;  %v7612_v16 = vld [vmem:[#allocation107_spill] sm:$0xff] }
 0x624   : > { %v4490_v10 = vpack.c.bf16 %v7581_v2, %v7577_v52  ;;  %vm7587_vm1 = vnez %v7586_v8  ;;  %vm7591_vm4 = vnez %v7590_v36  ;;  %vm7595_vm8 = vnez %v7594_v48 }
 0x625   : > { %v7589_v32 = vsel %vm7587_vm1, nan, %v7588_v55  ;;  %v7593_v37 = vsel %vm7591_vm4, nan, %v7592_v33  ;;  %v7597_v27 = vsel %vm7595_vm8, nan, %v7596_v21  ;;  %vm7599_vm12 = vnez %v7598_v61 }
 0x626   : > { %v4491_v38 = vpack.c.bf16 %v7589_v32, %v7585_v4  ;;  %v4492_v9 = vpack.c.bf16 %v7597_v27, %v7593_v37  ;;  %v7601_v54 = vsel %vm7599_vm12, nan, %v7600_v50  ;;  %vm7603_vm0 = vnez %v7602_v26 }
 0x627   : > { %v7605_v44 = vsel %vm7603_vm0, nan, %v7604_v14  ;;  %vm7607_vm2 = vnez %v7606_v31  ;;  %vm7611_vm10 = vnez %v7610_v59 }
 0x628   : > { %v4493_v58 = vpack.c.bf16 %v7605_v44, %v7601_v54  ;;  %v7609_v6 = vsel %vm7607_vm2, nan, %v7608_v20  ;;  %v7613_v62 = vsel %vm7611_vm10, nan, %v7612_v16 }
 0x629   : > { %v4494_v49 = vpack.c.bf16 %v7613_v62, %v7609_v6 }
 0x62a   : > { %4599 = shalt.err (!%p4596_p12)
}
 0x62b   : > { %4512 = dma.vmem_to_hbm [thread:$0]  (%p4520_p1), %s4219_s7, 16, %s7008_s3, [#allocation5]   ;;  %4181 = vst [vmem:[%s4767_s4 + $0x60] sm:$0xff] %v4487_v28  ;;  %4182 = vst [vmem:[%s4767_s4 + $0x68] sm:$0xff] %v4488_v23  ;;  %v7614_v46 = vld [vmem:[#allocation108_spill] sm:$0xff]  ;;  %v7616_v1 = vld [vmem:[#allocation109_spill] sm:$0xff]  ;;  %vm7626_vm9 = vnez %v7439_v5  ;;  %vm7629_vm11 = vnez %v7442_v60  ;;  %vm7632_vm13 = vnez %v7445_v25  ;;  %vm7635_vm15 = vnez %v7448_v34 }
 0x62c   : > { %4183 = vst [vmem:[%s4767_s4 + $0x70] sm:$0xff] %v4489_v17  ;;  %4184 = vst [vmem:[%s4767_s4 + $0x78] sm:$0xff] %v4490_v10  ;;  %vm7615_vm3 = vnez %v7614_v46  ;;  %v7618_v56 = vld [vmem:[#allocation110_spill] sm:$0xff]  ;;  %v7620_v47 = vld [vmem:[#allocation111_spill] sm:$0xff] }
 0x62d   : > { %v7617_v40 = vsel %vm7615_vm3, nan, %v7616_v1  ;;  %vm7619_vm5 = vnez %v7618_v56  ;;  %v7622_v57 = vld [vmem:[#allocation112_spill] sm:$0xff]  ;;  %v7624_v51 = vld [vmem:[#allocation113_spill] sm:$0xff]  ;;  %v7627_v19 = vld [vmem:[#allocation114_spill] sm:$0xff]  ;;  %4185 = vst [vmem:[%s4767_s4 + $0x80] sm:$0xff] %v4491_v38 }
 0x62e   : > { %v7621_v7 = vsel %vm7619_vm5, nan, %v7620_v47  ;;  %vm7623_vm7 = vnez %v7622_v57  ;;  %v7628_v23 = vsel %vm7626_vm9, nan, %v7627_v19  ;;  %v7630_v63 = vld [vmem:[#allocation115_spill] sm:$0xff]  ;;  %v7633_v29 = vld [vmem:[#allocation116_spill] sm:$0xff]  ;;  %v7636_v52 = vld [vmem:[#allocation117_spill] sm:$0xff]  ;;  %4186 = vst [vmem:[%s4767_s4 + $0x88] sm:$0xff] %v4492_v9 }
 0x62f   : > { %v4495_v45 = vpack.c.bf16 %v7621_v7, %v7617_v40  ;;  %v7625_v28 = vsel %vm7623_vm7, nan, %v7624_v51  ;;  %v7631_v30 = vsel %vm7629_vm11, nan, %v7630_v63  ;;  %v7634_v17 = vsel %vm7632_vm13, nan, %v7633_v29  ;;  %v7638_v12 = vld [vmem:[#allocation118_spill] sm:$0xff]  ;;  %v7640_v2 = vld [vmem:[#allocation119_spill] sm:$0xff]  ;;  %4187 = vst [vmem:[%s4767_s4 + $0x90] sm:$0xff] %v4493_v58 }
 0x630   : > { %v4496_v24 = vpack.c.bf16 %v7628_v23, %v7625_v28  ;;  %v4497_v18 = vpack.c.bf16 %v7634_v17, %v7631_v30  ;;  %v7637_v13 = vsel %vm7635_vm15, nan, %v7636_v52  ;;  %vm7639_vm1 = vnez %v7638_v12  ;;  %4188 = vst [vmem:[%s4767_s4 + $0x98] sm:$0xff] %v4494_v49  ;;  %v7642_v60 = vld [vmem:[#allocation120_spill] sm:$0xff]  ;;  %v7644_v25 = vld [vmem:[#allocation121_spill] sm:$0xff]  ;;  %v7646_v41 = vld [vmem:[#allocation122_spill] sm:$0xff] }
 0x631   : > { %v7641_v5 = vsel %vm7639_vm1, nan, %v7640_v2  ;;  %vm7643_vm4 = vnez %v7642_v60  ;;  %vm7647_vm8 = vnez %v7646_v41  ;;  %v7648_v34 = vld [vmem:[#allocation123_spill] sm:$0xff]  ;;  %v7650_v55 = vld [vmem:[#allocation124_spill] sm:$0xff]  ;;  %v7652_v32 = vld [vmem:[#allocation125_spill] sm:$0xff]  ;;  %4189 = vst [vmem:[%s4767_s4 + $0xa0] sm:$0xff] %v4495_v45  ;;  %vm7686_vm13 = vnez %v7499_v11 }
 0x632   : > { %v4498_v10 = vpack.c.bf16 %v7641_v5, %v7637_v13  ;;  %v7645_v0 = vsel %vm7643_vm4, nan, %v7644_v25  ;;  %v7649_v4 = vsel %vm7647_vm8, nan, %v7648_v34  ;;  %vm7651_vm12 = vnez %v7650_v55  ;;  %v7654_v36 = vld [vmem:[#allocation126_spill] sm:$0xff]  ;;  %v7656_v33 = vld [vmem:[#allocation127_spill] sm:$0xff]  ;;  %v7658_v21 = vld [vmem:[#allocation128_spill] sm:$0xff]  ;;  %4190 = vst [vmem:[%s4767_s4 + $0xa8] sm:$0xff] %v4496_v24 }
 0x633   : > { %v4499_v8 = vpack.c.bf16 %v7649_v4, %v7645_v0  ;;  %v7653_v38 = vsel %vm7651_vm12, nan, %v7652_v32  ;;  %vm7655_vm0 = vnez %v7654_v36  ;;  %vm7659_vm2 = vnez %v7658_v21  ;;  %v7660_v27 = vld [vmem:[#allocation129_spill] sm:$0xff]  ;;  %v7662_v61 = vld [vmem:[#allocation130_spill] sm:$0xff]  ;;  %v7664_v50 = vld [vmem:[#allocation131_spill] sm:$0xff]  ;;  %4191 = vst [vmem:[%s4767_s4 + $0xb0] sm:$0xff] %v4497_v18 }
 0x634   : > { %v7657_v37 = vsel %vm7655_vm0, nan, %v7656_v33  ;;  %v7661_v9 = vsel %vm7659_vm2, nan, %v7660_v27  ;;  %vm7663_vm10 = vnez %v7662_v61  ;;  %v7666_v14 = vld [vmem:[#allocation132_spill] sm:$0xff]  ;;  %v7668_v44 = vld [vmem:[#allocation133_spill] sm:$0xff]  ;;  %v7670_v31 = vld [vmem:[#allocation134_spill] sm:$0xff]  ;;  %4192 = vst [vmem:[%s4767_s4 + $0xb8] sm:$0xff] %v4498_v10  ;;  %vm7689_vm15 = vnez %v7502_v3 }
 0x635   : > { %v4500_v48 = vpack.c.bf16 %v7657_v37, %v7653_v38  ;;  %v7665_v54 = vsel %vm7663_vm10, nan, %v7664_v50  ;;  %vm7667_vm3 = vnez %v7666_v14  ;;  %vm7671_vm5 = vnez %v7670_v31  ;;  %v7672_v20 = vld [vmem:[#allocation135_spill] sm:$0xff]  ;;  %v7674_v16 = vld [vmem:[#allocation136_spill] sm:$0xff]  ;;  %v7676_v62 = vld [vmem:[#allocation137_spill] sm:$0xff]  ;;  %4193 = vst [vmem:[%s4767_s4 + $0xc0] sm:$0xff] %v4499_v8 }
 0x636   : > { %v4501_v26 = vpack.c.bf16 %v7665_v54, %v7661_v9  ;;  %v7669_v58 = vsel %vm7667_vm3, nan, %v7668_v44  ;;  %v7673_v6 = vsel %vm7671_vm5, nan, %v7672_v20  ;;  %vm7675_vm7 = vnez %v7674_v16  ;;  %v7678_v46 = vld [vmem:[#allocation138_spill] sm:$0xff]  ;;  %v7680_v1 = vld [vmem:[#allocation139_spill] sm:$0xff]  ;;  %v7682_v47 = vld [vmem:[#allocation140_spill] sm:$0xff] }
 0x637   : > { %v4502_v59 = vpack.c.bf16 %v7673_v6, %v7669_v58  ;;  %v7677_v49 = vsel %vm7675_vm7, nan, %v7676_v62  ;;  %vm7679_vm9 = vnez %v7678_v46  ;;  %vm7683_vm11 = vnez %v7682_v47  ;;  %v7684_v7 = vld [vmem:[#allocation141_spill] sm:$0xff]  ;;  %v7687_v45 = vld [vmem:[#allocation142_spill] sm:$0xff]  ;;  %v7690_v19 = vld [vmem:[#allocation143_spill] sm:$0xff]  ;;  %4194 = vst [vmem:[%s4767_s4 + $0xc8] sm:$0xff] %v4500_v48 }
 0x638   : > { %v7681_v40 = vsel %vm7679_vm9, nan, %v7680_v1  ;;  %v7685_v57 = vsel %vm7683_vm11, nan, %v7684_v7  ;;  %v7688_v51 = vsel %vm7686_vm13, nan, %v7687_v45  ;;  %v7691_v23 = vsel %vm7689_vm15, nan, %v7690_v19  ;;  %v7693_v24 = vld [vmem:[#allocation144_spill] sm:$0xff]  ;;  %4195 = vst [vmem:[%s4767_s4 + $0xd0] sm:$0xff] %v4501_v26 }
 0x639   : > { %v4503_v56 = vpack.c.bf16 %v7681_v40, %v7677_v49  ;;  %v4504_v28 = vpack.c.bf16 %v7688_v51, %v7685_v57  ;;  %vm7692_vm1 = vnez %v7505_v43  ;;  %v4506_v11 = vpack.c.bf16 %v3958_v22, %v3927_v53  ;;  %4196 = vst [vmem:[%s4767_s4 + $0xd8] sm:$0xff] %v4502_v59 }
 0x63a   : > { %v7694_v63 = vsel %vm7692_vm1, nan, %v7693_v24 }
 0x63b   : > { %v4505_v30 = vpack.c.bf16 %v7694_v63, %v7691_v23  ;;  %4197 = vst [vmem:[%s4767_s4 + $0xe0] sm:$0xff] %v4503_v56  ;;  %4198 = vst [vmem:[%s4767_s4 + $0xe8] sm:$0xff] %v4504_v28 }
 0x63c   : > { %4200 = vst [vmem:[%s4767_s4 + $0xf8] sm:$0xff] %v4506_v11 }
 0x63d   : > { %4199 = vst [vmem:[%s4767_s4 + $0xf0] sm:$0xff] %v4505_v30 }
 0x63e   : > { %4631 = dma.done.wait (%p4520_p1), [#allocation5], 16  }
 0x63f   : > { %4633 = vsyncadd (%p4520_p1), [#allocation5], 4294967280 }
 0x640 PF: > { %p16_p11 = scmp.ge.s32.totalorder %s4700_s18, 4   ;;  %s7695_s14 = smov %s4640_s15 }
 0x641   : > { %s7696_s15 = smov %s4644_s16  ;;  %s7697_s16 = smov %s4710_s21 }
 0x642   : > { %s7698_s17 = smov %s4700_s18  ;;  %18 = sbr.rel (!%p16_p11) target bundleno = 6 (0x6), region = 193 }
 0x647   :  { %4240 = vsyncpa [#allocation4], 1 }
 0x648   :  { %4242 = vsyncpa [#allocation4 + $0x1], 1 }
 0x649   :  { %4243 = vsyncpa [#allocation5], 1 }
 0x64a   :  { %4245 = vsyncpa [#allocation5 + $0x1], 1 }

// kernel: fp8_linear_forward.4
= control target key start
LH: loop header
LB: loop body
LE: loop exit
PB: predicated region body
PF: predicated region fallthrough
CT: control target
= control target key end

     0   :  { %s6802_s0 = inlined_call_operand.<no memory space> [shape: f32[1], index: 0, kind: input, shape index: {}]   ;;  %s6803_s1 = inlined_call_operand.vmem [shape: f32[256,512], index: 1, kind: input, shape index: {}]   ;;  %s6804_s2 = inlined_call_operand.vmem [shape: bf16[256,512], index: 2, kind: output, shape index: {0}]   ;;  %s6805_s3 = inlined_call_operand.hbm [shape: f32[1,1], index: 3, kind: output, shape index: {1}]  }
   0x1   :  { %9 = sst [smem:[#allocation2]] %s6802_s0 }
   0x2   :  { %10 = vsyncpa [#allocation4], 0  ;;  %s4555_s14 = smov 0  }
   0x3 LB: > { %s4561_s15 = sadd.s32 4294967295, %s4528_s14   ;;  %p4270_p0 = scmp.ge.s32.totalorder %s4528_s14, 1  ;;  %s4528_s14 = sphi %s4555_s14, %s16_s14  }
   0x4   : > { %p139_p1 = scmp.lt.s32.totalorder %s4528_s14, 3 }
   0x6   : > { %p140_p2 = pnand %p4270_p0, %p139_p1 }
   0x8   : > { %143 = sbr.rel (%p140_p2) target bundleno = 1565 (0x61d), region = 28 }
   0xd   : > { %s4271_s16 = sshll.u32 %s4561_s15, 4  ;;  %p4277_p4 = scmp.ne.s32.totalorder %s4561_s15, 0 }
   0xe   : > { %p166_p3 = scmp.lt.s32.totalorder %s4271_s16, 31 }
  0x10   : > { %s7488_s16 = smov (!%p166_p3, %s4271_s16), 31 }
  0x11   : > { %s4442_s0 = sshll.u32 %s7488_s16, 5  ;;  %s4443_s17 = sshll.u32 %s7488_s16, 4 }
  0x12   : > { %s4569_s20 = scalar_lea.vmem %s6803_s1, %s4442_s0  ;;  %s4574_s23 = scalar_lea.vmem %s6804_s2, %s4443_s17 }
  0x13   : > { %v4577_v0 = vld [vmem:[%s4569_s20] sm:$0xff]  ;;  %v4580_v1 = vld [vmem:[%s4569_s20 + $0x8] sm:$0xff]  ;;  %v4583_v2 = vld [vmem:[%s4569_s20 + $0x10] sm:$0xff] }
  0x14   : > { %v4586_v3 = vld [vmem:[%s4569_s20 + $0x20] sm:$0xff]  ;;  %v4589_v4 = vld [vmem:[%s4569_s20 + $0x18] sm:$0xff]  ;;  %v4592_v5 = vld [vmem:[%s4569_s20 + $0x28] sm:$0xff]  ;;  %v243_v6 = vand.u32 2147483647, %v4577_v0 }
  0x15   : > { %v4596_v7 = vld [vmem:[%s4569_s20 + $0x30] sm:$0xff]  ;;  %v244_v8 = vand.u32 2147483647, %v4580_v1  ;;  %v4600_v9 = vld [vmem:[%s4569_s20 + $0x38] sm:$0xff]  ;;  %v245_v10 = vand.u32 2147483647, %v4583_v2 }
  0x16   : > { %v247_v11 = vand.u32 2147483647, %v4586_v3  ;;  %v4605_v12 = vld [vmem:[%s4569_s20 + $0x40] sm:$0xff]  ;;  %v246_v13 = vand.u32 2147483647, %v4589_v4  ;;  %v4610_v15 = vld [vmem:[%s4569_s20 + $0x48] sm:$0xff] }
  0x17   : > { %v248_v14 = vand.u32 2147483647, %v4592_v5  ;;  %v249_v16 = vand.u32 2147483647, %v4596_v7  ;;  %v4614_v18 = vld [vmem:[%s4569_s20 + $0x50] sm:$0xff]  ;;  %v4618_v21 = vld [vmem:[%s4569_s20 + $0x58] sm:$0xff] }
  0x18   : > { %v307_v17 = vmax.f32.f32 %v243_v6, %v247_v11  ;;  %v250_v19 = vand.u32 2147483647, %v4600_v9  ;;  %v251_v22 = vand.u32 2147483647, %v4605_v12  ;;  %v4622_v24 = vld [vmem:[%s4569_s20 + $0x60] sm:$0xff]  ;;  %v4626_v27 = vld [vmem:[%s4569_s20 + $0x68] sm:$0xff] }
  0x19   : > { %v308_v20 = vmax.f32.f32 %v244_v8, %v248_v14  ;;  %v309_v23 = vmax.f32.f32 %v245_v10, %v249_v16  ;;  %v252_v25 = vand.u32 2147483647, %v4610_v15  ;;  %v253_v28 = vand.u32 2147483647, %v4614_v18  ;;  %v4630_v30 = vld [vmem:[%s4569_s20 + $0x70] sm:$0xff]  ;;  %v4634_v33 = vld [vmem:[%s4569_s20 + $0x78] sm:$0xff] }
  0x1a   : > { %v310_v26 = vmax.f32.f32 %v246_v13, %v250_v19  ;;  %v311_v29 = vmax.f32.f32 %v307_v17, %v251_v22  ;;  %v254_v31 = vand.u32 2147483647, %v4618_v21  ;;  %v255_v34 = vand.u32 2147483647, %v4622_v24  ;;  %v4638_v36 = vld [vmem:[%s4569_s20 + $0x80] sm:$0xff]  ;;  %v4642_v39 = vld [vmem:[%s4569_s20 + $0x88] sm:$0xff] }
  0x1b   : > { %v312_v32 = vmax.f32.f32 %v308_v20, %v252_v25  ;;  %v313_v35 = vmax.f32.f32 %v309_v23, %v253_v28  ;;  %v256_v37 = vand.u32 2147483647, %v4626_v27  ;;  %v257_v40 = vand.u32 2147483647, %v4630_v30  ;;  %v4646_v42 = vld [vmem:[%s4569_s20 + $0x90] sm:$0xff]  ;;  %v4650_v45 = vld [vmem:[%s4569_s20 + $0x98] sm:$0xff] }
  0x1c   : > { %v314_v38 = vmax.f32.f32 %v310_v26, %v254_v31  ;;  %v315_v41 = vmax.f32.f32 %v311_v29, %v255_v34  ;;  %v258_v43 = vand.u32 2147483647, %v4634_v33  ;;  %v259_v46 = vand.u32 2147483647, %v4638_v36  ;;  %v4654_v48 = vld [vmem:[%s4569_s20 + $0xa0] sm:$0xff]  ;;  %v4657_v49 = vld [vmem:[%s4569_s20 + $0xa8] sm:$0xff] }
  0x1d   : > { %v316_v44 = vmax.f32.f32 %v312_v32, %v256_v37  ;;  %v317_v47 = vmax.f32.f32 %v313_v35, %v257_v40  ;;  %v260_v50 = vand.u32 2147483647, %v4642_v39  ;;  %v4661_v52 = vld [vmem:[%s4569_s20 + $0xb0] sm:$0xff]  ;;  %v4664_v53 = vld [vmem:[%s4569_s20 + $0xb8] sm:$0xff]  ;;  %v261_v54 = vand.u32 2147483647, %v4646_v42 }
  0x1e   : > { %v318_v51 = vmax.f32.f32 %v314_v38, %v258_v43  ;;  %v319_v55 = vmax.f32.f32 %v315_v41, %v259_v46  ;;  %v4668_v56 = vld [vmem:[%s4569_s20 + $0xc0] sm:$0xff]  ;;  %v262_v57 = vand.u32 2147483647, %v4650_v45  ;;  %v4672_v59 = vld [vmem:[%s4569_s20 + $0xc8] sm:$0xff]  ;;  %v263_v60 = vand.u32 2147483647, %v4654_v48 }
  0x1f   : > { %v320_v58 = vmax.f32.f32 %v316_v44, %v260_v50  ;;  %v264_v61 = vand.u32 2147483647, %v4657_v49  ;;  %v321_v62 = vmax.f32.f32 %v317_v47, %v261_v54  ;;  %v4677_v63 = vld [vmem:[%s4569_s20 + $0xd0] sm:$0xff]  ;;  %v265_v6 = vand.u32 2147483647, %v4661_v52  ;;  %v4682_v11 = vld [vmem:[%s4569_s20 + $0xd8] sm:$0xff] }
  0x20   : > { %v266_v8 = vand.u32 2147483647, %v4664_v53  ;;  %v322_v10 = vmax.f32.f32 %v318_v51, %v262_v57  ;;  %6979 = vst [vmem:[#allocation70_spill] sm:$0xff] %v4682_v11  ;;  %v267_v13 = vand.u32 2147483647, %v4668_v56  ;;  %v323_v14 = vmax.f32.f32 %v319_v55, %v263_v60  ;;  %v4686_v16 = vld [vmem:[%s4569_s20 + $0xe0] sm:$0xff] }
  0x21   : > { %6980 = vst [vmem:[#allocation71_spill] sm:$0xff] %v4686_v16  ;;  %v268_v17 = vand.u32 2147483647, %v4672_v59  ;;  %v324_v19 = vmax.f32.f32 %v320_v58, %v264_v61  ;;  %v4690_v20 = vld [vmem:[%s4569_s20 + $0xe8] sm:$0xff]  ;;  %v269_v22 = vand.u32 2147483647, %v4677_v63  ;;  %v325_v23 = vmax.f32.f32 %v321_v62, %v265_v6 }
  0x22   : > { %6981 = vst [vmem:[#allocation72_spill] sm:$0xff] %v4690_v20  ;;  %v4694_v25 = vld [vmem:[%s4569_s20 + $0xf0] sm:$0xff]  ;;  %v270_v26 = vand.u32 2147483647, %v4682_v11  ;;  %v326_v28 = vmax.f32.f32 %v322_v10, %v266_v8  ;;  %v4698_v29 = vld [vmem:[%s4569_s20 + $0xf8] sm:$0xff]  ;;  %v327_v32 = vmax.f32.f32 %v323_v14, %v267_v13  ;;  %v4702_v34 = vld [vmem:[%s4569_s20 + $0x100] sm:$0xff] }
  0x23   : > { %6982 = vst [vmem:[#allocation73_spill] sm:$0xff] %v4694_v25  ;;  %6983 = vst [vmem:[#allocation74_spill] sm:$0xff] %v4698_v29  ;;  %v271_v31 = vand.u32 2147483647, %v4686_v16  ;;  %v4705_v35 = vld [vmem:[%s4569_s20 + $0x108] sm:$0xff]  ;;  %v4708_v37 = vld [vmem:[%s4569_s20 + $0x110] sm:$0xff]  ;;  %v328_v40 = vmax.f32.f32 %v324_v19, %v268_v17  ;;  %v329_v47 = vmax.f32.f32 %v325_v23, %v269_v22 }
  0x24   : > { %6984 = vst [vmem:[#allocation75_spill] sm:$0xff] %v4702_v34  ;;  %6985 = vst [vmem:[#allocation76_spill] sm:$0xff] %v4705_v35  ;;  %v272_v38 = vand.u32 2147483647, %v4690_v20  ;;  %v4712_v41 = vld [vmem:[%s4569_s20 + $0x118] sm:$0xff]  ;;  %v4715_v43 = vld [vmem:[%s4569_s20 + $0x120] sm:$0xff]  ;;  %v330_v57 = vmax.f32.f32 %v326_v28, %v270_v26 }
  0x25   : > { %6986 = vst [vmem:[#allocation77_spill] sm:$0xff] %v4708_v37  ;;  %6987 = vst [vmem:[#allocation78_spill] sm:$0xff] %v4712_v41  ;;  %v4718_v44 = vld [vmem:[%s4569_s20 + $0x128] sm:$0xff]  ;;  %v273_v46 = vand.u32 2147483647, %v4694_v25  ;;  %v4722_v50 = vld [vmem:[%s4569_s20 + $0x130] sm:$0xff]  ;;  %v331_v6 = vmax.f32.f32 %v327_v32, %v271_v31 }
  0x26   : > { %6988 = vst [vmem:[#allocation79_spill] sm:$0xff] %v4715_v43  ;;  %6989 = vst [vmem:[#allocation80_spill] sm:$0xff] %v4718_v44  ;;  %v4725_v51 = vld [vmem:[%s4569_s20 + $0x138] sm:$0xff]  ;;  %v4728_v54 = vld [vmem:[%s4569_s20 + $0x140] sm:$0xff]  ;;  %v274_v55 = vand.u32 2147483647, %v4698_v29  ;;  %v332_v17 = vmax.f32.f32 %v328_v40, %v272_v38 }
  0x27   : > { %6990 = vst [vmem:[#allocation81_spill] sm:$0xff] %v4722_v50  ;;  %6991 = vst [vmem:[#allocation82_spill] sm:$0xff] %v4725_v51  ;;  %v4732_v58 = vld [vmem:[%s4569_s20 + $0x148] sm:$0xff]  ;;  %v4735_v60 = vld [vmem:[%s4569_s20 + $0x150] sm:$0xff]  ;;  %v275_v62 = vand.u32 2147483647, %v4702_v34  ;;  %v333_v28 = vmax.f32.f32 %v329_v47, %v273_v46 }
  0x28   : > { %6992 = vst [vmem:[#allocation83_spill] sm:$0xff] %v4728_v54  ;;  %6993 = vst [vmem:[#allocation84_spill] sm:$0xff] %v4732_v58  ;;  %v4738_v61 = vld [vmem:[%s4569_s20 + $0x158] sm:$0xff]  ;;  %v4742_v8 = vld [vmem:[%s4569_s20 + $0x160] sm:$0xff]  ;;  %v276_v10 = vand.u32 2147483647, %v4705_v35  ;;  %v334_v35 = vmax.f32.f32 %v330_v57, %v274_v55 }
  0x29   : > { %6994 = vst [vmem:[#allocation85_spill] sm:$0xff] %v4735_v60  ;;  %6995 = vst [vmem:[#allocation86_spill] sm:$0xff] %v4738_v61  ;;  %v277_v13 = vand.u32 2147483647, %v4708_v37  ;;  %v278_v14 = vand.u32 2147483647, %v4712_v41  ;;  %v335_v29 = vmax.f32.f32 %v331_v6, %v275_v62 }
  0x2a   : > { %6996 = vst [vmem:[#allocation87_spill] sm:$0xff] %v4742_v8  ;;  %v4748_v19 = vld [vmem:[%s4569_s20 + $0x168] sm:$0xff]  ;;  %v4751_v22 = vld [vmem:[%s4569_s20 + $0x170] sm:$0xff]  ;;  %v4754_v23 = vld [vmem:[%s4569_s20 + $0x178] sm:$0xff]  ;;  %v279_v26 = vand.u32 2147483647, %v4715_v43  ;;  %v336_v57 = vmax.f32.f32 %v332_v17, %v276_v10 }
  0x2b   : > { %6997 = vst [vmem:[#allocation88_spill] sm:$0xff] %v4748_v19  ;;  %6998 = vst [vmem:[#allocation89_spill] sm:$0xff] %v4751_v22  ;;  %v4758_v31 = vld [vmem:[%s4569_s20 + $0x180] sm:$0xff]  ;;  %v4761_v32 = vld [vmem:[%s4569_s20 + $0x188] sm:$0xff]  ;;  %v280_v38 = vand.u32 2147483647, %v4718_v44  ;;  %v338_v20 = vmax.f32.f32 %v334_v35, %v278_v14 }
  0x2c   : > { %6999 = vst [vmem:[#allocation90_spill] sm:$0xff] %v4754_v23  ;;  %7000 = vst [vmem:[#allocation91_spill] sm:$0xff] %v4758_v31  ;;  %v4764_v37 = vld [vmem:[%s4569_s20 + $0x190] sm:$0xff]  ;;  %v281_v40 = vand.u32 2147483647, %v4722_v50  ;;  %v4770_v34 = vld [vmem:[%s4569_s20 + $0x198] sm:$0xff]  ;;  %v339_v6 = vmax.f32.f32 %v335_v29, %v279_v26 }
  0x2d   : > { %7001 = vst [vmem:[#allocation92_spill] sm:$0xff] %v4761_v32  ;;  %7002 = vst [vmem:[#allocation93_spill] sm:$0xff] %v4764_v37  ;;  %v282_v41 = vand.u32 2147483647, %v4725_v51  ;;  %v283_v43 = vand.u32 2147483647, %v4728_v54  ;;  %v337_v51 = vmax.f32.f32 %v333_v28, %v277_v13  ;;  %v340_v13 = vmax.f32.f32 %v336_v57, %v280_v38 }
  0x2e   : > { %7003 = vst [vmem:[#allocation94_spill] sm:$0xff] %v4770_v34  ;;  %v284_v46 = vand.u32 2147483647, %v4732_v58  ;;  %v285_v47 = vand.u32 2147483647, %v4735_v60  ;;  %v4776_v25 = vld [vmem:[%s4569_s20 + $0x1a0] sm:$0xff] }
  0x2f   : > { %7004 = vst [vmem:[#allocation95_spill] sm:$0xff] %v4776_v25  ;;  %v4779_v44 = vld [vmem:[%s4569_s20 + $0x1a8] sm:$0xff]  ;;  %v4782_v50 = vld [vmem:[%s4569_s20 + $0x1b0] sm:$0xff]  ;;  %v286_v55 = vand.u32 2147483647, %v4738_v61  ;;  %v4789_v60 = vld [vmem:[%s4569_s20 + $0x1b8] sm:$0xff]  ;;  %v341_v35 = vmax.f32.f32 %v337_v51, %v281_v40  ;;  %v342_v14 = vmax.f32.f32 %v338_v20, %v282_v41  ;;  %v343_v26 = vmax.f32.f32 %v339_v6, %v283_v43 }
  0x30   : > { %7005 = vst [vmem:[#allocation96_spill] sm:$0xff] %v4779_v44  ;;  %7006 = vst [vmem:[#allocation97_spill] sm:$0xff] %v4782_v50  ;;  %v287_v54 = vand.u32 2147483647, %v4742_v8  ;;  %v288_v58 = vand.u32 2147483647, %v4748_v19  ;;  %v344_v51 = vmax.f32.f32 %v340_v13, %v284_v46 }
  0x31   : > { %v289_v62 = vand.u32 2147483647, %v4751_v22  ;;  %v4792_v16 = vld [vmem:[%s4569_s20 + $0x1c0] sm:$0xff]  ;;  %v4795_v11 = vld [vmem:[%s4569_s20 + $0x1c8] sm:$0xff]  ;;  %v290_v10 = vand.u32 2147483647, %v4754_v23  ;;  %v345_v20 = vmax.f32.f32 %v341_v35, %v285_v47  ;;  %v346_v41 = vmax.f32.f32 %v342_v14, %v286_v55 }
  0x32   : > { %7007 = vst [vmem:[#allocation98_spill] sm:$0xff] %v4795_v11  ;;  %v291_v17 = vand.u32 2147483647, %v4758_v31  ;;  %v292_v28 = vand.u32 2147483647, %v4761_v32  ;;  %v4802_v22 = vld [vmem:[%s4569_s20 + $0x1d0] sm:$0xff]  ;;  %v347_v31 = vmax.f32.f32 %v343_v26, %v287_v54  ;;  %v348_v61 = vmax.f32.f32 %v344_v51, %v288_v58 }
  0x33   : > { %v293_v29 = vand.u32 2147483647, %v4764_v37  ;;  %7008 = vst [vmem:[#allocation99_spill] sm:$0xff] %v4802_v22  ;;  %v4805_v19 = vld [vmem:[%s4569_s20 + $0x1d8] sm:$0xff]  ;;  %v4808_v8 = vld [vmem:[%s4569_s20 + $0x1e0] sm:$0xff]  ;;  %v4815_v37 = vld [vmem:[%s4569_s20 + $0x1e8] sm:$0xff]  ;;  %v350_v46 = vmax.f32.f32 %v346_v41, %v290_v10 }
  0x34   : > { %7009 = vst [vmem:[#allocation100_spill] sm:$0xff] %v4805_v19  ;;  %v294_v38 = vand.u32 2147483647, %v4770_v34  ;;  %v295_v40 = vand.u32 2147483647, %v4776_v25  ;;  %7010 = vst [vmem:[#allocation101_spill] sm:$0xff] %v4815_v37  ;;  %v349_v34 = vmax.f32.f32 %v345_v20, %v289_v62  ;;  %v351_v35 = vmax.f32.f32 %v347_v31, %v291_v17 }
  0x35   : > { %v296_v57 = vand.u32 2147483647, %v4779_v44  ;;  %v297_v32 = vand.u32 2147483647, %v4782_v50  ;;  %v4818_v43 = vld [vmem:[%s4569_s20 + $0x1f0] sm:$0xff]  ;;  %v4821_v6 = vld [vmem:[%s4569_s20 + $0x1f8] sm:$0xff]  ;;  %v352_v14 = vmax.f32.f32 %v348_v61, %v292_v28 }
  0x36   : > { %7011 = vst [vmem:[#allocation102_spill] sm:$0xff] %v4818_v43  ;;  %7012 = vst [vmem:[#allocation103_spill] sm:$0xff] %v4821_v6  ;;  %v298_v23 = vand.u32 2147483647, %v4789_v60  ;;  %v299_v47 = vand.u32 2147483647, %v4792_v16  ;;  %v353_v26 = vmax.f32.f32 %v349_v34, %v293_v29  ;;  %v354_v50 = vmax.f32.f32 %v350_v46, %v294_v38 }
  0x37   : > { %v300_v55 = vand.u32 2147483647, %v4795_v11  ;;  %v301_v13 = vand.u32 2147483647, %v4802_v22  ;;  %v302_v54 = vand.u32 2147483647, %v4805_v19  ;;  %v355_v62 = vmax.f32.f32 %v351_v35, %v295_v40 }
  0x38   : > { %v303_v44 = vand.u32 2147483647, %v4808_v8  ;;  %v304_v25 = vand.u32 2147483647, %v4815_v37  ;;  %v305_v58 = vand.u32 2147483647, %v4818_v43  ;;  %v356_v51 = vmax.f32.f32 %v352_v14, %v296_v57 }
  0x39   : > { %v306_v10 = vand.u32 2147483647, %v4821_v6  ;;  %v357_v20 = vmax.f32.f32 %v353_v26, %v297_v32  ;;  %v358_v41 = vmax.f32.f32 %v354_v50, %v298_v23  ;;  %v359_v11 = vmax.f32.f32 %v355_v62, %v299_v47 }
  0x3a   : > { %v360_v22 = vmax.f32.f32 %v356_v51, %v300_v55 }
  0x3b   : > { %v361_v31 = vmax.f32.f32 %v357_v20, %v301_v13  ;;  %v362_v17 = vmax.f32.f32 %v358_v41, %v302_v54  ;;  %v363_v19 = vmax.f32.f32 %v359_v11, %v303_v44 }
  0x3c   : > { %v364_v61 = vmax.f32.f32 %v360_v22, %v304_v25 }
  0x3d   : > { %v365_v34 = vmax.f32.f32 %v361_v31, %v305_v58  ;;  %v366_v28 = vmax.f32.f32 %v362_v17, %v306_v10 }
  0x3e   : > { %v367_v29 = vmax.f32.f32 %v363_v19, %v364_v61 }
  0x3f   : > { %v368_v38 = vmax.f32.f32 %v365_v34, %v366_v28 }
  0x41   : > { %v369_v46 = vmax.f32.f32 %v367_v29, %v368_v38 }
  0x43   : > { %370 = vmax.xlane.f32.xlu0 %v369_v46 }
  0xcc   : > { %v371_v37 = vpop.xlane.xlu0 %370 }
  0xcd   : > { %v372_v43 = vrot.slane %v371_v37, 4 }
  0xcf   : > { %v373_v40 = vmax.f32 %v371_v37, %v372_v43 }
  0xd1   : > { %v374_v35 = vrot.slane %v373_v40, 2 }
  0xd3   : > { %v375_v6 = vmax.f32 %v373_v40, %v374_v35 }
  0xd5   : > { %v376_v57 = vrot.slane %v375_v6, 1 }
  0xd7   : > { %v377_v32 = vmax.f32 %v375_v6, %v376_v57 }
  0xd9   : > { %4476 = vpush %v377_v32 }
 0x107   : > { %383 = sbr.rel (%p4277_p4) target bundleno = 270 (0x10e), region = 32 }
 0x10a   : > { %s4477_s24 = spop %4476 }
 0x10b   : > { %v379_v50 = vstv %s4477_s24 }
 0x10c   : > { %vm384_vm0 = vcmask 0   ;;  %v4530_v11 = vmov 0.0  }
 0x10d   : > { %385 = vst.msk [vmem:[#allocation3] sm:$0x1] %vm384_vm0, %v4530_v11 }
 0x10e PF: > { %vm388_vm1 = vcmask 0   ;;  %s390_s25 = sld [smem:[#allocation2]]  ;;  %v7013_v47 = vld [vmem:[#allocation70_spill] sm:$0xff]  ;;  %v7014_v55 = vld [vmem:[#allocation71_spill] sm:$0xff]  ;;  %v7015_v13 = vld [vmem:[#allocation72_spill] sm:$0xff] }
 0x10f   : > { %v7016_v54 = vld [vmem:[#allocation73_spill] sm:$0xff]  ;;  %v7017_v14 = vld [vmem:[#allocation74_spill] sm:$0xff]  ;;  %v7018_v26 = vld [vmem:[#allocation75_spill] sm:$0xff] }
 0x110   : > { %v7019_v62 = vld [vmem:[#allocation76_spill] sm:$0xff]  ;;  %v7020_v51 = vld [vmem:[#allocation77_spill] sm:$0xff]  ;;  %v7021_v41 = vld [vmem:[#allocation78_spill] sm:$0xff] }
 0x111   : > { %v7022_v17 = vld [vmem:[#allocation79_spill] sm:$0xff]  ;;  %v7023_v34 = vld [vmem:[#allocation80_spill] sm:$0xff]  ;;  %v7024_v29 = vld [vmem:[#allocation81_spill] sm:$0xff] }
 0x112   : > { %v7025_v46 = vld [vmem:[#allocation82_spill] sm:$0xff]  ;;  %v7026_v35 = vld [vmem:[#allocation83_spill] sm:$0xff]  ;;  %v7027_v32 = vld [vmem:[#allocation84_spill] sm:$0xff] }
 0x113   : > { %v7028_v11 = vld [vmem:[#allocation85_spill] sm:$0xff] }
 0x114   : > { %v386_v25 = vld [vmem:[#allocation3] sm:$0x1]  ;;  %v4833_v37 = vstv %s390_s25 }
 0x115   : > { %v387_v44 = vmax.f32 %v386_v25, %v379_v50  ;;  %v4837_v19 = vmul.f32 %v4833_v37, %v4577_v0  ;;  %v4841_v22 = vmul.f32 %v4833_v37, %v4580_v1  ;;  %v4845_v23 = vmul.f32 %v4833_v37, %v4583_v2 }
 0x116   : > { %v4849_v43 = vmul.f32 %v4833_v37, %v4589_v4  ;;  %v4853_v6 = vmul.f32 %v4833_v37, %v4586_v3  ;;  %v4857_v0 = vmul.f32 %v4833_v37, %v4592_v5  ;;  %v4861_v1 = vmul.f32 %v4833_v37, %v4596_v7 }
 0x117   : > { %389 = vst.msk [vmem:[#allocation3] sm:$0x1] %vm388_vm1, %v387_v44  ;;  %v4865_v2 = vmul.f32 %v4833_v37, %v4600_v9  ;;  %v4869_v4 = vmul.f32 %v4833_v37, %v4605_v12  ;;  %v4873_v3 = vmul.f32 %v4833_v37, %v4610_v15  ;;  %v4877_v5 = vmul.f32 %v4833_v37, %v4614_v18  ;;  %v7029_v44 = vld [vmem:[#allocation86_spill] sm:$0xff] }
 0x118   : > { %v4881_v7 = vmul.f32 %v4833_v37, %v4618_v21  ;;  %v4885_v9 = vmul.f32 %v4833_v37, %v4622_v24  ;;  %v4889_v12 = vmul.f32 %v4833_v37, %v4626_v27  ;;  %v4893_v15 = vmul.f32 %v4833_v37, %v4630_v30 }
 0x119   : > { %v4897_v18 = vmul.f32 %v4833_v37, %v4634_v33  ;;  %v4901_v21 = vmul.f32 %v4833_v37, %v4638_v36  ;;  %v4905_v24 = vmul.f32 %v4833_v37, %v4642_v39  ;;  %v4909_v27 = vmul.f32 %v4833_v37, %v4646_v42 }
 0x11a   : > { %v4913_v30 = vmul.f32 %v4833_v37, %v4650_v45  ;;  %v4917_v33 = vmul.f32 %v4833_v37, %v4654_v48  ;;  %v4921_v36 = vmul.f32 %v4833_v37, %v4657_v49  ;;  %v4925_v39 = vmul.f32 %v4833_v37, %v4661_v52 }
 0x11b   : > { %v4929_v42 = vmul.f32 %v4833_v37, %v4664_v53  ;;  %v4933_v45 = vmul.f32 %v4833_v37, %v4668_v56  ;;  %v4937_v48 = vmul.f32 %v4833_v37, %v4672_v59  ;;  %v4941_v49 = vmul.f32 %v4833_v37, %v4677_v63 }
 0x11c   : > { %v4945_v52 = vmul.f32 %v4833_v37, %v7013_v47  ;;  %v4949_v53 = vmul.f32 %v4833_v37, %v7014_v55  ;;  %v4953_v56 = vmul.f32 %v4833_v37, %v7015_v13  ;;  %v4957_v59 = vmul.f32 %v4833_v37, %v7016_v54  ;;  %v7030_v55 = vld [vmem:[#allocation87_spill] sm:$0xff]  ;;  %v7031_v54 = vld [vmem:[#allocation88_spill] sm:$0xff] }
 0x11d   : > { %v4961_v63 = vmul.f32 %v4833_v37, %v7017_v14  ;;  %v4965_v58 = vmul.f32 %v4833_v37, %v7018_v26  ;;  %v4969_v10 = vmul.f32 %v4833_v37, %v7019_v62  ;;  %v4973_v20 = vmul.f32 %v4833_v37, %v7020_v51  ;;  %v7032_v26 = vld [vmem:[#allocation89_spill] sm:$0xff]  ;;  %v7034_v51 = vld [vmem:[#allocation90_spill] sm:$0xff] }
 0x11e   : > { %v4977_v31 = vmul.f32 %v4833_v37, %v7021_v41  ;;  %v4981_v61 = vmul.f32 %v4833_v37, %v7022_v17  ;;  %v4985_v28 = vmul.f32 %v4833_v37, %v7023_v34  ;;  %v4989_v38 = vmul.f32 %v4833_v37, %v7024_v29  ;;  %v7036_v17 = vld [vmem:[#allocation91_spill] sm:$0xff]  ;;  %v7038_v29 = vld [vmem:[#allocation92_spill] sm:$0xff] }
 0x11f   : > { %v4993_v40 = vmul.f32 %v4833_v37, %v7025_v46  ;;  %v4997_v57 = vmul.f32 %v4833_v37, %v7026_v35  ;;  %v5001_v50 = vmul.f32 %v4833_v37, %v7027_v32  ;;  %v5005_v25 = vmul.f32 %v4833_v37, %v7028_v11  ;;  %v7040_v35 = vld [vmem:[#allocation93_spill] sm:$0xff]  ;;  %v7042_v11 = vld [vmem:[#allocation94_spill] sm:$0xff] }
 0x120   : > { %v5009_v47 = vmul.f32 %v4833_v37, %v7029_v44  ;;  %v5013_v13 = vmul.f32 %v4833_v37, %v7030_v55  ;;  %v5017_v14 = vmul.f32 %v4833_v37, %v7031_v54  ;;  %v5021_v62 = vmul.f32 %v4833_v37, %v7032_v26  ;;  %v7044_v55 = vld [vmem:[#allocation95_spill] sm:$0xff]  ;;  %v7045_v26 = vld [vmem:[#allocation96_spill] sm:$0xff] }
 0x121   : > { %v5025_v41 = vmul.f32 %v4833_v37, %v7034_v51  ;;  %v5029_v34 = vmul.f32 %v4833_v37, %v7036_v17  ;;  %v5033_v46 = vmul.f32 %v4833_v37, %v7038_v29  ;;  %v5037_v32 = vmul.f32 %v4833_v37, %v7040_v35  ;;  %v7046_v17 = vld [vmem:[#allocation97_spill] sm:$0xff] }
 0x122   : > { %7033 = vst [vmem:[#allocation70_spill] sm:$0xff] %v5021_v62  ;;  %v5041_v44 = vmul.f32 %v4833_v37, %v7042_v11  ;;  %v444_v54 = vmul.f32 %v4833_v37, %v7044_v55  ;;  %v445_v51 = vmul.f32 %v4833_v37, %v7045_v26  ;;  %v5051_v29 = vmul.f32 %v4833_v37, %v4789_v60  ;;  %v7050_v55 = vld [vmem:[#allocation100_spill] sm:$0xff]  ;;  %v7056_v62 = vld [vmem:[#allocation103_spill] sm:$0xff] }
 0x123   : > { %7035 = vst [vmem:[#allocation71_spill] sm:$0xff] %v5025_v41  ;;  %7037 = vst [vmem:[#allocation72_spill] sm:$0xff] %v5029_v34  ;;  %v446_v34 = vmul.f32 %v4833_v37, %v7046_v17  ;;  %v448_v35 = vmul.f32 %v4833_v37, %v4792_v16  ;;  %v5061_v41 = vmul.f32 %v4833_v37, %v7050_v55  ;;  %v7052_v17 = vld [vmem:[#allocation101_spill] sm:$0xff]  ;;  %v5081_v55 = vclamps-f32 %v4841_v22, 240.0 }
 0x124   : > { %7039 = vst [vmem:[#allocation73_spill] sm:$0xff] %v5033_v46  ;;  %7041 = vst [vmem:[#allocation74_spill] sm:$0xff] %v5037_v32  ;;  %v7048_v32 = vld [vmem:[#allocation98_spill] sm:$0xff]  ;;  %v452_v26 = vmul.f32 %v4833_v37, %v4808_v8  ;;  %v5067_v60 = vmul.f32 %v4833_v37, %v7052_v17  ;;  %v5084_v8 = vclamps-f32 %v4845_v23, 240.0  ;;  %v5087_v17 = vclamps-f32 %v4849_v43, 240.0 }
 0x125   : > { %7043 = vst [vmem:[#allocation75_spill] sm:$0xff] %v5041_v44  ;;  %7047 = vst [vmem:[#allocation76_spill] sm:$0xff] %v5051_v29  ;;  %v449_v11 = vmul.f32 %v4833_v37, %v7048_v32  ;;  %v7049_v44 = vld [vmem:[#allocation99_spill] sm:$0xff]  ;;  %v7054_v29 = vld [vmem:[#allocation102_spill] sm:$0xff]  ;;  %v5075_v32 = vmul.f32 %v4833_v37, %v7056_v62  ;;  %v5102_v22 = vclamps-f32 %v4869_v4, 240.0  ;;  %v5105_v23 = vclamps-f32 %v4873_v3, 240.0 }
 0x126   : > { %v450_v46 = vmul.f32 %v4833_v37, %v7049_v44  ;;  %7051 = vst [vmem:[#allocation77_spill] sm:$0xff] %v5061_v41  ;;  %7053 = vst [vmem:[#allocation78_spill] sm:$0xff] %v5067_v60  ;;  %v5071_v16 = vmul.f32 %v4833_v37, %v7054_v29  ;;  %v5078_v44 = vclamps-f32 %v4837_v19, 240.0  ;;  %v5090_v41 = vclamps-f32 %v4853_v6, 240.0 }
 0x127   : > { %7057 = vst [vmem:[#allocation80_spill] sm:$0xff] %v5075_v32  ;;  %v5093_v29 = vclamps-f32 %v4857_v0, 240.0  ;;  %v5096_v37 = vclamps-f32 %v4861_v1, 240.0  ;;  %v5099_v19 = vclamps-f32 %v4865_v2, 240.0  ;;  %v5108_v43 = vclamps-f32 %v4877_v5, 240.0 }
 0x128   : > { %7055 = vst [vmem:[#allocation79_spill] sm:$0xff] %v5071_v16  ;;  %v5111_v6 = vclamps-f32 %v4881_v7, 240.0  ;;  %v5114_v0 = vclamps-f32 %v4885_v9, 240.0  ;;  %v5117_v1 = vclamps-f32 %v4889_v12, 240.0  ;;  %v5120_v2 = vclamps-f32 %v4893_v15, 240.0 }
 0x129   : > { %v5123_v4 = vclamps-f32 %v4897_v18, 240.0  ;;  %v5126_v3 = vclamps-f32 %v4901_v21, 240.0  ;;  %v5129_v5 = vclamps-f32 %v4905_v24, 240.0  ;;  %v5132_v7 = vclamps-f32 %v4909_v27, 240.0 }
 0x12a   : > { %v5135_v9 = vclamps-f32 %v4913_v30, 240.0  ;;  %v5138_v12 = vclamps-f32 %v4917_v33, 240.0  ;;  %v5141_v15 = vclamps-f32 %v4921_v36, 240.0  ;;  %v5144_v18 = vclamps-f32 %v4925_v39, 240.0 }
 0x12b   : > { %v5147_v21 = vclamps-f32 %v4929_v42, 240.0  ;;  %v5150_v24 = vclamps-f32 %v4933_v45, 240.0  ;;  %v5153_v27 = vclamps-f32 %v4937_v48, 240.0  ;;  %v5156_v30 = vclamps-f32 %v4941_v49, 240.0 }
 0x12c   : > { %v5159_v33 = vclamps-f32 %v4945_v52, 240.0  ;;  %v5162_v36 = vclamps-f32 %v4949_v53, 240.0  ;;  %v5165_v39 = vclamps-f32 %v4953_v56, 240.0  ;;  %v5168_v42 = vclamps-f32 %v4957_v59, 240.0 }
 0x12d   : > { %v5171_v45 = vclamps-f32 %v4961_v63, 240.0  ;;  %v5174_v48 = vclamps-f32 %v4965_v58, 240.0  ;;  %v5177_v49 = vclamps-f32 %v4969_v10, 240.0  ;;  %v5180_v52 = vclamps-f32 %v4973_v20, 240.0 }
 0x12e   : > { %v5183_v53 = vclamps-f32 %v4977_v31, 240.0  ;;  %v5186_v56 = vclamps-f32 %v4981_v61, 240.0  ;;  %v5189_v59 = vclamps-f32 %v4985_v28, 240.0  ;;  %v5192_v63 = vclamps-f32 %v4989_v38, 240.0 }
 0x12f   : > { %v5195_v58 = vclamps-f32 %v4993_v40, 240.0  ;;  %v5198_v10 = vclamps-f32 %v4997_v57, 240.0  ;;  %v5201_v20 = vclamps-f32 %v5001_v50, 240.0  ;;  %v5204_v31 = vclamps-f32 %v5005_v25, 240.0  ;;  %v7063_v40 = vld [vmem:[#allocation70_spill] sm:$0xff]  ;;  %v7065_v57 = vld [vmem:[#allocation71_spill] sm:$0xff] }
 0x130   : > { %7058 = vst [vmem:[#allocation81_spill] sm:$0xff] %v5183_v53  ;;  %7059 = vst [vmem:[#allocation82_spill] sm:$0xff] %v5192_v63  ;;  %v5207_v61 = vclamps-f32 %v5009_v47, 240.0  ;;  %v5210_v28 = vclamps-f32 %v5013_v13, 240.0  ;;  %v5213_v38 = vclamps-f32 %v5017_v14, 240.0  ;;  %v5216_v62 = vclamps-f32 %v7063_v40, 240.0 }
 0x131   : > { %7060 = vst [vmem:[#allocation83_spill] sm:$0xff] %v5195_v58  ;;  %7061 = vst [vmem:[#allocation84_spill] sm:$0xff] %v5204_v31  ;;  %v5219_v32 = vclamps-f32 %v7065_v57, 240.0  ;;  %v7067_v50 = vld [vmem:[#allocation72_spill] sm:$0xff]  ;;  %v7069_v25 = vld [vmem:[#allocation73_spill] sm:$0xff]  ;;  %v5230_v13 = vclamps-f32 %v444_v54, 240.0  ;;  %vm599_vm2 = vcmp.ne.f32.partialorder %v5078_v44, %v5078_v44  ;;  %vm620_vm3 = vcmp.ne.f32.partialorder %v5090_v41, %v5090_v41 }
 0x132   : > { %7062 = vst [vmem:[#allocation85_spill] sm:$0xff] %v5207_v61  ;;  %7064 = vst [vmem:[#allocation86_spill] sm:$0xff] %v5216_v62  ;;  %v5222_v16 = vclamps-f32 %v7067_v50, 240.0  ;;  %v5225_v60 = vclamps-f32 %v7069_v25, 240.0  ;;  %v7071_v47 = vld [vmem:[#allocation74_spill] sm:$0xff]  ;;  %v5232_v58 = vclamps-f32 %v445_v51, 240.0  ;;  %vm641_vm10 = vcmp.ne.f32.partialorder %v5102_v22, %v5102_v22 }
 0x133   : > { %7066 = vst [vmem:[#allocation87_spill] sm:$0xff] %v5219_v32  ;;  %v5228_v61 = vclamps-f32 %v7071_v47, 240.0  ;;  %7073 = vst [vmem:[#allocation91_spill] sm:$0xff] %v5230_v13  ;;  %v5234_v14 = vclamps-f32 %v446_v34, 240.0  ;;  %v5236_v40 = vclamps-f32 %v448_v35, 240.0  ;;  %v5238_v53 = vclamps-f32 %v449_v11, 240.0 }
 0x134   : > { %7068 = vst [vmem:[#allocation88_spill] sm:$0xff] %v5222_v16  ;;  %7070 = vst [vmem:[#allocation89_spill] sm:$0xff] %v5225_v60  ;;  %v5240_v57 = vclamps-f32 %v450_v46, 240.0  ;;  %v584_v50 = vand.u32 2147483647, %v5078_v44  ;;  %v590_v25 = vshrl.u32 %v5078_v44, 20  ;;  %vm662_vm13 = vcmp.ne.f32.partialorder %v5114_v0, %v5114_v0 }
 0x135   : > { %7072 = vst [vmem:[#allocation90_spill] sm:$0xff] %v5228_v61  ;;  %7074 = vst [vmem:[#allocation92_spill] sm:$0xff] %v5232_v58  ;;  %v5244_v60 = vclamps-f32 %v452_v26, 240.0  ;;  %v585_v47 = vand.u32 2147483648, %v5078_v44  ;;  %v605_v54 = vand.u32 2147483647, %v5090_v41  ;;  %vm687_vm14 = vcmp.ne.f32.partialorder %v5081_v55, %v5081_v55 }
 0x136   : > { %7075 = vst [vmem:[#allocation93_spill] sm:$0xff] %v5234_v14  ;;  %7076 = vst [vmem:[#allocation94_spill] sm:$0xff] %v5236_v40  ;;  %v611_v51 = vshrl.u32 %v5090_v41, 20  ;;  %v587_v34 = vadd.f32 1182793728, %v584_v50  ;;  %v591_v14 = vand.u32 1, %v590_v25  ;;  %v606_v46 = vand.u32 2147483648, %v5090_v41 }
 0x137   : > { %7077 = vst [vmem:[#allocation95_spill] sm:$0xff] %v5238_v53  ;;  %7078 = vst [vmem:[#allocation96_spill] sm:$0xff] %v5240_v57  ;;  %v592_v35 = vadd.s32 3288858623, %v584_v50  ;;  %v608_v11 = vadd.f32 1182793728, %v605_v54  ;;  %vm595_vm4 = vcmp.lt.s32.totalorder %v584_v50, 1015021568  ;;  %vm708_vm1 = vcmp.ne.f32.partialorder %v5093_v29, %v5093_v29 }
 0x138   : > { %7079 = vst [vmem:[#allocation97_spill] sm:$0xff] %v5244_v60  ;;  %v612_v57 = vand.u32 1, %v611_v51  ;;  %v4342_v26 = vadd.s32 3112173568, %v587_v34  ;;  %v613_v53 = vadd.s32 3288858623, %v605_v54  ;;  %v601_v58 = vshrl.u32 %v585_v47, 24 }
 0x139   : > { %v593_v61 = vadd.s32 %v592_v35, %v591_v14  ;;  %vm597_vm5 = vcmp.ge.s32.totalorder %v584_v50, 1139277825  ;;  %vm616_vm6 = vcmp.lt.s32.totalorder %v605_v54, 1015021568  ;;  %v626_v25 = vand.u32 2147483647, %v5102_v22 }
 0x13a   : > { %v4343_v40 = vadd.s32 3112173568, %v608_v11  ;;  %v614_v13 = vadd.s32 %v613_v53, %v612_v57  ;;  %v632_v16 = vshrl.u32 %v5102_v22, 20  ;;  %vm618_vm7 = vcmp.ge.s32.totalorder %v605_v54, 1139277825 }
 0x13b   : > { %v594_v60 = vshrl.u32 %v593_v61, 20  ;;  %v622_v32 = vshrl.u32 %v606_v46, 24  ;;  %v629_v51 = vadd.f32 1182793728, %v626_v25  ;;  %v634_v62 = vadd.s32 3288858623, %v626_v25 }
 0x13c   : > { %v615_v63 = vshrl.u32 %v614_v13, 20  ;;  %v627_v14 = vand.u32 2147483648, %v5102_v22  ;;  %v633_v34 = vand.u32 1, %v632_v16  ;;  %vm637_vm8 = vcmp.lt.s32.totalorder %v626_v25, 1015021568 }
 0x13d   : > { %v596_v31 = vsel %vm595_vm4, %v4342_v26, %v594_v60  ;;  %vm639_vm9 = vcmp.ge.s32.totalorder %v626_v25, 1139277825  ;;  %v647_v47 = vand.u32 2147483647, %v5114_v0  ;;  %v4344_v57 = vadd.s32 3112173568, %v629_v51 }
 0x13e   : > { %v598_v35 = vsel %vm597_vm5, 127, %v596_v31  ;;  %v617_v61 = vsel %vm616_vm6, %v4343_v40, %v615_v63  ;;  %v635_v46 = vadd.s32 %v634_v62, %v633_v34  ;;  %v653_v16 = vshrl.u32 %v5114_v0, 20 }
 0x13f   : > { %v600_v53 = vsel %vm599_vm2, 127, %v598_v35  ;;  %v619_v60 = vsel %vm618_vm7, 127, %v617_v61  ;;  %v650_v13 = vadd.f32 1182793728, %v647_v47  ;;  %v655_v44 = vadd.s32 3288858623, %v647_v47 }
 0x140   : > { %v602_v11 = vor.u32 %v601_v58, %v600_v53  ;;  %v621_v31 = vsel %vm620_vm3, 127, %v619_v60  ;;  %v636_v50 = vshrl.u32 %v635_v46, 20  ;;  %v643_v35 = vshrl.u32 %v627_v14, 24 }
 0x141   : > { %v623_v26 = vor.u32 %v622_v32, %v621_v31  ;;  %v648_v63 = vand.u32 2147483648, %v5114_v0  ;;  %v654_v62 = vand.u32 1, %v653_v16  ;;  %v4345_v54 = vadd.s32 3112173568, %v650_v13 }
 0x142   : > { %v603_v58 = vor.u32 4294967040, %v602_v11  ;;  %v638_v40 = vsel %vm637_vm8, %v4344_v57, %v636_v50  ;;  %vm658_vm11 = vcmp.lt.s32.totalorder %v647_v47, 1015021568  ;;  %v672_v53 = vand.u32 2147483647, %v5081_v55 }
 0x143   : > { %v624_v51 = vor.u32 4294967040, %v623_v26  ;;  %v640_v34 = vsel %vm639_vm9, 127, %v638_v40  ;;  %v656_v41 = vadd.s32 %v655_v44, %v654_v62  ;;  %vm660_vm12 = vcmp.ge.s32.totalorder %v647_v47, 1139277825 }
 0x144   : > { %v642_v61 = vsel %vm641_vm10, 127, %v640_v34  ;;  %v678_v32 = vshrl.u32 %v5081_v55, 20  ;;  %v664_v46 = vshrl.u32 %v648_v63, 24  ;;  %v675_v11 = vadd.f32 1182793728, %v672_v53 }
 0x145   : > { %v644_v22 = vor.u32 %v643_v35, %v642_v61  ;;  %v657_v14 = vshrl.u32 %v656_v41, 20  ;;  %v673_v57 = vand.u32 2147483648, %v5081_v55  ;;  %v680_v13 = vadd.s32 3288858623, %v672_v53 }
 0x146   : > { %v679_v60 = vand.u32 1, %v678_v32  ;;  %v668_v16 = vpack.c.b16 %v624_v51, %v603_v58  ;;  %vm683_vm15 = vcmp.lt.s32.totalorder %v672_v53, 1015021568  ;;  %vm685_vm0 = vcmp.ge.s32.totalorder %v672_v53, 1139277825 }
 0x147   : > { %v659_v25 = vsel %vm658_vm11, %v4345_v54, %v657_v14  ;;  %v4346_v50 = vadd.s32 3112173568, %v675_v11  ;;  %v693_v26 = vand.u32 2147483647, %v5093_v29  ;;  %v645_v35 = vor.u32 4294967040, %v644_v22 }
 0x148   : > { %v661_v31 = vsel %vm660_vm12, 127, %v659_v25  ;;  %v681_v44 = vadd.s32 %v680_v13, %v679_v60  ;;  %v699_v62 = vshrl.u32 %v5093_v29, 20  ;;  %v714_v40 = vand.u32 2147483647, %v5105_v23 }
 0x149   : > { %v663_v63 = vsel %vm662_vm13, 127, %v661_v31  ;;  %v696_v54 = vadd.f32 1182793728, %v693_v26  ;;  %v701_v58 = vadd.s32 3288858623, %v693_v26  ;;  %v689_v51 = vshrl.u32 %v673_v57, 24 }
 0x14a   : > { %v665_v34 = vor.u32 %v664_v46, %v663_v63  ;;  %v682_v47 = vshrl.u32 %v681_v44, 20  ;;  %v694_v41 = vand.u32 2147483648, %v5093_v29  ;;  %v700_v61 = vand.u32 1, %v699_v62 }
 0x14b   : > { %v4347_v0 = vadd.s32 3112173568, %v696_v54  ;;  %vm704_vm2 = vcmp.lt.s32.totalorder %v693_v26, 1015021568  ;;  %v717_v60 = vadd.f32 1182793728, %v714_v40  ;;  %v720_v46 = vshrl.u32 %v5105_v23, 20 }
 0x14c   : > { %v666_v32 = vor.u32 4294967040, %v665_v34  ;;  %v684_v22 = vsel %vm683_vm15, %v4346_v50, %v682_v47  ;;  %v702_v11 = vadd.s32 %v701_v58, %v700_v61  ;;  %v715_v25 = vand.u32 2147483648, %v5105_v23 }
 0x14d   : > { %v686_v14 = vsel %vm685_vm0, 127, %v684_v22  ;;  %v722_v31 = vadd.s32 3288858623, %v714_v40  ;;  %vm706_vm3 = vcmp.ge.s32.totalorder %v693_v26, 1139277825  ;;  %v710_v63 = vshrl.u32 %v694_v41, 24 }
 0x14e   : > { %v669_v13 = vpack.c.b16 %v666_v32, %v645_v35  ;;  %v688_v57 = vsel %vm687_vm14, 127, %v686_v14  ;;  %v703_v44 = vshrl.u32 %v702_v11, 20  ;;  %v721_v50 = vand.u32 1, %v720_v46 }
 0x14f   : > { %v690_v53 = vor.u32 %v689_v51, %v688_v57  ;;  %v4348_v34 = vadd.s32 3112173568, %v717_v60  ;;  %vm725_vm4 = vcmp.lt.s32.totalorder %v714_v40, 1015021568  ;;  %vm727_vm5 = vcmp.ge.s32.totalorder %v714_v40, 1139277825 }
 0x150   : > { %v5297_v62 = vpack.c.b8 %v669_v13, %v668_v16  ;;  %v705_v47 = vsel %vm704_vm2, %v4347_v0, %v703_v44  ;;  %v723_v54 = vadd.s32 %v722_v31, %v721_v50  ;;  %v735_v35 = vand.u32 2147483647, %v5117_v1 }
 0x151   : > { %v707_v55 = vsel %vm706_vm3, 127, %v705_v47  ;;  %vm729_vm6 = vcmp.ne.f32.partialorder %v5105_v23, %v5105_v23  ;;  %v731_v58 = vshrl.u32 %v715_v25, 24  ;;  %v741_v61 = vshrl.u32 %v5117_v1, 20 }
 0x152   : > { %v709_v16 = vsel %vm708_vm1, 127, %v707_v55  ;;  %v724_v51 = vshrl.u32 %v723_v54, 20  ;;  %v738_v41 = vadd.f32 1182793728, %v735_v35  ;;  %v743_v32 = vadd.s32 3288858623, %v735_v35 }
 0x153   : > { %v691_v26 = vor.u32 4294967040, %v690_v53  ;;  %v711_v22 = vor.u32 %v710_v63, %v709_v16  ;;  %v736_v0 = vand.u32 2147483648, %v5117_v1  ;;  %v742_v14 = vand.u32 1, %v741_v61 }
 0x154   : > { %v726_v11 = vsel %vm725_vm4, %v4348_v34, %v724_v51  ;;  %vm746_vm7 = vcmp.lt.s32.totalorder %v735_v35, 1015021568  ;;  %vm750_vm8 = vcmp.ne.f32.partialorder %v5117_v1, %v5117_v1  ;;  %v760_v60 = vand.u32 2147483647, %v5084_v8 }
 0x155   : > { %v712_v46 = vor.u32 4294967040, %v711_v22  ;;  %v728_v29 = vsel %vm727_vm5, 127, %v726_v11  ;;  %v4349_v13 = vadd.s32 3112173568, %v738_v41  ;;  %v744_v57 = vadd.s32 %v743_v32, %v742_v14 }
 0x156   : > { %v730_v25 = vsel %vm729_vm6, 127, %v728_v29  ;;  %v763_v31 = vadd.f32 1182793728, %v760_v60  ;;  %v766_v44 = vshrl.u32 %v5084_v8, 20  ;;  %v768_v63 = vadd.s32 3288858623, %v760_v60 }
 0x157   : > { %v732_v50 = vor.u32 %v731_v58, %v730_v25  ;;  %v745_v53 = vshrl.u32 %v744_v57, 20  ;;  %vm748_vm9 = vcmp.ge.s32.totalorder %v735_v35, 1139277825  ;;  %v752_v34 = vshrl.u32 %v736_v0, 24 }
 0x158   : > { %v756_v47 = vpack.c.b16 %v712_v46, %v691_v26  ;;  %v761_v54 = vand.u32 2147483648, %v5084_v8  ;;  %v767_v55 = vand.u32 1, %v766_v44  ;;  %vm771_vm10 = vcmp.lt.s32.totalorder %v760_v60, 1015021568 }
 0x159   : > { %v747_v40 = vsel %vm746_vm7, %v4349_v13, %v745_v53  ;;  %v4350_v61 = vadd.s32 3112173568, %v763_v31  ;;  %vm773_vm11 = vcmp.ge.s32.totalorder %v760_v60, 1139277825  ;;  %v781_v23 = vand.u32 2147483647, %v5096_v37 }
 0x15a   : > { %v749_v16 = vsel %vm748_vm9, 127, %v747_v40  ;;  %v769_v51 = vadd.s32 %v768_v63, %v767_v55  ;;  %vm775_vm12 = vcmp.ne.f32.partialorder %v5084_v8, %v5084_v8  ;;  %v787_v58 = vshrl.u32 %v5096_v37, 20 }
 0x15b   : > { %v733_v41 = vor.u32 4294967040, %v732_v50  ;;  %v751_v32 = vsel %vm750_vm8, 127, %v749_v16  ;;  %v784_v26 = vadd.f32 1182793728, %v781_v23  ;;  %v789_v22 = vadd.s32 3288858623, %v781_v23 }
 0x15c   : > { %v753_v35 = vor.u32 %v752_v34, %v751_v32  ;;  %v770_v0 = vshrl.u32 %v769_v51, 20  ;;  %v777_v14 = vshrl.u32 %v761_v54, 24  ;;  %v788_v11 = vand.u32 1, %v787_v58 }
 0x15d   : > { %v782_v46 = vand.u32 2147483648, %v5096_v37  ;;  %vm792_vm13 = vcmp.lt.s32.totalorder %v781_v23, 1015021568  ;;  %vm794_vm14 = vcmp.ge.s32.totalorder %v781_v23, 1139277825  ;;  %v802_v29 = vand.u32 2147483647, %v5108_v43 }
 0x15e   : > { %v754_v13 = vor.u32 4294967040, %v753_v35  ;;  %v772_v57 = vsel %vm771_vm10, %v4350_v61, %v770_v0  ;;  %v4351_v25 = vadd.s32 3112173568, %v784_v26  ;;  %v790_v31 = vadd.s32 %v789_v22, %v788_v11 }
 0x15f   : > { %v774_v1 = vsel %vm773_vm11, 127, %v772_v57  ;;  %v805_v44 = vadd.f32 1182793728, %v802_v29  ;;  %v808_v63 = vshrl.u32 %v5108_v43, 20  ;;  %v810_v50 = vadd.s32 3288858623, %v802_v29 }
 0x160   : > { %v757_v53 = vpack.c.b16 %v754_v13, %v733_v41  ;;  %v776_v34 = vsel %vm775_vm12, 127, %v774_v1  ;;  %v791_v54 = vshrl.u32 %v790_v31, 20  ;;  %v803_v55 = vand.u32 2147483648, %v5108_v43 }
 0x161   : > { %vm796_vm15 = vcmp.ne.f32.partialorder %v5096_v37, %v5096_v37  ;;  %v798_v40 = vshrl.u32 %v782_v46, 24  ;;  %v809_v61 = vand.u32 1, %v808_v63  ;;  %vm813_vm0 = vcmp.lt.s32.totalorder %v802_v29, 1015021568 }
 0x162   : > { %v5337_v60 = vpack.c.b8 %v757_v53, %v756_v47  ;;  %v778_v16 = vor.u32 %v777_v14, %v776_v34  ;;  %v793_v51 = vsel %vm792_vm13, %v4351_v25, %v791_v54  ;;  %v4352_v58 = vadd.s32 3112173568, %v805_v44 }
 0x163   : > { %v795_v41 = vsel %vm794_vm14, 127, %v793_v51  ;;  %v811_v32 = vadd.s32 %v810_v50, %v809_v61  ;;  %vm815_vm1 = vcmp.ge.s32.totalorder %v802_v29, 1139277825  ;;  %v823_v8 = vand.u32 2147483647, %v5120_v2 }
 0x164   : > { %v797_v26 = vsel %vm796_vm15, 127, %v795_v41  ;;  %vm817_vm2 = vcmp.ne.f32.partialorder %v5108_v43, %v5108_v43  ;;  %v819_v37 = vshrl.u32 %v803_v55, 24  ;;  %v829_v22 = vshrl.u32 %v5120_v2, 20 }
 0x165   : > { %v799_v35 = vor.u32 %v798_v40, %v797_v26  ;;  %v812_v47 = vshrl.u32 %v811_v32, 20  ;;  %v826_v0 = vadd.f32 1182793728, %v823_v8  ;;  %v831_v14 = vadd.s32 3288858623, %v823_v8 }
 0x166   : > { %v779_v11 = vor.u32 4294967040, %v778_v16  ;;  %v824_v46 = vand.u32 2147483648, %v5120_v2  ;;  %v830_v23 = vand.u32 1, %v829_v22  ;;  %vm838_vm3 = vcmp.ne.f32.partialorder %v5120_v2, %v5120_v2 }
 0x167   : > { %v800_v13 = vor.u32 4294967040, %v799_v35  ;;  %v814_v57 = vsel %vm813_vm0, %v4352_v58, %v812_v47  ;;  %vm834_vm4 = vcmp.lt.s32.totalorder %v823_v8, 1015021568  ;;  %v848_v25 = vand.u32 2147483647, %v5087_v17 }
 0x168   : > { %v816_v31 = vsel %vm815_vm1, 127, %v814_v57  ;;  %v4353_v1 = vadd.s32 3112173568, %v826_v0  ;;  %v832_v44 = vadd.s32 %v831_v14, %v830_v23  ;;  %v854_v63 = vshrl.u32 %v5087_v17, 20 }
 0x169   : > { %v818_v50 = vsel %vm817_vm2, 127, %v816_v31  ;;  %v849_v53 = vand.u32 2147483648, %v5087_v17  ;;  %v851_v34 = vadd.f32 1182793728, %v848_v25  ;;  %v856_v54 = vadd.s32 3288858623, %v848_v25 }
 0x16a   : > { %v833_v55 = vshrl.u32 %v832_v44, 20  ;;  %vm836_vm5 = vcmp.ge.s32.totalorder %v823_v8, 1139277825  ;;  %v840_v40 = vshrl.u32 %v824_v46, 24  ;;  %v855_v61 = vand.u32 1, %v854_v63 }
 0x16b   : > { %v820_v16 = vor.u32 %v819_v37, %v818_v50  ;;  %v844_v51 = vpack.c.b16 %v800_v13, %v779_v11  ;;  %v4354_v29 = vadd.s32 3112173568, %v851_v34  ;;  %vm859_vm6 = vcmp.lt.s32.totalorder %v848_v25, 1015021568 }
 0x16c   : > { %v835_v58 = vsel %vm834_vm4, %v4353_v1, %v833_v55  ;;  %v857_v41 = vadd.s32 %v856_v54, %v855_v61  ;;  %vm861_vm7 = vcmp.ge.s32.totalorder %v848_v25, 1139277825  ;;  %v869_v32 = vand.u32 2147483647, %v5099_v19 }
 0x16d   : > { %v837_v43 = vsel %vm836_vm5, 127, %v835_v58  ;;  %vm863_vm8 = vcmp.ne.f32.partialorder %v5087_v17, %v5087_v17  ;;  %v865_v26 = vshrl.u32 %v849_v53, 24  ;;  %v875_v22 = vshrl.u32 %v5099_v19, 20 }
 0x16e   : > { %v839_v37 = vsel %vm838_vm3, 127, %v837_v43  ;;  %v858_v35 = vshrl.u32 %v857_v41, 20  ;;  %v872_v47 = vadd.f32 1182793728, %v869_v32  ;;  %v877_v0 = vadd.s32 3288858623, %v869_v32 }
 0x16f   : > { %v821_v8 = vor.u32 4294967040, %v820_v16  ;;  %v841_v14 = vor.u32 %v840_v40, %v839_v37  ;;  %v870_v11 = vand.u32 2147483648, %v5099_v19  ;;  %v876_v46 = vand.u32 1, %v875_v22 }
 0x170   : > { %v860_v23 = vsel %vm859_vm6, %v4354_v29, %v858_v35  ;;  %vm880_vm9 = vcmp.lt.s32.totalorder %v869_v32, 1015021568  ;;  %vm884_vm10 = vcmp.ne.f32.partialorder %v5099_v19, %v5099_v19  ;;  %v890_v13 = vand.u32 2147483647, %v5111_v6 }
 0x171   : > { %v842_v57 = vor.u32 4294967040, %v841_v14  ;;  %v862_v2 = vsel %vm861_vm7, 127, %v860_v23  ;;  %v4355_v31 = vadd.s32 3112173568, %v872_v47  ;;  %v878_v1 = vadd.s32 %v877_v0, %v876_v46 }
 0x172   : > { %v864_v44 = vsel %vm863_vm8, 127, %v862_v2  ;;  %v893_v63 = vadd.f32 1182793728, %v890_v13  ;;  %v896_v50 = vshrl.u32 %v5111_v6, 20  ;;  %v898_v53 = vadd.s32 3288858623, %v890_v13 }
 0x173   : > { %v845_v34 = vpack.c.b16 %v842_v57, %v821_v8  ;;  %v879_v54 = vshrl.u32 %v878_v1, 20  ;;  %vm882_vm11 = vcmp.ge.s32.totalorder %v869_v32, 1139277825  ;;  %v886_v55 = vshrl.u32 %v870_v11, 24 }
 0x174   : > { %v866_v40 = vor.u32 %v865_v26, %v864_v44  ;;  %v891_v61 = vand.u32 2147483648, %v5111_v6  ;;  %v897_v16 = vand.u32 1, %v896_v50  ;;  %vm901_vm12 = vcmp.lt.s32.totalorder %v890_v13, 1015021568 }
 0x175   : > { %v5375_v25 = vpack.c.b8 %v845_v34, %v844_v51  ;;  %v881_v29 = vsel %vm880_vm9, %v4355_v31, %v879_v54  ;;  %v4356_v58 = vadd.s32 3112173568, %v893_v63  ;;  %vm903_vm13 = vcmp.ge.s32.totalorder %v890_v13, 1139277825 }
 0x176   : > { %v883_v17 = vsel %vm882_vm11, 127, %v881_v29  ;;  %v899_v41 = vadd.s32 %v898_v53, %v897_v16  ;;  %vm905_vm14 = vcmp.ne.f32.partialorder %v5111_v6, %v5111_v6  ;;  %v911_v43 = vand.u32 2147483647, %v5123_v4 }
 0x177   : > { %v885_v26 = vsel %vm884_vm10, 127, %v883_v17  ;;  %v912_v22 = vand.u32 2147483648, %v5123_v4  ;;  %v917_v51 = vshrl.u32 %v5123_v4, 20  ;;  %v936_v32 = vand.u32 2147483647, %v5126_v3 }
 0x178   : > { %v887_v37 = vor.u32 %v886_v55, %v885_v26  ;;  %v900_v35 = vshrl.u32 %v899_v41, 20  ;;  %v914_v47 = vadd.f32 1182793728, %v911_v43  ;;  %v919_v0 = vadd.s32 3288858623, %v911_v43 }
 0x179   : > { %v867_v8 = vor.u32 4294967040, %v866_v40  ;;  %v907_v14 = vshrl.u32 %v891_v61, 24  ;;  %v918_v11 = vand.u32 1, %v917_v51  ;;  %vm926_vm15 = vcmp.ne.f32.partialorder %v5123_v4, %v5123_v4 }
 0x17a   : > { %v888_v46 = vor.u32 4294967040, %v887_v37  ;;  %v902_v19 = vsel %vm901_vm12, %v4356_v58, %v900_v35  ;;  %v4357_v23 = vadd.s32 3112173568, %v914_v47  ;;  %vm922_vm0 = vcmp.lt.s32.totalorder %v911_v43, 1015021568 }
 0x17b   : > { %v904_v57 = vsel %vm903_vm13, 127, %v902_v19  ;;  %v920_v2 = vadd.s32 %v919_v0, %v918_v11  ;;  %v939_v31 = vadd.f32 1182793728, %v936_v32  ;;  %v942_v1 = vshrl.u32 %v5126_v3, 20 }
 0x17c   : > { %v906_v44 = vsel %vm905_vm14, 127, %v904_v57  ;;  %vm924_vm1 = vcmp.ge.s32.totalorder %v911_v43, 1139277825  ;;  %v928_v63 = vshrl.u32 %v912_v22, 24  ;;  %v944_v50 = vadd.s32 3288858623, %v936_v32 }
 0x17d   : > { %v908_v53 = vor.u32 %v907_v14, %v906_v44  ;;  %v921_v34 = vshrl.u32 %v920_v2, 20  ;;  %v937_v54 = vand.u32 2147483648, %v5126_v3  ;;  %v943_v55 = vand.u32 1, %v942_v1 }
 0x17e   : > { %v932_v40 = vpack.c.b16 %v888_v46, %v867_v8  ;;  %v4358_v61 = vadd.s32 3112173568, %v939_v31  ;;  %vm947_vm2 = vcmp.lt.s32.totalorder %v936_v32, 1015021568  ;;  %v957_v13 = vand.u32 2147483647, %v5138_v12 }
 0x17f   : > { %v923_v16 = vsel %vm922_vm0, %v4357_v23, %v921_v34  ;;  %v945_v29 = vadd.s32 %v944_v50, %v943_v55  ;;  %vm949_vm3 = vcmp.ge.s32.totalorder %v936_v32, 1139277825  ;;  %vm951_vm4 = vcmp.ne.f32.partialorder %v5126_v3, %v5126_v3 }
 0x180   : > { %v925_v6 = vsel %vm924_vm1, 127, %v923_v16  ;;  %v960_v58 = vadd.f32 1182793728, %v957_v13  ;;  %v963_v17 = vshrl.u32 %v5138_v12, 20  ;;  %v965_v41 = vadd.s32 3288858623, %v957_v13 }
 0x181   : > { %v909_v26 = vor.u32 4294967040, %v908_v53  ;;  %v927_v22 = vsel %vm926_vm15, 127, %v925_v6  ;;  %v946_v51 = vshrl.u32 %v945_v29, 20  ;;  %v953_v37 = vshrl.u32 %v937_v54, 24 }
 0x182   : > { %v929_v35 = vor.u32 %v928_v63, %v927_v22  ;;  %v958_v43 = vand.u32 2147483648, %v5138_v12  ;;  %v964_v47 = vand.u32 1, %v963_v17  ;;  %vm968_vm5 = vcmp.lt.s32.totalorder %v957_v13, 1015021568 }
 0x183   : > { %v948_v0 = vsel %vm947_vm2, %v4358_v61, %v946_v51  ;;  %v4359_v8 = vadd.s32 3112173568, %v960_v58  ;;  %vm970_vm6 = vcmp.ge.s32.totalorder %v957_v13, 1139277825  ;;  %v978_v14 = vand.u32 2147483647, %v5150_v24 }
 0x184   : > { %v930_v11 = vor.u32 4294967040, %v929_v35  ;;  %v950_v46 = vsel %vm949_vm3, 127, %v948_v0  ;;  %v966_v19 = vadd.s32 %v965_v41, %v964_v47  ;;  %v984_v4 = vshrl.u32 %v5150_v24, 20 }
 0x185   : > { %v952_v23 = vsel %vm951_vm4, 127, %v950_v46  ;;  %vm972_vm7 = vcmp.ne.f32.partialorder %v5138_v12, %v5138_v12  ;;  %v981_v57 = vadd.f32 1182793728, %v978_v14  ;;  %v986_v2 = vadd.s32 3288858623, %v978_v14 }
 0x186   : > { %v933_v31 = vpack.c.b16 %v930_v11, %v909_v26  ;;  %v967_v1 = vshrl.u32 %v966_v19, 20  ;;  %v979_v44 = vand.u32 2147483648, %v5150_v24  ;;  %v985_v63 = vand.u32 1, %v984_v4 }
 0x187   : > { %v954_v50 = vor.u32 %v953_v37, %v952_v23  ;;  %v974_v32 = vshrl.u32 %v958_v43, 24  ;;  %v4360_v53 = vadd.s32 3112173568, %v981_v57  ;;  %vm989_vm8 = vcmp.lt.s32.totalorder %v978_v14, 1015021568 }
 0x188   : > { %v5415_v34 = vpack.c.b8 %v933_v31, %v932_v40  ;;  %v969_v54 = vsel %vm968_vm5, %v4359_v8, %v967_v1  ;;  %v987_v3 = vadd.s32 %v986_v2, %v985_v63  ;;  %vm991_vm9 = vcmp.ge.s32.totalorder %v978_v14, 1139277825 }
 0x189   : > { %v971_v55 = vsel %vm970_vm6, 127, %v969_v54  ;;  %vm993_vm10 = vcmp.ne.f32.partialorder %v5150_v24, %v5150_v24  ;;  %v999_v61 = vand.u32 2147483647, %v5162_v36  ;;  %v1005_v16 = vshrl.u32 %v5162_v36, 20 }
 0x18a   : > { %v973_v29 = vsel %vm972_vm7, 127, %v971_v55  ;;  %v988_v6 = vshrl.u32 %v987_v3, 20  ;;  %v995_v40 = vshrl.u32 %v979_v44, 24  ;;  %v1024_v58 = vand.u32 2147483647, %v5129_v5 }
 0x18b   : > { %v975_v17 = vor.u32 %v974_v32, %v973_v29  ;;  %v1002_v41 = vadd.f32 1182793728, %v999_v61  ;;  %v1006_v26 = vand.u32 1, %v1005_v16  ;;  %v1007_v13 = vadd.s32 3288858623, %v999_v61 }
 0x18c   : > { %v955_v22 = vor.u32 4294967040, %v954_v50  ;;  %v990_v51 = vsel %vm989_vm8, %v4360_v53, %v988_v6  ;;  %v1000_v37 = vand.u32 2147483648, %v5162_v36  ;;  %vm1014_vm11 = vcmp.ne.f32.partialorder %v5162_v36, %v5162_v36 }
 0x18d   : > { %v976_v35 = vor.u32 4294967040, %v975_v17  ;;  %v992_v12 = vsel %vm991_vm9, 127, %v990_v51  ;;  %v4361_v43 = vadd.s32 3112173568, %v1002_v41  ;;  %v1008_v47 = vadd.s32 %v1007_v13, %v1006_v26 }
 0x18e   : > { %v994_v0 = vsel %vm993_vm10, 127, %v992_v12  ;;  %vm1010_vm12 = vcmp.lt.s32.totalorder %v999_v61, 1015021568  ;;  %v1027_v8 = vadd.f32 1182793728, %v1024_v58  ;;  %v1030_v11 = vshrl.u32 %v5129_v5, 20 }
 0x18f   : > { %v996_v46 = vor.u32 %v995_v40, %v994_v0  ;;  %v1009_v19 = vshrl.u32 %v1008_v47, 20  ;;  %vm1012_vm13 = vcmp.ge.s32.totalorder %v999_v61, 1139277825  ;;  %v1032_v4 = vadd.s32 3288858623, %v1024_v58 }
 0x190   : > { %v1016_v23 = vshrl.u32 %v1000_v37, 24  ;;  %v1020_v57 = vpack.c.b16 %v976_v35, %v955_v22  ;;  %v1025_v2 = vand.u32 2147483648, %v5129_v5  ;;  %v1031_v14 = vand.u32 1, %v1030_v11 }
 0x191   : > { %v1011_v31 = vsel %vm1010_vm12, %v4361_v43, %v1009_v19  ;;  %v4362_v1 = vadd.s32 3112173568, %v1027_v8  ;;  %vm1035_vm14 = vcmp.lt.s32.totalorder %v1024_v58, 1015021568  ;;  %vm1037_vm15 = vcmp.ge.s32.totalorder %v1024_v58, 1139277825 }
 0x192   : > { %v997_v44 = vor.u32 4294967040, %v996_v46  ;;  %v1013_v24 = vsel %vm1012_vm13, 127, %v1011_v31  ;;  %v1033_v63 = vadd.s32 %v1032_v4, %v1031_v14  ;;  %v1045_v50 = vand.u32 2147483647, %v5141_v15 }
 0x193   : > { %v1015_v32 = vsel %vm1014_vm11, 127, %v1013_v24  ;;  %vm1039_vm0 = vcmp.ne.f32.partialorder %v5129_v5, %v5129_v5  ;;  %v1051_v53 = vshrl.u32 %v5141_v15, 20  ;;  %v1066_v54 = vand.u32 2147483647, %v5153_v27 }
 0x194   : > { %v1017_v3 = vor.u32 %v1016_v23, %v1015_v32  ;;  %v1034_v55 = vshrl.u32 %v1033_v63, 20  ;;  %v1048_v61 = vadd.f32 1182793728, %v1045_v50  ;;  %v1053_v16 = vadd.s32 3288858623, %v1045_v50 }
 0x195   : > { %v1041_v29 = vshrl.u32 %v1025_v2, 24  ;;  %v1046_v6 = vand.u32 2147483648, %v5141_v15  ;;  %v1052_v40 = vand.u32 1, %v1051_v53  ;;  %vm1060_vm1 = vcmp.ne.f32.partialorder %v5141_v15, %v5141_v15 }
 0x196   : > { %v1018_v36 = vor.u32 4294967040, %v1017_v3  ;;  %v1036_v17 = vsel %vm1035_vm14, %v4362_v1, %v1034_v55  ;;  %v4363_v41 = vadd.s32 3112173568, %v1048_v61  ;;  %vm1056_vm2 = vcmp.lt.s32.totalorder %v1045_v50, 1015021568 }
 0x197   : > { %v1038_v26 = vsel %vm1037_vm15, 127, %v1036_v17  ;;  %v1054_v13 = vadd.s32 %v1053_v16, %v1052_v40  ;;  %v1069_v22 = vadd.f32 1182793728, %v1066_v54  ;;  %v1072_v51 = vshrl.u32 %v5153_v27, 20 }
 0x198   : > { %v1021_v37 = vpack.c.b16 %v1018_v36, %v997_v44  ;;  %v1040_v35 = vsel %vm1039_vm0, 127, %v1038_v26  ;;  %v1067_v12 = vand.u32 2147483648, %v5153_v27  ;;  %v1074_v43 = vadd.s32 3288858623, %v1066_v54 }
 0x199   : > { %v1055_v47 = vshrl.u32 %v1054_v13, 20  ;;  %vm1058_vm3 = vcmp.ge.s32.totalorder %v1045_v50, 1139277825  ;;  %v1062_v0 = vshrl.u32 %v1046_v6, 24  ;;  %v1073_v8 = vand.u32 1, %v1072_v51 }
 0x19a   : > { %v5455_v11 = vpack.c.b8 %v1021_v37, %v1020_v57  ;;  %v1042_v58 = vor.u32 %v1041_v29, %v1040_v35  ;;  %v4364_v46 = vadd.s32 3112173568, %v1069_v22  ;;  %vm1077_vm4 = vcmp.lt.s32.totalorder %v1066_v54, 1015021568 }
 0x19b   : > { %v1057_v19 = vsel %vm1056_vm2, %v4363_v41, %v1055_v47  ;;  %v1075_v4 = vadd.s32 %v1074_v43, %v1073_v8  ;;  %vm1079_vm5 = vcmp.ge.s32.totalorder %v1066_v54, 1139277825  ;;  %v1087_v23 = vand.u32 2147483647, %v5165_v39 }
 0x19c   : > { %v1059_v5 = vsel %vm1058_vm3, 127, %v1057_v19  ;;  %vm1081_vm6 = vcmp.ne.f32.partialorder %v5153_v27, %v5153_v27  ;;  %v1083_v2 = vshrl.u32 %v1067_v12, 24  ;;  %v1093_v14 = vshrl.u32 %v5165_v39, 20 }
 0x19d   : > { %v1061_v57 = vsel %vm1060_vm1, 127, %v1059_v5  ;;  %v1076_v31 = vshrl.u32 %v1075_v4, 20  ;;  %v1090_v1 = vadd.f32 1182793728, %v1087_v23  ;;  %v1095_v44 = vadd.s32 3288858623, %v1087_v23 }
 0x19e   : > { %v1043_v24 = vor.u32 4294967040, %v1042_v58  ;;  %v1063_v63 = vor.u32 %v1062_v0, %v1061_v57  ;;  %v1088_v50 = vand.u32 2147483648, %v5165_v39  ;;  %v1094_v32 = vand.u32 1, %v1093_v14 }
 0x19f   : > { %v1078_v53 = vsel %vm1077_vm4, %v4364_v46, %v1076_v31  ;;  %vm1098_vm7 = vcmp.lt.s32.totalorder %v1087_v23, 1015021568  ;;  %vm1102_vm8 = vcmp.ne.f32.partialorder %v5165_v39, %v5165_v39  ;;  %v1112_v3 = vand.u32 2147483647, %v5132_v7 }
 0x1a0   : > { %v1064_v55 = vor.u32 4294967040, %v1063_v63  ;;  %v1080_v15 = vsel %vm1079_vm5, 127, %v1078_v53  ;;  %v4365_v61 = vadd.s32 3112173568, %v1090_v1  ;;  %v1096_v16 = vadd.s32 %v1095_v44, %v1094_v32 }
 0x1a1   : > { %v1082_v29 = vsel %vm1081_vm6, 127, %v1080_v15  ;;  %v1115_v6 = vadd.f32 1182793728, %v1112_v3  ;;  %v1118_v40 = vshrl.u32 %v5132_v7, 20  ;;  %v1120_v36 = vadd.s32 3288858623, %v1112_v3 }
 0x1a2   : > { %v1084_v17 = vor.u32 %v1083_v2, %v1082_v29  ;;  %v1097_v41 = vshrl.u32 %v1096_v16, 20  ;;  %vm1100_vm9 = vcmp.ge.s32.totalorder %v1087_v23, 1139277825  ;;  %v1104_v26 = vshrl.u32 %v1088_v50, 24 }
 0x1a3   : > { %v1108_v13 = vpack.c.b16 %v1064_v55, %v1043_v24  ;;  %v1113_v22 = vand.u32 2147483648, %v5132_v7  ;;  %v1119_v51 = vand.u32 1, %v1118_v40  ;;  %vm1123_vm10 = vcmp.lt.s32.totalorder %v1112_v3, 1015021568 }
 0x1a4   : > { %v1099_v54 = vsel %vm1098_vm7, %v4365_v61, %v1097_v41  ;;  %v4366_v37 = vadd.s32 3112173568, %v1115_v6  ;;  %vm1125_vm11 = vcmp.ge.s32.totalorder %v1112_v3, 1139277825  ;;  %v1133_v27 = vand.u32 2147483647, %v5144_v18 }
 0x1a5   : > { %v1101_v35 = vsel %vm1100_vm9, 127, %v1099_v54  ;;  %v1121_v12 = vadd.s32 %v1120_v36, %v1119_v51  ;;  %vm1127_vm12 = vcmp.ne.f32.partialorder %v5132_v7, %v5132_v7  ;;  %v1139_v43 = vshrl.u32 %v5144_v18, 20 }
 0x1a6   : > { %v1085_v47 = vor.u32 4294967040, %v1084_v17  ;;  %v1103_v0 = vsel %vm1102_vm8, 127, %v1101_v35  ;;  %v1136_v8 = vadd.f32 1182793728, %v1133_v27  ;;  %v1141_v58 = vadd.s32 3288858623, %v1133_v27 }
 0x1a7   : > { %v1105_v46 = vor.u32 %v1104_v26, %v1103_v0  ;;  %v1122_v19 = vshrl.u32 %v1121_v12, 20  ;;  %v1129_v4 = vshrl.u32 %v1113_v22, 24  ;;  %v1140_v23 = vand.u32 1, %v1139_v43 }
 0x1a8   : > { %v1134_v5 = vand.u32 2147483648, %v5144_v18  ;;  %vm1144_vm13 = vcmp.lt.s32.totalorder %v1133_v27, 1015021568  ;;  %vm1146_vm14 = vcmp.ge.s32.totalorder %v1133_v27, 1139277825  ;;  %v1154_v2 = vand.u32 2147483647, %v5156_v30 }
 0x1a9   : > { %v1106_v14 = vor.u32 4294967040, %v1105_v46  ;;  %v1124_v57 = vsel %vm1123_vm10, %v4366_v37, %v1122_v19  ;;  %v4367_v31 = vadd.s32 3112173568, %v1136_v8  ;;  %v1142_v1 = vadd.s32 %v1141_v58, %v1140_v23 }
 0x1aa   : > { %v1126_v39 = vsel %vm1125_vm11, 127, %v1124_v57  ;;  %v1157_v44 = vadd.f32 1182793728, %v1154_v2  ;;  %v1160_v24 = vshrl.u32 %v5156_v30, 20  ;;  %v1162_v63 = vadd.s32 3288858623, %v1154_v2 }
 0x1ab   : > { %v1109_v50 = vpack.c.b16 %v1106_v14, %v1085_v47  ;;  %v1128_v32 = vsel %vm1127_vm12, 127, %v1126_v39  ;;  %v1143_v53 = vshrl.u32 %v1142_v1, 20  ;;  %v1155_v55 = vand.u32 2147483648, %v5156_v30 }
 0x1ac   : > { %vm1148_vm15 = vcmp.ne.f32.partialorder %v5144_v18, %v5144_v18  ;;  %v1150_v15 = vshrl.u32 %v1134_v5, 24  ;;  %v1161_v61 = vand.u32 1, %v1160_v24  ;;  %vm1165_vm0 = vcmp.lt.s32.totalorder %v1154_v2, 1015021568 }
 0x1ad   : > { %v5495_v3 = vpack.c.b8 %v1109_v50, %v1108_v13  ;;  %v1130_v16 = vor.u32 %v1129_v4, %v1128_v32  ;;  %v1145_v29 = vsel %vm1144_vm13, %v4367_v31, %v1143_v53  ;;  %v4368_v6 = vadd.s32 3112173568, %v1157_v44 }
 0x1ae   : > { %v1147_v40 = vsel %vm1146_vm14, 127, %v1145_v29  ;;  %v1163_v36 = vadd.s32 %v1162_v63, %v1161_v61  ;;  %vm1167_vm1 = vcmp.ge.s32.totalorder %v1154_v2, 1139277825  ;;  %v1175_v7 = vand.u32 2147483647, %v5168_v42 }
 0x1af   : > { %v1149_v17 = vsel %vm1148_vm15, 127, %v1147_v40  ;;  %vm1169_vm2 = vcmp.ne.f32.partialorder %v5156_v30, %v5156_v30  ;;  %v1171_v18 = vshrl.u32 %v1155_v55, 24  ;;  %v1181_v41 = vshrl.u32 %v5168_v42, 20 }
 0x1b0   : > { %v1151_v26 = vor.u32 %v1150_v15, %v1149_v17  ;;  %v1164_v13 = vshrl.u32 %v1163_v36, 20  ;;  %v1178_v22 = vadd.f32 1182793728, %v1175_v7  ;;  %v1183_v51 = vadd.s32 3288858623, %v1175_v7 }
 0x1b1   : > { %v1131_v54 = vor.u32 4294967040, %v1130_v16  ;;  %v1176_v37 = vand.u32 2147483648, %v5168_v42  ;;  %v1182_v27 = vand.u32 1, %v1181_v41  ;;  %vm1190_vm3 = vcmp.ne.f32.partialorder %v5168_v42, %v5168_v42 }
 0x1b2   : > { %v1152_v35 = vor.u32 4294967040, %v1151_v26  ;;  %v1166_v12 = vsel %vm1165_vm0, %v4368_v6, %v1164_v13  ;;  %vm1186_vm4 = vcmp.lt.s32.totalorder %v1175_v7, 1015021568  ;;  %v1200_v43 = vand.u32 2147483647, %v5135_v9 }
 0x1b3   : > { %v1168_v47 = vsel %vm1167_vm1, 127, %v1166_v12  ;;  %v4369_v0 = vadd.s32 3112173568, %v1178_v22  ;;  %v1184_v8 = vadd.s32 %v1183_v51, %v1182_v27  ;;  %v1206_v58 = vshrl.u32 %v5135_v9, 20 }
 0x1b4   : > { %v1170_v46 = vsel %vm1169_vm2, 127, %v1168_v47  ;;  %v1201_v19 = vand.u32 2147483648, %v5135_v9  ;;  %v1203_v4 = vadd.f32 1182793728, %v1200_v43  ;;  %v1208_v23 = vadd.s32 3288858623, %v1200_v43 }
 0x1b5   : > { %v1185_v5 = vshrl.u32 %v1184_v8, 20  ;;  %vm1188_vm5 = vcmp.ge.s32.totalorder %v1175_v7, 1139277825  ;;  %v1192_v14 = vshrl.u32 %v1176_v37, 24  ;;  %v1207_v57 = vand.u32 1, %v1206_v58 }
 0x1b6   : > { %v1172_v31 = vor.u32 %v1171_v18, %v1170_v46  ;;  %v1196_v1 = vpack.c.b16 %v1152_v35, %v1131_v54  ;;  %v4370_v2 = vadd.s32 3112173568, %v1203_v4  ;;  %vm1211_vm6 = vcmp.lt.s32.totalorder %v1200_v43, 1015021568 }
 0x1b7   : > { %v1187_v39 = vsel %vm1186_vm4, %v4369_v0, %v1185_v5  ;;  %v1209_v44 = vadd.s32 %v1208_v23, %v1207_v57  ;;  %vm1213_vm7 = vcmp.ge.s32.totalorder %v1200_v43, 1139277825  ;;  %v1221_v24 = vand.u32 2147483647, %v5147_v21 }
 0x1b8   : > { %v1189_v30 = vsel %vm1188_vm5, 127, %v1187_v39  ;;  %vm1215_vm8 = vcmp.ne.f32.partialorder %v5135_v9, %v5135_v9  ;;  %v1217_v63 = vshrl.u32 %v1201_v19, 24  ;;  %v1227_v50 = vshrl.u32 %v5147_v21, 20 }
 0x1b9   : > { %v1191_v32 = vsel %vm1190_vm3, 127, %v1189_v30  ;;  %v1210_v53 = vshrl.u32 %v1209_v44, 20  ;;  %v1224_v55 = vadd.f32 1182793728, %v1221_v24  ;;  %v1229_v15 = vadd.s32 3288858623, %v1221_v24 }
 0x1ba   : > { %v1173_v61 = vor.u32 4294967040, %v1172_v31  ;;  %v1193_v16 = vor.u32 %v1192_v14, %v1191_v32  ;;  %v1222_v29 = vand.u32 2147483648, %v5147_v21  ;;  %v1228_v6 = vand.u32 1, %v1227_v50 }
 0x1bb   : > { %v1212_v40 = vsel %vm1211_vm6, %v4370_v2, %v1210_v53  ;;  %vm1232_vm9 = vcmp.lt.s32.totalorder %v1221_v24, 1015021568  ;;  %vm1236_vm10 = vcmp.ne.f32.partialorder %v5147_v21, %v5147_v21  ;;  %v1242_v36 = vand.u32 2147483647, %v5159_v33 }
 0x1bc   : > { %v1194_v7 = vor.u32 4294967040, %v1193_v16  ;;  %v1214_v42 = vsel %vm1213_vm7, 127, %v1212_v40  ;;  %v4371_v17 = vadd.s32 3112173568, %v1224_v55  ;;  %v1230_v18 = vadd.s32 %v1229_v15, %v1228_v6 }
 0x1bd   : > { %v1216_v41 = vsel %vm1215_vm8, 127, %v1214_v42  ;;  %v1245_v26 = vadd.f32 1182793728, %v1242_v36  ;;  %v1248_v13 = vshrl.u32 %v5159_v33, 20  ;;  %v1250_v22 = vadd.s32 3288858623, %v1242_v36 }
 0x1be   : > { %v1197_v51 = vpack.c.b16 %v1194_v7, %v1173_v61  ;;  %v1231_v54 = vshrl.u32 %v1230_v18, 20  ;;  %vm1234_vm11 = vcmp.ge.s32.totalorder %v1221_v24, 1139277825  ;;  %v1238_v37 = vshrl.u32 %v1222_v29, 24 }
 0x1bf   : > { %v1218_v27 = vor.u32 %v1217_v63, %v1216_v41  ;;  %v1243_v35 = vand.u32 2147483648, %v5159_v33  ;;  %v1249_v12 = vand.u32 1, %v1248_v13  ;;  %vm1253_vm12 = vcmp.lt.s32.totalorder %v1242_v36, 1015021568 }
 0x1c0   : > { %v5533_v43 = vpack.c.b8 %v1197_v51, %v1196_v1  ;;  %v1233_v47 = vsel %vm1232_vm9, %v4371_v17, %v1231_v54  ;;  %v4372_v0 = vadd.s32 3112173568, %v1245_v26  ;;  %vm1255_vm13 = vcmp.ge.s32.totalorder %v1242_v36, 1139277825 }
 0x1c1   : > { %v1235_v9 = vsel %vm1234_vm11, 127, %v1233_v47  ;;  %v1251_v8 = vadd.s32 %v1250_v22, %v1249_v12  ;;  %vm1257_vm14 = vcmp.ne.f32.partialorder %v5159_v33, %v5159_v33  ;;  %v1263_v58 = vand.u32 2147483647, %v5171_v45 }
 0x1c2   : > { %v1237_v46 = vsel %vm1236_vm10, 127, %v1235_v9  ;;  %v1264_v19 = vand.u32 2147483648, %v5171_v45  ;;  %v1269_v4 = vshrl.u32 %v5171_v45, 20  ;;  %v1288_v23 = vand.u32 2147483647, %v5174_v48 }
 0x1c3   : > { %v1239_v5 = vor.u32 %v1238_v37, %v1237_v46  ;;  %v1252_v14 = vshrl.u32 %v1251_v8, 20  ;;  %v1266_v57 = vadd.f32 1182793728, %v1263_v58  ;;  %v1271_v31 = vadd.s32 3288858623, %v1263_v58 }
 0x1c4   : > { %v1219_v1 = vor.u32 4294967040, %v1218_v27  ;;  %v1259_v2 = vshrl.u32 %v1243_v35, 24  ;;  %v1270_v39 = vand.u32 1, %v1269_v4  ;;  %vm1278_vm15 = vcmp.ne.f32.partialorder %v5171_v45, %v5171_v45 }
 0x1c5   : > { %v1240_v44 = vor.u32 4294967040, %v1239_v5  ;;  %v1254_v21 = vsel %vm1253_vm12, %v4372_v0, %v1252_v14  ;;  %v4373_v24 = vadd.s32 3112173568, %v1266_v57  ;;  %vm1274_vm0 = vcmp.lt.s32.totalorder %v1263_v58, 1015021568 }
 0x1c6   : > { %v1256_v30 = vsel %vm1255_vm13, 127, %v1254_v21  ;;  %v1272_v63 = vadd.s32 %v1271_v31, %v1270_v39  ;;  %v1291_v50 = vadd.f32 1182793728, %v1288_v23  ;;  %v1294_v32 = vshrl.u32 %v5174_v48, 20 }
 0x1c7   : > { %v1258_v53 = vsel %vm1257_vm14, 127, %v1256_v30  ;;  %vm1276_vm1 = vcmp.ge.s32.totalorder %v1263_v58, 1139277825  ;;  %v1280_v55 = vshrl.u32 %v1264_v19, 24  ;;  %v1296_v15 = vadd.s32 3288858623, %v1288_v23 }
 0x1c8   : > { %v1260_v61 = vor.u32 %v1259_v2, %v1258_v53  ;;  %v1273_v16 = vshrl.u32 %v1272_v63, 20  ;;  %v1289_v29 = vand.u32 2147483648, %v5174_v48  ;;  %v1295_v6 = vand.u32 1, %v1294_v32 }
 0x1c9   : > { %v1284_v40 = vpack.c.b16 %v1240_v44, %v1219_v1  ;;  %v4374_v7 = vadd.s32 3112173568, %v1291_v50  ;;  %vm1299_vm2 = vcmp.lt.s32.totalorder %v1288_v23, 1015021568  ;;  %v1309_v36 = vand.u32 2147483647, %v5186_v56 }
 0x1ca   : > { %v1275_v42 = vsel %vm1274_vm0, %v4373_v24, %v1273_v16  ;;  %v1297_v17 = vadd.s32 %v1296_v15, %v1295_v6  ;;  %vm1301_vm3 = vcmp.ge.s32.totalorder %v1288_v23, 1139277825  ;;  %vm1303_vm4 = vcmp.ne.f32.partialorder %v5174_v48, %v5174_v48 }
 0x1cb   : > { %v1277_v33 = vsel %vm1276_vm1, 127, %v1275_v42  ;;  %v1312_v18 = vadd.f32 1182793728, %v1309_v36  ;;  %v1315_v41 = vshrl.u32 %v5186_v56, 20  ;;  %v1317_v26 = vadd.s32 3288858623, %v1309_v36 }
 0x1cc   : > { %v1261_v13 = vor.u32 4294967040, %v1260_v61  ;;  %v1279_v22 = vsel %vm1278_vm15, 127, %v1277_v33  ;;  %v1298_v51 = vshrl.u32 %v1297_v17, 20  ;;  %v1305_v54 = vshrl.u32 %v1289_v29, 24 }
 0x1cd   : > { %v1281_v37 = vor.u32 %v1280_v55, %v1279_v22  ;;  %v1310_v27 = vand.u32 2147483648, %v5186_v56  ;;  %v1316_v35 = vand.u32 1, %v1315_v41  ;;  %vm1320_vm5 = vcmp.lt.s32.totalorder %v1309_v36, 1015021568 }
 0x1ce   : > { %v1300_v12 = vsel %vm1299_vm2, %v4374_v7, %v1298_v51  ;;  %v4375_v47 = vadd.s32 3112173568, %v1312_v18  ;;  %vm1322_vm6 = vcmp.ge.s32.totalorder %v1309_v36, 1139277825  ;;  %v1330_v0 = vand.u32 2147483647, %v5198_v10 }
 0x1cf   : > { %v1282_v9 = vor.u32 4294967040, %v1281_v37  ;;  %v1302_v8 = vsel %vm1301_vm3, 127, %v1300_v12  ;;  %v1318_v58 = vadd.s32 %v1317_v26, %v1316_v35  ;;  %v1336_v45 = vshrl.u32 %v5198_v10, 20 }
 0x1d0   : > { %v1304_v46 = vsel %vm1303_vm4, 127, %v1302_v8  ;;  %vm1324_vm7 = vcmp.ne.f32.partialorder %v5186_v56, %v5186_v56  ;;  %v1333_v19 = vadd.f32 1182793728, %v1330_v0  ;;  %v1338_v4 = vadd.s32 3288858623, %v1330_v0 }
 0x1d1   : > { %v1285_v5 = vpack.c.b16 %v1282_v9, %v1261_v13  ;;  %v1319_v14 = vshrl.u32 %v1318_v58, 20  ;;  %v1331_v57 = vand.u32 2147483648, %v5198_v10  ;;  %v1337_v31 = vand.u32 1, %v1336_v45 }
 0x1d2   : > { %v1306_v1 = vor.u32 %v1305_v54, %v1304_v46  ;;  %v1326_v23 = vshrl.u32 %v1310_v27, 24  ;;  %v4376_v2 = vadd.s32 3112173568, %v1333_v19  ;;  %vm1341_vm8 = vcmp.lt.s32.totalorder %v1330_v0, 1015021568 }
 0x1d3   : > { %v5573_v39 = vpack.c.b8 %v1285_v5, %v1284_v40  ;;  %v1321_v44 = vsel %vm1320_vm5, %v4375_v47, %v1319_v14  ;;  %v1339_v48 = vadd.s32 %v1338_v4, %v1337_v31  ;;  %vm1343_vm9 = vcmp.ge.s32.totalorder %v1330_v0, 1139277825 }
 0x1d4   : > { %v1323_v21 = vsel %vm1322_vm6, 127, %v1321_v44  ;;  %vm1345_vm10 = vcmp.ne.f32.partialorder %v5198_v10, %v5198_v10  ;;  %v1351_v24 = vand.u32 2147483647, %v5210_v28  ;;  %v1357_v30 = vshrl.u32 %v5210_v28, 20 }
 0x1d5   : > { %v1325_v63 = vsel %vm1324_vm7, 127, %v1323_v21  ;;  %v1340_v50 = vshrl.u32 %v1339_v48, 20  ;;  %v1347_v32 = vshrl.u32 %v1331_v57, 24  ;;  %v1376_v53 = vand.u32 2147483647, %v5177_v49 }
 0x1d6   : > { %v1327_v55 = vor.u32 %v1326_v23, %v1325_v63  ;;  %v1354_v15 = vadd.f32 1182793728, %v1351_v24  ;;  %v1358_v61 = vand.u32 1, %v1357_v30  ;;  %v1359_v16 = vadd.s32 3288858623, %v1351_v24 }
 0x1d7   : > { %v1307_v29 = vor.u32 4294967040, %v1306_v1  ;;  %v1342_v6 = vsel %vm1341_vm8, %v4376_v2, %v1340_v50  ;;  %v1352_v40 = vand.u32 2147483648, %v5210_v28  ;;  %vm1366_vm11 = vcmp.ne.f32.partialorder %v5210_v28, %v5210_v28 }
 0x1d8   : > { %v1328_v7 = vor.u32 4294967040, %v1327_v55  ;;  %v1344_v56 = vsel %vm1343_vm9, 127, %v1342_v6  ;;  %v4377_v36 = vadd.s32 3112173568, %v1354_v15  ;;  %v1360_v42 = vadd.s32 %v1359_v16, %v1358_v61 }
 0x1d9   : > { %v1346_v17 = vsel %vm1345_vm10, 127, %v1344_v56  ;;  %vm1362_vm12 = vcmp.lt.s32.totalorder %v1351_v24, 1015021568  ;;  %v1379_v33 = vadd.f32 1182793728, %v1376_v53  ;;  %v1382_v18 = vshrl.u32 %v5177_v49, 20 }
 0x1da   : > { %v1348_v41 = vor.u32 %v1347_v32, %v1346_v17  ;;  %v1361_v26 = vshrl.u32 %v1360_v42, 20  ;;  %vm1364_vm13 = vcmp.ge.s32.totalorder %v1351_v24, 1139277825  ;;  %v1384_v13 = vadd.s32 3288858623, %v1376_v53 }
 0x1db   : > { %v1368_v22 = vshrl.u32 %v1352_v40, 24  ;;  %v1372_v51 = vpack.c.b16 %v1328_v7, %v1307_v29  ;;  %v1377_v54 = vand.u32 2147483648, %v5177_v49  ;;  %v1383_v37 = vand.u32 1, %v1382_v18 }
 0x1dc   : > { %v1363_v27 = vsel %vm1362_vm12, %v4377_v36, %v1361_v26  ;;  %v4378_v35 = vadd.s32 3112173568, %v1379_v33  ;;  %vm1387_vm14 = vcmp.lt.s32.totalorder %v1376_v53, 1015021568  ;;  %vm1389_vm15 = vcmp.ge.s32.totalorder %v1376_v53, 1139277825 }
 0x1dd   : > { %v1349_v12 = vor.u32 4294967040, %v1348_v41  ;;  %v1365_v10 = vsel %vm1364_vm13, 127, %v1363_v27  ;;  %v1385_v47 = vadd.s32 %v1384_v13, %v1383_v37  ;;  %v1397_v0 = vand.u32 2147483647, %v5189_v59 }
 0x1de   : > { %v1367_v9 = vsel %vm1366_vm11, 127, %v1365_v10  ;;  %vm1391_vm0 = vcmp.ne.f32.partialorder %v5177_v49, %v5177_v49  ;;  %v1403_v8 = vshrl.u32 %v5189_v59, 20  ;;  %v1418_v58 = vand.u32 2147483647, %v5201_v20 }
 0x1df   : > { %v1369_v45 = vor.u32 %v1368_v22, %v1367_v9  ;;  %v1386_v46 = vshrl.u32 %v1385_v47, 20  ;;  %v1400_v19 = vadd.f32 1182793728, %v1397_v0  ;;  %v1405_v4 = vadd.s32 3288858623, %v1397_v0 }
 0x1e0   : > { %v1393_v5 = vshrl.u32 %v1377_v54, 24  ;;  %v1398_v14 = vand.u32 2147483648, %v5189_v59  ;;  %v1404_v57 = vand.u32 1, %v1403_v8  ;;  %vm1412_vm1 = vcmp.ne.f32.partialorder %v5189_v59, %v5189_v59 }
 0x1e1   : > { %v1370_v28 = vor.u32 4294967040, %v1369_v45  ;;  %v1388_v31 = vsel %vm1387_vm14, %v4378_v35, %v1386_v46  ;;  %v4379_v1 = vadd.s32 3112173568, %v1400_v19  ;;  %vm1408_vm2 = vcmp.lt.s32.totalorder %v1397_v0, 1015021568 }
 0x1e2   : > { %v1390_v23 = vsel %vm1389_vm15, 127, %v1388_v31  ;;  %v1406_v2 = vadd.s32 %v1405_v4, %v1404_v57  ;;  %v1421_v44 = vadd.f32 1182793728, %v1418_v58  ;;  %v1424_v48 = vshrl.u32 %v5201_v20, 20  ;;  %v7080_v4 = vld [vmem:[#allocation82_spill] sm:$0xff] }
 0x1e3   : > { %v1373_v21 = vpack.c.b16 %v1370_v28, %v1349_v12  ;;  %v1392_v24 = vsel %vm1391_vm0, 127, %v1390_v23  ;;  %v1419_v30 = vand.u32 2147483648, %v5201_v20  ;;  %v1426_v63 = vadd.s32 3288858623, %v1418_v58 }
 0x1e4   : > { %v1407_v50 = vshrl.u32 %v1406_v2, 20  ;;  %vm1410_vm3 = vcmp.ge.s32.totalorder %v1397_v0, 1139277825  ;;  %v1414_v32 = vshrl.u32 %v1398_v14, 24  ;;  %v1425_v55 = vand.u32 1, %v1424_v48 }
 0x1e5   : > { %v5613_v15 = vpack.c.b8 %v1373_v21, %v1372_v51  ;;  %v1394_v53 = vor.u32 %v1393_v5, %v1392_v24  ;;  %v4380_v61 = vadd.s32 3112173568, %v1421_v44  ;;  %vm1429_vm4 = vcmp.lt.s32.totalorder %v1418_v58, 1015021568 }
 0x1e6   : > { %v1409_v16 = vsel %vm1408_vm2, %v4379_v1, %v1407_v50  ;;  %v1427_v29 = vadd.s32 %v1426_v63, %v1425_v55  ;;  %vm1431_vm5 = vcmp.ge.s32.totalorder %v1418_v58, 1139277825  ;;  %v1439_v6 = vand.u32 2147483647, %v5213_v38 }
 0x1e7   : > { %v1411_v49 = vsel %vm1410_vm3, 127, %v1409_v16  ;;  %vm1433_vm6 = vcmp.ne.f32.partialorder %v5201_v20, %v5201_v20  ;;  %v1435_v40 = vshrl.u32 %v1419_v30, 24  ;;  %v1445_v7 = vshrl.u32 %v5213_v38, 20  ;;  %v7081_v30 = vld [vmem:[#allocation84_spill] sm:$0xff] }
 0x1e8   : > { %v1413_v56 = vsel %vm1412_vm1, 127, %v1411_v49  ;;  %v1428_v36 = vshrl.u32 %v1427_v29, 20  ;;  %v1442_v42 = vadd.f32 1182793728, %v1439_v6  ;;  %v1447_v17 = vadd.s32 3288858623, %v1439_v6 }
 0x1e9   : > { %v1395_v33 = vor.u32 4294967040, %v1394_v53  ;;  %v1415_v18 = vor.u32 %v1414_v32, %v1413_v56  ;;  %v1440_v41 = vand.u32 2147483648, %v5213_v38  ;;  %v1446_v26 = vand.u32 1, %v1445_v7 }
 0x1ea   : > { %v1430_v13 = vsel %vm1429_vm4, %v4380_v61, %v1428_v36  ;;  %vm1450_vm7 = vcmp.lt.s32.totalorder %v1439_v6, 1015021568  ;;  %vm1454_vm8 = vcmp.ne.f32.partialorder %v5213_v38, %v5213_v38  ;;  %v1464_v22 = vand.u32 2147483647, %v5180_v52 }
 0x1eb   : > { %v1416_v51 = vor.u32 4294967040, %v1415_v18  ;;  %v1432_v59 = vsel %vm1431_vm5, 127, %v1430_v13  ;;  %v4381_v54 = vadd.s32 3112173568, %v1442_v42  ;;  %v1448_v37 = vadd.s32 %v1447_v17, %v1446_v26 }
 0x1ec   : > { %v1434_v27 = vsel %vm1433_vm6, 127, %v1432_v59  ;;  %v1467_v35 = vadd.f32 1182793728, %v1464_v22  ;;  %v1470_v12 = vshrl.u32 %v5180_v52, 20  ;;  %v1472_v10 = vadd.s32 3288858623, %v1464_v22 }
 0x1ed   : > { %v1436_v47 = vor.u32 %v1435_v40, %v1434_v27  ;;  %v1449_v0 = vshrl.u32 %v1448_v37, 20  ;;  %vm1452_vm9 = vcmp.ge.s32.totalorder %v1439_v6, 1139277825  ;;  %v1456_v9 = vshrl.u32 %v1440_v41, 24 }
 0x1ee   : > { %v1460_v8 = vpack.c.b16 %v1416_v51, %v1395_v33  ;;  %v1465_v45 = vand.u32 2147483648, %v5180_v52  ;;  %v1471_v46 = vand.u32 1, %v1470_v12  ;;  %vm1475_vm10 = vcmp.lt.s32.totalorder %v1464_v22, 1015021568 }
 0x1ef   : > { %v1451_v58 = vsel %vm1450_vm7, %v4381_v54, %v1449_v0  ;;  %v4382_v19 = vadd.s32 3112173568, %v1467_v35  ;;  %vm1477_vm11 = vcmp.ge.s32.totalorder %v1464_v22, 1139277825  ;;  %v1485_v20 = vand.u32 2147483647, %v7080_v4 }
 0x1f0   : > { %v1453_v5 = vsel %vm1452_vm9, 127, %v1451_v58  ;;  %v1473_v14 = vadd.s32 %v1472_v10, %v1471_v46  ;;  %vm1479_vm12 = vcmp.ne.f32.partialorder %v5180_v52, %v5180_v52  ;;  %v1491_v57 = vshrl.u32 %v7080_v4, 20  ;;  %v7082_v52 = vld [vmem:[#allocation86_spill] sm:$0xff] }
 0x1f1   : > { %v1437_v28 = vor.u32 4294967040, %v1436_v47  ;;  %v1455_v31 = vsel %vm1454_vm8, 127, %v1453_v5  ;;  %v1488_v1 = vadd.f32 1182793728, %v1485_v20  ;;  %v1493_v23 = vadd.s32 3288858623, %v1485_v20 }
 0x1f2   : > { %v1457_v2 = vor.u32 %v1456_v9, %v1455_v31  ;;  %v1474_v44 = vshrl.u32 %v1473_v14, 20  ;;  %v1481_v48 = vshrl.u32 %v1465_v45, 24  ;;  %v1492_v21 = vand.u32 1, %v1491_v57 }
 0x1f3   : > { %v1486_v24 = vand.u32 2147483648, %v7080_v4  ;;  %vm1496_vm13 = vcmp.lt.s32.totalorder %v1485_v20, 1015021568  ;;  %vm1498_vm14 = vcmp.ge.s32.totalorder %v1485_v20, 1139277825  ;;  %v1506_v63 = vand.u32 2147483647, %v7081_v30 }
 0x1f4   : > { %v1458_v50 = vor.u32 4294967040, %v1457_v2  ;;  %v1476_v32 = vsel %vm1475_vm10, %v4382_v19, %v1474_v44  ;;  %v4383_v55 = vadd.s32 3112173568, %v1488_v1  ;;  %v1494_v53 = vadd.s32 %v1493_v23, %v1492_v21 }
 0x1f5   : > { %v1478_v38 = vsel %vm1477_vm11, 127, %v1476_v32  ;;  %v1509_v61 = vadd.f32 1182793728, %v1506_v63  ;;  %v1512_v16 = vshrl.u32 %v7081_v30, 20  ;;  %v1514_v29 = vadd.s32 3288858623, %v1506_v63 }
 0x1f6   : > { %v1461_v6 = vpack.c.b16 %v1458_v50, %v1437_v28  ;;  %v1480_v49 = vsel %vm1479_vm12, 127, %v1478_v38  ;;  %v1495_v40 = vshrl.u32 %v1494_v53, 20  ;;  %v1507_v7 = vand.u32 2147483648, %v7081_v30 }
 0x1f7   : > { %vm1500_vm15 = vcmp.ne.f32.partialorder %v7080_v4, %v7080_v4  ;;  %v1502_v56 = vshrl.u32 %v1486_v24, 24  ;;  %v1513_v36 = vand.u32 1, %v1512_v16  ;;  %vm1517_vm0 = vcmp.lt.s32.totalorder %v1506_v63, 1015021568  ;;  %v7084_v24 = vld [vmem:[#allocation83_spill] sm:$0xff] }
 0x1f8   : > { %v5653_v42 = vpack.c.b8 %v1461_v6, %v1460_v8  ;;  %v1482_v17 = vor.u32 %v1481_v48, %v1480_v49  ;;  %v1497_v33 = vsel %vm1496_vm13, %v4383_v55, %v1495_v40  ;;  %v4384_v18 = vadd.s32 3112173568, %v1509_v61  ;;  %v7083_v8 = vld [vmem:[#allocation81_spill] sm:$0xff] }
 0x1f9   : > { %v1499_v41 = vsel %vm1498_vm14, 127, %v1497_v33  ;;  %v1515_v26 = vadd.s32 %v1514_v29, %v1513_v36  ;;  %vm1519_vm1 = vcmp.ge.s32.totalorder %v1506_v63, 1139277825  ;;  %v1527_v13 = vand.u32 2147483647, %v7082_v52 }
 0x1fa   : > { %v1501_v22 = vsel %vm1500_vm15, 127, %v1499_v41  ;;  %vm1521_vm2 = vcmp.ne.f32.partialorder %v7081_v30, %v7081_v30  ;;  %v1523_v51 = vshrl.u32 %v1507_v7, 24  ;;  %v1533_v59 = vshrl.u32 %v7082_v52, 20  ;;  %v7085_v7 = vld [vmem:[#allocation85_spill] sm:$0xff] }
 0x1fb   : > { %v1503_v54 = vor.u32 %v1502_v56, %v1501_v22  ;;  %v1516_v37 = vshrl.u32 %v1515_v26, 20  ;;  %v1530_v27 = vadd.f32 1182793728, %v1527_v13  ;;  %v1535_v35 = vadd.s32 3288858623, %v1527_v13 }
 0x1fc   : > { %v1483_v12 = vor.u32 4294967040, %v1482_v17  ;;  %v1528_v10 = vand.u32 2147483648, %v7082_v52  ;;  %v1534_v47 = vand.u32 1, %v1533_v59  ;;  %vm1542_vm3 = vcmp.ne.f32.partialorder %v7082_v52, %v7082_v52 }
 0x1fd   : > { %v1504_v0 = vor.u32 4294967040, %v1503_v54  ;;  %v1518_v9 = vsel %vm1517_vm0, %v4384_v18, %v1516_v37  ;;  %vm1538_vm4 = vcmp.lt.s32.totalorder %v1527_v13, 1015021568  ;;  %v1552_v45 = vand.u32 2147483647, %v7083_v8 }
 0x1fe   : > { %v1520_v46 = vsel %vm1519_vm1, 127, %v1518_v9  ;;  %v4385_v58 = vadd.s32 3112173568, %v1530_v27  ;;  %v1536_v19 = vadd.s32 %v1535_v35, %v1534_v47  ;;  %v1558_v4 = vshrl.u32 %v7083_v8, 20  ;;  %v7086_v9 = vld [vmem:[#allocation87_spill] sm:$0xff] }
 0x1ff   : > { %v1522_v20 = vsel %vm1521_vm2, 127, %v1520_v46  ;;  %v1553_v5 = vand.u32 2147483648, %v7083_v8  ;;  %v1555_v14 = vadd.f32 1182793728, %v1552_v45  ;;  %v1560_v57 = vadd.s32 3288858623, %v1552_v45 }
 0x200   : > { %v1537_v28 = vshrl.u32 %v1536_v19, 20  ;;  %vm1540_vm5 = vcmp.ge.s32.totalorder %v1527_v13, 1139277825  ;;  %v1544_v31 = vshrl.u32 %v1528_v10, 24  ;;  %v1559_v1 = vand.u32 1, %v1558_v4  ;;  %v7087_v19 = vld [vmem:[#allocation88_spill] sm:$0xff] }
 0x201   : > { %v1524_v23 = vor.u32 %v1523_v51, %v1522_v20  ;;  %v1548_v2 = vpack.c.b16 %v1504_v0, %v1483_v12  ;;  %v4386_v44 = vadd.s32 3112173568, %v1555_v14  ;;  %vm1563_vm6 = vcmp.lt.s32.totalorder %v1552_v45, 1015021568 }
 0x202   : > { %v1539_v48 = vsel %vm1538_vm4, %v4385_v58, %v1537_v28  ;;  %v1561_v21 = vadd.s32 %v1560_v57, %v1559_v1  ;;  %vm1565_vm7 = vcmp.ge.s32.totalorder %v1552_v45, 1139277825  ;;  %v1573_v63 = vand.u32 2147483647, %v7084_v24 }
 0x203   : > { %v1541_v30 = vsel %vm1540_vm5, 127, %v1539_v48  ;;  %vm1567_vm8 = vcmp.ne.f32.partialorder %v7083_v8, %v7083_v8  ;;  %v1569_v50 = vshrl.u32 %v1553_v5, 24  ;;  %v1579_v32 = vshrl.u32 %v7084_v24, 20 }
 0x204   : > { %v1543_v55 = vsel %vm1542_vm3, 127, %v1541_v30  ;;  %v1562_v53 = vshrl.u32 %v1561_v21, 20  ;;  %v1576_v38 = vadd.f32 1182793728, %v1573_v63  ;;  %v1581_v61 = vadd.s32 3288858623, %v1573_v63 }
 0x205   : > { %v1525_v16 = vor.u32 4294967040, %v1524_v23  ;;  %v1545_v29 = vor.u32 %v1544_v31, %v1543_v55  ;;  %v1574_v6 = vand.u32 2147483648, %v7084_v24  ;;  %v1580_v49 = vand.u32 1, %v1579_v32 }
 0x206   : > { %v1564_v40 = vsel %vm1563_vm6, %v4386_v44, %v1562_v53  ;;  %vm1584_vm9 = vcmp.lt.s32.totalorder %v1573_v63, 1015021568  ;;  %vm1588_vm10 = vcmp.ne.f32.partialorder %v7084_v24, %v7084_v24  ;;  %v1594_v56 = vand.u32 2147483647, %v7085_v7 }
 0x207   : > { %v1546_v36 = vor.u32 4294967040, %v1545_v29  ;;  %v1566_v17 = vsel %vm1565_vm7, 127, %v1564_v40  ;;  %v4387_v33 = vadd.s32 3112173568, %v1576_v38  ;;  %v1582_v18 = vadd.s32 %v1581_v61, %v1580_v49 }
 0x208   : > { %v1568_v41 = vsel %vm1567_vm8, 127, %v1566_v17  ;;  %v1597_v26 = vadd.f32 1182793728, %v1594_v56  ;;  %v1600_v52 = vshrl.u32 %v7085_v7, 20  ;;  %v1602_v13 = vadd.s32 3288858623, %v1594_v56 }
 0x209   : > { %v1549_v22 = vpack.c.b16 %v1546_v36, %v1525_v16  ;;  %v1583_v51 = vshrl.u32 %v1582_v18, 20  ;;  %vm1586_vm11 = vcmp.ge.s32.totalorder %v1573_v63, 1139277825  ;;  %v1590_v59 = vshrl.u32 %v1574_v6, 24  ;;  %v7088_v6 = vld [vmem:[#allocation91_spill] sm:$0xff] }
 0x20a   : > { %v1570_v54 = vor.u32 %v1569_v50, %v1568_v41  ;;  %v1595_v37 = vand.u32 2147483648, %v7085_v7  ;;  %v1601_v27 = vand.u32 1, %v1600_v52  ;;  %vm1605_vm12 = vcmp.lt.s32.totalorder %v1594_v56, 1015021568 }
 0x20b   : > { %v5691_v35 = vpack.c.b8 %v1549_v22, %v1548_v2  ;;  %v1585_v12 = vsel %vm1584_vm9, %v4387_v33, %v1583_v51  ;;  %v4388_v10 = vadd.s32 3112173568, %v1597_v26  ;;  %vm1607_vm13 = vcmp.ge.s32.totalorder %v1594_v56, 1139277825 }
 0x20c   : > { %v1587_v47 = vsel %vm1586_vm11, 127, %v1585_v12  ;;  %v1603_v0 = vadd.s32 %v1602_v13, %v1601_v27  ;;  %vm1609_vm14 = vcmp.ne.f32.partialorder %v7085_v7, %v7085_v7  ;;  %v1615_v8 = vand.u32 2147483647, %v7086_v9 }
 0x20d   : > { %v1589_v45 = vsel %vm1588_vm10, 127, %v1587_v47  ;;  %v1616_v46 = vand.u32 2147483648, %v7086_v9  ;;  %v1621_v58 = vshrl.u32 %v7086_v9, 20  ;;  %v1640_v4 = vand.u32 2147483647, %v7087_v19 }
 0x20e   : > { %v1591_v20 = vor.u32 %v1590_v59, %v1589_v45  ;;  %v1604_v5 = vshrl.u32 %v1603_v0, 20  ;;  %v1618_v14 = vadd.f32 1182793728, %v1615_v8  ;;  %v1623_v57 = vadd.s32 3288858623, %v1615_v8 }
 0x20f   : > { %v1571_v28 = vor.u32 4294967040, %v1570_v54  ;;  %v1611_v31 = vshrl.u32 %v1595_v37, 24  ;;  %v1622_v1 = vand.u32 1, %v1621_v58  ;;  %vm1630_vm15 = vcmp.ne.f32.partialorder %v7086_v9, %v7086_v9  ;;  %v7089_v37 = vld [vmem:[#allocation94_spill] sm:$0xff] }
 0x210   : > { %v1592_v23 = vor.u32 4294967040, %v1591_v20  ;;  %v1606_v2 = vsel %vm1605_vm12, %v4388_v10, %v1604_v5  ;;  %v4389_v44 = vadd.s32 3112173568, %v1618_v14  ;;  %vm1626_vm0 = vcmp.lt.s32.totalorder %v1615_v8, 1015021568 }
 0x211   : > { %v1608_v48 = vsel %vm1607_vm13, 127, %v1606_v2  ;;  %v1624_v21 = vadd.s32 %v1623_v57, %v1622_v1  ;;  %v1643_v24 = vadd.f32 1182793728, %v1640_v4  ;;  %v1646_v63 = vshrl.u32 %v7087_v19, 20 }
 0x212   : > { %v1610_v30 = vsel %vm1609_vm14, 127, %v1608_v48  ;;  %vm1628_vm1 = vcmp.ge.s32.totalorder %v1615_v8, 1139277825  ;;  %v1632_v50 = vshrl.u32 %v1616_v46, 24  ;;  %v1648_v32 = vadd.s32 3288858623, %v1640_v4 }
 0x213   : > { %v1612_v55 = vor.u32 %v1611_v31, %v1610_v30  ;;  %v1625_v53 = vshrl.u32 %v1624_v21, 20  ;;  %v1641_v38 = vand.u32 2147483648, %v7087_v19  ;;  %v1647_v61 = vand.u32 1, %v1646_v63  ;;  %v7091_v63 = vld [vmem:[#allocation89_spill] sm:$0xff] }
 0x214   : > { %v1636_v16 = vpack.c.b16 %v1592_v23, %v1571_v28  ;;  %v4390_v29 = vadd.s32 3112173568, %v1643_v24  ;;  %vm1651_vm2 = vcmp.lt.s32.totalorder %v1640_v4, 1015021568  ;;  %v1661_v49 = vand.u32 2147483647, %v7088_v6  ;;  %v7090_v23 = vld [vmem:[#allocation97_spill] sm:$0xff] }
 0x215   : > { %v1627_v40 = vsel %vm1626_vm0, %v4389_v44, %v1625_v53  ;;  %v1649_v56 = vadd.s32 %v1648_v32, %v1647_v61  ;;  %vm1653_vm3 = vcmp.ge.s32.totalorder %v1640_v4, 1139277825  ;;  %vm1655_vm4 = vcmp.ne.f32.partialorder %v7087_v19, %v7087_v19 }
 0x216   : > { %v1629_v7 = vsel %vm1628_vm1, 127, %v1627_v40  ;;  %v1664_v36 = vadd.f32 1182793728, %v1661_v49  ;;  %v1667_v17 = vshrl.u32 %v7088_v6, 20  ;;  %v1669_v33 = vadd.s32 3288858623, %v1661_v49 }
 0x217   : > { %v1613_v18 = vor.u32 4294967040, %v1612_v55  ;;  %v1631_v41 = vsel %vm1630_vm15, 127, %v1629_v7  ;;  %v1650_v26 = vshrl.u32 %v1649_v56, 20  ;;  %v1657_v52 = vshrl.u32 %v1641_v38, 24  ;;  %v7092_v38 = vld [vmem:[#allocation78_spill] sm:$0xff] }
 0x218   : > { %v1633_v13 = vor.u32 %v1632_v50, %v1631_v41  ;;  %v1662_v22 = vand.u32 2147483648, %v7088_v6  ;;  %v1668_v51 = vand.u32 1, %v1667_v17  ;;  %vm1672_vm5 = vcmp.lt.s32.totalorder %v1661_v49, 1015021568 }
 0x219   : > { %v1652_v59 = vsel %vm1651_vm2, %v4390_v29, %v1650_v26  ;;  %v4391_v54 = vadd.s32 3112173568, %v1664_v36  ;;  %vm1674_vm6 = vcmp.ge.s32.totalorder %v1661_v49, 1139277825  ;;  %v1682_v27 = vand.u32 2147483647, %v7089_v37 }
 0x21a   : > { %v1634_v12 = vor.u32 4294967040, %v1633_v13  ;;  %v1654_v10 = vsel %vm1653_vm3, 127, %v1652_v59  ;;  %v1670_v47 = vadd.s32 %v1669_v33, %v1668_v51  ;;  %v1688_v0 = vshrl.u32 %v7089_v37, 20 }
 0x21b   : > { %v1656_v9 = vsel %vm1655_vm4, 127, %v1654_v10  ;;  %vm1676_vm7 = vcmp.ne.f32.partialorder %v7088_v6, %v7088_v6  ;;  %v1685_v8 = vadd.f32 1182793728, %v1682_v27  ;;  %v1690_v45 = vadd.s32 3288858623, %v1682_v27 }
 0x21c   : > { %v1637_v46 = vpack.c.b16 %v1634_v12, %v1613_v18  ;;  %v1671_v58 = vshrl.u32 %v1670_v47, 20  ;;  %v1683_v20 = vand.u32 2147483648, %v7089_v37  ;;  %v1689_v5 = vand.u32 1, %v1688_v0  ;;  %v7093_v12 = vld [vmem:[#allocation92_spill] sm:$0xff] }
 0x21d   : > { %v1658_v14 = vor.u32 %v1657_v52, %v1656_v9  ;;  %v1678_v4 = vshrl.u32 %v1662_v22, 24  ;;  %v4392_v57 = vadd.s32 3112173568, %v1685_v8  ;;  %vm1693_vm8 = vcmp.lt.s32.totalorder %v1682_v27, 1015021568  ;;  %v7094_v8 = vld [vmem:[#allocation95_spill] sm:$0xff] }
 0x21e   : > { %v5731_v28 = vpack.c.b8 %v1637_v46, %v1636_v16  ;;  %v1673_v31 = vsel %vm1672_vm5, %v4391_v54, %v1671_v58  ;;  %v1691_v19 = vadd.s32 %v1690_v45, %v1689_v5  ;;  %vm1695_vm9 = vcmp.ge.s32.totalorder %v1682_v27, 1139277825 }
 0x21f   : > { %v1675_v1 = vsel %vm1674_vm6, 127, %v1673_v31  ;;  %vm1697_vm10 = vcmp.ne.f32.partialorder %v7089_v37, %v7089_v37  ;;  %v1703_v2 = vand.u32 2147483647, %v7090_v23  ;;  %v1709_v44 = vshrl.u32 %v7090_v23, 20 }
 0x220   : > { %v1677_v48 = vsel %vm1676_vm7, 127, %v1675_v1  ;;  %v1692_v21 = vshrl.u32 %v1691_v19, 20  ;;  %v1699_v24 = vshrl.u32 %v1683_v20, 24  ;;  %v1728_v30 = vand.u32 2147483647, %v7091_v63 }
 0x221   : > { %v1679_v50 = vor.u32 %v1678_v4, %v1677_v48  ;;  %v1706_v32 = vadd.f32 1182793728, %v1703_v2  ;;  %v1710_v55 = vand.u32 1, %v1709_v44  ;;  %v1711_v53 = vadd.s32 3288858623, %v1703_v2 }
 0x222   : > { %v5744_v61 = vclamps-f32 %v7092_v38, 240.0  ;;  %v1659_v16 = vor.u32 4294967040, %v1658_v14  ;;  %v1694_v29 = vsel %vm1693_vm8, %v4392_v57, %v1692_v21  ;;  %v1704_v49 = vand.u32 2147483648, %v7090_v23 }
 0x223   : > { %v1680_v40 = vor.u32 4294967040, %v1679_v50  ;;  %v1696_v6 = vsel %vm1695_vm9, 127, %v1694_v29  ;;  %v4393_v56 = vadd.s32 3112173568, %v1706_v32  ;;  %v1712_v7 = vadd.s32 %v1711_v53, %v1710_v55 }
 0x224   : > { %v1698_v36 = vsel %vm1697_vm10, 127, %v1696_v6  ;;  %vm1714_vm11 = vcmp.lt.s32.totalorder %v1703_v2, 1015021568  ;;  %v1731_v17 = vadd.f32 1182793728, %v1728_v30  ;;  %v1734_v33 = vshrl.u32 %v7091_v63, 20 }
 0x225   : > { %v1700_v18 = vor.u32 %v1699_v24, %v1698_v36  ;;  %v1713_v41 = vshrl.u32 %v1712_v7, 20  ;;  %vm1716_vm12 = vcmp.ge.s32.totalorder %v1703_v2, 1139277825  ;;  %v1736_v26 = vadd.s32 3288858623, %v1728_v30 }
 0x226   : > { %vm1718_vm13 = vcmp.ne.f32.partialorder %v7090_v23, %v7090_v23  ;;  %v1720_v52 = vshrl.u32 %v1704_v49, 24  ;;  %v1729_v13 = vand.u32 2147483648, %v7091_v63  ;;  %v1735_v22 = vand.u32 1, %v1734_v33 }
 0x227   : > { %v1715_v51 = vsel %vm1714_vm11, %v4393_v56, %v1713_v41  ;;  %v1724_v59 = vpack.c.b16 %v1680_v40, %v1659_v16  ;;  %v4394_v54 = vadd.s32 3112173568, %v1731_v17  ;;  %vm1739_vm14 = vcmp.lt.s32.totalorder %v1728_v30, 1015021568 }
 0x228   : > { %v1717_v37 = vsel %vm1716_vm12, 127, %v1715_v51  ;;  %v1737_v27 = vadd.s32 %v1736_v26, %v1735_v22  ;;  %vm1741_vm15 = vcmp.ge.s32.totalorder %v1728_v30, 1139277825  ;;  %v1749_v10 = vand.u32 2147483647, %v7093_v12  ;;  %v7095_v51 = vld [vmem:[#allocation90_spill] sm:$0xff] }
 0x229   : > { %v1701_v47 = vor.u32 4294967040, %v1700_v18  ;;  %v1719_v0 = vsel %vm1718_vm13, 127, %v1717_v37  ;;  %v1755_v9 = vshrl.u32 %v7093_v12, 20  ;;  %v1770_v45 = vand.u32 2147483647, %v7094_v8 }
 0x22a   : > { %v1721_v46 = vor.u32 %v1720_v52, %v1719_v0  ;;  %v1738_v58 = vshrl.u32 %v1737_v27, 20  ;;  %v1752_v20 = vadd.f32 1182793728, %v1749_v10  ;;  %v1757_v5 = vadd.s32 3288858623, %v1749_v10 }
 0x22b   : > { %vm1743_vm0 = vcmp.ne.f32.partialorder %v7091_v63, %v7091_v63  ;;  %v1745_v14 = vshrl.u32 %v1729_v13, 24  ;;  %v1750_v4 = vand.u32 2147483648, %v7093_v12  ;;  %v1756_v57 = vand.u32 1, %v1755_v9 }
 0x22c   : > { %v1722_v31 = vor.u32 4294967040, %v1721_v46  ;;  %v1740_v19 = vsel %vm1739_vm14, %v4394_v54, %v1738_v58  ;;  %v4395_v1 = vadd.s32 3112173568, %v1752_v20  ;;  %vm1764_vm1 = vcmp.ne.f32.partialorder %v7093_v12, %v7093_v12  ;;  %v7096_v46 = vld [vmem:[#allocation79_spill] sm:$0xff] }
 0x22d   : > { %v1742_v23 = vsel %vm1741_vm15, 127, %v1740_v19  ;;  %v1758_v2 = vadd.s32 %v1757_v5, %v1756_v57  ;;  %v1773_v44 = vadd.f32 1182793728, %v1770_v45  ;;  %v1776_v48 = vshrl.u32 %v7094_v8, 20 }
 0x22e   : > { %v1725_v21 = vpack.c.b16 %v1722_v31, %v1701_v47  ;;  %v1744_v24 = vsel %vm1743_vm0, 127, %v1742_v23  ;;  %vm1760_vm2 = vcmp.lt.s32.totalorder %v1749_v10, 1015021568  ;;  %v1778_v63 = vadd.s32 3288858623, %v1770_v45  ;;  %v7097_v31 = vld [vmem:[#allocation93_spill] sm:$0xff] }
 0x22f   : > { %v1759_v50 = vshrl.u32 %v1758_v2, 20  ;;  %vm1762_vm3 = vcmp.ge.s32.totalorder %v1749_v10, 1139277825  ;;  %v1766_v32 = vshrl.u32 %v1750_v4, 24  ;;  %v1777_v55 = vand.u32 1, %v1776_v48 }
 0x230   : > { %v5767_v53 = vpack.c.b8 %v1725_v21, %v1724_v59  ;;  %v1746_v38 = vor.u32 %v1745_v14, %v1744_v24  ;;  %v1771_v16 = vand.u32 2147483648, %v7094_v8  ;;  %vm1781_vm4 = vcmp.lt.s32.totalorder %v1770_v45, 1015021568 }
 0x231   : > { %v1761_v30 = vsel %vm1760_vm2, %v4395_v1, %v1759_v50  ;;  %v4396_v29 = vadd.s32 3112173568, %v1773_v44  ;;  %v1779_v49 = vadd.s32 %v1778_v63, %v1777_v55  ;;  %v1791_v40 = vand.u32 2147483647, %v5744_v61 }
 0x232   : > { %v1763_v6 = vsel %vm1762_vm3, 127, %v1761_v30  ;;  %vm1783_vm5 = vcmp.ge.s32.totalorder %v1770_v45, 1139277825  ;;  %vm1785_vm6 = vcmp.ne.f32.partialorder %v7094_v8, %v7094_v8  ;;  %v1797_v56 = vshrl.u32 %v5744_v61, 20 }
 0x233   : > { %v1765_v7 = vsel %vm1764_vm1, 127, %v1763_v6  ;;  %v1780_v36 = vshrl.u32 %v1779_v49, 20  ;;  %v1794_v17 = vadd.f32 1182793728, %v1791_v40  ;;  %v1799_v33 = vadd.s32 3288858623, %v1791_v40 }
 0x234   : > { %v1747_v18 = vor.u32 4294967040, %v1746_v38  ;;  %v1767_v41 = vor.u32 %v1766_v32, %v1765_v7  ;;  %v1787_v26 = vshrl.u32 %v1771_v16, 24  ;;  %v1798_v52 = vand.u32 1, %v1797_v56  ;;  %v7098_v38 = vld [vmem:[#allocation96_spill] sm:$0xff] }
 0x235   : > { %v1782_v13 = vsel %vm1781_vm4, %v4396_v29, %v1780_v36  ;;  %v1792_v22 = vand.u32 2147483648, %v5744_v61  ;;  %vm1802_vm7 = vcmp.lt.s32.totalorder %v1791_v40, 1015021568  ;;  %v1816_v59 = vand.u32 2147483647, %v7095_v51 }
 0x236   : > { %v1768_v54 = vor.u32 4294967040, %v1767_v41  ;;  %v1784_v37 = vsel %vm1783_vm5, 127, %v1782_v13  ;;  %v4397_v27 = vadd.s32 3112173568, %v1794_v17  ;;  %v1800_v12 = vadd.s32 %v1799_v33, %v1798_v52  ;;  %v7099_v17 = vld [vmem:[#allocation75_spill] sm:$0xff] }
 0x237   : > { %v1786_v10 = vsel %vm1785_vm6, 127, %v1784_v37  ;;  %v1819_v47 = vadd.f32 1182793728, %v1816_v59  ;;  %v1822_v0 = vshrl.u32 %v7095_v51, 20  ;;  %v1824_v9 = vadd.s32 3288858623, %v1816_v59 }
 0x238   : > { %v5786_v58 = vclamps-f32 %v7096_v46, 240.0  ;;  %v1801_v20 = vshrl.u32 %v1800_v12, 20  ;;  %vm1804_vm8 = vcmp.ge.s32.totalorder %v1791_v40, 1139277825  ;;  %vm1806_vm9 = vcmp.ne.f32.partialorder %v5744_v61, %v5744_v61 }
 0x239   : > { %v1788_v45 = vor.u32 %v1787_v26, %v1786_v10  ;;  %v1808_v5 = vshrl.u32 %v1792_v22, 24  ;;  %v1817_v14 = vand.u32 2147483648, %v7095_v51  ;;  %v1823_v4 = vand.u32 1, %v1822_v0  ;;  %v7100_v0 = vld [vmem:[#allocation76_spill] sm:$0xff] }
 0x23a   : > { %v1803_v8 = vsel %vm1802_vm7, %v4397_v27, %v1801_v20  ;;  %v1812_v57 = vpack.c.b16 %v1768_v54, %v1747_v18  ;;  %vm1827_vm10 = vcmp.lt.s32.totalorder %v1816_v59, 1015021568  ;;  %v1837_v19 = vand.u32 2147483647, %v7097_v31 }
 0x23b   : > { %v1805_v1 = vsel %vm1804_vm8, 127, %v1803_v8  ;;  %v4398_v23 = vadd.s32 3112173568, %v1819_v47  ;;  %v1825_v2 = vadd.s32 %v1824_v9, %v1823_v4  ;;  %v1843_v44 = vshrl.u32 %v7097_v31, 20 }
 0x23c   : > { %v1807_v48 = vsel %vm1806_vm9, 127, %v1805_v1  ;;  %vm1829_vm11 = vcmp.ge.s32.totalorder %v1816_v59, 1139277825  ;;  %v1840_v21 = vadd.f32 1182793728, %v1837_v19  ;;  %v1845_v61 = vadd.s32 3288858623, %v1837_v19 }
 0x23d   : > { %v1789_v24 = vor.u32 4294967040, %v1788_v45  ;;  %v1809_v63 = vor.u32 %v1808_v5, %v1807_v48  ;;  %v1826_v50 = vshrl.u32 %v1825_v2, 20  ;;  %v1844_v32 = vand.u32 1, %v1843_v44 }
 0x23e   : > { %vm1831_vm12 = vcmp.ne.f32.partialorder %v7095_v51, %v7095_v51  ;;  %v1838_v55 = vand.u32 2147483648, %v7097_v31  ;;  %vm1848_vm13 = vcmp.lt.s32.totalorder %v1837_v19, 1015021568  ;;  %v1858_v16 = vand.u32 2147483647, %v7098_v38 }
 0x23f   : > { %v1810_v30 = vor.u32 4294967040, %v1809_v63  ;;  %v1828_v29 = vsel %vm1827_vm10, %v4398_v23, %v1826_v50  ;;  %v4399_v49 = vadd.s32 3112173568, %v1840_v21  ;;  %v1846_v40 = vadd.s32 %v1845_v61, %v1844_v32  ;;  %v7101_v63 = vld [vmem:[#allocation77_spill] sm:$0xff] }
 0x240   : > { %v1830_v6 = vsel %vm1829_vm11, 127, %v1828_v29  ;;  %v1861_v56 = vadd.f32 1182793728, %v1858_v16  ;;  %v1864_v7 = vshrl.u32 %v7098_v38, 20  ;;  %v1866_v36 = vadd.s32 3288858623, %v1858_v16 }
 0x241   : > { %v5801_v33 = vclamps-f32 %v7099_v17, 240.0  ;;  %v1813_v18 = vpack.c.b16 %v1810_v30, %v1789_v24  ;;  %v1847_v41 = vshrl.u32 %v1846_v40, 20  ;;  %vm1850_vm14 = vcmp.ge.s32.totalorder %v1837_v19, 1139277825 }
 0x242   : > { %v1833_v26 = vshrl.u32 %v1817_v14, 24  ;;  %vm1852_vm15 = vcmp.ne.f32.partialorder %v7097_v31, %v7097_v31  ;;  %v1854_v52 = vshrl.u32 %v1838_v55, 24  ;;  %v1865_v13 = vand.u32 1, %v1864_v7 }
 0x243   : > { %v5805_v22 = vpack.c.b8 %v1813_v18, %v1812_v57  ;;  %v1832_v59 = vsel %vm1831_vm12, 127, %v1830_v6  ;;  %v1849_v54 = vsel %vm1848_vm13, %v4399_v49, %v1847_v41  ;;  %v1859_v37 = vand.u32 2147483648, %v7098_v38 }
 0x244   : > { %v1851_v27 = vsel %vm1850_vm14, 127, %v1849_v54  ;;  %v4400_v12 = vadd.s32 3112173568, %v1861_v56  ;;  %v1867_v10 = vadd.s32 %v1866_v36, %v1865_v13  ;;  %v1879_v47 = vand.u32 2147483647, %v5786_v58  ;;  %v7102_v56 = vld [vmem:[#allocation80_spill] sm:$0xff] }
 0x245   : > { %v5814_v9 = vclamps-f32 %v7100_v0, 240.0  ;;  %v1853_v46 = vsel %vm1852_vm15, 127, %v1851_v27  ;;  %vm1869_vm0 = vcmp.lt.s32.totalorder %v1858_v16, 1015021568  ;;  %v1885_v20 = vshrl.u32 %v5786_v58, 20 }
 0x246   : > { %v1868_v45 = vshrl.u32 %v1867_v10, 20  ;;  %vm1871_vm1 = vcmp.ge.s32.totalorder %v1858_v16, 1139277825  ;;  %v1882_v51 = vadd.f32 1182793728, %v1879_v47  ;;  %v1887_v5 = vadd.s32 3288858623, %v1879_v47 }
 0x247   : > { %v1834_v14 = vor.u32 %v1833_v26, %v1832_v59  ;;  %vm1873_vm2 = vcmp.ne.f32.partialorder %v7098_v38, %v7098_v38  ;;  %v1875_v4 = vshrl.u32 %v1859_v37, 24  ;;  %v1886_v8 = vand.u32 1, %v1885_v20 }
 0x248   : > { %v1855_v57 = vor.u32 %v1854_v52, %v1853_v46  ;;  %v1870_v31 = vsel %vm1869_vm0, %v4400_v12, %v1868_v45  ;;  %v1880_v19 = vand.u32 2147483648, %v5786_v58  ;;  %v1904_v1 = vand.u32 2147483647, %v5801_v33 }
 0x249   : > { %v1872_v23 = vsel %vm1871_vm1, 127, %v1870_v31  ;;  %v4401_v2 = vadd.s32 3112173568, %v1882_v51  ;;  %v1888_v44 = vadd.s32 %v1887_v5, %v1886_v8  ;;  %v1910_v48 = vshrl.u32 %v5801_v33, 20 }
 0x24a   : > { %v1874_v21 = vsel %vm1873_vm2, 127, %v1872_v23  ;;  %vm1890_vm3 = vcmp.lt.s32.totalorder %v1879_v47, 1015021568  ;;  %v1907_v61 = vadd.f32 1182793728, %v1904_v1  ;;  %v1912_v24 = vadd.s32 3288858623, %v1904_v1 }
 0x24b   : > { %v5823_v50 = vclamps-f32 %v7101_v63, 240.0  ;;  %v1889_v32 = vshrl.u32 %v1888_v44, 20  ;;  %vm1892_vm4 = vcmp.ge.s32.totalorder %v1879_v47, 1139277825  ;;  %v1911_v55 = vand.u32 1, %v1910_v48 }
 0x24c   : > { %v1835_v38 = vor.u32 4294967040, %v1834_v14  ;;  %v1876_v16 = vor.u32 %v1875_v4, %v1874_v21  ;;  %vm1894_vm5 = vcmp.ne.f32.partialorder %v5786_v58, %v5786_v58  ;;  %v1896_v30 = vshrl.u32 %v1880_v19, 24 }
 0x24d   : > { %v1856_v29 = vor.u32 4294967040, %v1855_v57  ;;  %v1891_v49 = vsel %vm1890_vm3, %v4401_v2, %v1889_v32  ;;  %v1913_v40 = vadd.s32 %v1912_v24, %v1911_v55  ;;  %v1925_v6 = vand.u32 2147483647, %v5814_v9 }
 0x24e   : > { %v5829_v7 = vclamps-f32 %v7102_v56, 240.0  ;;  %v1893_v36 = vsel %vm1892_vm4, 127, %v1891_v49  ;;  %v4402_v17 = vadd.s32 3112173568, %v1907_v61  ;;  %v1931_v18 = vshrl.u32 %v5814_v9, 20 }
 0x24f   : > { %v1895_v41 = vsel %vm1894_vm5, 127, %v1893_v36  ;;  %v1914_v26 = vshrl.u32 %v1913_v40, 20  ;;  %v1928_v52 = vadd.f32 1182793728, %v1925_v6  ;;  %v1933_v13 = vadd.s32 3288858623, %v1925_v6 }
 0x250   : > { %v1877_v59 = vor.u32 4294967040, %v1876_v16  ;;  %v1897_v54 = vor.u32 %v1896_v30, %v1895_v41  ;;  %vm1915_vm6 = vcmp.lt.s32.totalorder %v1904_v1, 1015021568  ;;  %v1932_v58 = vand.u32 1, %v1931_v18 }
 0x251   : > { %v1900_v37 = vpack.c.b16 %v1856_v29, %v1835_v38  ;;  %v1905_v27 = vand.u32 2147483648, %v5801_v33  ;;  %vm1917_vm7 = vcmp.ge.s32.totalorder %v1904_v1, 1139277825  ;;  %v1946_v12 = vand.u32 2147483647, %v5823_v50 }
 0x252   : > { %v1898_v10 = vor.u32 4294967040, %v1897_v54  ;;  %v4403_v47 = vadd.s32 3112173568, %v1928_v52  ;;  %v1934_v0 = vadd.s32 %v1933_v13, %v1932_v58  ;;  %vm1936_vm8 = vcmp.lt.s32.totalorder %v1925_v6, 1015021568 }
 0x253   : > { %v1916_v46 = vsel %vm1915_vm6, %v4402_v17, %v1914_v26  ;;  %v1949_v20 = vadd.f32 1182793728, %v1946_v12  ;;  %v1952_v45 = vshrl.u32 %v5823_v50, 20  ;;  %v1954_v51 = vadd.s32 3288858623, %v1946_v12 }
 0x254   : > { %v1901_v5 = vpack.c.b16 %v1898_v10, %v1877_v59  ;;  %v1926_v14 = vand.u32 2147483648, %v5814_v9  ;;  %v1935_v4 = vshrl.u32 %v1934_v0, 20  ;;  %vm1938_vm9 = vcmp.ge.s32.totalorder %v1925_v6, 1139277825 }
 0x255   : > { %vm1919_vm10 = vcmp.ne.f32.partialorder %v5801_v33, %v5801_v33  ;;  %vm1940_vm11 = vcmp.ne.f32.partialorder %v5814_v9, %v5814_v9  ;;  %v1953_v8 = vand.u32 1, %v1952_v45  ;;  %v1918_v31 = vsel %vm1917_vm7, 127, %v1916_v46 }
 0x256   : > { %v5840_v57 = vpack.c.b8 %v1901_v5, %v1900_v37  ;;  %v1937_v19 = vsel %vm1936_vm8, %v4403_v47, %v1935_v4  ;;  %v1947_v23 = vand.u32 2147483648, %v5823_v50  ;;  %v4404_v44 = vadd.s32 3112173568, %v1949_v20 }
 0x257   : > { %v1939_v2 = vsel %vm1938_vm9, 127, %v1937_v19  ;;  %v1955_v48 = vadd.s32 %v1954_v51, %v1953_v8  ;;  %v1967_v21 = vand.u32 2147483647, %v5829_v7  ;;  %v1921_v61 = vshrl.u32 %v1905_v27, 24 }
 0x258   : > { %v1942_v24 = vshrl.u32 %v1926_v14, 24  ;;  %vm1957_vm12 = vcmp.lt.s32.totalorder %v1946_v12, 1015021568  ;;  %v1973_v63 = vshrl.u32 %v5829_v7, 20  ;;  %vm1959_vm13 = vcmp.ge.s32.totalorder %v1946_v12, 1139277825 }
 0x259   : > { %v1956_v32 = vshrl.u32 %v1955_v48, 20  ;;  %v1970_v55 = vadd.f32 1182793728, %v1967_v21  ;;  %v1975_v38 = vadd.s32 3288858623, %v1967_v21  ;;  %v1920_v1 = vsel %vm1919_vm10, 127, %v1918_v31 }
 0x25a   : > { %v1941_v16 = vsel %vm1940_vm11, 127, %v1939_v2  ;;  %vm1961_vm14 = vcmp.ne.f32.partialorder %v5823_v50, %v5823_v50  ;;  %v1974_v30 = vand.u32 1, %v1973_v63  ;;  %v1963_v49 = vshrl.u32 %v1947_v23, 24 }
 0x25b   : > { %v1958_v29 = vsel %vm1957_vm12, %v4404_v44, %v1956_v32  ;;  %v1968_v40 = vand.u32 2147483648, %v5829_v7  ;;  %v4405_v56 = vadd.s32 3112173568, %v1970_v55  ;;  %v1922_v17 = vor.u32 %v1921_v61, %v1920_v1 }
 0x25c   : > { %v1960_v6 = vsel %vm1959_vm13, 127, %v1958_v29  ;;  %v1976_v36 = vadd.s32 %v1975_v38, %v1974_v30  ;;  %v1943_v18 = vor.u32 %v1942_v24, %v1941_v16  ;;  %vm1978_vm15 = vcmp.lt.s32.totalorder %v1967_v21, 1015021568 }
 0x25d   : > { %v1962_v41 = vsel %vm1961_vm14, 127, %v1960_v6  ;;  %vm1980_vm0 = vcmp.ge.s32.totalorder %v1967_v21, 1139277825  ;;  %vm1982_vm1 = vcmp.ne.f32.partialorder %v5829_v7, %v5829_v7  ;;  %v1984_v9 = vshrl.u32 %v1968_v40, 24 }
 0x25e   : > { %v1977_v33 = vshrl.u32 %v1976_v36, 20  ;;  %v1964_v26 = vor.u32 %v1963_v49, %v1962_v41  ;;  %v1923_v52 = vor.u32 4294967040, %v1922_v17  ;;  %v1944_v13 = vor.u32 4294967040, %v1943_v18 }
 0x260   : > { %v1979_v50 = vsel %vm1978_vm15, %v4405_v56, %v1977_v33  ;;  %v1965_v58 = vor.u32 4294967040, %v1964_v26  ;;  %v1988_v12 = vpack.c.b16 %v1944_v13, %v1923_v52 }
 0x261   : > { %v1981_v59 = vsel %vm1980_vm0, 127, %v1979_v50 }
 0x262   : > { %v1983_v54 = vsel %vm1982_vm1, 127, %v1981_v59 }
 0x263   : > { %v1985_v37 = vor.u32 %v1984_v9, %v1983_v54 }
 0x265   : > { %v1986_v27 = vor.u32 4294967040, %v1985_v37 }
 0x267   : > { %v1989_v10 = vpack.c.b16 %v1986_v27, %v1965_v58 }
 0x269   : > { %v5857_v47 = vpack.c.b8 %v1989_v10, %v1988_v12 }
 0x26a   : > { %1992 = vst [vmem:[#allocation5] sm:$0xff] %v5297_v62 }
 0x271   : > { %v1993_v0 = vld [vmem:[#allocation5] sm:$0x3] }
 0x272   : > { %v1994_v46 = vunpack.c.0.f8e4m3b11 %v1993_v0 }
 0x274   : > { %v1998_v20 = vand.u32 2147483647, %v1994_v46  ;;  %vm2000_vm2 = vcmp.ne.f32.partialorder %v1994_v46, %v1994_v46  ;;  %v2001_v7 = vmul.f32 16.0, %v1994_v46 }
 0x276   : > { %vm5860_vm3 = vcmp.gt.f32.partialorder %v1998_v20, 29.0  ;;  %v5864_v51 = vsel %vm2000_vm2, -0.0, %v2001_v7 }
 0x277   : > { %2022 = vst [vmem:[#allocation6] sm:$0xff] %v5337_v60 }
 0x27e   : > { %v2023_v14 = vld [vmem:[#allocation6] sm:$0x3] }
 0x27f   : > { %v2024_v4 = vunpack.c.0.f8e4m3b11 %v2023_v14 }
 0x281   : > { %v2028_v8 = vand.u32 2147483647, %v2024_v4  ;;  %vm2030_vm4 = vcmp.ne.f32.partialorder %v2024_v4, %v2024_v4  ;;  %v2031_v31 = vmul.f32 16.0, %v2024_v4 }
 0x283   : > { %vm5870_vm5 = vcmp.gt.f32.partialorder %v2028_v8, 29.0  ;;  %v5874_v23 = vsel %vm2030_vm4, -0.0, %v2031_v31 }
 0x284   : > { %2052 = vst [vmem:[#allocation7] sm:$0xff] %v5375_v25 }
 0x28b   : > { %v2053_v44 = vld [vmem:[#allocation7] sm:$0x3] }
 0x28c   : > { %v2054_v48 = vunpack.c.0.f8e4m3b11 %v2053_v44 }
 0x28e   : > { %v2058_v21 = vand.u32 2147483647, %v2054_v48  ;;  %vm2060_vm6 = vcmp.ne.f32.partialorder %v2054_v48, %v2054_v48  ;;  %v2061_v61 = vmul.f32 16.0, %v2054_v48 }
 0x290   : > { %vm5880_vm7 = vcmp.gt.f32.partialorder %v2058_v21, 29.0  ;;  %v5884_v63 = vsel %vm2060_vm6, -0.0, %v2061_v61 }
 0x291   : > { %2082 = vst [vmem:[#allocation8] sm:$0xff] %v5415_v34 }
 0x298   : > { %v2083_v55 = vld [vmem:[#allocation8] sm:$0x3] }
 0x299   : > { %v2084_v38 = vunpack.c.0.f8e4m3b11 %v2083_v55 }
 0x29b   : > { %v2088_v1 = vand.u32 2147483647, %v2084_v38  ;;  %vm2090_vm8 = vcmp.ne.f32.partialorder %v2084_v38, %v2084_v38  ;;  %v2091_v16 = vmul.f32 16.0, %v2084_v38 }
 0x29d   : > { %vm5890_vm9 = vcmp.gt.f32.partialorder %v2088_v1, 29.0  ;;  %v5894_v29 = vsel %vm2090_vm8, -0.0, %v2091_v16 }
 0x29e   : > { %2112 = vst [vmem:[#allocation9] sm:$0xff] %v5297_v62 }
 0x2a5   : > { %v2114_v40 = vld [vmem:[#allocation9 + $0x2] sm:$0x3] }
 0x2a6   : > { %v2115_v6 = vunpack.c.0.f8e4m3b11 %v2114_v40 }
 0x2a8   : > { %v2119_v56 = vand.u32 2147483647, %v2115_v6  ;;  %vm2121_vm10 = vcmp.ne.f32.partialorder %v2115_v6, %v2115_v6  ;;  %v2122_v36 = vmul.f32 16.0, %v2115_v6 }
 0x2aa   : > { %vm5900_vm11 = vcmp.gt.f32.partialorder %v2119_v56, 29.0  ;;  %v5904_v18 = vsel %vm2121_vm10, -0.0, %v2122_v36 }
 0x2ab   : > { %2143 = vst [vmem:[#allocation10] sm:$0xff] %v5337_v60 }
 0x2b2   : > { %v2145_v33 = vld [vmem:[#allocation10 + $0x2] sm:$0x3] }
 0x2b3   : > { %v2146_v26 = vunpack.c.0.f8e4m3b11 %v2145_v33 }
 0x2b5   : > { %v2150_v9 = vand.u32 2147483647, %v2146_v26  ;;  %vm2152_vm12 = vcmp.ne.f32.partialorder %v2146_v26, %v2146_v26  ;;  %v2153_v50 = vmul.f32 16.0, %v2146_v26 }
 0x2b7   : > { %vm5910_vm13 = vcmp.gt.f32.partialorder %v2150_v9, 29.0  ;;  %v5914_v13 = vsel %vm2152_vm12, -0.0, %v2153_v50 }
 0x2b8   : > { %2174 = vst [vmem:[#allocation11] sm:$0xff] %v5375_v25 }
 0x2bf   : > { %v2176_v54 = vld [vmem:[#allocation11 + $0x2] sm:$0x3] }
 0x2c0   : > { %v2177_v58 = vunpack.c.0.f8e4m3b11 %v2176_v54 }
 0x2c2   : > { %v2181_v37 = vand.u32 2147483647, %v2177_v58  ;;  %vm2183_vm14 = vcmp.ne.f32.partialorder %v2177_v58, %v2177_v58  ;;  %v2184_v27 = vmul.f32 16.0, %v2177_v58 }
 0x2c4   : > { %vm5920_vm15 = vcmp.gt.f32.partialorder %v2181_v37, 29.0  ;;  %v5924_v10 = vsel %vm2183_vm14, -0.0, %v2184_v27 }
 0x2c5   : > { %2205 = vst [vmem:[#allocation12] sm:$0xff] %v5415_v34 }
 0x2cc   : > { %v2207_v46 = vld [vmem:[#allocation12 + $0x2] sm:$0x3] }
 0x2cd   : > { %v2208_v20 = vunpack.c.0.f8e4m3b11 %v2207_v46 }
 0x2cf   : > { %v2212_v7 = vand.u32 2147483647, %v2208_v20  ;;  %vm2214_vm0 = vcmp.ne.f32.partialorder %v2208_v20, %v2208_v20  ;;  %v2215_v14 = vmul.f32 16.0, %v2208_v20 }
 0x2d1   : > { %vm5930_vm1 = vcmp.gt.f32.partialorder %v2212_v7, 29.0  ;;  %v5934_v8 = vsel %vm2214_vm0, -0.0, %v2215_v14 }
 0x2d2   : > { %2236 = vst [vmem:[#allocation13] sm:$0xff] %v5297_v62 }
 0x2d9   : > { %v2238_v44 = vld [vmem:[#allocation13 + $0x4] sm:$0x3] }
 0x2da   : > { %v2239_v48 = vunpack.c.0.f8e4m3b11 %v2238_v44 }
 0x2dc   : > { %v2243_v21 = vand.u32 2147483647, %v2239_v48  ;;  %vm2245_vm2 = vcmp.ne.f32.partialorder %v2239_v48, %v2239_v48  ;;  %v2246_v61 = vmul.f32 16.0, %v2239_v48 }
 0x2de   : > { %vm5940_vm4 = vcmp.gt.f32.partialorder %v2243_v21, 29.0  ;;  %v5944_v38 = vsel %vm2245_vm2, -0.0, %v2246_v61 }
 0x2df   : > { %2267 = vst [vmem:[#allocation14] sm:$0xff] %v5337_v60 }
 0x2e6   : > { %v2269_v16 = vld [vmem:[#allocation14 + $0x4] sm:$0x3] }
 0x2e7   : > { %v2270_v40 = vunpack.c.0.f8e4m3b11 %v2269_v16 }
 0x2e9   : > { %v2274_v6 = vand.u32 2147483647, %v2270_v40  ;;  %vm2276_vm6 = vcmp.ne.f32.partialorder %v2270_v40, %v2270_v40  ;;  %v2277_v56 = vmul.f32 16.0, %v2270_v40 }
 0x2eb   : > { %vm5950_vm8 = vcmp.gt.f32.partialorder %v2274_v6, 29.0  ;;  %v5954_v33 = vsel %vm2276_vm6, -0.0, %v2277_v56 }
 0x2ec   : > { %2298 = vst [vmem:[#allocation15] sm:$0xff] %v5375_v25 }
 0x2f3   : > { %v2300_v9 = vld [vmem:[#allocation15 + $0x4] sm:$0x3] }
 0x2f4   : > { %v2301_v50 = vunpack.c.0.f8e4m3b11 %v2300_v9 }
 0x2f6   : > { %v2305_v54 = vand.u32 2147483647, %v2301_v50  ;;  %vm2307_vm10 = vcmp.ne.f32.partialorder %v2301_v50, %v2301_v50  ;;  %v2308_v58 = vmul.f32 16.0, %v2301_v50 }
 0x2f8   : > { %vm5960_vm12 = vcmp.gt.f32.partialorder %v2305_v54, 29.0  ;;  %v5964_v27 = vsel %vm2307_vm10, -0.0, %v2308_v58 }
 0x2f9   : > { %2329 = vst [vmem:[#allocation16] sm:$0xff] %v5415_v34 }
 0x300   : > { %v2331_v20 = vld [vmem:[#allocation16 + $0x4] sm:$0x3] }
 0x301   : > { %v2332_v7 = vunpack.c.0.f8e4m3b11 %v2331_v20 }
 0x303   : > { %v2336_v14 = vand.u32 2147483647, %v2332_v7  ;;  %vm2338_vm14 = vcmp.ne.f32.partialorder %v2332_v7, %v2332_v7  ;;  %v2339_v44 = vmul.f32 16.0, %v2332_v7 }
 0x305   : > { %vm5970_vm0 = vcmp.gt.f32.partialorder %v2336_v14, 29.0  ;;  %v5974_v21 = vsel %vm2338_vm14, -0.0, %v2339_v44 }
 0x306   : > { %2360 = vst [vmem:[#allocation17] sm:$0xff] %v5297_v62  ;;  %v7127_v9 = vmov 0 }
 0x30d   : > { %v2362_v16 = vld [vmem:[#allocation17 + $0x6] sm:$0x3] }
 0x30e   : > { %v2363_v40 = vunpack.c.0.f8e4m3b11 %v2362_v16 }
 0x310   : > { %v2367_v6 = vand.u32 2147483647, %v2363_v40  ;;  %vm2369_vm2 = vcmp.ne.f32.partialorder %v2363_v40, %v2363_v40  ;;  %v2370_v56 = vmul.f32 16.0, %v2363_v40 }
 0x312   : > { %vm5980_vm6 = vcmp.gt.f32.partialorder %v2367_v6, 29.0  ;;  %v5984_v50 = vsel %vm2369_vm2, -0.0, %v2370_v56 }
 0x313   : > { %v7128_v9 = vsel %vm5980_vm6, 4294967295, %v7127_v9 }
 0x314   : > { %2391 = vst [vmem:[#allocation18] sm:$0xff] %v5337_v60  ;;  %v7129_v14 = vmov 0 }
 0x31b   : > { %v2393_v58 = vld [vmem:[#allocation18 + $0x6] sm:$0x3] }
 0x31c   : > { %v2394_v20 = vunpack.c.0.f8e4m3b11 %v2393_v58 }
 0x31e   : > { %v2398_v62 = vand.u32 2147483647, %v2394_v20  ;;  %vm2400_vm10 = vcmp.ne.f32.partialorder %v2394_v20, %v2394_v20  ;;  %v2401_v7 = vmul.f32 16.0, %v2394_v20 }
 0x320   : > { %vm5990_vm14 = vcmp.gt.f32.partialorder %v2398_v62, 29.0  ;;  %v5994_v44 = vsel %vm2400_vm10, -0.0, %v2401_v7 }
 0x321   : > { %v7130_v14 = vsel %vm5990_vm14, 4294967295, %v7129_v14 }
 0x322   : > { %2422 = vst [vmem:[#allocation19] sm:$0xff] %v5375_v25  ;;  %v7131_v58 = vmov 0 }
 0x329   : > { %v2424_v40 = vld [vmem:[#allocation19 + $0x6] sm:$0x3] }
 0x32a   : > { %v2425_v6 = vunpack.c.0.f8e4m3b11 %v2424_v40 }
 0x32c   : > { %v2429_v60 = vand.u32 2147483647, %v2425_v6  ;;  %vm2431_vm2 = vcmp.ne.f32.partialorder %v2425_v6, %v2425_v6  ;;  %v2432_v56 = vmul.f32 16.0, %v2425_v6 }
 0x32e   : > { %vm6000_vm6 = vcmp.gt.f32.partialorder %v2429_v60, 29.0  ;;  %v6004_v20 = vsel %vm2431_vm2, -0.0, %v2432_v56 }
 0x32f   : > { %v7132_v58 = vsel %vm6000_vm6, 4294967295, %v7131_v58 }
 0x330   : > { %2453 = vst [vmem:[#allocation20] sm:$0xff] %v5415_v34  ;;  %v7133_v54 = vmov 0 }
 0x337   : > { %v2455_v7 = vld [vmem:[#allocation20 + $0x6] sm:$0x3] }
 0x338   : > { %v2456_v16 = vunpack.c.0.f8e4m3b11 %v2455_v7 }
 0x33a   : > { %v2460_v25 = vand.u32 2147483647, %v2456_v16  ;;  %vm2462_vm10 = vcmp.ne.f32.partialorder %v2456_v16, %v2456_v16  ;;  %v2463_v40 = vmul.f32 16.0, %v2456_v16 }
 0x33c   : > { %vm6010_vm14 = vcmp.gt.f32.partialorder %v2460_v25, 29.0  ;;  %v6014_v6 = vsel %vm2462_vm10, -0.0, %v2463_v40 }
 0x33d   : > { %v7134_v54 = vsel %vm6010_vm14, 4294967295, %v7133_v54 }
 0x33e   : > { %2484 = vst [vmem:[#allocation21] sm:$0xff] %v5455_v11  ;;  %v7135_v61 = vmov 0 }
 0x345   : > { %v2485_v56 = vld [vmem:[#allocation21] sm:$0x3] }
 0x346   : > { %v2486_v62 = vunpack.c.0.f8e4m3b11 %v2485_v56 }
 0x348   : > { %v2490_v34 = vand.u32 2147483647, %v2486_v62  ;;  %vm2492_vm2 = vcmp.ne.f32.partialorder %v2486_v62, %v2486_v62  ;;  %v2493_v7 = vmul.f32 16.0, %v2486_v62 }
 0x34a   : > { %vm6020_vm6 = vcmp.gt.f32.partialorder %v2490_v34, 29.0  ;;  %v6024_v16 = vsel %vm2492_vm2, -0.0, %v2493_v7 }
 0x34b   : > { %v7136_v61 = vsel %vm6020_vm6, 4294967295, %v7135_v61 }
 0x34c   : > { %2514 = vst [vmem:[#allocation22] sm:$0xff] %v5495_v3  ;;  %v7137_v26 = vmov 0 }
 0x353   : > { %v2515_v40 = vld [vmem:[#allocation22] sm:$0x3] }
 0x354   : > { %v2516_v60 = vunpack.c.0.f8e4m3b11 %v2515_v40 }
 0x356   : > { %v2520_v46 = vand.u32 2147483647, %v2516_v60  ;;  %vm2522_vm10 = vcmp.ne.f32.partialorder %v2516_v60, %v2516_v60  ;;  %v2523_v56 = vmul.f32 16.0, %v2516_v60 }
 0x358   : > { %vm6030_vm14 = vcmp.gt.f32.partialorder %v2520_v46, 29.0  ;;  %v6034_v62 = vsel %vm2522_vm10, -0.0, %v2523_v56 }
 0x359   : > { %v7138_v26 = vsel %vm6030_vm14, 4294967295, %v7137_v26 }
 0x35a   : > { %2544 = vst [vmem:[#allocation23] sm:$0xff] %v5533_v43  ;;  %v7139_v31 = vmov 0 }
 0x361   : > { %v2545_v7 = vld [vmem:[#allocation23] sm:$0x3] }
 0x362   : > { %v2546_v25 = vunpack.c.0.f8e4m3b11 %v2545_v7 }
 0x364   : > { %v2550_v1 = vand.u32 2147483647, %v2546_v25  ;;  %vm2552_vm2 = vcmp.ne.f32.partialorder %v2546_v25, %v2546_v25  ;;  %v2553_v40 = vmul.f32 16.0, %v2546_v25 }
 0x366   : > { %vm6040_vm6 = vcmp.gt.f32.partialorder %v2550_v1, 29.0  ;;  %v6044_v46 = vsel %vm2552_vm2, -0.0, %v2553_v40 }
 0x367   : > { %v7140_v31 = vsel %vm6040_vm6, 4294967295, %v7139_v31 }
 0x368   : > { %2574 = vst [vmem:[#allocation24] sm:$0xff] %v5573_v39  ;;  %v7141_v59 = vmov 0 }
 0x36f   : > { %v2575_v56 = vld [vmem:[#allocation24] sm:$0x3] }
 0x370   : > { %v2576_v34 = vunpack.c.0.f8e4m3b11 %v2575_v56 }
 0x372   : > { %v2580_v0 = vand.u32 2147483647, %v2576_v34  ;;  %vm2582_vm10 = vcmp.ne.f32.partialorder %v2576_v34, %v2576_v34  ;;  %v2583_v7 = vmul.f32 16.0, %v2576_v34 }
 0x374   : > { %vm6050_vm14 = vcmp.gt.f32.partialorder %v2580_v0, 29.0  ;;  %v6054_v1 = vsel %vm2582_vm10, -0.0, %v2583_v7 }
 0x375   : > { %v7142_v59 = vsel %vm6050_vm14, 4294967295, %v7141_v59 }
 0x376   : > { %2604 = vst [vmem:[#allocation25] sm:$0xff] %v5455_v11  ;;  %v7143_v49 = vmov 0 }
 0x37d   : > { %v2606_v40 = vld [vmem:[#allocation25 + $0x2] sm:$0x3] }
 0x37e   : > { %v2607_v60 = vunpack.c.0.f8e4m3b11 %v2606_v40 }
 0x380   : > { %v2611_v41 = vand.u32 2147483647, %v2607_v60  ;;  %vm2613_vm2 = vcmp.ne.f32.partialorder %v2607_v60, %v2607_v60  ;;  %v2614_v56 = vmul.f32 16.0, %v2607_v60 }
 0x382   : > { %vm6060_vm6 = vcmp.gt.f32.partialorder %v2611_v41, 29.0  ;;  %v6064_v0 = vsel %vm2613_vm2, -0.0, %v2614_v56 }
 0x383   : > { %v7144_v49 = vsel %vm6060_vm6, 4294967295, %v7143_v49  ;;  %7145 = vst [vmem:[#allocation98_spill] sm:$0xff] %v6064_v0 }
 0x384   : > { %2635 = vst [vmem:[#allocation26] sm:$0xff] %v5495_v3  ;;  %v7146_v2 = vmov 0 }
 0x38b   : > { %v2637_v7 = vld [vmem:[#allocation26 + $0x2] sm:$0x3] }
 0x38c   : > { %v2638_v25 = vunpack.c.0.f8e4m3b11 %v2637_v7 }
 0x38e   : > { %v2642_v32 = vand.u32 2147483647, %v2638_v25  ;;  %vm2644_vm10 = vcmp.ne.f32.partialorder %v2638_v25, %v2638_v25  ;;  %v2645_v40 = vmul.f32 16.0, %v2638_v25 }
 0x390   : > { %vm6070_vm14 = vcmp.gt.f32.partialorder %v2642_v32, 29.0  ;;  %v6074_v41 = vsel %vm2644_vm10, -0.0, %v2645_v40 }
 0x391   : > { %v7147_v2 = vsel %vm6070_vm14, 4294967295, %v7146_v2  ;;  %7149 = vst [vmem:[#allocation100_spill] sm:$0xff] %v6074_v41 }
 0x392   : > { %7148 = vst [vmem:[#allocation99_spill] sm:$0xff] %v7147_v2 }
 0x393   : > { %2666 = vst [vmem:[#allocation27] sm:$0xff] %v5533_v43  ;;  %v7150_v0 = vmov 0 }
 0x39a   : > { %v2668_v56 = vld [vmem:[#allocation27 + $0x2] sm:$0x3] }
 0x39b   : > { %v2669_v34 = vunpack.c.0.f8e4m3b11 %v2668_v56 }
 0x39d   : > { %v2673_v5 = vand.u32 2147483647, %v2669_v34  ;;  %vm2675_vm2 = vcmp.ne.f32.partialorder %v2669_v34, %v2669_v34  ;;  %v2676_v7 = vmul.f32 16.0, %v2669_v34 }
 0x39f   : > { %vm6080_vm6 = vcmp.gt.f32.partialorder %v2673_v5, 29.0  ;;  %v6084_v32 = vsel %vm2675_vm2, -0.0, %v2676_v7 }
 0x3a0   : > { %v7151_v0 = vsel %vm6080_vm6, 4294967295, %v7150_v0  ;;  %7153 = vst [vmem:[#allocation102_spill] sm:$0xff] %v6084_v32 }
 0x3a1   : > { %7152 = vst [vmem:[#allocation101_spill] sm:$0xff] %v7151_v0 }
 0x3a2   : > { %2697 = vst [vmem:[#allocation28] sm:$0xff] %v5573_v39  ;;  %v7154_v2 = vmov 0 }
 0x3a9   : > { %v2699_v40 = vld [vmem:[#allocation28 + $0x2] sm:$0x3] }
 0x3aa   : > { %v2700_v60 = vunpack.c.0.f8e4m3b11 %v2699_v40 }
 0x3ac   : > { %v2704_v41 = vand.u32 2147483647, %v2700_v60  ;;  %vm2706_vm10 = vcmp.ne.f32.partialorder %v2700_v60, %v2700_v60  ;;  %v2707_v56 = vmul.f32 16.0, %v2700_v60 }
 0x3ae   : > { %vm6090_vm14 = vcmp.gt.f32.partialorder %v2704_v41, 29.0  ;;  %v6094_v5 = vsel %vm2706_vm10, -0.0, %v2707_v56 }
 0x3af   : > { %v7155_v2 = vsel %vm6090_vm14, 4294967295, %v7154_v2  ;;  %7157 = vst [vmem:[#allocation70_spill] sm:$0xff] %v6094_v5 }
 0x3b0   : > { %7156 = vst [vmem:[#allocation103_spill] sm:$0xff] %v7155_v2 }
 0x3b1   : > { %2728 = vst [vmem:[#allocation29] sm:$0xff] %v5455_v11  ;;  %v7158_v0 = vmov 0 }
 0x3b8   : > { %v2730_v7 = vld [vmem:[#allocation29 + $0x4] sm:$0x3] }
 0x3b9   : > { %v2731_v25 = vunpack.c.0.f8e4m3b11 %v2730_v7 }
 0x3bb   : > { %v2735_v32 = vand.u32 2147483647, %v2731_v25  ;;  %vm2737_vm2 = vcmp.ne.f32.partialorder %v2731_v25, %v2731_v25  ;;  %v2738_v40 = vmul.f32 16.0, %v2731_v25 }
 0x3bd   : > { %vm6100_vm6 = vcmp.gt.f32.partialorder %v2735_v32, 29.0  ;;  %v6104_v41 = vsel %vm2737_vm2, -0.0, %v2738_v40 }
 0x3be   : > { %v7159_v0 = vsel %vm6100_vm6, 4294967295, %v7158_v0  ;;  %7161 = vst [vmem:[#allocation72_spill] sm:$0xff] %v6104_v41 }
 0x3bf   : > { %7160 = vst [vmem:[#allocation71_spill] sm:$0xff] %v7159_v0 }
 0x3c0   : > { %2759 = vst [vmem:[#allocation30] sm:$0xff] %v5495_v3  ;;  %v7162_v2 = vmov 0 }
 0x3c7   : > { %v2761_v56 = vld [vmem:[#allocation30 + $0x4] sm:$0x3] }
 0x3c8   : > { %v2762_v34 = vunpack.c.0.f8e4m3b11 %v2761_v56 }
 0x3ca   : > { %v2766_v5 = vand.u32 2147483647, %v2762_v34  ;;  %vm2768_vm10 = vcmp.ne.f32.partialorder %v2762_v34, %v2762_v34  ;;  %v2769_v7 = vmul.f32 16.0, %v2762_v34 }
 0x3cc   : > { %vm6110_vm14 = vcmp.gt.f32.partialorder %v2766_v5, 29.0  ;;  %v6114_v32 = vsel %vm2768_vm10, -0.0, %v2769_v7 }
 0x3cd   : > { %v7163_v2 = vsel %vm6110_vm14, 4294967295, %v7162_v2  ;;  %7165 = vst [vmem:[#allocation74_spill] sm:$0xff] %v6114_v32 }
 0x3ce   : > { %7164 = vst [vmem:[#allocation73_spill] sm:$0xff] %v7163_v2 }
 0x3cf   : > { %2790 = vst [vmem:[#allocation31] sm:$0xff] %v5533_v43  ;;  %v7166_v0 = vmov 0 }
 0x3d6   : > { %v2792_v40 = vld [vmem:[#allocation31 + $0x4] sm:$0x3] }
 0x3d7   : > { %v2793_v60 = vunpack.c.0.f8e4m3b11 %v2792_v40 }
 0x3d9   : > { %v2797_v41 = vand.u32 2147483647, %v2793_v60  ;;  %vm2799_vm2 = vcmp.ne.f32.partialorder %v2793_v60, %v2793_v60  ;;  %v2800_v56 = vmul.f32 16.0, %v2793_v60 }
 0x3db   : > { %vm6120_vm6 = vcmp.gt.f32.partialorder %v2797_v41, 29.0  ;;  %v6124_v5 = vsel %vm2799_vm2, -0.0, %v2800_v56 }
 0x3dc   : > { %v7167_v0 = vsel %vm6120_vm6, 4294967295, %v7166_v0  ;;  %7169 = vst [vmem:[#allocation84_spill] sm:$0xff] %v6124_v5 }
 0x3dd   : > { %7168 = vst [vmem:[#allocation82_spill] sm:$0xff] %v7167_v0 }
 0x3de   : > { %2821 = vst [vmem:[#allocation32] sm:$0xff] %v5573_v39  ;;  %v7170_v2 = vmov 0 }
 0x3e5   : > { %v2823_v7 = vld [vmem:[#allocation32 + $0x4] sm:$0x3] }
 0x3e6   : > { %v2824_v25 = vunpack.c.0.f8e4m3b11 %v2823_v7 }
 0x3e8   : > { %v2828_v32 = vand.u32 2147483647, %v2824_v25  ;;  %vm2830_vm10 = vcmp.ne.f32.partialorder %v2824_v25, %v2824_v25  ;;  %v2831_v40 = vmul.f32 16.0, %v2824_v25 }
 0x3ea   : > { %vm6130_vm14 = vcmp.gt.f32.partialorder %v2828_v32, 29.0  ;;  %v6134_v41 = vsel %vm2830_vm10, -0.0, %v2831_v40 }
 0x3eb   : > { %v7171_v2 = vsel %vm6130_vm14, 4294967295, %v7170_v2  ;;  %7172 = vst [vmem:[#allocation86_spill] sm:$0xff] %v6134_v41 }
 0x3ec   : > { %2852 = vst [vmem:[#allocation33] sm:$0xff] %v5455_v11  ;;  %v7173_v0 = vmov 0 }
 0x3f3   : > { %v2854_v56 = vld [vmem:[#allocation33 + $0x6] sm:$0x3] }
 0x3f4   : > { %v2855_v34 = vunpack.c.0.f8e4m3b11 %v2854_v56 }
 0x3f6   : > { %v2859_v5 = vand.u32 2147483647, %v2855_v34  ;;  %vm2861_vm2 = vcmp.ne.f32.partialorder %v2855_v34, %v2855_v34  ;;  %v2862_v7 = vmul.f32 16.0, %v2855_v34 }
 0x3f8   : > { %vm6140_vm6 = vcmp.gt.f32.partialorder %v2859_v5, 29.0  ;;  %v6144_v32 = vsel %vm2861_vm2, -0.0, %v2862_v7 }
 0x3f9   : > { %v7174_v0 = vsel %vm6140_vm6, 4294967295, %v7173_v0  ;;  %7175 = vst [vmem:[#allocation81_spill] sm:$0xff] %v6144_v32 }
 0x3fa   : > { %2883 = vst [vmem:[#allocation34] sm:$0xff] %v5495_v3  ;;  %v7176_v41 = vmov 0 }
 0x401   : > { %v2885_v40 = vld [vmem:[#allocation34 + $0x6] sm:$0x3] }
 0x402   : > { %v2886_v60 = vunpack.c.0.f8e4m3b11 %v2885_v40 }
 0x404   : > { %v2890_v11 = vand.u32 2147483647, %v2886_v60  ;;  %vm2892_vm10 = vcmp.ne.f32.partialorder %v2886_v60, %v2886_v60  ;;  %v2893_v56 = vmul.f32 16.0, %v2886_v60 }
 0x406   : > { %vm6150_vm14 = vcmp.gt.f32.partialorder %v2890_v11, 29.0  ;;  %v6154_v5 = vsel %vm2892_vm10, -0.0, %v2893_v56 }
 0x407   : > { %v7177_v41 = vsel %vm6150_vm14, 4294967295, %v7176_v41  ;;  %7178 = vst [vmem:[#allocation83_spill] sm:$0xff] %v6154_v5 }
 0x408   : > { %2914 = vst [vmem:[#allocation35] sm:$0xff] %v5533_v43  ;;  %v7179_v32 = vmov 0 }
 0x40f   : > { %v2916_v7 = vld [vmem:[#allocation35 + $0x6] sm:$0x3] }
 0x410   : > { %v2917_v25 = vunpack.c.0.f8e4m3b11 %v2916_v7 }
 0x412   : > { %v2921_v3 = vand.u32 2147483647, %v2917_v25  ;;  %vm2923_vm2 = vcmp.ne.f32.partialorder %v2917_v25, %v2917_v25  ;;  %v2924_v40 = vmul.f32 16.0, %v2917_v25 }
 0x414   : > { %vm6160_vm6 = vcmp.gt.f32.partialorder %v2921_v3, 29.0  ;;  %v6164_v60 = vsel %vm2923_vm2, -0.0, %v2924_v40 }
 0x415   : > { %v7180_v32 = vsel %vm6160_vm6, 4294967295, %v7179_v32  ;;  %7181 = vst [vmem:[#allocation85_spill] sm:$0xff] %v6164_v60 }
 0x416   : > { %2945 = vst [vmem:[#allocation36] sm:$0xff] %v5573_v39  ;;  %v7182_v5 = vmov 0 }
 0x41d   : > { %v2947_v56 = vld [vmem:[#allocation36 + $0x6] sm:$0x3] }
 0x41e   : > { %v2948_v34 = vunpack.c.0.f8e4m3b11 %v2947_v56 }
 0x420   : > { %v2952_v43 = vand.u32 2147483647, %v2948_v34  ;;  %vm2954_vm10 = vcmp.ne.f32.partialorder %v2948_v34, %v2948_v34  ;;  %v2955_v7 = vmul.f32 16.0, %v2948_v34 }
 0x422   : > { %vm6170_vm14 = vcmp.gt.f32.partialorder %v2952_v43, 29.0  ;;  %v6174_v25 = vsel %vm2954_vm10, -0.0, %v2955_v7 }
 0x423   : > { %v7183_v5 = vsel %vm6170_vm14, 4294967295, %v7182_v5  ;;  %7185 = vst [vmem:[#allocation88_spill] sm:$0xff] %v6174_v25 }
 0x424   : > { %7184 = vst [vmem:[#allocation87_spill] sm:$0xff] %v7183_v5 }
 0x425   : > { %2976 = vst [vmem:[#allocation37] sm:$0xff] %v5613_v15  ;;  %v7186_v60 = vmov 0 }
 0x42c   : > { %v2977_v40 = vld [vmem:[#allocation37] sm:$0x3] }
 0x42d   : > { %v2978_v11 = vunpack.c.0.f8e4m3b11 %v2977_v40 }
 0x42f   : > { %v2982_v39 = vand.u32 2147483647, %v2978_v11  ;;  %vm2984_vm2 = vcmp.ne.f32.partialorder %v2978_v11, %v2978_v11  ;;  %v2985_v56 = vmul.f32 16.0, %v2978_v11 }
 0x431   : > { %vm6180_vm6 = vcmp.gt.f32.partialorder %v2982_v39, 29.0  ;;  %v6184_v34 = vsel %vm2984_vm2, -0.0, %v2985_v56 }
 0x432   : > { %v7187_v60 = vsel %vm6180_vm6, 4294967295, %v7186_v60  ;;  %7189 = vst [vmem:[#allocation94_spill] sm:$0xff] %v6184_v34 }
 0x433   : > { %7188 = vst [vmem:[#allocation91_spill] sm:$0xff] %v7187_v60 }
 0x434   : > { %3006 = vst [vmem:[#allocation38] sm:$0xff] %v5653_v42  ;;  %v7190_v5 = vmov 0 }
 0x43b   : > { %v3007_v7 = vld [vmem:[#allocation38] sm:$0x3] }
 0x43c   : > { %v3008_v3 = vunpack.c.0.f8e4m3b11 %v3007_v7 }
 0x43e   : > { %v3012_v25 = vand.u32 2147483647, %v3008_v3  ;;  %vm3014_vm10 = vcmp.ne.f32.partialorder %v3008_v3, %v3008_v3  ;;  %v3015_v40 = vmul.f32 16.0, %v3008_v3 }
 0x440   : > { %vm6190_vm14 = vcmp.gt.f32.partialorder %v3012_v25, 29.0  ;;  %v6194_v11 = vsel %vm3014_vm10, -0.0, %v3015_v40 }
 0x441   : > { %v7191_v5 = vsel %vm6190_vm14, 4294967295, %v7190_v5  ;;  %7193 = vst [vmem:[#allocation89_spill] sm:$0xff] %v6194_v11 }
 0x442   : > { %7192 = vst [vmem:[#allocation97_spill] sm:$0xff] %v7191_v5 }
 0x443   : > { %3036 = vst [vmem:[#allocation39] sm:$0xff] %v5691_v35  ;;  %v7194_v60 = vmov 0 }
 0x44a   : > { %v3037_v56 = vld [vmem:[#allocation39] sm:$0x3] }
 0x44b   : > { %v3038_v43 = vunpack.c.0.f8e4m3b11 %v3037_v56 }
 0x44d   : > { %v3042_v34 = vand.u32 2147483647, %v3038_v43  ;;  %vm3044_vm2 = vcmp.ne.f32.partialorder %v3038_v43, %v3038_v43  ;;  %v3045_v7 = vmul.f32 16.0, %v3038_v43 }
 0x44f   : > { %vm6200_vm6 = vcmp.gt.f32.partialorder %v3042_v34, 29.0  ;;  %v6204_v25 = vsel %vm3044_vm2, -0.0, %v3045_v7 }
 0x450   : > { %v7195_v60 = vsel %vm6200_vm6, 4294967295, %v7194_v60  ;;  %7197 = vst [vmem:[#allocation92_spill] sm:$0xff] %v6204_v25 }
 0x451   : > { %7196 = vst [vmem:[#allocation78_spill] sm:$0xff] %v7195_v60 }
 0x452   : > { %3066 = vst [vmem:[#allocation40] sm:$0xff] %v5731_v28  ;;  %v7198_v5 = vmov 0 }
 0x459   : > { %v3067_v40 = vld [vmem:[#allocation40] sm:$0x3] }
 0x45a   : > { %v3068_v39 = vunpack.c.0.f8e4m3b11 %v3067_v40 }
 0x45c   : > { %v3072_v11 = vand.u32 2147483647, %v3068_v39  ;;  %vm3074_vm10 = vcmp.ne.f32.partialorder %v3068_v39, %v3068_v39  ;;  %v3075_v56 = vmul.f32 16.0, %v3068_v39 }
 0x45e   : > { %vm6210_vm14 = vcmp.gt.f32.partialorder %v3072_v11, 29.0  ;;  %v6214_v34 = vsel %vm3074_vm10, -0.0, %v3075_v56 }
 0x45f   : > { %v7199_v5 = vsel %vm6210_vm14, 4294967295, %v7198_v5  ;;  %7201 = vst [vmem:[#allocation90_spill] sm:$0xff] %v6214_v34 }
 0x460   : > { %7200 = vst [vmem:[#allocation95_spill] sm:$0xff] %v7199_v5 }
 0x461   : > { %3096 = vst [vmem:[#allocation41] sm:$0xff] %v5613_v15  ;;  %v7202_v60 = vmov 0 }
 0x468   : > { %v3098_v7 = vld [vmem:[#allocation41 + $0x2] sm:$0x3] }
 0x469   : > { %v3099_v3 = vunpack.c.0.f8e4m3b11 %v3098_v7 }
 0x46b   : > { %v3103_v25 = vand.u32 2147483647, %v3099_v3  ;;  %vm3105_vm2 = vcmp.ne.f32.partialorder %v3099_v3, %v3099_v3  ;;  %v3106_v40 = vmul.f32 16.0, %v3099_v3 }
 0x46d   : > { %vm6220_vm6 = vcmp.gt.f32.partialorder %v3103_v25, 29.0  ;;  %v6224_v11 = vsel %vm3105_vm2, -0.0, %v3106_v40 }
 0x46e   : > { %v7203_v60 = vsel %vm6220_vm6, 4294967295, %v7202_v60  ;;  %7205 = vst [vmem:[#allocation93_spill] sm:$0xff] %v6224_v11 }
 0x46f   : > { %7204 = vst [vmem:[#allocation79_spill] sm:$0xff] %v7203_v60 }
 0x470   : > { %3127 = vst [vmem:[#allocation42] sm:$0xff] %v5653_v42  ;;  %v7206_v5 = vmov 0 }
 0x477   : > { %v3129_v56 = vld [vmem:[#allocation42 + $0x2] sm:$0x3] }
 0x478   : > { %v3130_v43 = vunpack.c.0.f8e4m3b11 %v3129_v56 }
 0x47a   : > { %v3134_v34 = vand.u32 2147483647, %v3130_v43  ;;  %vm3136_vm10 = vcmp.ne.f32.partialorder %v3130_v43, %v3130_v43  ;;  %v3137_v7 = vmul.f32 16.0, %v3130_v43 }
 0x47c   : > { %vm6230_vm14 = vcmp.gt.f32.partialorder %v3134_v34, 29.0  ;;  %v6234_v25 = vsel %vm3136_vm10, -0.0, %v3137_v7 }
 0x47d   : > { %v7207_v5 = vsel %vm6230_vm14, 4294967295, %v7206_v5  ;;  %7209 = vst [vmem:[#allocation75_spill] sm:$0xff] %v6234_v25 }
 0x47e   : > { %7208 = vst [vmem:[#allocation96_spill] sm:$0xff] %v7207_v5 }
 0x47f   : > { %3158 = vst [vmem:[#allocation43] sm:$0xff] %v5691_v35  ;;  %v7210_v60 = vmov 0 }
 0x486   : > { %v3160_v40 = vld [vmem:[#allocation43 + $0x2] sm:$0x3] }
 0x487   : > { %v3161_v39 = vunpack.c.0.f8e4m3b11 %v3160_v40 }
 0x489   : > { %v3165_v11 = vand.u32 2147483647, %v3161_v39  ;;  %vm3167_vm2 = vcmp.ne.f32.partialorder %v3161_v39, %v3161_v39  ;;  %v3168_v56 = vmul.f32 16.0, %v3161_v39 }
 0x48b   : > { %vm6240_vm6 = vcmp.gt.f32.partialorder %v3165_v11, 29.0  ;;  %v6244_v34 = vsel %vm3167_vm2, -0.0, %v3168_v56 }
 0x48c   : > { %v7211_v60 = vsel %vm6240_vm6, 4294967295, %v7210_v60  ;;  %7213 = vst [vmem:[#allocation77_spill] sm:$0xff] %v6244_v34 }
 0x48d   : > { %7212 = vst [vmem:[#allocation76_spill] sm:$0xff] %v7211_v60 }
 0x48e   : > { %3189 = vst [vmem:[#allocation44] sm:$0xff] %v5731_v28  ;;  %v7214_v5 = vmov 0 }
 0x495   : > { %v3191_v7 = vld [vmem:[#allocation44 + $0x2] sm:$0x3] }
 0x496   : > { %v3192_v3 = vunpack.c.0.f8e4m3b11 %v3191_v7 }
 0x498   : > { %v3196_v25 = vand.u32 2147483647, %v3192_v3  ;;  %vm3198_vm10 = vcmp.ne.f32.partialorder %v3192_v3, %v3192_v3  ;;  %v3199_v40 = vmul.f32 16.0, %v3192_v3 }
 0x49a   : > { %vm6250_vm14 = vcmp.gt.f32.partialorder %v3196_v25, 29.0  ;;  %v6254_v11 = vsel %vm3198_vm10, -0.0, %v3199_v40 }
 0x49b   : > { %v7215_v5 = vsel %vm6250_vm14, 4294967295, %v7214_v5  ;;  %7217 = vst [vmem:[#allocation104_spill] sm:$0xff] %v6254_v11 }
 0x49c   : > { %7216 = vst [vmem:[#allocation80_spill] sm:$0xff] %v7215_v5 }
 0x49d   : > { %3220 = vst [vmem:[#allocation45] sm:$0xff] %v5613_v15  ;;  %v7218_v60 = vmov 0 }
 0x4a4   : > { %v3222_v56 = vld [vmem:[#allocation45 + $0x4] sm:$0x3] }
 0x4a5   : > { %v3223_v43 = vunpack.c.0.f8e4m3b11 %v3222_v56 }
 0x4a7   : > { %v3227_v34 = vand.u32 2147483647, %v3223_v43  ;;  %vm3229_vm2 = vcmp.ne.f32.partialorder %v3223_v43, %v3223_v43  ;;  %v3230_v7 = vmul.f32 16.0, %v3223_v43 }
 0x4a9   : > { %vm6260_vm6 = vcmp.gt.f32.partialorder %v3227_v34, 29.0  ;;  %v6264_v25 = vsel %vm3229_vm2, -0.0, %v3230_v7 }
 0x4aa   : > { %v7219_v60 = vsel %vm6260_vm6, 4294967295, %v7218_v60  ;;  %7221 = vst [vmem:[#allocation106_spill] sm:$0xff] %v6264_v25 }
 0x4ab   : > { %7220 = vst [vmem:[#allocation105_spill] sm:$0xff] %v7219_v60 }
 0x4ac   : > { %3251 = vst [vmem:[#allocation46] sm:$0xff] %v5653_v42  ;;  %v7222_v5 = vmov 0 }
 0x4b3   : > { %v3253_v40 = vld [vmem:[#allocation46 + $0x4] sm:$0x3] }
 0x4b4   : > { %v3254_v39 = vunpack.c.0.f8e4m3b11 %v3253_v40 }
 0x4b6   : > { %v3258_v11 = vand.u32 2147483647, %v3254_v39  ;;  %vm3260_vm10 = vcmp.ne.f32.partialorder %v3254_v39, %v3254_v39  ;;  %v3261_v56 = vmul.f32 16.0, %v3254_v39 }
 0x4b8   : > { %vm6270_vm14 = vcmp.gt.f32.partialorder %v3258_v11, 29.0  ;;  %v6274_v34 = vsel %vm3260_vm10, -0.0, %v3261_v56 }
 0x4b9   : > { %v7223_v5 = vsel %vm6270_vm14, 4294967295, %v7222_v5  ;;  %7225 = vst [vmem:[#allocation108_spill] sm:$0xff] %v6274_v34 }
 0x4ba   : > { %7224 = vst [vmem:[#allocation107_spill] sm:$0xff] %v7223_v5 }
 0x4bb   : > { %3282 = vst [vmem:[#allocation47] sm:$0xff] %v5691_v35  ;;  %v7226_v60 = vmov 0 }
 0x4c2   : > { %v3284_v7 = vld [vmem:[#allocation47 + $0x4] sm:$0x3] }
 0x4c3   : > { %v3285_v3 = vunpack.c.0.f8e4m3b11 %v3284_v7 }
 0x4c5   : > { %v3289_v25 = vand.u32 2147483647, %v3285_v3  ;;  %vm3291_vm2 = vcmp.ne.f32.partialorder %v3285_v3, %v3285_v3  ;;  %v3292_v40 = vmul.f32 16.0, %v3285_v3 }
 0x4c7   : > { %vm6280_vm6 = vcmp.gt.f32.partialorder %v3289_v25, 29.0  ;;  %v6284_v11 = vsel %vm3291_vm2, -0.0, %v3292_v40 }
 0x4c8   : > { %v7227_v60 = vsel %vm6280_vm6, 4294967295, %v7226_v60  ;;  %7229 = vst [vmem:[#allocation110_spill] sm:$0xff] %v6284_v11 }
 0x4c9   : > { %7228 = vst [vmem:[#allocation109_spill] sm:$0xff] %v7227_v60 }
 0x4ca   : > { %3313 = vst [vmem:[#allocation48] sm:$0xff] %v5731_v28  ;;  %v7230_v5 = vmov 0 }
 0x4d1   : > { %v3315_v56 = vld [vmem:[#allocation48 + $0x4] sm:$0x3] }
 0x4d2   : > { %v3316_v43 = vunpack.c.0.f8e4m3b11 %v3315_v56 }
 0x4d4   : > { %v3320_v34 = vand.u32 2147483647, %v3316_v43  ;;  %vm3322_vm10 = vcmp.ne.f32.partialorder %v3316_v43, %v3316_v43  ;;  %v3323_v7 = vmul.f32 16.0, %v3316_v43 }
 0x4d6   : > { %vm6290_vm14 = vcmp.gt.f32.partialorder %v3320_v34, 29.0  ;;  %v6294_v25 = vsel %vm3322_vm10, -0.0, %v3323_v7 }
 0x4d7   : > { %v7231_v5 = vsel %vm6290_vm14, 4294967295, %v7230_v5  ;;  %7232 = vst [vmem:[#allocation111_spill] sm:$0xff] %v6294_v25 }
 0x4d8   : > { %3344 = vst [vmem:[#allocation49] sm:$0xff] %v5613_v15  ;;  %v7233_v60 = vmov 0 }
 0x4df   : > { %v3346_v40 = vld [vmem:[#allocation49 + $0x6] sm:$0x3] }
 0x4e0   : > { %v3347_v39 = vunpack.c.0.f8e4m3b11 %v3346_v40 }
 0x4e2   : > { %v3351_v11 = vand.u32 2147483647, %v3347_v39  ;;  %vm3353_vm2 = vcmp.ne.f32.partialorder %v3347_v39, %v3347_v39  ;;  %v3354_v56 = vmul.f32 16.0, %v3347_v39 }
 0x4e4   : > { %vm6300_vm6 = vcmp.gt.f32.partialorder %v3351_v11, 29.0  ;;  %v6304_v34 = vsel %vm3353_vm2, -0.0, %v3354_v56 }
 0x4e5   : > { %v7234_v60 = vsel %vm6300_vm6, 4294967295, %v7233_v60  ;;  %7235 = vst [vmem:[#allocation112_spill] sm:$0xff] %v6304_v34 }
 0x4e6   : > { %3375 = vst [vmem:[#allocation50] sm:$0xff] %v5653_v42  ;;  %v7236_v25 = vmov 0 }
 0x4ed   : > { %v3377_v7 = vld [vmem:[#allocation50 + $0x6] sm:$0x3] }
 0x4ee   : > { %v3378_v3 = vunpack.c.0.f8e4m3b11 %v3377_v7 }
 0x4f0   : > { %v3382_v15 = vand.u32 2147483647, %v3378_v3  ;;  %vm3384_vm10 = vcmp.ne.f32.partialorder %v3378_v3, %v3378_v3  ;;  %v3385_v40 = vmul.f32 16.0, %v3378_v3 }
 0x4f2   : > { %vm6310_vm14 = vcmp.gt.f32.partialorder %v3382_v15, 29.0  ;;  %v6314_v11 = vsel %vm3384_vm10, -0.0, %v3385_v40 }
 0x4f3   : > { %v7237_v25 = vsel %vm6310_vm14, 4294967295, %v7236_v25  ;;  %7238 = vst [vmem:[#allocation113_spill] sm:$0xff] %v6314_v11 }
 0x4f4   : > { %3406 = vst [vmem:[#allocation51] sm:$0xff] %v5691_v35  ;;  %v7239_v34 = vmov 0 }
 0x4fb   : > { %v3408_v56 = vld [vmem:[#allocation51 + $0x6] sm:$0x3] }
 0x4fc   : > { %v3409_v43 = vunpack.c.0.f8e4m3b11 %v3408_v56 }
 0x4fe   : > { %v3413_v42 = vand.u32 2147483647, %v3409_v43  ;;  %vm3415_vm2 = vcmp.ne.f32.partialorder %v3409_v43, %v3409_v43  ;;  %v3416_v7 = vmul.f32 16.0, %v3409_v43 }
 0x500   : > { %vm6320_vm6 = vcmp.gt.f32.partialorder %v3413_v42, 29.0  ;;  %v6324_v3 = vsel %vm3415_vm2, -0.0, %v3416_v7 }
 0x501   : > { %v7240_v34 = vsel %vm6320_vm6, 4294967295, %v7239_v34  ;;  %7241 = vst [vmem:[#allocation114_spill] sm:$0xff] %v6324_v3 }
 0x502   : > { %3437 = vst [vmem:[#allocation52] sm:$0xff] %v5731_v28  ;;  %v7242_v11 = vmov 0 }
 0x509   : > { %v3439_v40 = vld [vmem:[#allocation52 + $0x6] sm:$0x3] }
 0x50a   : > { %v3440_v39 = vunpack.c.0.f8e4m3b11 %v3439_v40 }
 0x50c   : > { %v3444_v35 = vand.u32 2147483647, %v3440_v39  ;;  %vm3446_vm10 = vcmp.ne.f32.partialorder %v3440_v39, %v3440_v39  ;;  %v3447_v56 = vmul.f32 16.0, %v3440_v39 }
 0x50e   : > { %vm6330_vm14 = vcmp.gt.f32.partialorder %v3444_v35, 29.0  ;;  %v6334_v43 = vsel %vm3446_vm10, -0.0, %v3447_v56 }
 0x50f   : > { %v7243_v11 = vsel %vm6330_vm14, 4294967295, %v7242_v11  ;;  %7245 = vst [vmem:[#allocation116_spill] sm:$0xff] %v6334_v43 }
 0x510   : > { %7244 = vst [vmem:[#allocation115_spill] sm:$0xff] %v7243_v11 }
 0x511   : > { %3468 = vst [vmem:[#allocation53] sm:$0xff] %v5767_v53  ;;  %v7246_v3 = vmov 0 }
 0x518   : > { %v3469_v7 = vld [vmem:[#allocation53] sm:$0x3] }
 0x519   : > { %v3470_v15 = vunpack.c.0.f8e4m3b11 %v3469_v7 }
 0x51b   : > { %v3474_v28 = vand.u32 2147483647, %v3470_v15  ;;  %vm3476_vm2 = vcmp.ne.f32.partialorder %v3470_v15, %v3470_v15  ;;  %v3477_v40 = vmul.f32 16.0, %v3470_v15 }
 0x51d   : > { %vm6340_vm6 = vcmp.gt.f32.partialorder %v3474_v28, 29.0  ;;  %v6344_v39 = vsel %vm3476_vm2, -0.0, %v3477_v40 }
 0x51e   : > { %v7247_v3 = vsel %vm6340_vm6, 4294967295, %v7246_v3  ;;  %7249 = vst [vmem:[#allocation118_spill] sm:$0xff] %v6344_v39 }
 0x51f   : > { %7248 = vst [vmem:[#allocation117_spill] sm:$0xff] %v7247_v3 }
 0x520   : > { %3498 = vst [vmem:[#allocation54] sm:$0xff] %v5805_v22  ;;  %v7250_v11 = vmov 0 }
 0x527   : > { %v3499_v56 = vld [vmem:[#allocation54] sm:$0x3] }
 0x528   : > { %v3500_v42 = vunpack.c.0.f8e4m3b11 %v3499_v56 }
 0x52a   : > { %v3504_v43 = vand.u32 2147483647, %v3500_v42  ;;  %vm3506_vm10 = vcmp.ne.f32.partialorder %v3500_v42, %v3500_v42  ;;  %v3507_v7 = vmul.f32 16.0, %v3500_v42 }
 0x52c   : > { %vm6350_vm14 = vcmp.gt.f32.partialorder %v3504_v43, 29.0  ;;  %v6354_v15 = vsel %vm3506_vm10, -0.0, %v3507_v7 }
 0x52d   : > { %v7251_v11 = vsel %vm6350_vm14, 4294967295, %v7250_v11  ;;  %7253 = vst [vmem:[#allocation120_spill] sm:$0xff] %v6354_v15 }
 0x52e   : > { %7252 = vst [vmem:[#allocation119_spill] sm:$0xff] %v7251_v11 }
 0x52f   : > { %3528 = vst [vmem:[#allocation55] sm:$0xff] %v5840_v57  ;;  %v7254_v3 = vmov 0 }
 0x536   : > { %v3529_v40 = vld [vmem:[#allocation55] sm:$0x3] }
 0x537   : > { %v3530_v35 = vunpack.c.0.f8e4m3b11 %v3529_v40 }
 0x539   : > { %v3534_v39 = vand.u32 2147483647, %v3530_v35  ;;  %vm3536_vm2 = vcmp.ne.f32.partialorder %v3530_v35, %v3530_v35  ;;  %v3537_v56 = vmul.f32 16.0, %v3530_v35 }
 0x53b   : > { %vm6360_vm6 = vcmp.gt.f32.partialorder %v3534_v39, 29.0  ;;  %v6364_v43 = vsel %vm3536_vm2, -0.0, %v3537_v56 }
 0x53c   : > { %v7255_v3 = vsel %vm6360_vm6, 4294967295, %v7254_v3  ;;  %7257 = vst [vmem:[#allocation122_spill] sm:$0xff] %v6364_v43 }
 0x53d   : > { %7256 = vst [vmem:[#allocation121_spill] sm:$0xff] %v7255_v3 }
 0x53e   : > { %3558 = vst [vmem:[#allocation56] sm:$0xff] %v5857_v47  ;;  %v7258_v11 = vmov 0 }
 0x545   : > { %v3559_v7 = vld [vmem:[#allocation56] sm:$0x3] }
 0x546   : > { %v3560_v28 = vunpack.c.0.f8e4m3b11 %v3559_v7 }
 0x548   : > { %v3564_v15 = vand.u32 2147483647, %v3560_v28  ;;  %vm3566_vm10 = vcmp.ne.f32.partialorder %v3560_v28, %v3560_v28  ;;  %v3567_v40 = vmul.f32 16.0, %v3560_v28 }
 0x54a   : > { %vm6370_vm14 = vcmp.gt.f32.partialorder %v3564_v15, 29.0  ;;  %v6374_v39 = vsel %vm3566_vm10, -0.0, %v3567_v40 }
 0x54b   : > { %v7259_v11 = vsel %vm6370_vm14, 4294967295, %v7258_v11  ;;  %7261 = vst [vmem:[#allocation124_spill] sm:$0xff] %v6374_v39 }
 0x54c   : > { %7260 = vst [vmem:[#allocation123_spill] sm:$0xff] %v7259_v11 }
 0x54d   : > { %3588 = vst [vmem:[#allocation57] sm:$0xff] %v5767_v53  ;;  %v7262_v3 = vmov 0 }
 0x554   : > { %v3590_v56 = vld [vmem:[#allocation57 + $0x2] sm:$0x3] }
 0x555   : > { %v3591_v42 = vunpack.c.0.f8e4m3b11 %v3590_v56 }
 0x557   : > { %v3595_v43 = vand.u32 2147483647, %v3591_v42  ;;  %vm3597_vm2 = vcmp.ne.f32.partialorder %v3591_v42, %v3591_v42  ;;  %v3598_v7 = vmul.f32 16.0, %v3591_v42 }
 0x559   : > { %vm6380_vm6 = vcmp.gt.f32.partialorder %v3595_v43, 29.0  ;;  %v6384_v15 = vsel %vm3597_vm2, -0.0, %v3598_v7 }
 0x55a   : > { %v7263_v3 = vsel %vm6380_vm6, 4294967295, %v7262_v3  ;;  %7265 = vst [vmem:[#allocation126_spill] sm:$0xff] %v6384_v15 }
 0x55b   : > { %7264 = vst [vmem:[#allocation125_spill] sm:$0xff] %v7263_v3 }
 0x55c   : > { %3619 = vst [vmem:[#allocation58] sm:$0xff] %v5805_v22  ;;  %v7266_v11 = vmov 0 }
 0x563   : > { %v3621_v40 = vld [vmem:[#allocation58 + $0x2] sm:$0x3] }
 0x564   : > { %v3622_v35 = vunpack.c.0.f8e4m3b11 %v3621_v40 }
 0x566   : > { %v3626_v39 = vand.u32 2147483647, %v3622_v35  ;;  %vm3628_vm10 = vcmp.ne.f32.partialorder %v3622_v35, %v3622_v35  ;;  %v3629_v56 = vmul.f32 16.0, %v3622_v35 }
 0x568   : > { %vm6390_vm14 = vcmp.gt.f32.partialorder %v3626_v39, 29.0  ;;  %v6394_v43 = vsel %vm3628_vm10, -0.0, %v3629_v56 }
 0x569   : > { %v7267_v11 = vsel %vm6390_vm14, 4294967295, %v7266_v11  ;;  %7269 = vst [vmem:[#allocation128_spill] sm:$0xff] %v6394_v43 }
 0x56a   : > { %7268 = vst [vmem:[#allocation127_spill] sm:$0xff] %v7267_v11 }
 0x56b   : > { %3650 = vst [vmem:[#allocation59] sm:$0xff] %v5840_v57  ;;  %v7270_v3 = vmov 0 }
 0x572   : > { %v3652_v7 = vld [vmem:[#allocation59 + $0x2] sm:$0x3] }
 0x573   : > { %v3653_v28 = vunpack.c.0.f8e4m3b11 %v3652_v7 }
 0x575   : > { %v3657_v15 = vand.u32 2147483647, %v3653_v28  ;;  %vm3659_vm2 = vcmp.ne.f32.partialorder %v3653_v28, %v3653_v28  ;;  %v3660_v40 = vmul.f32 16.0, %v3653_v28 }
 0x577   : > { %vm6400_vm6 = vcmp.gt.f32.partialorder %v3657_v15, 29.0  ;;  %v6404_v39 = vsel %vm3659_vm2, -0.0, %v3660_v40 }
 0x578   : > { %v7271_v3 = vsel %vm6400_vm6, 4294967295, %v7270_v3  ;;  %7273 = vst [vmem:[#allocation130_spill] sm:$0xff] %v6404_v39 }
 0x579   : > { %7272 = vst [vmem:[#allocation129_spill] sm:$0xff] %v7271_v3 }
 0x57a   : > { %3681 = vst [vmem:[#allocation60] sm:$0xff] %v5857_v47  ;;  %v7274_v11 = vmov 0 }
 0x581   : > { %v3683_v56 = vld [vmem:[#allocation60 + $0x2] sm:$0x3] }
 0x582   : > { %v3684_v42 = vunpack.c.0.f8e4m3b11 %v3683_v56 }
 0x584   : > { %v3688_v43 = vand.u32 2147483647, %v3684_v42  ;;  %vm3690_vm10 = vcmp.ne.f32.partialorder %v3684_v42, %v3684_v42  ;;  %v3691_v7 = vmul.f32 16.0, %v3684_v42 }
 0x586   : > { %vm6410_vm14 = vcmp.gt.f32.partialorder %v3688_v43, 29.0  ;;  %v6414_v15 = vsel %vm3690_vm10, -0.0, %v3691_v7 }
 0x587   : > { %v7275_v11 = vsel %vm6410_vm14, 4294967295, %v7274_v11  ;;  %7277 = vst [vmem:[#allocation132_spill] sm:$0xff] %v6414_v15 }
 0x588   : > { %7276 = vst [vmem:[#allocation131_spill] sm:$0xff] %v7275_v11 }
 0x589   : > { %3712 = vst [vmem:[#allocation61] sm:$0xff] %v5767_v53  ;;  %v7278_v3 = vmov 0 }
 0x590   : > { %v3714_v40 = vld [vmem:[#allocation61 + $0x4] sm:$0x3] }
 0x591   : > { %v3715_v35 = vunpack.c.0.f8e4m3b11 %v3714_v40 }
 0x593   : > { %v3719_v39 = vand.u32 2147483647, %v3715_v35  ;;  %vm3721_vm2 = vcmp.ne.f32.partialorder %v3715_v35, %v3715_v35  ;;  %v3722_v56 = vmul.f32 16.0, %v3715_v35 }
 0x595   : > { %vm6420_vm6 = vcmp.gt.f32.partialorder %v3719_v39, 29.0  ;;  %v6424_v43 = vsel %vm3721_vm2, -0.0, %v3722_v56 }
 0x596   : > { %v7279_v3 = vsel %vm6420_vm6, 4294967295, %v7278_v3  ;;  %7281 = vst [vmem:[#allocation134_spill] sm:$0xff] %v6424_v43 }
 0x597   : > { %7280 = vst [vmem:[#allocation133_spill] sm:$0xff] %v7279_v3 }
 0x598   : > { %3743 = vst [vmem:[#allocation62] sm:$0xff] %v5805_v22  ;;  %v7282_v11 = vmov 0 }
 0x59f   : > { %v3745_v7 = vld [vmem:[#allocation62 + $0x4] sm:$0x3] }
 0x5a0   : > { %v3746_v28 = vunpack.c.0.f8e4m3b11 %v3745_v7 }
 0x5a2   : > { %v3750_v15 = vand.u32 2147483647, %v3746_v28  ;;  %vm3752_vm10 = vcmp.ne.f32.partialorder %v3746_v28, %v3746_v28  ;;  %v3753_v40 = vmul.f32 16.0, %v3746_v28 }
 0x5a4   : > { %vm6430_vm14 = vcmp.gt.f32.partialorder %v3750_v15, 29.0  ;;  %v6434_v39 = vsel %vm3752_vm10, -0.0, %v3753_v40 }
 0x5a5   : > { %v7283_v11 = vsel %vm6430_vm14, 4294967295, %v7282_v11  ;;  %7285 = vst [vmem:[#allocation136_spill] sm:$0xff] %v6434_v39 }
 0x5a6   : > { %7284 = vst [vmem:[#allocation135_spill] sm:$0xff] %v7283_v11 }
 0x5a7   : > { %3774 = vst [vmem:[#allocation63] sm:$0xff] %v5840_v57  ;;  %v7286_v3 = vmov 0 }
 0x5ae   : > { %v3776_v56 = vld [vmem:[#allocation63 + $0x4] sm:$0x3] }
 0x5af   : > { %v3777_v42 = vunpack.c.0.f8e4m3b11 %v3776_v56 }
 0x5b1   : > { %v3781_v43 = vand.u32 2147483647, %v3777_v42  ;;  %vm3783_vm2 = vcmp.ne.f32.partialorder %v3777_v42, %v3777_v42  ;;  %v3784_v7 = vmul.f32 16.0, %v3777_v42 }
 0x5b3   : > { %vm6440_vm6 = vcmp.gt.f32.partialorder %v3781_v43, 29.0  ;;  %v6444_v15 = vsel %vm3783_vm2, -0.0, %v3784_v7 }
 0x5b4   : > { %v7287_v3 = vsel %vm6440_vm6, 4294967295, %v7286_v3  ;;  %7289 = vst [vmem:[#allocation138_spill] sm:$0xff] %v6444_v15 }
 0x5b5   : > { %7288 = vst [vmem:[#allocation137_spill] sm:$0xff] %v7287_v3 }
 0x5b6   : > { %3805 = vst [vmem:[#allocation64] sm:$0xff] %v5857_v47  ;;  %v7290_v11 = vmov 0 }
 0x5bd   : > { %v3807_v40 = vld [vmem:[#allocation64 + $0x4] sm:$0x3] }
 0x5be   : > { %v3808_v35 = vunpack.c.0.f8e4m3b11 %v3807_v40 }
 0x5c0   : > { %v3812_v39 = vand.u32 2147483647, %v3808_v35  ;;  %vm3814_vm10 = vcmp.ne.f32.partialorder %v3808_v35, %v3808_v35  ;;  %v3815_v56 = vmul.f32 16.0, %v3808_v35 }
 0x5c2   : > { %vm6450_vm14 = vcmp.gt.f32.partialorder %v3812_v39, 29.0  ;;  %v6454_v43 = vsel %vm3814_vm10, -0.0, %v3815_v56 }
 0x5c3   : > { %v7291_v11 = vsel %vm6450_vm14, 4294967295, %v7290_v11  ;;  %7292 = vst [vmem:[#allocation139_spill] sm:$0xff] %v6454_v43 }
 0x5c4   : > { %3836 = vst [vmem:[#allocation65] sm:$0xff] %v5767_v53  ;;  %v7293_v3 = vmov 0 }
 0x5cb   : > { %v3838_v7 = vld [vmem:[#allocation65 + $0x6] sm:$0x3] }
 0x5cc   : > { %v3839_v28 = vunpack.c.0.f8e4m3b11 %v3838_v7 }
 0x5ce   : > { %v3843_v15 = vand.u32 2147483647, %v3839_v28  ;;  %vm3845_vm2 = vcmp.ne.f32.partialorder %v3839_v28, %v3839_v28  ;;  %v3846_v40 = vmul.f32 16.0, %v3839_v28 }
 0x5d0   : > { %vm6460_vm6 = vcmp.gt.f32.partialorder %v3843_v15, 29.0  ;;  %v6464_v39 = vsel %vm3845_vm2, -0.0, %v3846_v40 }
 0x5d1   : > { %v7294_v3 = vsel %vm6460_vm6, 4294967295, %v7293_v3  ;;  %7295 = vst [vmem:[#allocation140_spill] sm:$0xff] %v6464_v39 }
 0x5d2   : > { %3867 = vst [vmem:[#allocation66] sm:$0xff] %v5805_v22  ;;  %v7296_v43 = vmov 0 }
 0x5d9   : > { %v3869_v56 = vld [vmem:[#allocation66 + $0x6] sm:$0x3] }
 0x5da   : > { %v3870_v42 = vunpack.c.0.f8e4m3b11 %v3869_v56 }
 0x5dc   : > { %v3874_v53 = vand.u32 2147483647, %v3870_v42  ;;  %vm3876_vm10 = vcmp.ne.f32.partialorder %v3870_v42, %v3870_v42  ;;  %v3877_v7 = vmul.f32 16.0, %v3870_v42 }
 0x5de   : > { %vm6470_vm14 = vcmp.gt.f32.partialorder %v3874_v53, 29.0  ;;  %v6474_v15 = vsel %vm3876_vm10, -0.0, %v3877_v7 }
 0x5df   : > { %v7297_v43 = vsel %vm6470_vm14, 4294967295, %v7296_v43  ;;  %7298 = vst [vmem:[#allocation141_spill] sm:$0xff] %v6474_v15 }
 0x5e0   : > { %3898 = vst [vmem:[#allocation67] sm:$0xff] %v5840_v57 }
 0x5e7   : > { %v3900_v40 = vld [vmem:[#allocation67 + $0x6] sm:$0x3] }
 0x5e8   : > { %v3901_v35 = vunpack.c.0.f8e4m3b11 %v3900_v40 }
 0x5ea   : > { %v3905_v22 = vand.u32 2147483647, %v3901_v35  ;;  %vm3907_vm2 = vcmp.ne.f32.partialorder %v3901_v35, %v3901_v35  ;;  %v3908_v56 = vmul.f32 16.0, %v3901_v35 }
 0x5ec   : > { %vm6480_vm6 = vcmp.gt.f32.partialorder %v3905_v22, 29.0  ;;  %v6484_v42 = vsel %vm3907_vm2, -0.0, %v3908_v56 }
 0x5ed   : > { %v3910_v53 = vsel %vm6480_vm6, nan, %v6484_v42 }
 0x5ee   : > { %3929 = vst [vmem:[#allocation68] sm:$0xff] %v5857_v47  ;;  %v7303_v56 = vsel %vm5860_vm3, nan, %v5864_v51  ;;  %v7304_v47 = vsel %vm5870_vm5, nan, %v5874_v23  ;;  %v7306_v45 = vsel %vm5890_vm9, nan, %v5894_v29  ;;  %v7307_v51 = vsel %vm5900_vm11, nan, %v5904_v18  ;;  %p4482_p5 = scmp.eq.s32.totalorder %s4561_s15, 1 }
 0x5ef   : > { %v7308_v19 = vsel %vm5910_vm13, nan, %v5914_v13  ;;  %v7309_v24 = vsel %vm5920_vm15, nan, %v5924_v10  ;;  %v7311_v29 = vsel %vm5940_vm4, nan, %v5944_v38  ;;  %v7312_v17 = vsel %vm5950_vm8, nan, %v5954_v33  ;;  %s4531_s26 = smov [#allocation3]  }
 0x5f0   : > { %v4446_v23 = vpack.c.bf16 %v7308_v19, %v7307_v51  ;;  %v4448_v18 = vpack.c.bf16 %v7312_v17, %v7311_v29  ;;  %v7313_v52 = vsel %vm5960_vm12, nan, %v5964_v27  ;;  %v7314_v13 = vsel %vm5970_vm0, nan, %v5974_v21  ;;  %s4201_s27 = sshll.u32 %s4531_s26, 4  ;;  %v7359_v51 = vld [vmem:[#allocation86_spill] sm:$0xff]  ;;  %s4202_s27 = int_to_ptr.vmem [resolvable:$true] %s4201_s27 }
 0x5f1   : > { %v4449_v12 = vpack.c.bf16 %v7314_v13, %v7313_v52  ;;  %vm7315_vm3 = vnez %v7128_v9  ;;  %vm7317_vm5 = vnez %v7130_v14  ;;  %vm7321_vm9 = vnez %v7134_v54  ;;  %v7334_v54 = vld [vmem:[#allocation99_spill] sm:$0xff]  ;;  %s4494_s28 = scalar_lea.vmem %s4202_s27, 16  ;;  %s4500_s29 = scalar_lea.vmem %s4202_s27, 32 }
 0x5f2   : > { %v7316_v10 = vsel %vm7315_vm3, nan, %v5984_v50  ;;  %v7318_v4 = vsel %vm7317_vm5, nan, %v5994_v44  ;;  %v7322_v38 = vsel %vm7321_vm9, nan, %v6014_v6  ;;  %4154 = vst [vmem:[%s4574_s23 + $0x10] sm:$0xff] %v4446_v23  ;;  %vm7323_vm11 = vnez %v7136_v61  ;;  %v7332_v61 = vld [vmem:[#allocation98_spill] sm:$0xff]  ;;  %v7342_v6 = vld [vmem:[#allocation103_spill] sm:$0xff]  ;;  %p4495_p6 = scmp.ne.s32.totalorder %s4202_s27, %s4494_s28  ;;  %p4501_p9 = scmp.lt.s32.totalorder %s4202_s27, %s4202_s27 }
 0x5f3   : > { %v7324_v33 = vsel %vm7323_vm11, nan, %v6024_v16  ;;  %vm7325_vm13 = vnez %v7138_v26  ;;  %vm7327_vm15 = vnez %v7140_v31  ;;  %vm7331_vm4 = vnez %v7144_v49  ;;  %v7336_v26 = vld [vmem:[#allocation100_spill] sm:$0xff]  ;;  %v7340_v31 = vld [vmem:[#allocation102_spill] sm:$0xff]  ;;  %4156 = vst [vmem:[%s4574_s23 + $0x20] sm:$0xff] %v4448_v18  ;;  %4157 = vst [vmem:[%s4574_s23 + $0x28] sm:$0xff] %v4449_v12  ;;  %p4502_p10 = scmp.lt.s32.totalorder %s4500_s29, %s4494_s28 }
 0x5f4   : > { %v7326_v37 = vsel %vm7325_vm13, nan, %v6034_v62  ;;  %v7328_v48 = vsel %vm7327_vm15, nan, %v6044_v46  ;;  %v7333_v50 = vsel %vm7331_vm4, nan, %v7332_v61  ;;  %vm7335_vm8 = vnez %v7334_v54  ;;  %v7346_v49 = vld [vmem:[#allocation71_spill] sm:$0xff]  ;;  %v7348_v46 = vld [vmem:[#allocation72_spill] sm:$0xff]  ;;  %v7368_v18 = vld [vmem:[#allocation85_spill] sm:$0xff]  ;;  %p4496_p7 = pnand %p4495_p6, %p4482_p5 }
 0x5f5   : > { %v3931_v7 = vld [vmem:[#allocation68 + $0x6] sm:$0x3]  ;;  %v4452_v27 = vpack.c.bf16 %v7326_v37, %v7324_v33  ;;  %v7337_v14 = vsel %vm7335_vm8, nan, %v7336_v26  ;;  %vm7343_vm0 = vnez %v7342_v6  ;;  %vm7347_vm2 = vnez %v7346_v49  ;;  %v7370_v13 = vld [vmem:[#allocation87_spill] sm:$0xff]  ;;  %v7372_v12 = vld [vmem:[#allocation88_spill] sm:$0xff]  ;;  %p4503_p11 = por %p4502_p10, %p4501_p9 }
 0x5f6   : > { %v3932_v28 = vunpack.c.0.f8e4m3b11 %v3931_v7  ;;  %v7305_v7 = vsel %vm5880_vm7, nan, %v5884_v63  ;;  %v7310_v63 = vsel %vm5930_vm1, nan, %v5934_v8  ;;  %v4450_v8 = vpack.c.bf16 %v7318_v4, %v7316_v10  ;;  %v7384_v33 = vld [vmem:[#allocation92_spill] sm:$0xff]  ;;  %v7390_v61 = vld [vmem:[#allocation79_spill] sm:$0xff]  ;;  %p4497_p8 = pneg %p4496_p7 }
 0x5f7   : > { %v4447_v30 = vpack.c.bf16 %v7310_v63, %v7309_v24  ;;  %vm7319_vm7 = vnez %v7132_v58  ;;  %vm7329_vm1 = vnez %v7142_v59  ;;  %v4454_v44 = vpack.c.bf16 %v7337_v14, %v7333_v50  ;;  %v7338_v58 = vld [vmem:[#allocation101_spill] sm:$0xff]  ;;  %v7344_v59 = vld [vmem:[#allocation70_spill] sm:$0xff]  ;;  %4160 = vst [vmem:[%s4574_s23 + $0x40] sm:$0xff] %v4452_v27  ;;  %v7394_v26 = vld [vmem:[#allocation96_spill] sm:$0xff] }
 0x5f8   : > { %v3936_v57 = vand.u32 2147483647, %v3932_v28  ;;  %vm3938_vm10 = vcmp.ne.f32.partialorder %v3932_v28, %v3932_v28  ;;  %v3939_v40 = vmul.f32 16.0, %v3932_v28  ;;  %v4444_v28 = vpack.c.bf16 %v7304_v47, %v7303_v56  ;;  %4158 = vst [vmem:[%s4574_s23 + $0x30] sm:$0xff] %v4450_v8  ;;  %v7352_v56 = vld [vmem:[#allocation74_spill] sm:$0xff]  ;;  %v7362_v24 = vld [vmem:[#allocation81_spill] sm:$0xff]  ;;  %p4504_p12 = pnand %p4503_p11, %p4497_p8 }
 0x5f9   : > { %v7320_v55 = vsel %vm7319_vm7, nan, %v6004_v20  ;;  %4155 = vst [vmem:[%s4574_s23 + $0x18] sm:$0xff] %v4447_v30  ;;  %v7330_v21 = vsel %vm7329_vm1, nan, %v6054_v1  ;;  %vm7339_vm12 = vnez %v7338_v58  ;;  %v7345_v16 = vsel %vm7343_vm0, nan, %v7344_v59  ;;  %v7365_v30 = vld [vmem:[#allocation83_spill] sm:$0xff]  ;;  %4162 = vst [vmem:[%s4574_s23 + $0x50] sm:$0xff] %v4454_v44 }
 0x5fa   : > { %vm6490_vm14 = vcmp.gt.f32.partialorder %v3936_v57, 29.0  ;;  %v6494_v35 = vsel %vm3938_vm10, -0.0, %v3939_v40  ;;  %v4445_v57 = vpack.c.bf16 %v7306_v45, %v7305_v7  ;;  %v4451_v36 = vpack.c.bf16 %v7322_v38, %v7320_v55  ;;  %4152 = vst [vmem:[%s4574_s23] sm:$0xff] %v4444_v28  ;;  %v7350_v40 = vld [vmem:[#allocation73_spill] sm:$0xff]  ;;  %v7354_v7 = vld [vmem:[#allocation82_spill] sm:$0xff]  ;;  %v7356_v45 = vld [vmem:[#allocation84_spill] sm:$0xff] }
 0x5fb   : > { %v3941_v22 = vsel %vm6490_vm14, nan, %v6494_v35  ;;  %v4453_v9 = vpack.c.bf16 %v7330_v21, %v7328_v48  ;;  %v7341_v20 = vsel %vm7339_vm12, nan, %v7340_v31  ;;  %v7349_v1 = vsel %vm7347_vm2, nan, %v7348_v46  ;;  %v7378_v8 = vld [vmem:[#allocation97_spill] sm:$0xff]  ;;  %v7386_v48 = vld [vmem:[#allocation95_spill] sm:$0xff]  ;;  %v7388_v21 = vld [vmem:[#allocation90_spill] sm:$0xff] }
 0x5fc   : > { %4153 = vst [vmem:[%s4574_s23 + $0x8] sm:$0xff] %v4445_v57  ;;  %v4455_v62 = vpack.c.bf16 %v7345_v16, %v7341_v20  ;;  %4159 = vst [vmem:[%s4574_s23 + $0x38] sm:$0xff] %v4451_v36  ;;  %vm7351_vm10 = vnez %v7350_v40  ;;  %vm7355_vm3 = vnez %v7354_v7  ;;  %vm7358_vm5 = vnez %v7171_v2  ;;  %v7380_v55 = vld [vmem:[#allocation89_spill] sm:$0xff]  ;;  %v7382_v36 = vld [vmem:[#allocation78_spill] sm:$0xff] }
 0x5fd   : > { %v7353_v47 = vsel %vm7351_vm10, nan, %v7352_v56  ;;  %v7357_v57 = vsel %vm7355_vm3, nan, %v7356_v45  ;;  %v7360_v19 = vsel %vm7358_vm5, nan, %v7359_v51  ;;  %vm7361_vm7 = vnez %v7174_v0  ;;  %4161 = vst [vmem:[%s4574_s23 + $0x48] sm:$0xff] %v4453_v9  ;;  %v7374_v0 = vld [vmem:[#allocation91_spill] sm:$0xff]  ;;  %v7392_v50 = vld [vmem:[#allocation93_spill] sm:$0xff] }
 0x5fe   : > { %v4456_v28 = vpack.c.bf16 %v7353_v47, %v7349_v1  ;;  %v4457_v23 = vpack.c.bf16 %v7360_v19, %v7357_v57  ;;  %v7363_v63 = vsel %vm7361_vm7, nan, %v7362_v24  ;;  %vm7364_vm9 = vnez %v7177_v41  ;;  %4163 = vst [vmem:[%s4574_s23 + $0x58] sm:$0xff] %v4455_v62  ;;  %v7376_v41 = vld [vmem:[#allocation94_spill] sm:$0xff]  ;;  %v7396_v14 = vld [vmem:[#allocation75_spill] sm:$0xff]  ;;  %v7398_v31 = vld [vmem:[#allocation76_spill] sm:$0xff] }
 0x5ff   : > { %v7366_v29 = vsel %vm7364_vm9, nan, %v7365_v30  ;;  %vm7367_vm11 = vnez %v7180_v32  ;;  %vm7371_vm13 = vnez %v7370_v13  ;;  %vm7375_vm15 = vnez %v7374_v0  ;;  %v7400_v20 = vld [vmem:[#allocation77_spill] sm:$0xff]  ;;  %v7402_v59 = vld [vmem:[#allocation80_spill] sm:$0xff] }
 0x600   : > { %v4458_v17 = vpack.c.bf16 %v7366_v29, %v7363_v63  ;;  %v7369_v52 = vsel %vm7367_vm11, nan, %v7368_v18  ;;  %v7373_v2 = vsel %vm7371_vm13, nan, %v7372_v12  ;;  %v7377_v4 = vsel %vm7375_vm15, nan, %v7376_v41  ;;  %v7404_v16 = vld [vmem:[#allocation104_spill] sm:$0xff] }
 0x601   : > { %v4459_v10 = vpack.c.bf16 %v7373_v2, %v7369_v52  ;;  %vm7379_vm1 = vnez %v7378_v8  ;;  %vm7383_vm4 = vnez %v7382_v36  ;;  %vm7387_vm8 = vnez %v7386_v48 }
 0x602   : > { %v7381_v32 = vsel %vm7379_vm1, nan, %v7380_v55  ;;  %v7385_v37 = vsel %vm7383_vm4, nan, %v7384_v33  ;;  %v7389_v27 = vsel %vm7387_vm8, nan, %v7388_v21  ;;  %vm7391_vm12 = vnez %v7390_v61 }
 0x603   : > { %v4460_v38 = vpack.c.bf16 %v7381_v32, %v7377_v4  ;;  %v4461_v9 = vpack.c.bf16 %v7389_v27, %v7385_v37  ;;  %v7393_v54 = vsel %vm7391_vm12, nan, %v7392_v50  ;;  %vm7395_vm0 = vnez %v7394_v26 }
 0x604   : > { %v7397_v44 = vsel %vm7395_vm0, nan, %v7396_v14  ;;  %vm7399_vm2 = vnez %v7398_v31  ;;  %vm7403_vm10 = vnez %v7402_v59 }
 0x605   : > { %v4462_v58 = vpack.c.bf16 %v7397_v44, %v7393_v54  ;;  %v7401_v6 = vsel %vm7399_vm2, nan, %v7400_v20  ;;  %v7405_v62 = vsel %vm7403_vm10, nan, %v7404_v16 }
 0x606   : > { %v4463_v49 = vpack.c.bf16 %v7405_v62, %v7401_v6 }
 0x607   : > { %4507 = shalt.err (!%p4504_p12)
}
 0x608   : > { %4479 = dma.vmem_to_hbm [thread:$0]  (%p4482_p5), %s4202_s27, 16, %s6805_s3, [#allocation4]   ;;  %4164 = vst [vmem:[%s4574_s23 + $0x60] sm:$0xff] %v4456_v28  ;;  %4165 = vst [vmem:[%s4574_s23 + $0x68] sm:$0xff] %v4457_v23  ;;  %v7406_v46 = vld [vmem:[#allocation105_spill] sm:$0xff]  ;;  %v7408_v1 = vld [vmem:[#allocation106_spill] sm:$0xff]  ;;  %vm7418_vm9 = vnez %v7231_v5  ;;  %vm7421_vm11 = vnez %v7234_v60  ;;  %vm7424_vm13 = vnez %v7237_v25  ;;  %vm7427_vm15 = vnez %v7240_v34 }
 0x609   : > { %4166 = vst [vmem:[%s4574_s23 + $0x70] sm:$0xff] %v4458_v17  ;;  %4167 = vst [vmem:[%s4574_s23 + $0x78] sm:$0xff] %v4459_v10  ;;  %vm7407_vm3 = vnez %v7406_v46  ;;  %v7410_v56 = vld [vmem:[#allocation107_spill] sm:$0xff]  ;;  %v7412_v47 = vld [vmem:[#allocation108_spill] sm:$0xff] }
 0x60a   : > { %v7409_v40 = vsel %vm7407_vm3, nan, %v7408_v1  ;;  %vm7411_vm5 = vnez %v7410_v56  ;;  %v7414_v57 = vld [vmem:[#allocation109_spill] sm:$0xff]  ;;  %v7416_v51 = vld [vmem:[#allocation110_spill] sm:$0xff]  ;;  %v7419_v19 = vld [vmem:[#allocation111_spill] sm:$0xff]  ;;  %4168 = vst [vmem:[%s4574_s23 + $0x80] sm:$0xff] %v4460_v38 }
 0x60b   : > { %v7413_v7 = vsel %vm7411_vm5, nan, %v7412_v47  ;;  %vm7415_vm7 = vnez %v7414_v57  ;;  %v7420_v23 = vsel %vm7418_vm9, nan, %v7419_v19  ;;  %v7422_v63 = vld [vmem:[#allocation112_spill] sm:$0xff]  ;;  %v7425_v29 = vld [vmem:[#allocation113_spill] sm:$0xff]  ;;  %v7428_v52 = vld [vmem:[#allocation114_spill] sm:$0xff]  ;;  %4169 = vst [vmem:[%s4574_s23 + $0x88] sm:$0xff] %v4461_v9 }
 0x60c   : > { %v4464_v45 = vpack.c.bf16 %v7413_v7, %v7409_v40  ;;  %v7417_v28 = vsel %vm7415_vm7, nan, %v7416_v51  ;;  %v7423_v30 = vsel %vm7421_vm11, nan, %v7422_v63  ;;  %v7426_v17 = vsel %vm7424_vm13, nan, %v7425_v29  ;;  %v7430_v12 = vld [vmem:[#allocation115_spill] sm:$0xff]  ;;  %v7432_v2 = vld [vmem:[#allocation116_spill] sm:$0xff]  ;;  %4170 = vst [vmem:[%s4574_s23 + $0x90] sm:$0xff] %v4462_v58 }
 0x60d   : > { %v4465_v24 = vpack.c.bf16 %v7420_v23, %v7417_v28  ;;  %v4466_v18 = vpack.c.bf16 %v7426_v17, %v7423_v30  ;;  %v7429_v13 = vsel %vm7427_vm15, nan, %v7428_v52  ;;  %vm7431_vm1 = vnez %v7430_v12  ;;  %4171 = vst [vmem:[%s4574_s23 + $0x98] sm:$0xff] %v4463_v49  ;;  %v7434_v60 = vld [vmem:[#allocation117_spill] sm:$0xff]  ;;  %v7436_v25 = vld [vmem:[#allocation118_spill] sm:$0xff]  ;;  %v7438_v41 = vld [vmem:[#allocation119_spill] sm:$0xff] }
 0x60e   : > { %v7433_v5 = vsel %vm7431_vm1, nan, %v7432_v2  ;;  %vm7435_vm4 = vnez %v7434_v60  ;;  %vm7439_vm8 = vnez %v7438_v41  ;;  %v7440_v34 = vld [vmem:[#allocation120_spill] sm:$0xff]  ;;  %v7442_v55 = vld [vmem:[#allocation121_spill] sm:$0xff]  ;;  %v7444_v32 = vld [vmem:[#allocation122_spill] sm:$0xff]  ;;  %4172 = vst [vmem:[%s4574_s23 + $0xa0] sm:$0xff] %v4464_v45  ;;  %vm7478_vm13 = vnez %v7291_v11 }
 0x60f   : > { %v4467_v10 = vpack.c.bf16 %v7433_v5, %v7429_v13  ;;  %v7437_v0 = vsel %vm7435_vm4, nan, %v7436_v25  ;;  %v7441_v4 = vsel %vm7439_vm8, nan, %v7440_v34  ;;  %vm7443_vm12 = vnez %v7442_v55  ;;  %v7446_v36 = vld [vmem:[#allocation123_spill] sm:$0xff]  ;;  %v7448_v33 = vld [vmem:[#allocation124_spill] sm:$0xff]  ;;  %v7450_v21 = vld [vmem:[#allocation125_spill] sm:$0xff]  ;;  %4173 = vst [vmem:[%s4574_s23 + $0xa8] sm:$0xff] %v4465_v24 }
 0x610   : > { %v4468_v8 = vpack.c.bf16 %v7441_v4, %v7437_v0  ;;  %v7445_v38 = vsel %vm7443_vm12, nan, %v7444_v32  ;;  %vm7447_vm0 = vnez %v7446_v36  ;;  %vm7451_vm2 = vnez %v7450_v21  ;;  %v7452_v27 = vld [vmem:[#allocation126_spill] sm:$0xff]  ;;  %v7454_v61 = vld [vmem:[#allocation127_spill] sm:$0xff]  ;;  %v7456_v50 = vld [vmem:[#allocation128_spill] sm:$0xff]  ;;  %4174 = vst [vmem:[%s4574_s23 + $0xb0] sm:$0xff] %v4466_v18 }
 0x611   : > { %v7449_v37 = vsel %vm7447_vm0, nan, %v7448_v33  ;;  %v7453_v9 = vsel %vm7451_vm2, nan, %v7452_v27  ;;  %vm7455_vm10 = vnez %v7454_v61  ;;  %v7458_v14 = vld [vmem:[#allocation129_spill] sm:$0xff]  ;;  %v7460_v44 = vld [vmem:[#allocation130_spill] sm:$0xff]  ;;  %v7462_v31 = vld [vmem:[#allocation131_spill] sm:$0xff]  ;;  %4175 = vst [vmem:[%s4574_s23 + $0xb8] sm:$0xff] %v4467_v10  ;;  %vm7481_vm15 = vnez %v7294_v3 }
 0x612   : > { %v4469_v48 = vpack.c.bf16 %v7449_v37, %v7445_v38  ;;  %v7457_v54 = vsel %vm7455_vm10, nan, %v7456_v50  ;;  %vm7459_vm3 = vnez %v7458_v14  ;;  %vm7463_vm5 = vnez %v7462_v31  ;;  %v7464_v20 = vld [vmem:[#allocation132_spill] sm:$0xff]  ;;  %v7466_v16 = vld [vmem:[#allocation133_spill] sm:$0xff]  ;;  %v7468_v62 = vld [vmem:[#allocation134_spill] sm:$0xff]  ;;  %4176 = vst [vmem:[%s4574_s23 + $0xc0] sm:$0xff] %v4468_v8 }
 0x613   : > { %v4470_v26 = vpack.c.bf16 %v7457_v54, %v7453_v9  ;;  %v7461_v58 = vsel %vm7459_vm3, nan, %v7460_v44  ;;  %v7465_v6 = vsel %vm7463_vm5, nan, %v7464_v20  ;;  %vm7467_vm7 = vnez %v7466_v16  ;;  %v7470_v46 = vld [vmem:[#allocation135_spill] sm:$0xff]  ;;  %v7472_v1 = vld [vmem:[#allocation136_spill] sm:$0xff]  ;;  %v7474_v47 = vld [vmem:[#allocation137_spill] sm:$0xff] }
 0x614   : > { %v4471_v59 = vpack.c.bf16 %v7465_v6, %v7461_v58  ;;  %v7469_v49 = vsel %vm7467_vm7, nan, %v7468_v62  ;;  %vm7471_vm9 = vnez %v7470_v46  ;;  %vm7475_vm11 = vnez %v7474_v47  ;;  %v7476_v7 = vld [vmem:[#allocation138_spill] sm:$0xff]  ;;  %v7479_v45 = vld [vmem:[#allocation139_spill] sm:$0xff]  ;;  %v7482_v19 = vld [vmem:[#allocation140_spill] sm:$0xff]  ;;  %4177 = vst [vmem:[%s4574_s23 + $0xc8] sm:$0xff] %v4469_v48 }
 0x615   : > { %v7473_v40 = vsel %vm7471_vm9, nan, %v7472_v1  ;;  %v7477_v57 = vsel %vm7475_vm11, nan, %v7476_v7  ;;  %v7480_v51 = vsel %vm7478_vm13, nan, %v7479_v45  ;;  %v7483_v23 = vsel %vm7481_vm15, nan, %v7482_v19  ;;  %v7485_v24 = vld [vmem:[#allocation141_spill] sm:$0xff]  ;;  %4178 = vst [vmem:[%s4574_s23 + $0xd0] sm:$0xff] %v4470_v26 }
 0x616   : > { %v4472_v56 = vpack.c.bf16 %v7473_v40, %v7469_v49  ;;  %v4473_v28 = vpack.c.bf16 %v7480_v51, %v7477_v57  ;;  %vm7484_vm1 = vnez %v7297_v43  ;;  %v4475_v11 = vpack.c.bf16 %v3941_v22, %v3910_v53  ;;  %4179 = vst [vmem:[%s4574_s23 + $0xd8] sm:$0xff] %v4471_v59 }
 0x617   : > { %v7486_v63 = vsel %vm7484_vm1, nan, %v7485_v24 }
 0x618   : > { %v4474_v30 = vpack.c.bf16 %v7486_v63, %v7483_v23  ;;  %4180 = vst [vmem:[%s4574_s23 + $0xe0] sm:$0xff] %v4472_v56  ;;  %4181 = vst [vmem:[%s4574_s23 + $0xe8] sm:$0xff] %v4473_v28 }
 0x619   : > { %4183 = vst [vmem:[%s4574_s23 + $0xf8] sm:$0xff] %v4475_v11 }
 0x61a   : > { %4182 = vst [vmem:[%s4574_s23 + $0xf0] sm:$0xff] %v4474_v30 }
 0x61b   : > { %4523 = dma.done.wait (%p4482_p5), [#allocation4], 16  }
 0x61c   : > { %4525 = vsyncadd (%p4482_p5), [#allocation4], 4294967280 }
 0x61d PF: > { %s16_s14 = sadd.s32 1, %s4528_s14  }
 0x61e   : > { %p13_p13 = scmp.ge.s32.totalorder %s16_s14, 4  }
 0x620   :  { %15 = sbr.rel (!%p13_p13) target bundleno = 3 (0x3), region = 183 }
 0x625   :  { %4223 = vsyncpa [#allocation4], 1 }
 0x626   :  { %4225 = vsyncpa [#allocation4 + $0x1], 1 }

</bundles_post_ra>
